<compile_context>
chip_gen: v6e
topology: v6e:2x2x1
jax: 0.10.0
libtpu: 0.0.40
codegen_flags: <defaults>
</compile_context>

<pallas_src>
import jax
import jax.numpy as jnp
from jax.experimental import pallas as pl
from jax.experimental.pallas import tpu as pltpu

# Force full-f32 matmuls in both the XLA reference and the Pallas kernel so
# the numerical comparison below is meaningful.
jax.config.update("jax_default_matmul_precision", "highest")

SEQ = 8
BATCH = 8
HIDDEN = 128
VOCAB = 2


def lstm_seq_kernel(sel_ref, xp0_ref, xpd_ref, whh_ref, out_ref, cN_ref):
    """Single-invocation LSTM recurrence.

    sel_ref : (seq, B, 1)  f32 token value in {0., 1.}
    xp0_ref : (1, 4H)      emb[0] @ W_ih^T + b_ih + b_hh
    xpd_ref : (1, 4H)      (emb[1] - emb[0]) @ W_ih^T
    whh_ref : (H, 4H)      W_hh^T
    out_ref : (seq, B, H)  hidden state per step
    cN_ref  : (B, H)       final cell state
    """
    seq = sel_ref.shape[0]
    H = out_ref.shape[2]

    h = None
    c = None
    for t in range(seq):  # fully unrolled; seq == 8, static indices.
        # x_t @ W_ih^T + (b_ih + b_hh), reconstructed from the vocab=2 table
        # with one per-row FMA (VPU), no HBM-side gather needed.
        gates = xp0_ref[...] + sel_ref[t] * xpd_ref[...]            # (B, 4H)
        if t > 0:
            # Recurrent matmul: RHS read straight from VMEM (not hoisted into
            # a value -> no forced vreg spills on the serial path).
            gates = gates + jnp.dot(h, whh_ref[...],
                                    preferred_element_type=jnp.float32)

        # PyTorch gate order: input, forget, cell (g), output.
        i_g = jax.nn.sigmoid(gates[:, 0 * H:1 * H])
        g_g = jnp.tanh(gates[:, 2 * H:3 * H])
        o_g = jax.nn.sigmoid(gates[:, 3 * H:4 * H])

        if t == 0:
            c = i_g * g_g                       # c_prev == 0
        else:
            f_g = jax.nn.sigmoid(gates[:, 1 * H:2 * H])
            c = f_g * c + i_g * g_g
        h = o_g * jnp.tanh(c)
        out_ref[t] = h                          # (B, H) lane-dense store

    cN_ref[...] = c


def lstm_palindrome_forward(tokens, params):
    """tokens: (seq, batch) int32. Returns (logits, (h_n, c_n), lstm_out)."""
    emb_table = params["embedding"]        # (V, H)
    w_ih = params["w_ih"]                  # (4H, H)
    w_hh = params["w_hh"]                  # (4H, H)
    b = params["b_ih"] + params["b_hh"]    # (4H,)
    w_out = params["w_out"]                # (V, H)
    b_out = params["b_out"]                # (V,)

    seq, batch = tokens.shape
    H = emb_table.shape[1]
    V = emb_table.shape[0]
    assert V == 2, "kernel specializes the vocab=2 embedding + input projection"

    # Glue (XLA, tiny): fold embedding lookup + input projection + both biases
    # into a (2, 4H) table; the kernel linearly interpolates the two rows with
    # the float token value (exact for tokens in {0, 1}).
    xproj_table = emb_table @ w_ih.T + b                    # (2, 4H)
    xp0 = xproj_table[0:1]                                  # (1, 4H)
    xpd = xproj_table[1:2] - xproj_table[0:1]               # (1, 4H)
    sel = tokens.astype(jnp.float32)[:, :, None]            # (seq, B, 1)
    whh_t = w_hh.T                                          # (H, 4H)

    vmem = pl.BlockSpec(memory_space=pltpu.MemorySpace.VMEM)

    out_seq, c_n = pl.pallas_call(
        lstm_seq_kernel,
        out_shape=(
            jax.ShapeDtypeStruct((seq, batch, H), jnp.float32),
            jax.ShapeDtypeStruct((batch, H), jnp.float32),
        ),
        in_specs=[vmem, vmem, vmem, vmem],
        out_specs=(vmem, vmem),
    )(sel, xp0, xpd, whh_t)

    # V=2 output projection kept out of the kernel (lane-sparse on the MXU,
    # masked partial stores); XLA fuses this tiny GEMV + bias for free.
    logits = out_seq @ w_out.T + b_out                      # (seq, B, V)
    h_n = out_seq[-1]                                       # final hidden state
    hidden = (h_n[None, :, :], c_n[None, :, :])             # (num_layers=1, B, H)
    return logits, hidden, out_seq


def reference_forward(tokens, params):
    """Pure-JAX reference for correctness checking."""
    emb = params["embedding"][tokens]              # (seq, batch, H)
    H = params["embedding"].shape[1]
    w_ih, w_hh = params["w_ih"], params["w_hh"]
    b = params["b_ih"] + params["b_hh"]

    def step(carry, x_t):
        h, c = carry
        gates = x_t @ w_ih.T + h @ w_hh.T + b
        i = jax.nn.sigmoid(gates[:, 0 * H:1 * H])
        f = jax.nn.sigmoid(gates[:, 1 * H:2 * H])
        g = jnp.tanh(gates[:, 2 * H:3 * H])
        o = jax.nn.sigmoid(gates[:, 3 * H:4 * H])
        c = f * c + i * g
        h = o * jnp.tanh(c)
        return (h, c), h

    batch = tokens.shape[1]
    h0 = jnp.zeros((batch, H), jnp.float32)
    c0 = jnp.zeros((batch, H), jnp.float32)
    (h_n, c_n), out = jax.lax.scan(step, (h0, c0), emb)
    logits = out @ params["w_out"].T + params["b_out"]
    return logits, (h_n[None], c_n[None]), out


def init_params(key, vocab=VOCAB, hidden=HIDDEN):
    ks = jax.random.split(key, 7)
    bound = 1.0 / jnp.sqrt(hidden)
    u = lambda k, shape: jax.random.uniform(k, shape, jnp.float32, -bound, bound)
    return {
        "embedding": jax.random.normal(ks[0], (vocab, hidden), jnp.float32),
        "w_ih": u(ks[1], (4 * hidden, hidden)),
        "w_hh": u(ks[2], (4 * hidden, hidden)),
        "b_ih": u(ks[3], (4 * hidden,)),
        "b_hh": u(ks[4], (4 * hidden,)),
        "w_out": u(ks[5], (vocab, hidden)),
        "b_out": u(ks[6], (vocab,)),
    }


if __name__ == "__main__":
    # TODO(synk): generate()'s autoregressive multinomial sampling loop is
    # host-side control flow and is not reproduced here (forward only).
    key = jax.random.PRNGKey(0)
    k_params, k_tokens = jax.random.split(key)
    params = init_params(k_params)
    tokens = jax.random.randint(k_tokens, (SEQ, BATCH), 0, VOCAB, jnp.int32)

    logits, (h_n, c_n), out_seq = jax.jit(lstm_palindrome_forward)(tokens, params)
    jax.block_until_ready((logits, h_n, c_n, out_seq))

    ref_logits, (ref_h, ref_c), ref_out = reference_forward(tokens, params)
    assert logits.shape == (SEQ, BATCH, VOCAB)
    assert h_n.shape == (1, BATCH, HIDDEN) and c_n.shape == (1, BATCH, HIDDEN)
    assert jnp.allclose(logits, ref_logits, atol=1e-4, rtol=1e-4)
    assert jnp.allclose(h_n, ref_h, atol=1e-4, rtol=1e-4)
    assert jnp.allclose(c_n, ref_c, atol=1e-4, rtol=1e-4)
    assert jnp.allclose(out_seq, ref_out, atol=1e-4, rtol=1e-4)

    print("KERNEL_OK")
</pallas_src>

<mosaic_0001>
module attributes {stable_mosaic.version = 11 : i64} {
  func.func @lstm_seq_kernel(%arg0: memref<8x8x1xf32, #tpu.memory_space<vmem>>, %arg1: memref<1x512xf32, #tpu.memory_space<vmem>>, %arg2: memref<1x512xf32, #tpu.memory_space<vmem>>, %arg3: memref<128x512xf32, #tpu.memory_space<vmem>>, %arg4: memref<8x8x128xf32, #tpu.memory_space<vmem>>, %arg5: memref<8x128xf32, #tpu.memory_space<vmem>>) attributes {dimension_semantics = [], scalar_prefetch = 0 : i64, scratch_operands = 0 : i64, tpu.core_type = #tpu.core_type<tc>} {
    %c0 = arith.constant 0 : index
    %c0_0 = arith.constant 0 : index
    %0 = vector.load %arg1[%c0, %c0_0] : memref<1x512xf32, #tpu.memory_space<vmem>>, vector<1x512xf32>
    %c0_1 = arith.constant 0 : index
    %c0_2 = arith.constant 0 : index
    %c0_3 = arith.constant 0 : index
    %1 = vector.load %arg0[%c0_1, %c0_2, %c0_3] : memref<8x8x1xf32, #tpu.memory_space<vmem>>, vector<1x8x1xf32>
    %2 = vector.shape_cast %1 : vector<1x8x1xf32> to vector<8x1xf32>
    %c0_4 = arith.constant 0 : index
    %c0_5 = arith.constant 0 : index
    %3 = vector.load %arg2[%c0_4, %c0_5] : memref<1x512xf32, #tpu.memory_space<vmem>>, vector<1x512xf32>
    %4 = vector.broadcast %2 : vector<8x1xf32> to vector<8x512xf32>
    %5 = vector.broadcast %3 : vector<1x512xf32> to vector<8x512xf32>
    %6 = arith.mulf %4, %5 : vector<8x512xf32>
    %7 = vector.broadcast %0 : vector<1x512xf32> to vector<8x512xf32>
    %8 = arith.addf %7, %6 : vector<8x512xf32>
    %9 = vector.extract_strided_slice %8 {offsets = [0, 0], sizes = [8, 128], strides = [1, 1]} : vector<8x512xf32> to vector<8x128xf32>
    %10 = arith.negf %9 : vector<8x128xf32>
    %11 = math.exp %10 : vector<8x128xf32>
    %cst = arith.constant 1.000000e+00 : f32
    %12 = vector.broadcast %cst : f32 to vector<8x128xf32>
    %13 = arith.addf %12, %11 : vector<8x128xf32>
    %14 = arith.divf %12, %13 : vector<8x128xf32>
    %15 = vector.extract_strided_slice %8 {offsets = [0, 256], sizes = [8, 128], strides = [1, 1]} : vector<8x512xf32> to vector<8x128xf32>
    %16 = math.tanh %15 : vector<8x128xf32>
    %17 = vector.extract_strided_slice %8 {offsets = [0, 384], sizes = [8, 128], strides = [1, 1]} : vector<8x512xf32> to vector<8x128xf32>
    %18 = arith.negf %17 : vector<8x128xf32>
    %19 = math.exp %18 : vector<8x128xf32>
    %cst_6 = arith.constant 1.000000e+00 : f32
    %20 = vector.broadcast %cst_6 : f32 to vector<8x128xf32>
    %21 = arith.addf %20, %19 : vector<8x128xf32>
    %22 = arith.divf %20, %21 : vector<8x128xf32>
    %23 = arith.mulf %14, %16 : vector<8x128xf32>
    %24 = math.tanh %23 : vector<8x128xf32>
    %25 = arith.mulf %22, %24 : vector<8x128xf32>
    %c0_7 = arith.constant 0 : index
    %c0_8 = arith.constant 0 : index
    %c0_9 = arith.constant 0 : index
    %26 = vector.load %arg4[%c0_7, %c0_8, %c0_9] : memref<8x8x128xf32, #tpu.memory_space<vmem>>, vector<1x8x128xf32>
    %27 = vector.shape_cast %26 : vector<1x8x128xf32> to vector<8x128xf32>
    %28 = vector.shape_cast %25 : vector<8x128xf32> to vector<1x8x128xf32>
    tpu.vector_store %arg4[%c0_7, %c0_8, %c0_9], %28 {strides = array<i32>} : memref<8x8x128xf32, #tpu.memory_space<vmem>>, vector<1x8x128xf32>,
    %c0_10 = arith.constant 0 : index
    %c0_11 = arith.constant 0 : index
    %29 = vector.load %arg1[%c0_10, %c0_11] : memref<1x512xf32, #tpu.memory_space<vmem>>, vector<1x512xf32>
    %c1 = arith.constant 1 : index
    %c0_12 = arith.constant 0 : index
    %c0_13 = arith.constant 0 : index
    %30 = vector.load %arg0[%c1, %c0_12, %c0_13] : memref<8x8x1xf32, #tpu.memory_space<vmem>>, vector<1x8x1xf32>
    %31 = vector.shape_cast %30 : vector<1x8x1xf32> to vector<8x1xf32>
    %c0_14 = arith.constant 0 : index
    %c0_15 = arith.constant 0 : index
    %32 = vector.load %arg2[%c0_14, %c0_15] : memref<1x512xf32, #tpu.memory_space<vmem>>, vector<1x512xf32>
    %33 = vector.broadcast %31 : vector<8x1xf32> to vector<8x512xf32>
    %34 = vector.broadcast %32 : vector<1x512xf32> to vector<8x512xf32>
    %35 = arith.mulf %33, %34 : vector<8x512xf32>
    %36 = vector.broadcast %29 : vector<1x512xf32> to vector<8x512xf32>
    %37 = arith.addf %36, %35 : vector<8x512xf32>
    %c0_16 = arith.constant 0 : index
    %c0_17 = arith.constant 0 : index
    %38 = vector.load %arg3[%c0_16, %c0_17] : memref<128x512xf32, #tpu.memory_space<vmem>>, vector<128x512xf32>
    %cst_18 = arith.constant dense<0.000000e+00> : vector<8x512xf32>
    %39 = tpu.matmul %25, %38, %cst_18 {dimension_numbers = #tpu.dot_dimension_numbers<[1], [0], [0], [1], [0, 0, 1, 1], [], []>, precision = #tpu.contract_precision<fp32>} : vector<8x128xf32>, vector<128x512xf32>, vector<8x512xf32> -> vector<8x512xf32>
    %40 = arith.addf %37, %39 : vector<8x512xf32>
    %41 = vector.extract_strided_slice %40 {offsets = [0, 0], sizes = [8, 128], strides = [1, 1]} : vector<8x512xf32> to vector<8x128xf32>
    %42 = arith.negf %41 : vector<8x128xf32>
    %43 = math.exp %42 : vector<8x128xf32>
    %cst_19 = arith.constant 1.000000e+00 : f32
    %44 = vector.broadcast %cst_19 : f32 to vector<8x128xf32>
    %45 = arith.addf %44, %43 : vector<8x128xf32>
    %46 = arith.divf %44, %45 : vector<8x128xf32>
    %47 = vector.extract_strided_slice %40 {offsets = [0, 256], sizes = [8, 128], strides = [1, 1]} : vector<8x512xf32> to vector<8x128xf32>
    %48 = math.tanh %47 : vector<8x128xf32>
    %49 = vector.extract_strided_slice %40 {offsets = [0, 384], sizes = [8, 128], strides = [1, 1]} : vector<8x512xf32> to vector<8x128xf32>
    %50 = arith.negf %49 : vector<8x128xf32>
    %51 = math.exp %50 : vector<8x128xf32>
    %cst_20 = arith.constant 1.000000e+00 : f32
    %52 = vector.broadcast %cst_20 : f32 to vector<8x128xf32>
    %53 = arith.addf %52, %51 : vector<8x128xf32>
    %54 = arith.divf %52, %53 : vector<8x128xf32>
    %55 = vector.extract_strided_slice %40 {offsets = [0, 128], sizes = [8, 128], strides = [1, 1]} : vector<8x512xf32> to vector<8x128xf32>
    %56 = arith.negf %55 : vector<8x128xf32>
    %57 = math.exp %56 : vector<8x128xf32>
    %cst_21 = arith.constant 1.000000e+00 : f32
    %58 = vector.broadcast %cst_21 : f32 to vector<8x128xf32>
    %59 = arith.addf %58, %57 : vector<8x128xf32>
    %60 = arith.divf %58, %59 : vector<8x128xf32>
    %61 = arith.mulf %60, %23 : vector<8x128xf32>
    %62 = arith.mulf %46, %48 : vector<8x128xf32>
    %63 = arith.addf %61, %62 : vector<8x128xf32>
    %64 = math.tanh %63 : vector<8x128xf32>
    %65 = arith.mulf %54, %64 : vector<8x128xf32>
    %c1_22 = arith.constant 1 : index
    %c0_23 = arith.constant 0 : index
    %c0_24 = arith.constant 0 : index
    %66 = vector.load %arg4[%c1_22, %c0_23, %c0_24] : memref<8x8x128xf32, #tpu.memory_space<vmem>>, vector<1x8x128xf32>
    %67 = vector.shape_cast %66 : vector<1x8x128xf32> to vector<8x128xf32>
    %68 = vector.shape_cast %65 : vector<8x128xf32> to vector<1x8x128xf32>
    tpu.vector_store %arg4[%c1_22, %c0_23, %c0_24], %68 {strides = array<i32>} : memref<8x8x128xf32, #tpu.memory_space<vmem>>, vector<1x8x128xf32>,
    %c0_25 = arith.constant 0 : index
    %c0_26 = arith.constant 0 : index
    %69 = vector.load %arg1[%c0_25, %c0_26] : memref<1x512xf32, #tpu.memory_space<vmem>>, vector<1x512xf32>
    %c2 = arith.constant 2 : index
    %c0_27 = arith.constant 0 : index
    %c0_28 = arith.constant 0 : index
    %70 = vector.load %arg0[%c2, %c0_27, %c0_28] : memref<8x8x1xf32, #tpu.memory_space<vmem>>, vector<1x8x1xf32>
    %71 = vector.shape_cast %70 : vector<1x8x1xf32> to vector<8x1xf32>
    %c0_29 = arith.constant 0 : index
    %c0_30 = arith.constant 0 : index
    %72 = vector.load %arg2[%c0_29, %c0_30] : memref<1x512xf32, #tpu.memory_space<vmem>>, vector<1x512xf32>
    %73 = vector.broadcast %71 : vector<8x1xf32> to vector<8x512xf32>
    %74 = vector.broadcast %72 : vector<1x512xf32> to vector<8x512xf32>
    %75 = arith.mulf %73, %74 : vector<8x512xf32>
    %76 = vector.broadcast %69 : vector<1x512xf32> to vector<8x512xf32>
    %77 = arith.addf %76, %75 : vector<8x512xf32>
    %c0_31 = arith.constant 0 : index
    %c0_32 = arith.constant 0 : index
    %78 = vector.load %arg3[%c0_31, %c0_32] : memref<128x512xf32, #tpu.memory_space<vmem>>, vector<128x512xf32>
    %cst_33 = arith.constant dense<0.000000e+00> : vector<8x512xf32>
    %79 = tpu.matmul %65, %78, %cst_33 {dimension_numbers = #tpu.dot_dimension_numbers<[1], [0], [0], [1], [0, 0, 1, 1], [], []>, precision = #tpu.contract_precision<fp32>} : vector<8x128xf32>, vector<128x512xf32>, vector<8x512xf32> -> vector<8x512xf32>
    %80 = arith.addf %77, %79 : vector<8x512xf32>
    %81 = vector.extract_strided_slice %80 {offsets = [0, 0], sizes = [8, 128], strides = [1, 1]} : vector<8x512xf32> to vector<8x128xf32>
    %82 = arith.negf %81 : vector<8x128xf32>
    %83 = math.exp %82 : vector<8x128xf32>
    %cst_34 = arith.constant 1.000000e+00 : f32
    %84 = vector.broadcast %cst_34 : f32 to vector<8x128xf32>
    %85 = arith.addf %84, %83 : vector<8x128xf32>
    %86 = arith.divf %84, %85 : vector<8x128xf32>
    %87 = vector.extract_strided_slice %80 {offsets = [0, 256], sizes = [8, 128], strides = [1, 1]} : vector<8x512xf32> to vector<8x128xf32>
    %88 = math.tanh %87 : vector<8x128xf32>
    %89 = vector.extract_strided_slice %80 {offsets = [0, 384], sizes = [8, 128], strides = [1, 1]} : vector<8x512xf32> to vector<8x128xf32>
    %90 = arith.negf %89 : vector<8x128xf32>
    %91 = math.exp %90 : vector<8x128xf32>
    %cst_35 = arith.constant 1.000000e+00 : f32
    %92 = vector.broadcast %cst_35 : f32 to vector<8x128xf32>
    %93 = arith.addf %92, %91 : vector<8x128xf32>
    %94 = arith.divf %92, %93 : vector<8x128xf32>
    %95 = vector.extract_strided_slice %80 {offsets = [0, 128], sizes = [8, 128], strides = [1, 1]} : vector<8x512xf32> to vector<8x128xf32>
    %96 = arith.negf %95 : vector<8x128xf32>
    %97 = math.exp %96 : vector<8x128xf32>
    %cst_36 = arith.constant 1.000000e+00 : f32
    %98 = vector.broadcast %cst_36 : f32 to vector<8x128xf32>
    %99 = arith.addf %98, %97 : vector<8x128xf32>
    %100 = arith.divf %98, %99 : vector<8x128xf32>
    %101 = arith.mulf %100, %63 : vector<8x128xf32>
    %102 = arith.mulf %86, %88 : vector<8x128xf32>
    %103 = arith.addf %101, %102 : vector<8x128xf32>
    %104 = math.tanh %103 : vector<8x128xf32>
    %105 = arith.mulf %94, %104 : vector<8x128xf32>
    %c2_37 = arith.constant 2 : index
    %c0_38 = arith.constant 0 : index
    %c0_39 = arith.constant 0 : index
    %106 = vector.load %arg4[%c2_37, %c0_38, %c0_39] : memref<8x8x128xf32, #tpu.memory_space<vmem>>, vector<1x8x128xf32>
    %107 = vector.shape_cast %106 : vector<1x8x128xf32> to vector<8x128xf32>
    %108 = vector.shape_cast %105 : vector<8x128xf32> to vector<1x8x128xf32>
    tpu.vector_store %arg4[%c2_37, %c0_38, %c0_39], %108 {strides = array<i32>} : memref<8x8x128xf32, #tpu.memory_space<vmem>>, vector<1x8x128xf32>,
    %c0_40 = arith.constant 0 : index
    %c0_41 = arith.constant 0 : index
    %109 = vector.load %arg1[%c0_40, %c0_41] : memref<1x512xf32, #tpu.memory_space<vmem>>, vector<1x512xf32>
    %c3 = arith.constant 3 : index
    %c0_42 = arith.constant 0 : index
    %c0_43 = arith.constant 0 : index
    %110 = vector.load %arg0[%c3, %c0_42, %c0_43] : memref<8x8x1xf32, #tpu.memory_space<vmem>>, vector<1x8x1xf32>
    %111 = vector.shape_cast %110 : vector<1x8x1xf32> to vector<8x1xf32>
    %c0_44 = arith.constant 0 : index
    %c0_45 = arith.constant 0 : index
    %112 = vector.load %arg2[%c0_44, %c0_45] : memref<1x512xf32, #tpu.memory_space<vmem>>, vector<1x512xf32>
    %113 = vector.broadcast %111 : vector<8x1xf32> to vector<8x512xf32>
    %114 = vector.broadcast %112 : vector<1x512xf32> to vector<8x512xf32>
    %115 = arith.mulf %113, %114 : vector<8x512xf32>
    %116 = vector.broadcast %109 : vector<1x512xf32> to vector<8x512xf32>
    %117 = arith.addf %116, %115 : vector<8x512xf32>
    %c0_46 = arith.constant 0 : index
    %c0_47 = arith.constant 0 : index
    %118 = vector.load %arg3[%c0_46, %c0_47] : memref<128x512xf32, #tpu.memory_space<vmem>>, vector<128x512xf32>
    %cst_48 = arith.constant dense<0.000000e+00> : vector<8x512xf32>
    %119 = tpu.matmul %105, %118, %cst_48 {dimension_numbers = #tpu.dot_dimension_numbers<[1], [0], [0], [1], [0, 0, 1, 1], [], []>, precision = #tpu.contract_precision<fp32>} : vector<8x128xf32>, vector<128x512xf32>, vector<8x512xf32> -> vector<8x512xf32>
    %120 = arith.addf %117, %119 : vector<8x512xf32>
    %121 = vector.extract_strided_slice %120 {offsets = [0, 0], sizes = [8, 128], strides = [1, 1]} : vector<8x512xf32> to vector<8x128xf32>
    %122 = arith.negf %121 : vector<8x128xf32>
    %123 = math.exp %122 : vector<8x128xf32>
    %cst_49 = arith.constant 1.000000e+00 : f32
    %124 = vector.broadcast %cst_49 : f32 to vector<8x128xf32>
    %125 = arith.addf %124, %123 : vector<8x128xf32>
    %126 = arith.divf %124, %125 : vector<8x128xf32>
    %127 = vector.extract_strided_slice %120 {offsets = [0, 256], sizes = [8, 128], strides = [1, 1]} : vector<8x512xf32> to vector<8x128xf32>
    %128 = math.tanh %127 : vector<8x128xf32>
    %129 = vector.extract_strided_slice %120 {offsets = [0, 384], sizes = [8, 128], strides = [1, 1]} : vector<8x512xf32> to vector<8x128xf32>
    %130 = arith.negf %129 : vector<8x128xf32>
    %131 = math.exp %130 : vector<8x128xf32>
    %cst_50 = arith.constant 1.000000e+00 : f32
    %132 = vector.broadcast %cst_50 : f32 to vector<8x128xf32>
    %133 = arith.addf %132, %131 : vector<8x128xf32>
    %134 = arith.divf %132, %133 : vector<8x128xf32>
    %135 = vector.extract_strided_slice %120 {offsets = [0, 128], sizes = [8, 128], strides = [1, 1]} : vector<8x512xf32> to vector<8x128xf32>
    %136 = arith.negf %135 : vector<8x128xf32>
    %137 = math.exp %136 : vector<8x128xf32>
    %cst_51 = arith.constant 1.000000e+00 : f32
    %138 = vector.broadcast %cst_51 : f32 to vector<8x128xf32>
    %139 = arith.addf %138, %137 : vector<8x128xf32>
    %140 = arith.divf %138, %139 : vector<8x128xf32>
    %141 = arith.mulf %140, %103 : vector<8x128xf32>
    %142 = arith.mulf %126, %128 : vector<8x128xf32>
    %143 = arith.addf %141, %142 : vector<8x128xf32>
    %144 = math.tanh %143 : vector<8x128xf32>
    %145 = arith.mulf %134, %144 : vector<8x128xf32>
    %c3_52 = arith.constant 3 : index
    %c0_53 = arith.constant 0 : index
    %c0_54 = arith.constant 0 : index
    %146 = vector.load %arg4[%c3_52, %c0_53, %c0_54] : memref<8x8x128xf32, #tpu.memory_space<vmem>>, vector<1x8x128xf32>
    %147 = vector.shape_cast %146 : vector<1x8x128xf32> to vector<8x128xf32>
    %148 = vector.shape_cast %145 : vector<8x128xf32> to vector<1x8x128xf32>
    tpu.vector_store %arg4[%c3_52, %c0_53, %c0_54], %148 {strides = array<i32>} : memref<8x8x128xf32, #tpu.memory_space<vmem>>, vector<1x8x128xf32>,
    %c0_55 = arith.constant 0 : index
    %c0_56 = arith.constant 0 : index
    %149 = vector.load %arg1[%c0_55, %c0_56] : memref<1x512xf32, #tpu.memory_space<vmem>>, vector<1x512xf32>
    %c4 = arith.constant 4 : index
    %c0_57 = arith.constant 0 : index
    %c0_58 = arith.constant 0 : index
    %150 = vector.load %arg0[%c4, %c0_57, %c0_58] : memref<8x8x1xf32, #tpu.memory_space<vmem>>, vector<1x8x1xf32>
    %151 = vector.shape_cast %150 : vector<1x8x1xf32> to vector<8x1xf32>
    %c0_59 = arith.constant 0 : index
    %c0_60 = arith.constant 0 : index
    %152 = vector.load %arg2[%c0_59, %c0_60] : memref<1x512xf32, #tpu.memory_space<vmem>>, vector<1x512xf32>
    %153 = vector.broadcast %151 : vector<8x1xf32> to vector<8x512xf32>
    %154 = vector.broadcast %152 : vector<1x512xf32> to vector<8x512xf32>
    %155 = arith.mulf %153, %154 : vector<8x512xf32>
    %156 = vector.broadcast %149 : vector<1x512xf32> to vector<8x512xf32>
    %157 = arith.addf %156, %155 : vector<8x512xf32>
    %c0_61 = arith.constant 0 : index
    %c0_62 = arith.constant 0 : index
    %158 = vector.load %arg3[%c0_61, %c0_62] : memref<128x512xf32, #tpu.memory_space<vmem>>, vector<128x512xf32>
    %cst_63 = arith.constant dense<0.000000e+00> : vector<8x512xf32>
    %159 = tpu.matmul %145, %158, %cst_63 {dimension_numbers = #tpu.dot_dimension_numbers<[1], [0], [0], [1], [0, 0, 1, 1], [], []>, precision = #tpu.contract_precision<fp32>} : vector<8x128xf32>, vector<128x512xf32>, vector<8x512xf32> -> vector<8x512xf32>
    %160 = arith.addf %157, %159 : vector<8x512xf32>
    %161 = vector.extract_strided_slice %160 {offsets = [0, 0], sizes = [8, 128], strides = [1, 1]} : vector<8x512xf32> to vector<8x128xf32>
    %162 = arith.negf %161 : vector<8x128xf32>
    %163 = math.exp %162 : vector<8x128xf32>
    %cst_64 = arith.constant 1.000000e+00 : f32
    %164 = vector.broadcast %cst_64 : f32 to vector<8x128xf32>
    %165 = arith.addf %164, %163 : vector<8x128xf32>
    %166 = arith.divf %164, %165 : vector<8x128xf32>
    %167 = vector.extract_strided_slice %160 {offsets = [0, 256], sizes = [8, 128], strides = [1, 1]} : vector<8x512xf32> to vector<8x128xf32>
    %168 = math.tanh %167 : vector<8x128xf32>
    %169 = vector.extract_strided_slice %160 {offsets = [0, 384], sizes = [8, 128], strides = [1, 1]} : vector<8x512xf32> to vector<8x128xf32>
    %170 = arith.negf %169 : vector<8x128xf32>
    %171 = math.exp %170 : vector<8x128xf32>
    %cst_65 = arith.constant 1.000000e+00 : f32
    %172 = vector.broadcast %cst_65 : f32 to vector<8x128xf32>
    %173 = arith.addf %172, %171 : vector<8x128xf32>
    %174 = arith.divf %172, %173 : vector<8x128xf32>
    %175 = vector.extract_strided_slice %160 {offsets = [0, 128], sizes = [8, 128], strides = [1, 1]} : vector<8x512xf32> to vector<8x128xf32>
    %176 = arith.negf %175 : vector<8x128xf32>
    %177 = math.exp %176 : vector<8x128xf32>
    %cst_66 = arith.constant 1.000000e+00 : f32
    %178 = vector.broadcast %cst_66 : f32 to vector<8x128xf32>
    %179 = arith.addf %178, %177 : vector<8x128xf32>
    %180 = arith.divf %178, %179 : vector<8x128xf32>
    %181 = arith.mulf %180, %143 : vector<8x128xf32>
    %182 = arith.mulf %166, %168 : vector<8x128xf32>
    %183 = arith.addf %181, %182 : vector<8x128xf32>
    %184 = math.tanh %183 : vector<8x128xf32>
    %185 = arith.mulf %174, %184 : vector<8x128xf32>
    %c4_67 = arith.constant 4 : index
    %c0_68 = arith.constant 0 : index
    %c0_69 = arith.constant 0 : index
    %186 = vector.load %arg4[%c4_67, %c0_68, %c0_69] : memref<8x8x128xf32, #tpu.memory_space<vmem>>, vector<1x8x128xf32>
    %187 = vector.shape_cast %186 : vector<1x8x128xf32> to vector<8x128xf32>
    %188 = vector.shape_cast %185 : vector<8x128xf32> to vector<1x8x128xf32>
    tpu.vector_store %arg4[%c4_67, %c0_68, %c0_69], %188 {strides = array<i32>} : memref<8x8x128xf32, #tpu.memory_space<vmem>>, vector<1x8x128xf32>,
    %c0_70 = arith.constant 0 : index
    %c0_71 = arith.constant 0 : index
    %189 = vector.load %arg1[%c0_70, %c0_71] : memref<1x512xf32, #tpu.memory_space<vmem>>, vector<1x512xf32>
    %c5 = arith.constant 5 : index
    %c0_72 = arith.constant 0 : index
    %c0_73 = arith.constant 0 : index
    %190 = vector.load %arg0[%c5, %c0_72, %c0_73] : memref<8x8x1xf32, #tpu.memory_space<vmem>>, vector<1x8x1xf32>
    %191 = vector.shape_cast %190 : vector<1x8x1xf32> to vector<8x1xf32>
    %c0_74 = arith.constant 0 : index
    %c0_75 = arith.constant 0 : index
    %192 = vector.load %arg2[%c0_74, %c0_75] : memref<1x512xf32, #tpu.memory_space<vmem>>, vector<1x512xf32>
    %193 = vector.broadcast %191 : vector<8x1xf32> to vector<8x512xf32>
    %194 = vector.broadcast %192 : vector<1x512xf32> to vector<8x512xf32>
    %195 = arith.mulf %193, %194 : vector<8x512xf32>
    %196 = vector.broadcast %189 : vector<1x512xf32> to vector<8x512xf32>
    %197 = arith.addf %196, %195 : vector<8x512xf32>
    %c0_76 = arith.constant 0 : index
    %c0_77 = arith.constant 0 : index
    %198 = vector.load %arg3[%c0_76, %c0_77] : memref<128x512xf32, #tpu.memory_space<vmem>>, vector<128x512xf32>
    %cst_78 = arith.constant dense<0.000000e+00> : vector<8x512xf32>
    %199 = tpu.matmul %185, %198, %cst_78 {dimension_numbers = #tpu.dot_dimension_numbers<[1], [0], [0], [1], [0, 0, 1, 1], [], []>, precision = #tpu.contract_precision<fp32>} : vector<8x128xf32>, vector<128x512xf32>, vector<8x512xf32> -> vector<8x512xf32>
    %200 = arith.addf %197, %199 : vector<8x512xf32>
    %201 = vector.extract_strided_slice %200 {offsets = [0, 0], sizes = [8, 128], strides = [1, 1]} : vector<8x512xf32> to vector<8x128xf32>
    %202 = arith.negf %201 : vector<8x128xf32>
    %203 = math.exp %202 : vector<8x128xf32>
    %cst_79 = arith.constant 1.000000e+00 : f32
    %204 = vector.broadcast %cst_79 : f32 to vector<8x128xf32>
    %205 = arith.addf %204, %203 : vector<8x128xf32>
    %206 = arith.divf %204, %205 : vector<8x128xf32>
    %207 = vector.extract_strided_slice %200 {offsets = [0, 256], sizes = [8, 128], strides = [1, 1]} : vector<8x512xf32> to vector<8x128xf32>
    %208 = math.tanh %207 : vector<8x128xf32>
    %209 = vector.extract_strided_slice %200 {offsets = [0, 384], sizes = [8, 128], strides = [1, 1]} : vector<8x512xf32> to vector<8x128xf32>
    %210 = arith.negf %209 : vector<8x128xf32>
    %211 = math.exp %210 : vector<8x128xf32>
    %cst_80 = arith.constant 1.000000e+00 : f32
    %212 = vector.broadcast %cst_80 : f32 to vector<8x128xf32>
    %213 = arith.addf %212, %211 : vector<8x128xf32>
    %214 = arith.divf %212, %213 : vector<8x128xf32>
    %215 = vector.extract_strided_slice %200 {offsets = [0, 128], sizes = [8, 128], strides = [1, 1]} : vector<8x512xf32> to vector<8x128xf32>
    %216 = arith.negf %215 : vector<8x128xf32>
    %217 = math.exp %216 : vector<8x128xf32>
    %cst_81 = arith.constant 1.000000e+00 : f32
    %218 = vector.broadcast %cst_81 : f32 to vector<8x128xf32>
    %219 = arith.addf %218, %217 : vector<8x128xf32>
    %220 = arith.divf %218, %219 : vector<8x128xf32>
    %221 = arith.mulf %220, %183 : vector<8x128xf32>
    %222 = arith.mulf %206, %208 : vector<8x128xf32>
    %223 = arith.addf %221, %222 : vector<8x128xf32>
    %224 = math.tanh %223 : vector<8x128xf32>
    %225 = arith.mulf %214, %224 : vector<8x128xf32>
    %c5_82 = arith.constant 5 : index
    %c0_83 = arith.constant 0 : index
    %c0_84 = arith.constant 0 : index
    %226 = vector.load %arg4[%c5_82, %c0_83, %c0_84] : memref<8x8x128xf32, #tpu.memory_space<vmem>>, vector<1x8x128xf32>
    %227 = vector.shape_cast %226 : vector<1x8x128xf32> to vector<8x128xf32>
    %228 = vector.shape_cast %225 : vector<8x128xf32> to vector<1x8x128xf32>
    tpu.vector_store %arg4[%c5_82, %c0_83, %c0_84], %228 {strides = array<i32>} : memref<8x8x128xf32, #tpu.memory_space<vmem>>, vector<1x8x128xf32>,
    %c0_85 = arith.constant 0 : index
    %c0_86 = arith.constant 0 : index
    %229 = vector.load %arg1[%c0_85, %c0_86] : memref<1x512xf32, #tpu.memory_space<vmem>>, vector<1x512xf32>
    %c6 = arith.constant 6 : index
    %c0_87 = arith.constant 0 : index
    %c0_88 = arith.constant 0 : index
    %230 = vector.load %arg0[%c6, %c0_87, %c0_88] : memref<8x8x1xf32, #tpu.memory_space<vmem>>, vector<1x8x1xf32>
    %231 = vector.shape_cast %230 : vector<1x8x1xf32> to vector<8x1xf32>
    %c0_89 = arith.constant 0 : index
    %c0_90 = arith.constant 0 : index
    %232 = vector.load %arg2[%c0_89, %c0_90] : memref<1x512xf32, #tpu.memory_space<vmem>>, vector<1x512xf32>
    %233 = vector.broadcast %231 : vector<8x1xf32> to vector<8x512xf32>
    %234 = vector.broadcast %232 : vector<1x512xf32> to vector<8x512xf32>
    %235 = arith.mulf %233, %234 : vector<8x512xf32>
    %236 = vector.broadcast %229 : vector<1x512xf32> to vector<8x512xf32>
    %237 = arith.addf %236, %235 : vector<8x512xf32>
    %c0_91 = arith.constant 0 : index
    %c0_92 = arith.constant 0 : index
    %238 = vector.load %arg3[%c0_91, %c0_92] : memref<128x512xf32, #tpu.memory_space<vmem>>, vector<128x512xf32>
    %cst_93 = arith.constant dense<0.000000e+00> : vector<8x512xf32>
    %239 = tpu.matmul %225, %238, %cst_93 {dimension_numbers = #tpu.dot_dimension_numbers<[1], [0], [0], [1], [0, 0, 1, 1], [], []>, precision = #tpu.contract_precision<fp32>} : vector<8x128xf32>, vector<128x512xf32>, vector<8x512xf32> -> vector<8x512xf32>
    %240 = arith.addf %237, %239 : vector<8x512xf32>
    %241 = vector.extract_strided_slice %240 {offsets = [0, 0], sizes = [8, 128], strides = [1, 1]} : vector<8x512xf32> to vector<8x128xf32>
    %242 = arith.negf %241 : vector<8x128xf32>
    %243 = math.exp %242 : vector<8x128xf32>
    %cst_94 = arith.constant 1.000000e+00 : f32
    %244 = vector.broadcast %cst_94 : f32 to vector<8x128xf32>
    %245 = arith.addf %244, %243 : vector<8x128xf32>
    %246 = arith.divf %244, %245 : vector<8x128xf32>
    %247 = vector.extract_strided_slice %240 {offsets = [0, 256], sizes = [8, 128], strides = [1, 1]} : vector<8x512xf32> to vector<8x128xf32>
    %248 = math.tanh %247 : vector<8x128xf32>
    %249 = vector.extract_strided_slice %240 {offsets = [0, 384], sizes = [8, 128], strides = [1, 1]} : vector<8x512xf32> to vector<8x128xf32>
    %250 = arith.negf %249 : vector<8x128xf32>
    %251 = math.exp %250 : vector<8x128xf32>
    %cst_95 = arith.constant 1.000000e+00 : f32
    %252 = vector.broadcast %cst_95 : f32 to vector<8x128xf32>
    %253 = arith.addf %252, %251 : vector<8x128xf32>
    %254 = arith.divf %252, %253 : vector<8x128xf32>
    %255 = vector.extract_strided_slice %240 {offsets = [0, 128], sizes = [8, 128], strides = [1, 1]} : vector<8x512xf32> to vector<8x128xf32>
    %256 = arith.negf %255 : vector<8x128xf32>
    %257 = math.exp %256 : vector<8x128xf32>
    %cst_96 = arith.constant 1.000000e+00 : f32
    %258 = vector.broadcast %cst_96 : f32 to vector<8x128xf32>
    %259 = arith.addf %258, %257 : vector<8x128xf32>
    %260 = arith.divf %258, %259 : vector<8x128xf32>
    %261 = arith.mulf %260, %223 : vector<8x128xf32>
    %262 = arith.mulf %246, %248 : vector<8x128xf32>
    %263 = arith.addf %261, %262 : vector<8x128xf32>
    %264 = math.tanh %263 : vector<8x128xf32>
    %265 = arith.mulf %254, %264 : vector<8x128xf32>
    %c6_97 = arith.constant 6 : index
    %c0_98 = arith.constant 0 : index
    %c0_99 = arith.constant 0 : index
    %266 = vector.load %arg4[%c6_97, %c0_98, %c0_99] : memref<8x8x128xf32, #tpu.memory_space<vmem>>, vector<1x8x128xf32>
    %267 = vector.shape_cast %266 : vector<1x8x128xf32> to vector<8x128xf32>
    %268 = vector.shape_cast %265 : vector<8x128xf32> to vector<1x8x128xf32>
    tpu.vector_store %arg4[%c6_97, %c0_98, %c0_99], %268 {strides = array<i32>} : memref<8x8x128xf32, #tpu.memory_space<vmem>>, vector<1x8x128xf32>,
    %c0_100 = arith.constant 0 : index
    %c0_101 = arith.constant 0 : index
    %269 = vector.load %arg1[%c0_100, %c0_101] : memref<1x512xf32, #tpu.memory_space<vmem>>, vector<1x512xf32>
    %c7 = arith.constant 7 : index
    %c0_102 = arith.constant 0 : index
    %c0_103 = arith.constant 0 : index
    %270 = vector.load %arg0[%c7, %c0_102, %c0_103] : memref<8x8x1xf32, #tpu.memory_space<vmem>>, vector<1x8x1xf32>
    %271 = vector.shape_cast %270 : vector<1x8x1xf32> to vector<8x1xf32>
    %c0_104 = arith.constant 0 : index
    %c0_105 = arith.constant 0 : index
    %272 = vector.load %arg2[%c0_104, %c0_105] : memref<1x512xf32, #tpu.memory_space<vmem>>, vector<1x512xf32>
    %273 = vector.broadcast %271 : vector<8x1xf32> to vector<8x512xf32>
    %274 = vector.broadcast %272 : vector<1x512xf32> to vector<8x512xf32>
    %275 = arith.mulf %273, %274 : vector<8x512xf32>
    %276 = vector.broadcast %269 : vector<1x512xf32> to vector<8x512xf32>
    %277 = arith.addf %276, %275 : vector<8x512xf32>
    %c0_106 = arith.constant 0 : index
    %c0_107 = arith.constant 0 : index
    %278 = vector.load %arg3[%c0_106, %c0_107] : memref<128x512xf32, #tpu.memory_space<vmem>>, vector<128x512xf32>
    %cst_108 = arith.constant dense<0.000000e+00> : vector<8x512xf32>
    %279 = tpu.matmul %265, %278, %cst_108 {dimension_numbers = #tpu.dot_dimension_numbers<[1], [0], [0], [1], [0, 0, 1, 1], [], []>, precision = #tpu.contract_precision<fp32>} : vector<8x128xf32>, vector<128x512xf32>, vector<8x512xf32> -> vector<8x512xf32>
    %280 = arith.addf %277, %279 : vector<8x512xf32>
    %281 = vector.extract_strided_slice %280 {offsets = [0, 0], sizes = [8, 128], strides = [1, 1]} : vector<8x512xf32> to vector<8x128xf32>
    %282 = arith.negf %281 : vector<8x128xf32>
    %283 = math.exp %282 : vector<8x128xf32>
    %cst_109 = arith.constant 1.000000e+00 : f32
    %284 = vector.broadcast %cst_109 : f32 to vector<8x128xf32>
    %285 = arith.addf %284, %283 : vector<8x128xf32>
    %286 = arith.divf %284, %285 : vector<8x128xf32>
    %287 = vector.extract_strided_slice %280 {offsets = [0, 256], sizes = [8, 128], strides = [1, 1]} : vector<8x512xf32> to vector<8x128xf32>
    %288 = math.tanh %287 : vector<8x128xf32>
    %289 = vector.extract_strided_slice %280 {offsets = [0, 384], sizes = [8, 128], strides = [1, 1]} : vector<8x512xf32> to vector<8x128xf32>
    %290 = arith.negf %289 : vector<8x128xf32>
    %291 = math.exp %290 : vector<8x128xf32>
    %cst_110 = arith.constant 1.000000e+00 : f32
    %292 = vector.broadcast %cst_110 : f32 to vector<8x128xf32>
    %293 = arith.addf %292, %291 : vector<8x128xf32>
    %294 = arith.divf %292, %293 : vector<8x128xf32>
    %295 = vector.extract_strided_slice %280 {offsets = [0, 128], sizes = [8, 128], strides = [1, 1]} : vector<8x512xf32> to vector<8x128xf32>
    %296 = arith.negf %295 : vector<8x128xf32>
    %297 = math.exp %296 : vector<8x128xf32>
    %cst_111 = arith.constant 1.000000e+00 : f32
    %298 = vector.broadcast %cst_111 : f32 to vector<8x128xf32>
    %299 = arith.addf %298, %297 : vector<8x128xf32>
    %300 = arith.divf %298, %299 : vector<8x128xf32>
    %301 = arith.mulf %300, %263 : vector<8x128xf32>
    %302 = arith.mulf %286, %288 : vector<8x128xf32>
    %303 = arith.addf %301, %302 : vector<8x128xf32>
    %304 = math.tanh %303 : vector<8x128xf32>
    %305 = arith.mulf %294, %304 : vector<8x128xf32>
    %c7_112 = arith.constant 7 : index
    %c0_113 = arith.constant 0 : index
    %c0_114 = arith.constant 0 : index
    %306 = vector.load %arg4[%c7_112, %c0_113, %c0_114] : memref<8x8x128xf32, #tpu.memory_space<vmem>>, vector<1x8x128xf32>
    %307 = vector.shape_cast %306 : vector<1x8x128xf32> to vector<8x128xf32>
    %308 = vector.shape_cast %305 : vector<8x128xf32> to vector<1x8x128xf32>
    tpu.vector_store %arg4[%c7_112, %c0_113, %c0_114], %308 {strides = array<i32>} : memref<8x8x128xf32, #tpu.memory_space<vmem>>, vector<1x8x128xf32>,
    %c0_115 = arith.constant 0 : index
    %c0_116 = arith.constant 0 : index
    %309 = vector.load %arg5[%c0_115, %c0_116] : memref<8x128xf32, #tpu.memory_space<vmem>>, vector<8x128xf32>
    tpu.vector_store %arg5[%c0_115, %c0_116], %303 {strides = array<i32>} : memref<8x128xf32, #tpu.memory_space<vmem>>, vector<8x128xf32>,
    return
  }
}

</mosaic_0001>

<bundles_post_ra>
// kernel: lstm_palindrome_forward.1
= control target key start
LH: loop header
LB: loop body
LE: loop exit
PB: predicated region body
PF: predicated region fallthrough
CT: control target
= control target key end

     0   :  { %v13331_v1 = vmov 0   ;;  %s22219_s0 = inlined_call_operand.vmem [shape: f32[8,8,1], index: 0, kind: input, shape index: {}]   ;;  %s22220_s1 = inlined_call_operand.vmem [shape: f32[1,512], index: 1, kind: input, shape index: {}]   ;;  %s22221_s2 = inlined_call_operand.vmem [shape: f32[1,512], index: 2, kind: input, shape index: {}]   ;;  %s22222_s3 = inlined_call_operand.vmem [shape: f32[128,512], index: 3, kind: input, shape index: {}]   ;;  %s22223_s4 = inlined_call_operand.vmem [shape: f32[8,8,128], index: 4, kind: output, shape index: {0}]   ;;  %s22224_s5 = inlined_call_operand.hbm [shape: f32[8,128], index: 5, kind: output, shape index: {1}]  }
   0x1   :  { %v21_v0 = vld [vmem:[%s22219_s0] sm:$0xff]  ;;  %13183 = vset.pattern.permute.xlu0 %v13331_v1  ;;  %13184 = vset.pattern.permute.xlu1 %v13331_v1 }
   0x2   :  { %25 = vperm.xlu0 %13183, %v21_v0  }
   0x3   :  { %11 = vsyncpa [#allocation3], 0  ;;  %v13145_v2 = vld [vmem:[%s22219_s0 + $0x8] sm:$0xff]  ;;  %v13160_v3 = vld [vmem:[%s22219_s0 + $0x20] sm:$0xff] }
   0x4   :  { %v13170_v4 = vld [vmem:[%s22219_s0 + $0x30] sm:$0xff]  ;;  %v203_v5 = vld [vmem:[%s22222_s3 + $0x1e8] sm:$0xff]  ;;  %v202_v7 = vld [vmem:[%s22222_s3 + $0x1e0] sm:$0xff] }
   0x5   :  { %v13379_v6 = vand.u32 4294901760, %v203_v5  ;;  %v13384_v8 = vand.u32 4294901760, %v202_v7  ;;  %v199_v9 = vld [vmem:[%s22222_s3 + $0x1c8] sm:$0xff]  ;;  %v198_v12 = vld [vmem:[%s22222_s3 + $0x1c0] sm:$0xff] }
   0x6   :  { %89 = vperm.xlu0 %13183, %v13145_v2   ;;  %v13392_v11 = vand.u32 4294901760, %v199_v9  ;;  %v13401_v14 = vand.u32 4294901760, %v198_v12  ;;  %v195_v15 = vld [vmem:[%s22222_s3 + $0x1a8] sm:$0xff]  ;;  %v194_v19 = vld [vmem:[%s22222_s3 + $0x1a0] sm:$0xff] }
   0x7   :  { %23214 = vst [vmem:[#allocation5_spill] sm:$0xff] %v13379_v6  ;;  %v13390_v10 = vsub.f32 %v203_v5, %v13379_v6  ;;  %207 = vmatprep.subr.mxu0 %v13379_v6  ;;  %v13399_v13 = vsub.f32 %v202_v7, %v13384_v8  ;;  %v13411_v18 = vand.u32 4294901760, %v195_v15  ;;  %v13421_v22 = vand.u32 4294901760, %v194_v19  ;;  %v191_v23 = vld [vmem:[%s22222_s3 + $0x188] sm:$0xff]  ;;  %v190_v28 = vld [vmem:[%s22222_s3 + $0x180] sm:$0xff] }
   0x8   :  { %209 = vmatpush1.msra.mxu0 %v13384_v8  ;;  %v13409_v17 = vsub.f32 %v199_v9, %v13392_v11  ;;  %v13419_v21 = vsub.f32 %v198_v12, %v13401_v14  ;;  %v13434_v27 = vand.u32 4294901760, %v191_v23  ;;  %v13447_v32 = vand.u32 4294901760, %v190_v28  ;;  %v187_v33 = vld [vmem:[%s22222_s3 + $0x168] sm:$0xff]  ;;  %v186_v38 = vld [vmem:[%s22222_s3 + $0x160] sm:$0xff] }
   0x9   :  { %23215 = vst [vmem:[#allocation6_spill] sm:$0xff] %v13390_v10  ;;  %v22244_v16 = vand.u32 4294901760, %v13390_v10  ;;  %211 = vmatprep.subr.mxu0 %v13392_v11  ;;  %v22243_v20 = vand.u32 4294901760, %v13399_v13  ;;  %v13432_v26 = vsub.f32 %v195_v15, %v13411_v18  ;;  %v13445_v31 = vsub.f32 %v194_v19, %v13421_v22  ;;  %v183_v43 = vld [vmem:[%s22222_s3 + $0x148] sm:$0xff]  ;;  %v182_v48 = vld [vmem:[%s22222_s3 + $0x140] sm:$0xff] }
   0xa   :  { %5678 = vperm.xlu0 %13183, %v13160_v3   ;;  %213 = vmatpush1.msra.mxu0 %v13401_v14  ;;  %v22241_v25 = vand.u32 4294901760, %v13409_v17  ;;  %v22240_v30 = vand.u32 4294901760, %v13419_v21  ;;  %v13458_v37 = vsub.f32 %v191_v23, %v13434_v27  ;;  %v13469_v42 = vsub.f32 %v190_v28, %v13447_v32  ;;  %v179_v53 = vld [vmem:[%s22222_s3 + $0x128] sm:$0xff]  ;;  %v178_v58 = vld [vmem:[%s22222_s3 + $0x120] sm:$0xff] }
   0xb   :  { %v317_v24 = vsub.f32 %v13390_v10, %v22244_v16  ;;  %215 = vmatprep.subr.mxu0 %v13411_v18  ;;  %v323_v29 = vsub.f32 %v13399_v13, %v22243_v20  ;;  %v22238_v36 = vand.u32 4294901760, %v13432_v26  ;;  %v22237_v41 = vand.u32 4294901760, %v13445_v31  ;;  %v175_v63 = vld [vmem:[%s22222_s3 + $0x108] sm:$0xff] }
   0xc   :  { %217 = vmatpush1.msra.mxu0 %v13421_v22  ;;  %v329_v35 = vsub.f32 %v13409_v17, %v22241_v25  ;;  %v335_v40 = vsub.f32 %v13419_v21, %v22240_v30  ;;  %v22236_v46 = vand.u32 4294901760, %v13458_v37  ;;  %v13479_v47 = vand.u32 4294901760, %v187_v33 }
   0xd   :  { %v318_v34 = vand.u32 4294901760, %v317_v24  ;;  %219 = vmatprep.subr.mxu0 %v13434_v27  ;;  %v324_v39 = vand.u32 4294901760, %v323_v29  ;;  %v341_v45 = vsub.f32 %v13432_v26, %v22238_v36  ;;  %v347_v50 = vsub.f32 %v13445_v31, %v22237_v41 }
   0xe   :  { %9404 = vperm.xlu0 %13183, %v13170_v4   ;;  %221 = vmatpush1.msra.mxu0 %v13447_v32  ;;  %v330_v44 = vand.u32 4294901760, %v329_v35  ;;  %v336_v49 = vand.u32 4294901760, %v335_v40  ;;  %v22234_v51 = vand.u32 4294901760, %v13469_v42  ;;  %v13488_v52 = vand.u32 4294901760, %v186_v38  ;;  %v174_v4 = vld [vmem:[%s22222_s3 + $0x100] sm:$0xff]  ;;  %v171_v35 = vld [vmem:[%s22222_s3 + $0xe8] sm:$0xff] }
   0xf   :  { %319 = vmatprep.subr.mxu1 %v318_v34  ;;  %v342_v54 = vand.u32 4294901760, %v341_v45  ;;  %v353_v55 = vsub.f32 %v13458_v37, %v22236_v46  ;;  %v13497_v56 = vsub.f32 %v187_v33, %v13479_v47  ;;  %v13499_v57 = vand.u32 4294901760, %v183_v43  ;;  %223 = vmatprep.subr.mxu0 %v13479_v47 }
  0x10   :  { %325 = vmatpush1.msra.mxu1 %v324_v39  ;;  %v348_v59 = vand.u32 4294901760, %v347_v50  ;;  %v359_v60 = vsub.f32 %v13469_v42, %v22234_v51  ;;  %v13509_v61 = vsub.f32 %v186_v38, %v13488_v52  ;;  %v13511_v62 = vand.u32 4294901760, %v182_v48  ;;  %225 = vmatpush1.msra.mxu0 %v13488_v52 }
  0x11   :  { %331 = vmatprep.subr.mxu1 %v330_v44  ;;  %v354_v0 = vand.u32 4294901760, %v353_v55  ;;  %v22232_v1 = vand.u32 4294901760, %v13497_v56  ;;  %v13519_v2 = vsub.f32 %v183_v43, %v13499_v57  ;;  %v13521_v3 = vand.u32 4294901760, %v179_v53  ;;  %227 = vmatprep.subr.mxu0 %v13499_v57  ;;  %v170_v44 = vld [vmem:[%s22222_s3 + $0xe0] sm:$0xff] }
  0x12   :  { %337 = vmatpush1.msra.mxu1 %v336_v49  ;;  %v360_v5 = vand.u32 4294901760, %v359_v60  ;;  %v22231_v7 = vand.u32 4294901760, %v13509_v61  ;;  %v13529_v9 = vsub.f32 %v182_v48, %v13511_v62  ;;  %v13531_v12 = vand.u32 4294901760, %v178_v58  ;;  %229 = vmatpush1.msra.mxu0 %v13511_v62  ;;  %v166_v60 = vld [vmem:[%s22222_s3 + $0xc0] sm:$0xff] }
  0x13   :  { %343 = vmatprep.subr.mxu1 %v342_v54  ;;  %v365_v15 = vsub.f32 %v13497_v56, %v22232_v1  ;;  %v22230_v19 = vand.u32 4294901760, %v13519_v2  ;;  %v13539_v23 = vsub.f32 %v179_v53, %v13521_v3  ;;  %v13541_v24 = vand.u32 4294901760, %v175_v63  ;;  %231 = vmatprep.subr.mxu0 %v13521_v3  ;;  %v167_v53 = vld [vmem:[%s22222_s3 + $0xc8] sm:$0xff] }
  0x14   :  { %349 = vmatpush1.msra.mxu1 %v348_v59  ;;  %v371_v28 = vsub.f32 %v13509_v61, %v22231_v7  ;;  %v22228_v29 = vand.u32 4294901760, %v13529_v9  ;;  %v13549_v33 = vsub.f32 %v178_v58, %v13531_v12  ;;  %v13551_v34 = vand.u32 4294901760, %v174_v4  ;;  %233 = vmatpush1.msra.mxu0 %v13531_v12 }
  0x15   :  { %355 = vmatprep.subr.mxu1 %v354_v0  ;;  %v366_v38 = vand.u32 4294901760, %v365_v15  ;;  %v377_v39 = vsub.f32 %v13519_v2, %v22230_v19  ;;  %v22227_v40 = vand.u32 4294901760, %v13539_v23  ;;  %v13562_v43 = vsub.f32 %v175_v63, %v13541_v24  ;;  %235 = vmatprep.subr.mxu0 %v13541_v24  ;;  %v163_v15 = vld [vmem:[%s22222_s3 + $0xa8] sm:$0xff] }
  0x16   :  { %361 = vmatpush1.msra.mxu1 %v360_v5  ;;  %v372_v45 = vand.u32 4294901760, %v371_v28  ;;  %v383_v48 = vsub.f32 %v13529_v9, %v22228_v29  ;;  %v22225_v49 = vand.u32 4294901760, %v13549_v33  ;;  %v13573_v50 = vsub.f32 %v174_v4, %v13551_v34  ;;  %237 = vmatpush1.msra.mxu0 %v13551_v34 }
  0x17   :  { %367 = vmatprep.subr.mxu1 %v366_v38  ;;  %v378_v54 = vand.u32 4294901760, %v377_v39  ;;  %v389_v55 = vsub.f32 %v13539_v23, %v22227_v40  ;;  %v22226_v58 = vand.u32 4294901760, %v13562_v43  ;;  %v13583_v59 = vand.u32 4294901760, %v171_v35 }
  0x18   :  { %373 = vmatpush1.msra.mxu1 %v372_v45  ;;  %v384_v63 = vand.u32 4294901760, %v383_v48  ;;  %v395_v0 = vsub.f32 %v13549_v33, %v22225_v49  ;;  %v22229_v4 = vand.u32 4294901760, %v13573_v50  ;;  %v13592_v5 = vand.u32 4294901760, %v170_v44  ;;  %v162_v48 = vld [vmem:[%s22222_s3 + $0xa0] sm:$0xff] }
  0x19   :  { %379 = vmatprep.subr.mxu1 %v378_v54  ;;  %v390_v28 = vand.u32 4294901760, %v389_v55  ;;  %v401_v38 = vsub.f32 %v13562_v43, %v22226_v58  ;;  %v13601_v39 = vsub.f32 %v171_v35, %v13583_v59  ;;  %v13603_v45 = vand.u32 4294901760, %v167_v53  ;;  %239 = vmatprep.subr.mxu0 %v13583_v59  ;;  %v159_v35 = vld [vmem:[%s22222_s3 + $0x88] sm:$0xff] }
  0x1a   :  { %385 = vmatpush1.msra.mxu1 %v384_v63  ;;  %v396_v49 = vand.u32 4294901760, %v395_v0  ;;  %v407_v54 = vsub.f32 %v13573_v50, %v22229_v4  ;;  %v13613_v55 = vsub.f32 %v170_v44, %v13592_v5  ;;  %v13615_v58 = vand.u32 4294901760, %v166_v60  ;;  %241 = vmatpush1.msra.mxu0 %v13592_v5  ;;  %v158_v44 = vld [vmem:[%s22222_s3 + $0x80] sm:$0xff] }
  0x1b   :  { %391 = vmatprep.subr.mxu1 %v390_v28  ;;  %v402_v40 = vand.u32 4294901760, %v401_v38  ;;  %v22233_v63 = vand.u32 4294901760, %v13601_v39  ;;  %v13623_v0 = vsub.f32 %v167_v53, %v13603_v45  ;;  %v13625_v29 = vand.u32 4294901760, %v163_v15  ;;  %243 = vmatprep.subr.mxu0 %v13603_v45 }
  0x1c   :  { %397 = vmatpush1.msra.mxu1 %v396_v49  ;;  %v408_v4 = vand.u32 4294901760, %v407_v54  ;;  %v22235_v19 = vand.u32 4294901760, %v13613_v55  ;;  %v13633_v28 = vsub.f32 %v166_v60, %v13615_v58  ;;  %v13635_v38 = vand.u32 4294901760, %v162_v48  ;;  %245 = vmatpush1.msra.mxu0 %v13615_v58 }
  0x1d   :  { %23216 = vst [vmem:[#allocation7_spill] sm:$0xff] %v13623_v0  ;;  %403 = vmatprep.subr.mxu1 %v402_v40  ;;  %v413_v53 = vsub.f32 %v13601_v39, %v22233_v63  ;;  %v22239_v7 = vand.u32 4294901760, %v13623_v0  ;;  %v13643_v1 = vsub.f32 %v163_v15, %v13625_v29  ;;  %v13645_v49 = vand.u32 4294901760, %v159_v35  ;;  %247 = vmatprep.subr.mxu0 %v13625_v29  ;;  %v155_v15 = vld [vmem:[%s22222_s3 + $0x68] sm:$0xff] }
  0x1e   :  { %23217 = vst [vmem:[#allocation8_spill] sm:$0xff] %v13633_v28  ;;  %409 = vmatpush1.msra.mxu1 %v408_v4  ;;  %v419_v60 = vsub.f32 %v13613_v55, %v22235_v19  ;;  %v22242_v40 = vand.u32 4294901760, %v13633_v28  ;;  %v13653_v54 = vsub.f32 %v162_v48, %v13635_v38  ;;  %v13655_v63 = vand.u32 4294901760, %v158_v44  ;;  %249 = vmatpush1.msra.mxu0 %v13635_v38  ;;  %v154_v48 = vld [vmem:[%s22222_s3 + $0x60] sm:$0xff] }
  0x1f   :  { %23218 = vst [vmem:[#allocation9_spill] sm:$0xff] %v13643_v1  ;;  %v414_v51 = vand.u32 4294901760, %v413_v53  ;;  %v425_v4 = vsub.f32 %v13623_v0, %v22239_v7  ;;  %v22245_v19 = vand.u32 4294901760, %v13643_v1  ;;  %v13666_v46 = vsub.f32 %v159_v35, %v13645_v49  ;;  %251 = vmatprep.subr.mxu0 %v13645_v49  ;;  %v151_v35 = vld [vmem:[%s22222_s3 + $0x48] sm:$0xff] }
  0x20   :  { %23219 = vst [vmem:[#allocation10_spill] sm:$0xff] %v13653_v54  ;;  %v420_v41 = vand.u32 4294901760, %v419_v60  ;;  %v431_v53 = vsub.f32 %v13633_v28, %v22242_v40  ;;  %v22250_v36 = vand.u32 4294901760, %v13653_v54  ;;  %v13677_v7 = vsub.f32 %v158_v44, %v13655_v63  ;;  %253 = vmatpush1.msra.mxu0 %v13655_v63  ;;  %v150_v44 = vld [vmem:[%s22222_s3 + $0x40] sm:$0xff] }
  0x21   :  { %23220 = vst [vmem:[#allocation11_spill] sm:$0xff] %v13666_v46  ;;  %415 = vmatprep.subr.mxu1 %v414_v51  ;;  %v426_v30 = vand.u32 4294901760, %v425_v4  ;;  %v437_v60 = vsub.f32 %v13643_v1, %v22245_v19  ;;  %v13687_v40 = vand.u32 4294901760, %v155_v15  ;;  %v13696_v4 = vand.u32 4294901760, %v154_v48  ;;  %v147_v19 = vld [vmem:[%s22222_s3 + $0x28] sm:$0xff] }
  0x22   :  { %23221 = vst [vmem:[#allocation12_spill] sm:$0xff] %v13677_v7  ;;  %421 = vmatpush1.msra.mxu1 %v420_v41  ;;  %v432_v20 = vand.u32 4294901760, %v431_v53  ;;  %v443_v16 = vsub.f32 %v13653_v54, %v22250_v36  ;;  %v23223_v1 = vand.u32 4294901760, %v13666_v46  ;;  %v13707_v53 = vand.u32 4294901760, %v151_v35  ;;  %v146_v36 = vld [vmem:[%s22222_s3 + $0x20] sm:$0xff] }
  0x23   :  { %23222 = vst [vmem:[#allocation13_spill] sm:$0xff] %v13696_v4  ;;  %427 = vmatprep.subr.mxu1 %v426_v30  ;;  %v438_v25 = vand.u32 4294901760, %v437_v60  ;;  %v13705_v41 = vsub.f32 %v155_v15, %v13687_v40  ;;  %255 = vmatprep.subr.mxu0 %v13687_v40  ;;  %v23226_v30 = vand.u32 4294901760, %v13677_v7  ;;  %v13717_v54 = vsub.f32 %v154_v48, %v13696_v4  ;;  %v143_v15 = vld [vmem:[%s22222_s3 + $0x8] sm:$0xff]  ;;  %v142_v48 = vld [vmem:[%s22222_s3] sm:$0xff] }
  0x24   :  { %v449_v28 = vsub.f32 %v13666_v46, %v23223_v1  ;;  %23225 = vst [vmem:[#allocation15_spill] sm:$0xff] %v13707_v53  ;;  %433 = vmatpush1.msra.mxu1 %v432_v20  ;;  %v444_v51 = vand.u32 4294901760, %v443_v16  ;;  %v13719_v1 = vand.u32 4294901760, %v150_v44  ;;  %257 = vmatpush1.msra.mxu0 %v13696_v4  ;;  %v13727_v16 = vsub.f32 %v151_v35, %v13707_v53 }
  0x25   :  { %23224 = vst [vmem:[#allocation14_spill] sm:$0xff] %v13705_v41  ;;  %v455_v60 = vsub.f32 %v13677_v7, %v23226_v30  ;;  %23227 = vst [vmem:[#allocation16_spill] sm:$0xff] %v13717_v54  ;;  %439 = vmatprep.subr.mxu1 %v438_v25  ;;  %v22263_v20 = vand.u32 4294901760, %v13705_v41  ;;  %v13729_v0 = vand.u32 4294901760, %v147_v19  ;;  %259 = vmatprep.subr.mxu0 %v13707_v53  ;;  %v22268_v7 = vand.u32 4294901760, %v13717_v54 }
  0x26   :  { %v450_v46 = vand.u32 4294901760, %v449_v28  ;;  %23228 = vst [vmem:[#allocation17_spill] sm:$0xff] %v13727_v16  ;;  %445 = vmatpush1.msra.mxu1 %v444_v51  ;;  %v13737_v25 = vsub.f32 %v150_v44, %v13719_v1  ;;  %v13739_v28 = vand.u32 4294901760, %v146_v36  ;;  %261 = vmatpush1.msra.mxu0 %v13719_v1  ;;  %v22271_v4 = vand.u32 4294901760, %v13727_v16 }
  0x27   :  { %23229 = vst [vmem:[#allocation18_spill] sm:$0xff] %v13729_v0  ;;  %v456_v30 = vand.u32 4294901760, %v455_v60  ;;  %v461_v35 = vsub.f32 %v13705_v41, %v22263_v20  ;;  %v13747_v53 = vsub.f32 %v147_v19, %v13729_v0  ;;  %v13749_v51 = vand.u32 4294901760, %v143_v15  ;;  %263 = vmatprep.subr.mxu0 %v13729_v0 }
  0x28   :  { %23230 = vst [vmem:[#allocation19_spill] sm:$0xff] %v13737_v25  ;;  %451 = vmatprep.subr.mxu1 %v450_v46  ;;  %v467_v44 = vsub.f32 %v13717_v54, %v22268_v7  ;;  %v22274_v46 = vand.u32 4294901760, %v13737_v25  ;;  %v13757_v60 = vsub.f32 %v146_v36, %v13739_v28  ;;  %v13759_v20 = vand.u32 4294901760, %v142_v48  ;;  %265 = vmatpush1.msra.mxu0 %v13739_v28 }
  0x29   :  { %23231 = vst [vmem:[#allocation20_spill] sm:$0xff] %v13747_v53  ;;  %23232 = vst [vmem:[#allocation21_spill] sm:$0xff] %v13749_v51  ;;  %457 = vmatpush1.msra.mxu1 %v456_v30  ;;  %v462_v19 = vand.u32 4294901760, %v461_v35  ;;  %v473_v41 = vsub.f32 %v13727_v16, %v22271_v4  ;;  %v22278_v30 = vand.u32 4294901760, %v13747_v53  ;;  %v13767_v0 = vsub.f32 %v143_v15, %v13749_v51 }
  0x2a   :  { %23233 = vst [vmem:[#allocation22_spill] sm:$0xff] %v13757_v60  ;;  %23234 = vst [vmem:[#allocation23_spill] sm:$0xff] %v13759_v20  ;;  %267 = vmatprep.subr.mxu0 %v13749_v51  ;;  %v468_v7 = vand.u32 4294901760, %v467_v44  ;;  %v479_v36 = vsub.f32 %v13737_v25, %v22274_v46  ;;  %v22277_v54 = vand.u32 4294901760, %v13757_v60  ;;  %v13775_v35 = vsub.f32 %v142_v48, %v13759_v20 }
  0x2b   :  { %23235 = vst [vmem:[#allocation24_spill] sm:$0xff] %v13767_v0  ;;  %269 = vmatpush1.msra.mxu0 %v13759_v20  ;;  %463 = vmatprep.subr.mxu1 %v462_v19  ;;  %v474_v4 = vand.u32 4294901760, %v473_v41  ;;  %v485_v15 = vsub.f32 %v13747_v53, %v22278_v30  ;;  %v22279_v16 = vand.u32 4294901760, %v13767_v0  ;;  %v22281_v25 = vmov 0.0  }
  0x2c   :  { %23236 = vst [vmem:[#allocation25_spill] sm:$0xff] %v13775_v35  ;;  %548 = vmatprep.subr.mxu0 %v13390_v10  ;;  %469 = vmatpush1.msra.mxu1 %v468_v7  ;;  %v480_v44 = vand.u32 4294901760, %v479_v36  ;;  %v491_v46 = vsub.f32 %v13757_v60, %v22277_v54  ;;  %v22280_v48 = vand.u32 4294901760, %v13775_v35 }
  0x2d   :  { %538 = vmatprep.mubr.f32.mxu1 %v22281_v25  ;;  %475 = vmatprep.subr.mxu1 %v474_v4  ;;  %v486_v41 = vand.u32 4294901760, %v485_v15  ;;  %v497_v19 = vsub.f32 %v13767_v0, %v22279_v16  ;;  %v29_v4 = vlaneseq }
  0x2e   :  { %302 = vmatprep.mubr.f32.mxu0 %v22281_v25  ;;  %481 = vmatpush1.msra.mxu1 %v480_v44  ;;  %v492_v7 = vand.u32 4294901760, %v491_v46  ;;  %v503_v36 = vsub.f32 %v13775_v35, %v22280_v48  ;;  %v22_v46 = vld [vmem:[%s22221_s2] sm:$0xf] }
  0x2f   :  { %487 = vmatprep.subr.mxu1 %v486_v41  ;;  %v498_v54 = vand.u32 4294901760, %v497_v19  ;;  %v13796_v15 = vshrl.u32 %v29_v4, 7  ;;  %v20_v44 = vld [vmem:[%s22220_s1] sm:$0xf] }
  0x30   :  { %493 = vmatpush1.msra.mxu1 %v492_v7  ;;  %v504_v30 = vand.u32 4294901760, %v503_v36 }
  0x31   :  { %499 = vmatprep.subr.mxu1 %v498_v54  ;;  %23237 = vst [vmem:[#allocation26_spill] sm:$0xff] %v13796_v15  ;;  %v13799_v16 = vsub.s32 0, %v13796_v15  ;;  %v13809_v54 = vsub.s32 3, %v13796_v15  ;;  %v13814_v25 = vsub.s32 2, %v13796_v15 }
  0x32   :  { %505 = vmatpush1.msra.mxu1 %v504_v30 }
  0x33   :  { %684 = vmatprep.subr.mxu1 %v13379_v6  ;;  %23238 = vst [vmem:[#allocation27_spill] sm:$0xff] %v13799_v16  ;;  %v32_v41 = vrot.slane %v22_v46, %v13799_v16  ;;  %23239 = vst [vmem:[#allocation28_spill] sm:$0xff] %v13809_v54  ;;  %v51_v30 = vrot.slane %v20_v44, %v13799_v16  ;;  %v40_v36 = vrot.slane %v22_v46, %v13809_v54 }
  0x34   :  { %23240 = vst [vmem:[#allocation29_spill] sm:$0xff] %v13814_v25  ;;  %v59_v35 = vrot.slane %v20_v44, %v13809_v54  ;;  %v36_v0 = vrot.slane %v22_v46, %v13814_v25  ;;  %v55_v6 = vrot.slane %v20_v44, %v13814_v25  ;;  %v23248_v46 = vld [vmem:[#allocation7_spill] sm:$0xff]  ;;  %v23261_v54 = vld [vmem:[#allocation17_spill] sm:$0xff] }
  0x35   :  { %v23249_v44 = vld [vmem:[#allocation15_spill] sm:$0xff] }
  0x36   :  { %v23262_v25 = vld [vmem:[#allocation19_spill] sm:$0xff] }
  0x7d   :  { %v26_v19 = vpop.permute.xlu0 %25 }
  0x7e   :  { %v44_v7 = vmul.f32 %v32_v41, %v26_v19  ;;  %v46_v10 = vmul.f32 %v40_v36, %v26_v19  ;;  %v45_v53 = vmul.f32 %v36_v0, %v26_v19  ;;  %v23250_v19 = vld [vmem:[#allocation8_spill] sm:$0xff] }
  0x80   :  { %v63_v4 = vadd.f32 %v51_v30, %v44_v7  ;;  %v65_v60 = vadd.f32 %v59_v35, %v46_v10  ;;  %v64_v20 = vadd.f32 %v55_v6, %v45_v53 }
  0x82   :  { %v13143_v48 = vmul.f32 -1.442695, %v63_v4  ;;  %v13144_v16 = vmul.f32 -1.442695, %v65_v60 }
  0x84   :  { %13185 = vpow2.f32 %v13143_v48  ;;  %v23247_v48 = vld [vmem:[#allocation13_spill] sm:$0xff] }
  0x85   :  { %13187 = vpow2.f32 %v13144_v16 }
  0x86   :  { %13189 = vtanh.f32 %v64_v20  ;;  %v23244_v20 = vmov 0.0  }
  0x91   :  { %v13186_v41 = vpop.eup %13185 }
  0x92   :  { %v69_v51 = vadd.f32 1.0, %v13186_v41  ;;  %v13188_v30 = vpop.eup %13187  ;;  %v23251_v41 = vld [vmem:[#allocation9_spill] sm:$0xff] }
  0x93   :  { %v76_v7 = vadd.f32 1.0, %v13188_v30  ;;  %v13190_v4 = vpop.eup %13189  ;;  %v23252_v30 = vld [vmem:[#allocation18_spill] sm:$0xff] }
  0x94   :  { %13191 = vrcp.f32 %v69_v51 }
  0x95   :  { %13193 = vrcp.f32 %v76_v7  ;;  %v23253_v7 = vld [vmem:[#allocation10_spill] sm:$0xff] }
  0xa1   :  { %v13192_v36 = vpop.eup %13191 }
  0xa2   :  { %v13819_v15 = vmul.f32 %v13192_v36, %v13190_v4  ;;  %v13194_v10 = vpop.eup %13193  ;;  %v23254_v4 = vld [vmem:[#allocation11_spill] sm:$0xff]  ;;  %v23255_v36 = vld [vmem:[#allocation21_spill] sm:$0xff] }
  0xa4   :  { %23241 = vst [vmem:[#allocation30_spill] sm:$0xff] %v13819_v15  ;;  %13195 = vtanh.f32 %v13819_v15  ;;  %v23260_v15 = vld [vmem:[#allocation16_spill] sm:$0xff] }
  0xb1   :  { %v13196_v0 = vpop.eup %13195 }
  0xb2   :  { %v81_v35 = vmul.f32 %v13196_v0, %v13194_v10  ;;  %v23256_v10 = vld [vmem:[#allocation12_spill] sm:$0xff]  ;;  %v23257_v0 = vld [vmem:[#allocation23_spill] sm:$0xff] }
  0xb4   :  { %82 = vst [vmem:[%s22223_s4] sm:$0xff] %v81_v35  ;;  %v13825_v6 = vand.u32 4294901760, %v81_v35 }
  0xb6   :  { %23242 = vst [vmem:[#allocation31_spill] sm:$0xff] %v13825_v6  ;;  %540 = vmatmul.mubr.f32.vlgmr.msra.gmra.mxu1 %v13825_v6  ;;  %v13829_v53 = vsub.f32 %v81_v35, %v13825_v6  ;;  %v23258_v35 = vld [vmem:[#allocation14_spill] sm:$0xff] }
  0xb7   :  { %686 = vmatpush1.msra.mxu1 %v13384_v8  ;;  %779 = vmatprep.mubr.f32.mxu1 %v23244_v20  ;;  %v23264_v6 = vld [vmem:[#allocation22_spill] sm:$0xff] }
  0xb8   :  { %23243 = vst [vmem:[#allocation32_spill] sm:$0xff] %v13829_v53  ;;  %688 = vmatprep.subr.mxu1 %v13392_v11  ;;  %v13835_v16 = vand.u32 4294901760, %v13829_v53 }
  0xb9   :  { %690 = vmatpush1.msra.mxu1 %v13401_v14 }
  0xba   :  { %23245 = vst [vmem:[#allocation33_spill] sm:$0xff] %v13835_v16  ;;  %692 = vmatprep.subr.mxu1 %v13411_v18  ;;  %v306_v51 = vsub.f32 %v13829_v53, %v13835_v16 }
  0xbb   :  { %694 = vmatpush1.msra.mxu1 %v13421_v22 }
  0xbc   :  { %696 = vmatprep.subr.mxu1 %v13434_v27  ;;  %v13843_v60 = vand.u32 4294901760, %v306_v51  ;;  %v23259_v51 = vld [vmem:[#allocation5_spill] sm:$0xff] }
  0xbd   :  { %698 = vmatpush1.msra.mxu1 %v13447_v32 }
  0xbe   :  { %23246 = vst [vmem:[#allocation34_spill] sm:$0xff] %v13843_v60  ;;  %700 = vmatprep.subr.mxu1 %v13479_v47  ;;  %308 = vmatmul.mubr.f32.vlgmr.msra.gmra.mxu0 %v13843_v60  ;;  %v23263_v60 = vld [vmem:[#allocation20_spill] sm:$0xff] }
  0xbf   :  { %551 = vmatpush1.msra.mxu0 %v13399_v13  ;;  %702 = vmatpush1.msra.mxu1 %v13488_v52 }
  0xc0   :  { %554 = vmatprep.subr.mxu0 %v13409_v17  ;;  %704 = vmatprep.subr.mxu1 %v13499_v57 }
  0xc1   :  { %557 = vmatpush1.msra.mxu0 %v13419_v21  ;;  %706 = vmatpush1.msra.mxu1 %v13511_v62 }
  0xc2   :  { %560 = vmatprep.subr.mxu0 %v13432_v26  ;;  %708 = vmatprep.subr.mxu1 %v13521_v3 }
  0xc3   :  { %563 = vmatpush1.msra.mxu0 %v13445_v31  ;;  %710 = vmatpush1.msra.mxu1 %v13531_v12 }
  0xc4   :  { %566 = vmatprep.subr.mxu0 %v13458_v37  ;;  %712 = vmatprep.subr.mxu1 %v13541_v24 }
  0xc5   :  { %569 = vmatpush1.msra.mxu0 %v13469_v42  ;;  %714 = vmatpush1.msra.mxu1 %v13551_v34 }
  0xc6   :  { %572 = vmatprep.subr.mxu0 %v13497_v56  ;;  %716 = vmatprep.subr.mxu1 %v13583_v59 }
  0xc7   :  { %575 = vmatpush1.msra.mxu0 %v13509_v61  ;;  %718 = vmatpush1.msra.mxu1 %v13592_v5 }
  0xc8   :  { %578 = vmatprep.subr.mxu0 %v13519_v2  ;;  %720 = vmatprep.subr.mxu1 %v13603_v45 }
  0xc9   :  { %581 = vmatpush1.msra.mxu0 %v13529_v9  ;;  %722 = vmatpush1.msra.mxu1 %v13615_v58 }
  0xca   :  { %584 = vmatprep.subr.mxu0 %v13539_v23  ;;  %724 = vmatprep.subr.mxu1 %v13625_v29 }
  0xcb   :  { %587 = vmatpush1.msra.mxu0 %v13549_v33  ;;  %726 = vmatpush1.msra.mxu1 %v13635_v38 }
  0xcc   :  { %590 = vmatprep.subr.mxu0 %v13562_v43  ;;  %728 = vmatprep.subr.mxu1 %v13645_v49 }
  0xcd   :  { %593 = vmatpush1.msra.mxu0 %v13573_v50  ;;  %730 = vmatpush1.msra.mxu1 %v13655_v63 }
  0xce   :  { %596 = vmatprep.subr.mxu0 %v13601_v39  ;;  %732 = vmatprep.subr.mxu1 %v13687_v40 }
  0xcf   :  { %599 = vmatpush1.msra.mxu0 %v13613_v55  ;;  %734 = vmatpush1.msra.mxu1 %v23247_v48 }
  0xd0   :  { %602 = vmatprep.subr.mxu0 %v23248_v46  ;;  %736 = vmatprep.subr.mxu1 %v23249_v44 }
  0xd1   :  { %605 = vmatpush1.msra.mxu0 %v23250_v19  ;;  %738 = vmatpush1.msra.mxu1 %v13719_v1 }
  0xd2   :  { %608 = vmatprep.subr.mxu0 %v23251_v41  ;;  %740 = vmatprep.subr.mxu1 %v23252_v30 }
  0xd3   :  { %611 = vmatpush1.msra.mxu0 %v23253_v7  ;;  %742 = vmatpush1.msra.mxu1 %v13739_v28 }
  0xd4   :  { %614 = vmatprep.subr.mxu0 %v23254_v4  ;;  %744 = vmatprep.subr.mxu1 %v23255_v36 }
  0xd5   :  { %617 = vmatpush1.msra.mxu0 %v23256_v10  ;;  %746 = vmatpush1.msra.mxu1 %v23257_v0 }
  0xd6   :  { %620 = vmatprep.subr.mxu0 %v23258_v35  ;;  %783 = vmatmul.mubr.f32.vlgmr.msra.gmra.mxu1 %v13835_v16 }
  0xd7   :  { %958 = vmatprep.subr.mxu1 %v23259_v51  ;;  %623 = vmatpush1.msra.mxu0 %v23260_v15  ;;  %v23265_v51 = vld [vmem:[#allocation24_spill] sm:$0xff] }
  0xd8   :  { %960 = vmatpush1.msra.mxu1 %v13384_v8  ;;  %626 = vmatprep.subr.mxu0 %v23261_v54  ;;  %v23266_v8 = vld [vmem:[#allocation25_spill] sm:$0xff] }
  0xd9   :  { %962 = vmatprep.subr.mxu1 %v13392_v11  ;;  %629 = vmatpush1.msra.mxu0 %v23262_v25  ;;  %v23267_v11 = vld [vmem:[#allocation6_spill] sm:$0xff] }
  0xda   :  { %964 = vmatpush1.msra.mxu1 %v13401_v14  ;;  %632 = vmatprep.subr.mxu0 %v23263_v60  ;;  %v23268_v14 = vand.u32 4294901760, %v23267_v11  ;;  %v201_v11 = vld [vmem:[%s22222_s3 + $0x1d8] sm:$0xff] }
  0xdb   :  { %966 = vmatprep.subr.mxu1 %v13411_v18  ;;  %635 = vmatpush1.msra.mxu0 %v23264_v6  ;;  %v205_v18 = vld [vmem:[%s22222_s3 + $0x1f8] sm:$0xff] }
  0xdc   :  { %968 = vmatpush1.msra.mxu1 %v13421_v22  ;;  %638 = vmatprep.subr.mxu0 %v23265_v51  ;;  %v23269_v22 = vand.u32 4294901760, %v13399_v13  ;;  %v13933_v13 = vand.u32 4294901760, %v205_v18 }
  0xdd   :  { %970 = vmatprep.subr.mxu1 %v13434_v27  ;;  %641 = vmatpush1.msra.mxu0 %v23266_v8  ;;  %v204_v27 = vld [vmem:[%s22222_s3 + $0x1f0] sm:$0xff] }
  0xde   :  { %674 = vmatprep.mubr.f32.mxu0 %v23244_v20  ;;  %972 = vmatpush1.msra.mxu1 %v13447_v32  ;;  %v23270_v32 = vand.u32 4294901760, %v13409_v17  ;;  %v23272_v17 = vand.u32 4294901760, %v13432_v26  ;;  %v23274_v26 = vand.u32 4294901760, %v13458_v37  ;;  %v192_v37 = vld [vmem:[%s22222_s3 + $0x190] sm:$0xff] }
  0xdf   :  { %677 = vmatmul.mubr.f32.vlgmr.msra.gmra.mxu0 %v13829_v53  ;;  %792 = vmatprep.subr.mxu0 %v23268_v14  ;;  %v200_v14 = vld [vmem:[%s22222_s3 + $0x1d0] sm:$0xff]  ;;  %v23295_v53 = vand.u32 4294901760, %v13613_v55 }
  0xe0   :  { %974 = vmatprep.subr.mxu1 %v13479_v47  ;;  %796 = vmatpush1.msra.mxu0 %v23269_v22  ;;  %v23271_v47 = vand.u32 4294901760, %v13419_v21  ;;  %v23273_v21 = vand.u32 4294901760, %v13445_v31  ;;  %v13949_v22 = vand.u32 4294901760, %v201_v11  ;;  %v23275_v31 = vand.u32 4294901760, %v13469_v42  ;;  %v189_v42 = vld [vmem:[%s22222_s3 + $0x178] sm:$0xff] }
  0xe1   :  { %976 = vmatpush1.msra.mxu1 %v13488_v52  ;;  %800 = vmatprep.subr.mxu0 %v23270_v32  ;;  %v13941_v52 = vand.u32 4294901760, %v204_v27  ;;  %v13957_v32 = vand.u32 4294901760, %v200_v14 }
  0xe2   :  { %978 = vmatprep.subr.mxu1 %v13499_v57  ;;  %804 = vmatpush1.msra.mxu0 %v23271_v47  ;;  %v197_v57 = vld [vmem:[%s22222_s3 + $0x1b8] sm:$0xff]  ;;  %v13966_v47 = vsub.f32 %v205_v18, %v13933_v13  ;;  %v23278_v18 = vand.u32 4294901760, %v13509_v61 }
  0xe3   :  { %980 = vmatpush1.msra.mxu1 %v13511_v62  ;;  %808 = vmatprep.subr.mxu0 %v23272_v17  ;;  %v196_v62 = vld [vmem:[%s22222_s3 + $0x1b0] sm:$0xff]  ;;  %v13968_v17 = vand.u32 4294901760, %v197_v57  ;;  %v185_v61 = vld [vmem:[%s22222_s3 + $0x158] sm:$0xff] }
  0xe4   :  { %982 = vmatprep.subr.mxu1 %v13521_v3  ;;  %812 = vmatpush1.msra.mxu0 %v23273_v21  ;;  %v193_v3 = vld [vmem:[%s22222_s3 + $0x198] sm:$0xff]  ;;  %v13977_v21 = vsub.f32 %v204_v27, %v13941_v52  ;;  %v23280_v27 = vand.u32 4294901760, %v13519_v2  ;;  %v14013_v2 = vand.u32 4294901760, %v189_v42 }
  0xe5   :  { %984 = vmatpush1.msra.mxu1 %v13531_v12  ;;  %816 = vmatprep.subr.mxu0 %v23274_v26  ;;  %v23276_v12 = vand.u32 4294901760, %v13497_v56  ;;  %v13988_v26 = vsub.f32 %v201_v11, %v13949_v22  ;;  %v188_v56 = vld [vmem:[%s22222_s3 + $0x170] sm:$0xff]  ;;  %v23282_v11 = vand.u32 4294901760, %v13529_v9 }
  0xe6   :  { %986 = vmatprep.subr.mxu1 %v13541_v24  ;;  %820 = vmatpush1.msra.mxu0 %v23275_v31  ;;  %23277 = vst [vmem:[#allocation13_spill] sm:$0xff] %v13977_v21  ;;  %v13979_v24 = vand.u32 4294901760, %v196_v62  ;;  %v13999_v31 = vsub.f32 %v200_v14, %v13957_v32  ;;  %v184_v14 = vld [vmem:[%s22222_s3 + $0x150] sm:$0xff] }
  0xe7   :  { %988 = vmatpush1.msra.mxu1 %v13551_v34  ;;  %824 = vmatprep.subr.mxu0 %v23276_v12  ;;  %23279 = vst [vmem:[#allocation7_spill] sm:$0xff] %v13988_v26  ;;  %v13990_v34 = vand.u32 4294901760, %v193_v3  ;;  %v22308_v12 = vand.u32 4294901760, %v13966_v47 }
  0xe8   :  { %990 = vmatprep.subr.mxu1 %v13583_v59  ;;  %828 = vmatpush1.msra.mxu0 %v23278_v18  ;;  %23281 = vst [vmem:[#allocation15_spill] sm:$0xff] %v13999_v31  ;;  %v14001_v59 = vand.u32 4294901760, %v192_v37  ;;  %v23284_v18 = vand.u32 4294901760, %v13539_v23  ;;  %v14023_v9 = vsub.f32 %v196_v62, %v13979_v24  ;;  %v180_v62 = vld [vmem:[%s22222_s3 + $0x130] sm:$0xff]  ;;  %v23299_v55 = vand.u32 4294901760, %v13999_v31 }
  0xe9   :  { %992 = vmatpush1.msra.mxu1 %v13592_v5  ;;  %832 = vmatprep.subr.mxu0 %v23280_v27  ;;  %v14011_v5 = vsub.f32 %v197_v57, %v13968_v17  ;;  %v14025_v27 = vand.u32 4294901760, %v188_v56  ;;  %v181_v57 = vld [vmem:[%s22222_s3 + $0x138] sm:$0xff]  ;;  %v14035_v23 = vsub.f32 %v193_v3, %v13990_v34 }
  0xea   :  { %994 = vmatprep.subr.mxu1 %v13603_v45  ;;  %836 = vmatpush1.msra.mxu0 %v23282_v11  ;;  %23285 = vst [vmem:[#allocation9_spill] sm:$0xff] %v14023_v9  ;;  %v23286_v11 = vand.u32 4294901760, %v13549_v33  ;;  %v23288_v45 = vand.u32 4294901760, %v13562_v43  ;;  %v14047_v33 = vsub.f32 %v192_v37, %v14001_v59  ;;  %v177_v3 = vld [vmem:[%s22222_s3 + $0x118] sm:$0xff]  ;;  %v14060_v43 = vsub.f32 %v13966_v47, %v22308_v12 }
  0xeb   :  { %23283 = vst [vmem:[#allocation8_spill] sm:$0xff] %v14011_v5  ;;  %996 = vmatpush1.msra.mxu1 %v13615_v58  ;;  %840 = vmatprep.subr.mxu0 %v23284_v18  ;;  %23287 = vst [vmem:[#allocation18_spill] sm:$0xff] %v14035_v23  ;;  %v14037_v18 = vand.u32 4294901760, %v185_v61  ;;  %v23290_v58 = vand.u32 4294901760, %v13573_v50  ;;  %v14064_v37 = vsub.f32 %v189_v42, %v14013_v2  ;;  %v23292_v50 = vand.u32 4294901760, %v13601_v39 }
  0xec   :  { %998 = vmatprep.subr.mxu1 %v13625_v29  ;;  %844 = vmatpush1.msra.mxu0 %v23286_v11  ;;  %23289 = vst [vmem:[#allocation10_spill] sm:$0xff] %v14047_v33  ;;  %v14049_v11 = vand.u32 4294901760, %v184_v14  ;;  %v176_v29 = vld [vmem:[%s22222_s3 + $0x110] sm:$0xff]  ;;  %v14081_v42 = vsub.f32 %v188_v56, %v14025_v27  ;;  %v23296_v39 = vand.u32 4294901760, %v13988_v26  ;;  %v14097_v12 = vand.u32 4294901760, %v177_v3 }
  0xed   :  { %1000 = vmatpush1.msra.mxu1 %v13635_v38  ;;  %848 = vmatprep.subr.mxu0 %v23288_v45  ;;  %23291 = vst [vmem:[#allocation11_spill] sm:$0xff] %v14064_v37  ;;  %v14066_v45 = vand.u32 4294901760, %v181_v57  ;;  %v14083_v38 = vand.u32 4294901760, %v180_v62  ;;  %v23298_v56 = vand.u32 4294901760, %v23248_v46  ;;  %v23302_v46 = vand.u32 4294901760, %v14011_v5 }
  0xee   :  { %1002 = vmatprep.subr.mxu1 %v13645_v49  ;;  %852 = vmatpush1.msra.mxu0 %v23290_v58  ;;  %v23293_v49 = vand.u32 4294901760, %v13977_v21  ;;  %23294 = vst [vmem:[#allocation21_spill] sm:$0xff] %v14081_v42 }
  0xef   :  { %1004 = vmatpush1.msra.mxu1 %v13655_v63  ;;  %856 = vmatprep.subr.mxu0 %v23292_v50  ;;  %v14091_v63 = vsub.f32 %v13988_v26, %v23296_v39  ;;  %v14109_v39 = vsub.f32 %v184_v14, %v14049_v11  ;;  %v14111_v50 = vand.u32 4294901760, %v176_v29  ;;  %v23304_v14 = vand.u32 4294901760, %v23251_v41 }
  0xf0   :  { %v14077_v58 = vsub.f32 %v13977_v21, %v23293_v49  ;;  %1006 = vmatprep.subr.mxu1 %v13687_v40  ;;  %860 = vmatpush1.msra.mxu0 %v23295_v53  ;;  %v14095_v49 = vsub.f32 %v185_v61, %v14037_v18  ;;  %v14105_v40 = vsub.f32 %v13999_v31, %v23299_v55  ;;  %v23301_v61 = vand.u32 4294901760, %v23250_v19 }
  0xf1   :  { %1008 = vmatpush1.msra.mxu1 %v23247_v48  ;;  %864 = vmatprep.subr.mxu0 %v23298_v56  ;;  %23300 = vst [vmem:[#allocation23_spill] sm:$0xff] %v14109_v39  ;;  %v1173_v48 = vand.u32 4294901760, %v14060_v43  ;;  %v14120_v56 = vsub.f32 %v14011_v5, %v23302_v46  ;;  %v22310_v55 = vand.u32 4294901760, %v14064_v37  ;;  %v14124_v53 = vsub.f32 %v181_v57, %v14066_v45  ;;  %v173_v57 = vld [vmem:[%s22222_s3 + $0xf8] sm:$0xff] }
  0xf2   :  { %23297 = vst [vmem:[#allocation12_spill] sm:$0xff] %v14095_v49  ;;  %1010 = vmatprep.subr.mxu1 %v23249_v44  ;;  %868 = vmatpush1.msra.mxu0 %v23301_v61  ;;  %v1179_v44 = vand.u32 4294901760, %v14077_v58  ;;  %v23305_v19 = vand.u32 4294901760, %v14023_v9  ;;  %v14137_v46 = vsub.f32 %v180_v62, %v14083_v38  ;;  %v1185_v41 = vand.u32 4294901760, %v14091_v63  ;;  %v172_v61 = vld [vmem:[%s22222_s3 + $0xf0] sm:$0xff] }
  0xf3   :  { %23303 = vst [vmem:[#allocation14_spill] sm:$0xff] %v14124_v53  ;;  %1012 = vmatpush1.msra.mxu1 %v13719_v1  ;;  %872 = vmatprep.subr.mxu0 %v23304_v14  ;;  %v23307_v1 = vand.u32 4294901760, %v23253_v7  ;;  %v23308_v58 = vand.u32 4294901760, %v14035_v23  ;;  %v14153_v62 = vsub.f32 %v177_v3, %v14097_v12  ;;  %v1191_v7 = vand.u32 4294901760, %v14105_v40 }
  0xf4   :  { %v14133_v43 = vsub.f32 %v14023_v9, %v23305_v19  ;;  %23306 = vst [vmem:[#allocation5_spill] sm:$0xff] %v14137_v46  ;;  %1014 = vmatprep.subr.mxu1 %v23252_v30  ;;  %v23310_v30 = vand.u32 4294901760, %v23254_v4  ;;  %v23311_v63 = vand.u32 4294901760, %v14047_v33  ;;  %v14169_v3 = vsub.f32 %v176_v29, %v14111_v50  ;;  %v169_v19 = vld [vmem:[%s22222_s3 + $0xd8] sm:$0xff]  ;;  %1053 = vmatprep.mubr.f32.mxu1 %v23244_v20  ;;  %v144_v9 = vld [vmem:[%s22222_s3 + $0x10] sm:$0xff] }
  0xf5   :  { %876 = vmatpush1.msra.mxu0 %v23307_v1  ;;  %v14149_v14 = vsub.f32 %v14035_v23, %v23308_v58  ;;  %23309 = vst [vmem:[#allocation16_spill] sm:$0xff] %v14153_v62  ;;  %1016 = vmatpush1.msra.mxu1 %v13739_v28  ;;  %v23313_v28 = vand.u32 4294901760, %v23256_v10  ;;  %v1197_v4 = vand.u32 4294901760, %v14120_v56  ;;  %v14181_v40 = vsub.f32 %v14064_v37, %v22310_v55  ;;  %v164_v37 = vld [vmem:[%s22222_s3 + $0xb0] sm:$0xff] }
  0xf6   :  { %880 = vmatprep.subr.mxu0 %v23310_v30  ;;  %v14165_v1 = vsub.f32 %v14047_v33, %v23311_v63  ;;  %23312 = vst [vmem:[#allocation17_spill] sm:$0xff] %v14169_v3  ;;  %1018 = vmatprep.subr.mxu1 %v23255_v36  ;;  %v14184_v29 = vand.u32 4294901760, %v173_v57  ;;  %v168_v63 = vld [vmem:[%s22222_s3 + $0xd0] sm:$0xff]  ;;  %v1203_v36 = vand.u32 4294901760, %v14133_v43  ;;  %v23314_v10 = vand.u32 4294901760, %v14081_v42  ;;  %v165_v30 = vld [vmem:[%s22222_s3 + $0xb8] sm:$0xff] }
  0xf7   :  { %884 = vmatpush1.msra.mxu0 %v23313_v28  ;;  %1020 = vmatpush1.msra.mxu1 %v23257_v0  ;;  %v14198_v55 = vand.u32 4294901760, %v172_v61  ;;  %v23315_v58 = vand.u32 4294901760, %v23258_v35  ;;  %v23316_v0 = vld [vmem:[#allocation31_spill] sm:$0xff]  ;;  %v1209_v43 = vand.u32 4294901760, %v14149_v14  ;;  %v23317_v16 = vand.u32 4294901760, %v14095_v49 }
  0xf8   :  { %v14195_v56 = vsub.f32 %v14081_v42, %v23314_v10  ;;  %1055 = vmatmul.mubr.f32.vlgmr.msra.gmra.mxu1 %v23316_v0  ;;  %v14213_v42 = vand.u32 4294901760, %v169_v19  ;;  %1174 = vmatprep.subr.mxu1 %v1173_v48  ;;  %v23318_v35 = vand.u32 4294901760, %v23260_v15  ;;  %v23319_v14 = vand.u32 4294901760, %v14109_v39 }
  0xf9   :  { %888 = vmatprep.subr.mxu0 %v23315_v58  ;;  %v14210_v10 = vsub.f32 %v14095_v49, %v23317_v16  ;;  %v1215_v58 = vand.u32 4294901760, %v14165_v1  ;;  %v14227_v28 = vand.u32 4294901760, %v168_v63  ;;  %v161_v49 = vld [vmem:[%s22222_s3 + $0x98] sm:$0xff]  ;;  %1180 = vmatpush1.msra.mxu1 %v1179_v44  ;;  %v23320_v48 = vand.u32 4294901760, %v23261_v54 }
  0xfa   :  { %892 = vmatpush1.msra.mxu0 %v23318_v35  ;;  %v14224_v33 = vsub.f32 %v14109_v39, %v23319_v14  ;;  %v1221_v15 = vand.u32 4294901760, %v14181_v40  ;;  %v23321_v1 = vand.u32 4294901760, %v14124_v53  ;;  %v14241_v14 = vsub.f32 %v173_v57, %v14184_v29  ;;  %v160_v39 = vld [vmem:[%s22222_s3 + $0x90] sm:$0xff]  ;;  %1186 = vmatprep.subr.mxu1 %v1185_v41 }
  0xfb   :  { %896 = vmatprep.subr.mxu0 %v23320_v48  ;;  %v14243_v16 = vand.u32 4294901760, %v165_v30  ;;  %v23324_v54 = vand.u32 4294901760, %v23262_v25  ;;  %v1227_v44 = vand.u32 4294901760, %v14195_v56  ;;  %v23325_v40 = vand.u32 4294901760, %v14137_v46  ;;  %1192 = vmatpush1.msra.mxu1 %v1191_v7 }
  0xfc   :  { %v14238_v35 = vsub.f32 %v14124_v53, %v23321_v1  ;;  %23322 = vst [vmem:[#allocation19_spill] sm:$0xff] %v14241_v14  ;;  %v14257_v57 = vsub.f32 %v172_v61, %v14198_v55  ;;  %v14259_v1 = vand.u32 4294901760, %v164_v37  ;;  %v157_v53 = vld [vmem:[%s22222_s3 + $0x78] sm:$0xff]  ;;  %v23327_v25 = vand.u32 4294901760, %v23263_v60  ;;  %1198 = vmatprep.subr.mxu1 %v1197_v4  ;;  %949 = vmatprep.mubr.f32.mxu0 %v23244_v20 }
  0xfd   :  { %23323 = vst [vmem:[#allocation20_spill] sm:$0xff] %v14243_v16  ;;  %900 = vmatpush1.msra.mxu0 %v23324_v54  ;;  %v14254_v48 = vsub.f32 %v14137_v46, %v23325_v40  ;;  %v1233_v41 = vand.u32 4294901760, %v14210_v10  ;;  %v23328_v56 = vand.u32 4294901760, %v14153_v62  ;;  %v14273_v61 = vsub.f32 %v169_v19, %v14213_v42  ;;  %v156_v46 = vld [vmem:[%s22222_s3 + $0x70] sm:$0xff]  ;;  %1204 = vmatpush1.msra.mxu1 %v1203_v36 }
  0xfe   :  { %23326 = vst [vmem:[#allocation22_spill] sm:$0xff] %v14257_v57  ;;  %904 = vmatprep.subr.mxu0 %v23327_v25  ;;  %v14275_v40 = vand.u32 4294901760, %v161_v49  ;;  %v23330_v60 = vand.u32 4294901760, %v23264_v6  ;;  %v1239_v7 = vand.u32 4294901760, %v14224_v33  ;;  %v23331_v10 = vand.u32 4294901760, %v14169_v3  ;;  %1210 = vmatprep.subr.mxu1 %v1209_v43 }
  0xff   :  { %v14270_v54 = vsub.f32 %v14153_v62, %v23328_v56  ;;  %23329 = vst [vmem:[#allocation24_spill] sm:$0xff] %v14273_v61  ;;  %v14289_v19 = vsub.f32 %v168_v63, %v14227_v28  ;;  %v14291_v56 = vand.u32 4294901760, %v160_v39  ;;  %v153_v62 = vld [vmem:[%s22222_s3 + $0x58] sm:$0xff]  ;;  %v23332_v6 = vand.u32 4294901760, %v23265_v51  ;;  %v152_v63 = vld [vmem:[%s22222_s3 + $0x50] sm:$0xff]  ;;  %1216 = vmatpush1.msra.mxu1 %v1215_v58  ;;  %1393 = vmatprep.mubr.f32.mxu1 %v23244_v20 }
 0x100   :  { %908 = vmatpush1.msra.mxu0 %v23330_v60  ;;  %v14286_v25 = vsub.f32 %v14169_v3, %v23331_v10  ;;  %v1245_v33 = vand.u32 4294901760, %v14238_v35  ;;  %v22336_v4 = vand.u32 4294901760, %v14241_v14  ;;  %v14301_v60 = vsub.f32 %v165_v30, %v14243_v16  ;;  %v149_v30 = vld [vmem:[%s22222_s3 + $0x38] sm:$0xff]  ;;  %1222 = vmatprep.subr.mxu1 %v1221_v15 }
 0x101   :  { %912 = vmatprep.subr.mxu0 %v23332_v6  ;;  %v14303_v10 = vand.u32 4294901760, %v157_v53  ;;  %v23333_v3 = vand.u32 4294901760, %v23266_v8  ;;  %v1251_v51 = vand.u32 4294901760, %v14254_v48  ;;  %v14313_v35 = vsub.f32 %v164_v37, %v14259_v1  ;;  %v148_v37 = vld [vmem:[%s22222_s3 + $0x30] sm:$0xff]  ;;  %1228 = vmatpush1.msra.mxu1 %v1227_v44 }
 0x102   :  { %v14315_v6 = vand.u32 4294901760, %v156_v46  ;;  %v1257_v43 = vand.u32 4294901760, %v14270_v54  ;;  %v14326_v48 = vand.u32 4294901760, %v153_v62  ;;  %v1263_v36 = vand.u32 4294901760, %v14286_v25  ;;  %1234 = vmatprep.subr.mxu1 %v1233_v41 }
 0x103   :  { %916 = vmatpush1.msra.mxu0 %v23333_v3  ;;  %v14324_v3 = vsub.f32 %v161_v49, %v14275_v40  ;;  %v14336_v54 = vsub.f32 %v160_v39, %v14291_v56  ;;  %v14338_v8 = vand.u32 4294901760, %v152_v63  ;;  %v145_v49 = vld [vmem:[%s22222_s3 + $0x18] sm:$0xff]  ;;  %v1268_v23 = vsub.f32 %v14241_v14, %v22336_v4  ;;  %1240 = vmatpush1.msra.mxu1 %v1239_v7 }
 0x104   :  { %951 = vmatmul.mubr.f32.vlgmr.msra.gmra.mxu0 %v23316_v0  ;;  %1062 = vmatprep.subr.mxu0 %v13933_v13  ;;  %v14349_v58 = vsub.f32 %v157_v53, %v14303_v10  ;;  %v14351_v39 = vand.u32 4294901760, %v149_v30  ;;  %v23335_v15 = vand.u32 4294901760, %v14257_v57  ;;  %v14362_v25 = vsub.f32 %v156_v46, %v14315_v6 }
 0x105   :  { %23334 = vst [vmem:[#allocation25_spill] sm:$0xff] %v14338_v8  ;;  %1064 = vmatpush1.msra.mxu0 %v13941_v52  ;;  %v14364_v53 = vand.u32 4294901760, %v148_v37  ;;  %v23336_v14 = vand.u32 4294901760, %v14273_v61  ;;  %v14372_v26 = vsub.f32 %v153_v62, %v14326_v48  ;;  %v23337_v46 = vand.u32 4294901760, %v14289_v19  ;;  %1246 = vmatprep.subr.mxu1 %v1245_v33 }
 0x106   :  { %1066 = vmatprep.subr.mxu0 %v13949_v22  ;;  %v1274_v5 = vsub.f32 %v14257_v57, %v23335_v15  ;;  %v14374_v15 = vand.u32 4294901760, %v145_v49  ;;  %v14382_v57 = vsub.f32 %v152_v63, %v14338_v8  ;;  %v1269_v62 = vand.u32 4294901760, %v1268_v23  ;;  %1252 = vmatpush1.msra.mxu1 %v1251_v51 }
 0x107   :  { %1068 = vmatpush1.msra.mxu0 %v13957_v32  ;;  %v1280_v44 = vsub.f32 %v14273_v61, %v23336_v14  ;;  %v1286_v41 = vsub.f32 %v14289_v19, %v23337_v46  ;;  %v14384_v14 = vand.u32 4294901760, %v144_v9  ;;  %v23338_v31 = vand.u32 4294901760, %v14301_v60  ;;  %1258 = vmatprep.subr.mxu1 %v1257_v43 }
 0x108   :  { %1070 = vmatprep.subr.mxu0 %v13968_v17  ;;  %v14392_v21 = vsub.f32 %v149_v30, %v14351_v39  ;;  %v1275_v63 = vand.u32 4294901760, %v1274_v5  ;;  %v23339_v46 = vand.u32 4294901760, %v14313_v35  ;;  %v14400_v23 = vsub.f32 %v148_v37, %v14364_v53  ;;  %1264 = vmatpush1.msra.mxu1 %v1263_v36 }
 0x109   :  { %1072 = vmatpush1.msra.mxu0 %v13979_v24  ;;  %v1292_v7 = vsub.f32 %v14301_v60, %v23338_v31  ;;  %v1281_v31 = vand.u32 4294901760, %v1280_v44  ;;  %v23340_v30 = vand.u32 4294901760, %v14324_v3  ;;  %v14408_v5 = vsub.f32 %v145_v49, %v14374_v15  ;;  %1270 = vmatprep.subr.mxu1 %v1269_v62 }
 0x10a   :  { %1074 = vmatprep.subr.mxu0 %v13990_v34  ;;  %v1298_v33 = vsub.f32 %v14313_v35, %v23339_v46  ;;  %v1287_v46 = vand.u32 4294901760, %v1286_v41  ;;  %v23341_v37 = vand.u32 4294901760, %v14336_v54  ;;  %v14416_v44 = vsub.f32 %v144_v9, %v14384_v14  ;;  %1276 = vmatpush1.msra.mxu1 %v1275_v63 }
 0x10b   :  { %1076 = vmatpush1.msra.mxu0 %v14001_v59  ;;  %v1304_v51 = vsub.f32 %v14324_v3, %v23340_v30  ;;  %v1293_v30 = vand.u32 4294901760, %v1292_v7  ;;  %v23342_v49 = vand.u32 4294901760, %v14349_v58  ;;  %1282 = vmatprep.subr.mxu1 %v1281_v31  ;;  %v23344_v7 = vand.u32 4294901760, %v14372_v26 }
 0x10c   :  { %1078 = vmatprep.subr.mxu0 %v14013_v2  ;;  %v1310_v43 = vsub.f32 %v14336_v54, %v23341_v37  ;;  %v1299_v41 = vand.u32 4294901760, %v1298_v33  ;;  %v23343_v37 = vand.u32 4294901760, %v14362_v25  ;;  %1288 = vmatpush1.msra.mxu1 %v1287_v46  ;;  %v23345_v33 = vand.u32 4294901760, %v14382_v57 }
 0x10d   :  { %1080 = vmatpush1.msra.mxu0 %v14025_v27  ;;  %v1316_v36 = vsub.f32 %v14349_v58, %v23342_v49  ;;  %v1305_v62 = vand.u32 4294901760, %v1304_v51  ;;  %v1328_v49 = vsub.f32 %v14372_v26, %v23344_v7  ;;  %v22349_v9 = vand.u32 4294901760, %v14416_v44  ;;  %1294 = vmatprep.subr.mxu1 %v1293_v30 }
 0x10e   :  { %1082 = vmatprep.subr.mxu0 %v14037_v18  ;;  %v1322_v4 = vsub.f32 %v14362_v25, %v23343_v37  ;;  %v1311_v63 = vand.u32 4294901760, %v1310_v43  ;;  %v1334_v37 = vsub.f32 %v14382_v57, %v23345_v33  ;;  %v23346_v51 = vand.u32 4294901760, %v14392_v21  ;;  %1300 = vmatpush1.msra.mxu1 %v1299_v41 }
 0x10f   :  { %1084 = vmatpush1.msra.mxu0 %v14049_v11  ;;  %v1317_v31 = vand.u32 4294901760, %v1316_v36  ;;  %v23347_v43 = vand.u32 4294901760, %v14400_v23  ;;  %1306 = vmatprep.subr.mxu1 %v1305_v62  ;;  %v1329_v33 = vand.u32 4294901760, %v1328_v49  ;;  %v23348_v30 = vand.u32 4294901760, %v14408_v5 }
 0x110   :  { %1086 = vmatprep.subr.mxu0 %v14066_v45  ;;  %v1340_v7 = vsub.f32 %v14392_v21, %v23346_v51  ;;  %v1323_v46 = vand.u32 4294901760, %v1322_v4  ;;  %1312 = vmatpush1.msra.mxu1 %v1311_v63  ;;  %v1335_v51 = vand.u32 4294901760, %v1334_v37  ;;  %v1358_v4 = vsub.f32 %v14416_v44, %v22349_v9  ;;  %v23350_v37 = vld [vmem:[#allocation13_spill] sm:$0xff]  ;;  %v23365_v9 = vld [vmem:[#allocation19_spill] sm:$0xff] }
 0x111   :  { %1088 = vmatpush1.msra.mxu0 %v14083_v38  ;;  %v1346_v61 = vsub.f32 %v14400_v23, %v23347_v43  ;;  %v1352_v36 = vsub.f32 %v14408_v5, %v23348_v30  ;;  %1318 = vmatprep.subr.mxu1 %v1317_v31  ;;  %v23351_v31 = vld [vmem:[#allocation7_spill] sm:$0xff]  ;;  %v23354_v43 = vld [vmem:[#allocation9_spill] sm:$0xff]  ;;  %v23356_v30 = vld [vmem:[#allocation10_spill] sm:$0xff] }
 0x112   :  { %1090 = vmatprep.subr.mxu0 %v14097_v12  ;;  %v1341_v41 = vand.u32 4294901760, %v1340_v7  ;;  %1324 = vmatpush1.msra.mxu1 %v1323_v46  ;;  %v1359_v63 = vand.u32 4294901760, %v1358_v4  ;;  %v23352_v7 = vld [vmem:[#allocation15_spill] sm:$0xff]  ;;  %v23353_v46 = vld [vmem:[#allocation8_spill] sm:$0xff] }
 0x113   :  { %1092 = vmatpush1.msra.mxu0 %v14111_v50  ;;  %v1347_v62 = vand.u32 4294901760, %v1346_v61  ;;  %1330 = vmatprep.subr.mxu1 %v1329_v33  ;;  %v1353_v49 = vand.u32 4294901760, %v1352_v36  ;;  %v23349_v61 = vld [vmem:[#allocation34_spill] sm:$0xff]  ;;  %v23357_v36 = vld [vmem:[#allocation11_spill] sm:$0xff]  ;;  %v23359_v4 = vld [vmem:[#allocation12_spill] sm:$0xff] }
 0x114   :  { %1094 = vmatprep.subr.mxu0 %v14184_v29  ;;  %1336 = vmatpush1.msra.mxu1 %v1335_v51  ;;  %v23355_v33 = vld [vmem:[#allocation18_spill] sm:$0xff]  ;;  %v23358_v51 = vld [vmem:[#allocation21_spill] sm:$0xff] }
 0x115   :  { %1096 = vmatpush1.msra.mxu0 %v14198_v55  ;;  %1342 = vmatprep.subr.mxu1 %v1341_v41  ;;  %v23360_v41 = vld [vmem:[#allocation23_spill] sm:$0xff] }
 0x116   :  { %1098 = vmatprep.subr.mxu0 %v14213_v42  ;;  %1348 = vmatpush1.msra.mxu1 %v1347_v62  ;;  %v23361_v62 = vld [vmem:[#allocation14_spill] sm:$0xff] }
 0x117   :  { %1100 = vmatpush1.msra.mxu0 %v14227_v28  ;;  %1354 = vmatprep.subr.mxu1 %v1353_v49  ;;  %v23362_v49 = vld [vmem:[#allocation5_spill] sm:$0xff] }
 0x118   :  { %1102 = vmatprep.subr.mxu0 %v14243_v16  ;;  %1360 = vmatpush1.msra.mxu1 %v1359_v63  ;;  %v23363_v63 = vld [vmem:[#allocation16_spill] sm:$0xff] }
 0x119   :  { %1104 = vmatpush1.msra.mxu0 %v14259_v1  ;;  %1395 = vmatmul.mubr.f32.vlgmr.msra.gmra.mxu1 %v23316_v0  ;;  %v23366_v0 = vld [vmem:[#allocation22_spill] sm:$0xff] }
 0x11a   :  { %1106 = vmatprep.subr.mxu0 %v14275_v40  ;;  %1539 = vmatprep.subr.mxu1 %v13933_v13 }
 0x11b   :  { %1108 = vmatpush1.msra.mxu0 %v14291_v56  ;;  %1541 = vmatpush1.msra.mxu1 %v13941_v52 }
 0x11c   :  { %1110 = vmatprep.subr.mxu0 %v14303_v10  ;;  %1543 = vmatprep.subr.mxu1 %v13949_v22 }
 0x11d   :  { %1112 = vmatpush1.msra.mxu0 %v14315_v6  ;;  %1545 = vmatpush1.msra.mxu1 %v13957_v32 }
 0x11e   :  { %1114 = vmatprep.subr.mxu0 %v14326_v48  ;;  %1547 = vmatprep.subr.mxu1 %v13968_v17 }
 0x11f   :  { %1116 = vmatpush1.msra.mxu0 %v14338_v8  ;;  %1549 = vmatpush1.msra.mxu1 %v13979_v24 }
 0x120   :  { %1118 = vmatprep.subr.mxu0 %v14351_v39  ;;  %1551 = vmatprep.subr.mxu1 %v13990_v34 }
 0x121   :  { %1120 = vmatpush1.msra.mxu0 %v14364_v53  ;;  %1157 = vmatprep.mubr.f32.mxu0 %v23244_v20 }
 0x122   :  { %1122 = vmatprep.subr.mxu0 %v14374_v15  ;;  %1553 = vmatpush1.msra.mxu1 %v14001_v59 }
 0x123   :  { %1124 = vmatpush1.msra.mxu0 %v14384_v14  ;;  %1555 = vmatprep.subr.mxu1 %v14013_v2 }
 0x124   :  { %1163 = vmatmul.mubr.f32.vlgmr.msra.gmra.mxu0 %v23349_v61  ;;  %1403 = vmatprep.subr.mxu0 %v13966_v47  ;;  %v23364_v61 = vld [vmem:[#allocation17_spill] sm:$0xff] }
 0x125   :  { %1406 = vmatpush1.msra.mxu0 %v23350_v37  ;;  %1557 = vmatpush1.msra.mxu1 %v14025_v27 }
 0x126   :  { %1409 = vmatprep.subr.mxu0 %v23351_v31  ;;  %1559 = vmatprep.subr.mxu1 %v14037_v18 }
 0x127   :  { %1412 = vmatpush1.msra.mxu0 %v23352_v7  ;;  %1561 = vmatpush1.msra.mxu1 %v14049_v11 }
 0x128   :  { %1415 = vmatprep.subr.mxu0 %v23353_v46  ;;  %1563 = vmatprep.subr.mxu1 %v14066_v45 }
 0x129   :  { %1418 = vmatpush1.msra.mxu0 %v23354_v43  ;;  %1565 = vmatpush1.msra.mxu1 %v14083_v38 }
 0x12a   :  { %1421 = vmatprep.subr.mxu0 %v23355_v33  ;;  %1567 = vmatprep.subr.mxu1 %v14097_v12 }
 0x12b   :  { %1424 = vmatpush1.msra.mxu0 %v23356_v30  ;;  %1569 = vmatpush1.msra.mxu1 %v14111_v50 }
 0x12c   :  { %1427 = vmatprep.subr.mxu0 %v23357_v36  ;;  %1571 = vmatprep.subr.mxu1 %v14184_v29 }
 0x12d   :  { %1430 = vmatpush1.msra.mxu0 %v23358_v51  ;;  %1573 = vmatpush1.msra.mxu1 %v14198_v55 }
 0x12e   :  { %1433 = vmatprep.subr.mxu0 %v23359_v4  ;;  %1575 = vmatprep.subr.mxu1 %v14213_v42 }
 0x12f   :  { %1436 = vmatpush1.msra.mxu0 %v23360_v41  ;;  %1577 = vmatpush1.msra.mxu1 %v14227_v28 }
 0x130   :  { %1439 = vmatprep.subr.mxu0 %v23361_v62  ;;  %1579 = vmatprep.subr.mxu1 %v14243_v16  ;;  %v23367_v16 = vld [vmem:[#allocation24_spill] sm:$0xff] }
 0x131   :  { %1442 = vmatpush1.msra.mxu0 %v23362_v49  ;;  %1581 = vmatpush1.msra.mxu1 %v14259_v1 }
 0x132   :  { %1445 = vmatprep.subr.mxu0 %v23363_v63  ;;  %1583 = vmatprep.subr.mxu1 %v14275_v40 }
 0x133   :  { %1448 = vmatpush1.msra.mxu0 %v23364_v61  ;;  %1585 = vmatpush1.msra.mxu1 %v14291_v56 }
 0x134   :  { %1451 = vmatprep.subr.mxu0 %v23365_v9  ;;  %1587 = vmatprep.subr.mxu1 %v14303_v10 }
 0x135   :  { %1454 = vmatpush1.msra.mxu0 %v23366_v0  ;;  %1589 = vmatpush1.msra.mxu1 %v14315_v6 }
 0x136   :  { %1457 = vmatprep.subr.mxu0 %v23367_v16  ;;  %1591 = vmatprep.subr.mxu1 %v14326_v48 }
 0x137   :  { %1460 = vmatpush1.msra.mxu0 %v14289_v19  ;;  %1593 = vmatpush1.msra.mxu1 %v14338_v8  ;;  %v23368_v8 = vld [vmem:[#allocation33_spill] sm:$0xff] }
 0x138   :  { %1463 = vmatprep.subr.mxu0 %v14301_v60  ;;  %1595 = vmatprep.subr.mxu1 %v14351_v39 }
 0x139   :  { %1466 = vmatpush1.msra.mxu0 %v14313_v35  ;;  %1597 = vmatpush1.msra.mxu1 %v14364_v53 }
 0x13a   :  { %1469 = vmatprep.subr.mxu0 %v14324_v3  ;;  %1599 = vmatprep.subr.mxu1 %v14374_v15 }
 0x13b   :  { %1472 = vmatpush1.msra.mxu0 %v14336_v54  ;;  %1601 = vmatpush1.msra.mxu1 %v14384_v14 }
 0x13c   :  { %1634 = vmatprep.mubr.f32.mxu1 %v23244_v20  ;;  %1475 = vmatprep.subr.mxu0 %v14349_v58 }
 0x13d   :  { %1638 = vmatmul.mubr.f32.vlgmr.msra.gmra.mxu1 %v23368_v8  ;;  %1813 = vmatprep.subr.mxu1 %v13933_v13  ;;  %v23369_v13 = vld [vmem:[#allocation32_spill] sm:$0xff]  ;;  %v23400_v8 = vand.u32 4294901760, %v14382_v57 }
 0x13e   :  { %1478 = vmatpush1.msra.mxu0 %v14362_v25  ;;  %1815 = vmatpush1.msra.mxu1 %v13941_v52  ;;  %v23370_v52 = vand.u32 4294901760, %v13966_v47  ;;  %v23374_v47 = vand.u32 4294901760, %v23353_v46 }
 0x13f   :  { %1481 = vmatprep.subr.mxu0 %v14372_v26  ;;  %1817 = vmatprep.subr.mxu1 %v13949_v22  ;;  %v23371_v22 = vand.u32 4294901760, %v23350_v37 }
 0x140   :  { %1484 = vmatpush1.msra.mxu0 %v14382_v57  ;;  %1819 = vmatpush1.msra.mxu1 %v13957_v32  ;;  %v23372_v32 = vand.u32 4294901760, %v23351_v31 }
 0x141   :  { %1487 = vmatprep.subr.mxu0 %v14392_v21  ;;  %1821 = vmatprep.subr.mxu1 %v13968_v17  ;;  %v23373_v17 = vand.u32 4294901760, %v23352_v7  ;;  %v2057_v7 = vld [vmem:[%s22222_s3 + $0x1a0] sm:$0xff] }
 0x142   :  { %1490 = vmatpush1.msra.mxu0 %v14400_v23  ;;  %1823 = vmatpush1.msra.mxu1 %v13979_v24  ;;  %v23375_v24 = vand.u32 4294901760, %v23354_v43 }
 0x143   :  { %1493 = vmatprep.subr.mxu0 %v14408_v5  ;;  %1825 = vmatprep.subr.mxu1 %v13990_v34  ;;  %v23376_v34 = vand.u32 4294901760, %v23355_v33  ;;  %v14688_v33 = vand.u32 4294901760, %v2057_v7 }
 0x144   :  { %1496 = vmatpush1.msra.mxu0 %v14416_v44  ;;  %1529 = vmatprep.mubr.f32.mxu0 %v23244_v20 }
 0x145   :  { %1827 = vmatpush1.msra.mxu1 %v14001_v59  ;;  %1532 = vmatmul.mubr.f32.vlgmr.msra.gmra.mxu0 %v23369_v13  ;;  %v23377_v59 = vand.u32 4294901760, %v23356_v30  ;;  %v2054_v30 = vld [vmem:[%s22222_s3 + $0x188] sm:$0xff] }
 0x146   :  { %1647 = vmatprep.subr.mxu0 %v23370_v52  ;;  %1829 = vmatprep.subr.mxu1 %v14013_v2  ;;  %v23378_v2 = vand.u32 4294901760, %v23357_v36  ;;  %v2053_v52 = vld [vmem:[%s22222_s3 + $0x180] sm:$0xff] }
 0x147   :  { %1651 = vmatpush1.msra.mxu0 %v23371_v22  ;;  %1831 = vmatpush1.msra.mxu1 %v14025_v27  ;;  %v23379_v27 = vand.u32 4294901760, %v23358_v51 }
 0x148   :  { %1655 = vmatprep.subr.mxu0 %v23372_v32  ;;  %1833 = vmatprep.subr.mxu1 %v14037_v18  ;;  %v23380_v18 = vand.u32 4294901760, %v23359_v4 }
 0x149   :  { %1659 = vmatpush1.msra.mxu0 %v23373_v17  ;;  %1835 = vmatpush1.msra.mxu1 %v14049_v11  ;;  %v23382_v11 = vand.u32 4294901760, %v23361_v62 }
 0x14a   :  { %1663 = vmatprep.subr.mxu0 %v23374_v47  ;;  %1837 = vmatprep.subr.mxu1 %v14066_v45  ;;  %v23384_v45 = vand.u32 4294901760, %v23362_v49  ;;  %v14707_v49 = vsub.f32 %v2057_v7, %v14688_v33 }
 0x14b   :  { %1667 = vmatpush1.msra.mxu0 %v23375_v24  ;;  %1839 = vmatpush1.msra.mxu1 %v14083_v38  ;;  %v23383_v38 = vld [vmem:[#allocation20_spill] sm:$0xff]  ;;  %v2050_v24 = vld [vmem:[%s22222_s3 + $0x168] sm:$0xff] }
 0x14c   :  { %1671 = vmatprep.subr.mxu0 %v23376_v34  ;;  %1841 = vmatprep.subr.mxu1 %v14097_v12  ;;  %v23381_v12 = vand.u32 4294901760, %v23360_v41  ;;  %v22365_v47 = vand.u32 4294901760, %v14707_v49 }
 0x14d   :  { %1675 = vmatpush1.msra.mxu0 %v23377_v59  ;;  %1843 = vmatpush1.msra.mxu1 %v14111_v50  ;;  %v23385_v50 = vand.u32 4294901760, %v23363_v63  ;;  %v14709_v63 = vand.u32 4294901760, %v2054_v30 }
 0x14e   :  { %1679 = vmatprep.subr.mxu0 %v23378_v2  ;;  %1845 = vmatprep.subr.mxu1 %v14184_v29  ;;  %v23388_v29 = vand.u32 4294901760, %v23366_v0  ;;  %v23393_v0 = vand.u32 4294901760, %v14313_v35  ;;  %v23398_v35 = vand.u32 4294901760, %v14362_v25  ;;  %v2049_v2 = vld [vmem:[%s22222_s3 + $0x160] sm:$0xff] }
 0x14f   :  { %1683 = vmatpush1.msra.mxu0 %v23379_v27  ;;  %1847 = vmatpush1.msra.mxu1 %v14198_v55  ;;  %v23387_v55 = vand.u32 4294901760, %v23365_v9  ;;  %v14728_v59 = vsub.f32 %v2054_v30, %v14709_v63  ;;  %v2037_v30 = vld [vmem:[%s22222_s3 + $0x100] sm:$0xff] }
 0x150   :  { %1687 = vmatprep.subr.mxu0 %v23380_v18  ;;  %1849 = vmatprep.subr.mxu1 %v14213_v42  ;;  %v23386_v42 = vand.u32 4294901760, %v23364_v61 }
 0x151   :  { %1691 = vmatpush1.msra.mxu0 %v23381_v12  ;;  %1851 = vmatpush1.msra.mxu1 %v14227_v28  ;;  %v23389_v28 = vand.u32 4294901760, %v23367_v16  ;;  %v23394_v16 = vand.u32 4294901760, %v14324_v3  ;;  %v23401_v3 = vand.u32 4294901760, %v14392_v21  ;;  %v2065_v21 = vld [vmem:[%s22222_s3 + $0x1e0] sm:$0xff]  ;;  %v2210_v12 = vsub.f32 %v14707_v49, %v22365_v47 }
 0x152   :  { %1695 = vmatprep.subr.mxu0 %v23382_v11  ;;  %1853 = vmatprep.subr.mxu1 %v23383_v38  ;;  %v14651_v25 = vand.u32 4294901760, %v2065_v21  ;;  %v14739_v11 = vand.u32 4294901760, %v2053_v52  ;;  %v22364_v38 = vand.u32 4294901760, %v14728_v59  ;;  %v2017_v47 = vld [vmem:[%s22222_s3 + $0x60] sm:$0xff] }
 0x153   :  { %1699 = vmatpush1.msra.mxu0 %v23384_v45  ;;  %1855 = vmatpush1.msra.mxu1 %v14259_v1  ;;  %v23390_v1 = vand.u32 4294901760, %v14289_v19  ;;  %v23395_v19 = vand.u32 4294901760, %v14336_v54  ;;  %v23404_v54 = vand.u32 4294901760, %v14416_v44  ;;  %v2058_v44 = vld [vmem:[%s22222_s3 + $0x1a8] sm:$0xff]  ;;  %v14742_v45 = vand.u32 4294901760, %v2050_v24 }
 0x154   :  { %1703 = vmatprep.subr.mxu0 %v23385_v50  ;;  %1857 = vmatprep.subr.mxu1 %v14275_v40  ;;  %v23391_v40 = vld [vmem:[#allocation25_spill] sm:$0xff]  ;;  %v14678_v31 = vand.u32 4294901760, %v2058_v44 }
 0x155   :  { %1707 = vmatpush1.msra.mxu0 %v23386_v42  ;;  %1859 = vmatpush1.msra.mxu1 %v14291_v56  ;;  %v23392_v56 = vand.u32 4294901760, %v14301_v60  ;;  %v23396_v60 = vand.u32 4294901760, %v14349_v58  ;;  %v23403_v58 = vand.u32 4294901760, %v14408_v5  ;;  %v2046_v50 = vld [vmem:[%s22222_s3 + $0x148] sm:$0xff]  ;;  %v2045_v42 = vld [vmem:[%s22222_s3 + $0x140] sm:$0xff] }
 0x156   :  { %1711 = vmatprep.subr.mxu0 %v23387_v55  ;;  %1861 = vmatprep.subr.mxu1 %v14303_v10  ;;  %v23397_v10 = vld [vmem:[#allocation31_spill] sm:$0xff]  ;;  %v14699_v4 = vsub.f32 %v2058_v44, %v14678_v31 }
 0x157   :  { %1715 = vmatpush1.msra.mxu0 %v23388_v29  ;;  %1863 = vmatpush1.msra.mxu1 %v14315_v6  ;;  %v23399_v6 = vand.u32 4294901760, %v14372_v26  ;;  %v2066_v26 = vld [vmem:[%s22222_s3 + $0x1e8] sm:$0xff]  ;;  %v2211_v29 = vand.u32 4294901760, %v2210_v12 }
 0x158   :  { %1719 = vmatprep.subr.mxu0 %v23389_v28  ;;  %1865 = vmatprep.subr.mxu1 %v14326_v48  ;;  %v23402_v48 = vand.u32 4294901760, %v14400_v23  ;;  %v14646_v57 = vand.u32 4294901760, %v2066_v26  ;;  %v14666_v23 = vsub.f32 %v2065_v21, %v14651_v25  ;;  %v22366_v17 = vand.u32 4294901760, %v14699_v4 }
 0x159   :  { %1723 = vmatpush1.msra.mxu0 %v23390_v1  ;;  %1867 = vmatpush1.msra.mxu1 %v23391_v40  ;;  %v14751_v28 = vsub.f32 %v2053_v52, %v14739_v11  ;;  %v14753_v1 = vand.u32 4294901760, %v2049_v2  ;;  %v2042_v40 = vld [vmem:[%s22222_s3 + $0x128] sm:$0xff] }
 0x15a   :  { %1727 = vmatprep.subr.mxu0 %v23392_v56  ;;  %1869 = vmatprep.subr.mxu1 %v14351_v39  ;;  %23405 = vst [vmem:[#allocation6_spill] sm:$0xff] %v14646_v57  ;;  %v2062_v39 = vld [vmem:[%s22222_s3 + $0x1c8] sm:$0xff]  ;;  %v22372_v46 = vand.u32 4294901760, %v14666_v23  ;;  %v2204_v18 = vsub.f32 %v14699_v4, %v22366_v17  ;;  %v2216_v56 = vsub.f32 %v14728_v59, %v22364_v38 }
 0x15b   :  { %1731 = vmatpush1.msra.mxu0 %v23393_v0  ;;  %1871 = vmatpush1.msra.mxu1 %v14364_v53  ;;  %v14657_v53 = vsub.f32 %v2066_v26, %v14646_v57  ;;  %v14763_v0 = vsub.f32 %v2050_v24, %v14742_v45  ;;  %v2034_v52 = vld [vmem:[%s22222_s3 + $0xe8] sm:$0xff] }
 0x15c   :  { %1735 = vmatprep.subr.mxu0 %v23394_v16  ;;  %1873 = vmatprep.subr.mxu1 %v14374_v15  ;;  %v14659_v15 = vand.u32 4294901760, %v2062_v39  ;;  %v2186_v41 = vsub.f32 %v14666_v23, %v22372_v46  ;;  %v2205_v55 = vand.u32 4294901760, %v2204_v18  ;;  %v22363_v16 = vand.u32 4294901760, %v14751_v28 }
 0x15d   :  { %1739 = vmatpush1.msra.mxu0 %v23395_v19  ;;  %1875 = vmatpush1.msra.mxu1 %v14384_v14  ;;  %23406 = vst [vmem:[#allocation34_spill] sm:$0xff] %v14657_v53  ;;  %v2061_v14 = vld [vmem:[%s22222_s3 + $0x1c0] sm:$0xff]  ;;  %v22373_v9 = vand.u32 4294901760, %v14657_v53  ;;  %v14768_v19 = vsub.f32 %v2049_v2, %v14753_v1 }
 0x15e   :  { %1908 = vmatprep.mubr.f32.mxu1 %v23244_v20  ;;  %1743 = vmatprep.subr.mxu0 %v23396_v60  ;;  %v14668_v5 = vand.u32 4294901760, %v2061_v14  ;;  %v14676_v37 = vsub.f32 %v2062_v39, %v14659_v15  ;;  %v2187_v22 = vand.u32 4294901760, %v2186_v41  ;;  %v14770_v60 = vand.u32 4294901760, %v2046_v50  ;;  %v2033_v2 = vld [vmem:[%s22222_s3 + $0xe0] sm:$0xff] }
 0x15f   :  { %1910 = vmatmul.mubr.f32.vlgmr.msra.gmra.mxu1 %v23397_v10  ;;  %1747 = vmatpush1.msra.mxu0 %v23398_v35  ;;  %v2180_v36 = vsub.f32 %v14657_v53, %v22373_v9  ;;  %v2041_v35 = vld [vmem:[%s22222_s3 + $0x120] sm:$0xff] }
 0x160   :  { %1804 = vmatprep.mubr.f32.mxu0 %v23244_v20  ;;  %1751 = vmatprep.subr.mxu0 %v23399_v6  ;;  %v14686_v43 = vsub.f32 %v2061_v14, %v14668_v5  ;;  %v22370_v51 = vand.u32 4294901760, %v14676_v37  ;;  %v2038_v6 = vld [vmem:[%s22222_s3 + $0x108] sm:$0xff]  ;;  %v14789_v26 = vsub.f32 %v2046_v50, %v14770_v60  ;;  %v14801_v44 = vand.u32 4294901760, %v2041_v35 }
 0x161   :  { %2401 = vmatprep.mubr.f32.mxu1 %v23244_v20  ;;  %1755 = vmatpush1.msra.mxu0 %v23400_v8  ;;  %v2181_v61 = vand.u32 4294901760, %v2180_v36  ;;  %v2217_v8 = vand.u32 4294901760, %v2216_v56  ;;  %v14803_v7 = vand.u32 4294901760, %v2038_v6  ;;  %v14835_v50 = vand.u32 4294901760, %v2037_v30  ;;  %v2030_v56 = vld [vmem:[%s22222_s3 + $0xc8] sm:$0xff] }
 0x162   :  { %1759 = vmatprep.subr.mxu0 %v23401_v3  ;;  %v22369_v62 = vand.u32 4294901760, %v14686_v43  ;;  %v2192_v13 = vsub.f32 %v14676_v37, %v22370_v51  ;;  %v22359_v3 = vand.u32 4294901760, %v14763_v0  ;;  %v14820_v24 = vsub.f32 %v2041_v35, %v14801_v44  ;;  %v2029_v35 = vld [vmem:[%s22222_s3 + $0xc0] sm:$0xff] }
 0x163   :  { %1763 = vmatpush1.msra.mxu0 %v23402_v48  ;;  %2182 = vmatprep.subr.mxu1 %v2181_v61  ;;  %v14782_v48 = vand.u32 4294901760, %v2042_v40  ;;  %v22357_v61 = vand.u32 4294901760, %v14789_v26 }
 0x164   :  { %1767 = vmatprep.subr.mxu0 %v23403_v58  ;;  %v2198_v32 = vsub.f32 %v14686_v43, %v22369_v62  ;;  %v2193_v34 = vand.u32 4294901760, %v2192_v13  ;;  %2188 = vmatpush1.msra.mxu1 %v2187_v22  ;;  %v2222_v58 = vsub.f32 %v14751_v28, %v22363_v16  ;;  %v2228_v39 = vsub.f32 %v14763_v0, %v22359_v3 }
 0x165   :  { %1771 = vmatpush1.msra.mxu0 %v23404_v54  ;;  %v22358_v54 = vand.u32 4294901760, %v14768_v19  ;;  %v14799_v14 = vsub.f32 %v2042_v40, %v14782_v48  ;;  %v2240_v18 = vsub.f32 %v14789_v26, %v22357_v61  ;;  %v14843_v40 = vand.u32 4294901760, %v2034_v52 }
 0x166   :  { %1806 = vmatmul.mubr.f32.vlgmr.msra.gmra.mxu0 %v23397_v10  ;;  %2070 = vmatprep.subr.mxu0 %v14646_v57  ;;  %v2199_v27 = vand.u32 4294901760, %v2198_v32  ;;  %v14772_v10 = vand.u32 4294901760, %v2045_v42  ;;  %v2223_v36 = vand.u32 4294901760, %v2222_v58  ;;  %v2229_v22 = vand.u32 4294901760, %v2228_v39 }
 0x167   :  { %2165 = vmatprep.mubr.f32.mxu0 %v23244_v20  ;;  %2072 = vmatpush1.msra.mxu0 %v14651_v25  ;;  %v2234_v41 = vsub.f32 %v14768_v19, %v22358_v54  ;;  %v22353_v32 = vand.u32 4294901760, %v14799_v14  ;;  %v14852_v58 = vsub.f32 %v2037_v30, %v14835_v50  ;;  %v14854_v39 = vand.u32 4294901760, %v2033_v2 }
 0x168   :  { %2074 = vmatprep.subr.mxu0 %v14659_v15  ;;  %2194 = vmatprep.subr.mxu1 %v2193_v34  ;;  %v14792_v21 = vsub.f32 %v2045_v42, %v14772_v10  ;;  %v14823_v34 = vsub.f32 %v2038_v6, %v14803_v7  ;;  %v2241_v6 = vand.u32 4294901760, %v2240_v18  ;;  %v14867_v30 = vsub.f32 %v2034_v52, %v14843_v40 }
 0x169   :  { %2076 = vmatpush1.msra.mxu0 %v14668_v5  ;;  %2200 = vmatpush1.msra.mxu1 %v2199_v27  ;;  %v2235_v27 = vand.u32 4294901760, %v2234_v41  ;;  %v2252_v42 = vsub.f32 %v14799_v14, %v22353_v32  ;;  %23408 = vst [vmem:[#allocation7_spill] sm:$0xff] %v14852_v58  ;;  %v22362_v18 = vand.u32 4294901760, %v14852_v58  ;;  %v14876_v32 = vand.u32 4294901760, %v2029_v35 }
 0x16a   :  { %2078 = vmatprep.subr.mxu0 %v14678_v31  ;;  %2206 = vmatprep.subr.mxu1 %v2205_v55  ;;  %v22356_v13 = vand.u32 4294901760, %v14792_v21  ;;  %23407 = vst [vmem:[#allocation13_spill] sm:$0xff] %v14823_v34  ;;  %v22354_v55 = vand.u32 4294901760, %v14820_v24  ;;  %23409 = vst [vmem:[#allocation15_spill] sm:$0xff] %v14867_v30 }
 0x16b   :  { %2080 = vmatpush1.msra.mxu0 %v14688_v33  ;;  %2212 = vmatpush1.msra.mxu1 %v2211_v29  ;;  %v22355_v29 = vand.u32 4294901760, %v14823_v34  ;;  %v2253_v41 = vand.u32 4294901760, %v2252_v42  ;;  %v14874_v42 = vand.u32 4294901760, %v2030_v56  ;;  %v14893_v3 = vsub.f32 %v2029_v35, %v14876_v32 }
 0x16c   :  { %2082 = vmatprep.subr.mxu0 %v14709_v63  ;;  %2218 = vmatprep.subr.mxu1 %v2217_v8  ;;  %v2246_v12 = vsub.f32 %v14792_v21, %v22356_v13 }
 0x16d   :  { %2084 = vmatpush1.msra.mxu0 %v14739_v11  ;;  %2224 = vmatpush1.msra.mxu1 %v2223_v36  ;;  %v2026_v36 = vld [vmem:[%s22222_s3 + $0xa8] sm:$0xff]  ;;  %v14890_v54 = vsub.f32 %v2030_v56, %v14874_v42  ;;  %23412 = vst [vmem:[#allocation18_spill] sm:$0xff] %v14893_v3 }
 0x16e   :  { %2086 = vmatprep.subr.mxu0 %v14742_v45  ;;  %2230 = vmatprep.subr.mxu1 %v2229_v22  ;;  %v2247_v8 = vand.u32 4294901760, %v2246_v12  ;;  %v2258_v22 = vsub.f32 %v14820_v24, %v22354_v55  ;;  %v14872_v12 = vsub.f32 %v2033_v2, %v14854_v39  ;;  %v2025_v55 = vld [vmem:[%s22222_s3 + $0xa0] sm:$0xff]  ;;  %v14883_v13 = vand.u32 4294901760, %v2026_v36 }
 0x16f   :  { %2088 = vmatpush1.msra.mxu0 %v14753_v1  ;;  %2236 = vmatpush1.msra.mxu1 %v2235_v27  ;;  %v2264_v27 = vsub.f32 %v14823_v34, %v22355_v29  ;;  %v2270_v2 = vsub.f32 %v14852_v58, %v22362_v18  ;;  %23411 = vst [vmem:[#allocation9_spill] sm:$0xff] %v14890_v54 }
 0x170   :  { %2090 = vmatprep.subr.mxu0 %v14770_v60  ;;  %2242 = vmatprep.subr.mxu1 %v2241_v6  ;;  %23410 = vst [vmem:[#allocation8_spill] sm:$0xff] %v14872_v12  ;;  %v2259_v52 = vand.u32 4294901760, %v2258_v22  ;;  %v22360_v6 = vand.u32 4294901760, %v14867_v30  ;;  %v22361_v61 = vand.u32 4294901760, %v14872_v12  ;;  %v14902_v22 = vand.u32 4294901760, %v2025_v55 }
 0x171   :  { %2092 = vmatpush1.msra.mxu0 %v14772_v10  ;;  %2248 = vmatpush1.msra.mxu1 %v2247_v8  ;;  %v2265_v29 = vand.u32 4294901760, %v2264_v27  ;;  %v2271_v56 = vand.u32 4294901760, %v2270_v2  ;;  %v22368_v27 = vand.u32 4294901760, %v14890_v54 }
 0x172   :  { %2094 = vmatprep.subr.mxu0 %v14782_v48  ;;  %2254 = vmatprep.subr.mxu1 %v2253_v41  ;;  %v2276_v8 = vsub.f32 %v14867_v30, %v22360_v6  ;;  %v14900_v41 = vsub.f32 %v2026_v36, %v14883_v13  ;;  %23414 = vst [vmem:[#allocation11_spill] sm:$0xff] %v14902_v22  ;;  %v2022_v6 = vld [vmem:[%s22222_s3 + $0x88] sm:$0xff]  ;;  %v2021_v36 = vld [vmem:[%s22222_s3 + $0x80] sm:$0xff] }
 0x173   :  { %2096 = vmatpush1.msra.mxu0 %v14801_v44  ;;  %2260 = vmatpush1.msra.mxu1 %v2259_v52  ;;  %v2282_v35 = vsub.f32 %v14872_v12, %v22361_v61  ;;  %v22367_v52 = vand.u32 4294901760, %v14893_v3  ;;  %v2018_v61 = vld [vmem:[%s22222_s3 + $0x68] sm:$0xff]  ;;  %v2288_v16 = vsub.f32 %v14890_v54, %v22368_v27  ;;  %v14939_v17 = vand.u32 4294901760, %v2021_v36 }
 0x174   :  { %2098 = vmatprep.subr.mxu0 %v14803_v7  ;;  %23413 = vst [vmem:[#allocation10_spill] sm:$0xff] %v14900_v41  ;;  %2266 = vmatprep.subr.mxu1 %v2265_v29  ;;  %v2277_v29 = vand.u32 4294901760, %v2276_v8  ;;  %v22371_v2 = vand.u32 4294901760, %v14900_v41  ;;  %v14929_v8 = vsub.f32 %v2025_v55, %v14902_v22  ;;  %v2013_v55 = vld [vmem:[%s22222_s3 + $0x40] sm:$0xff]  ;;  %v14948_v51 = vand.u32 4294901760, %v2018_v61 }
 0x175   :  { %2100 = vmatpush1.msra.mxu0 %v14835_v50  ;;  %2272 = vmatpush1.msra.mxu1 %v2271_v56  ;;  %v2283_v18 = vand.u32 4294901760, %v2282_v35  ;;  %v2294_v38 = vsub.f32 %v14893_v3, %v22367_v52  ;;  %v14937_v35 = vand.u32 4294901760, %v2022_v6  ;;  %23417 = vst [vmem:[#allocation23_spill] sm:$0xff] %v14939_v17  ;;  %v2014_v52 = vld [vmem:[%s22222_s3 + $0x48] sm:$0xff]  ;;  %v2289_v27 = vand.u32 4294901760, %v2288_v16 }
 0x176   :  { %2102 = vmatprep.subr.mxu0 %v14843_v40  ;;  %23415 = vst [vmem:[#allocation21_spill] sm:$0xff] %v14929_v8  ;;  %2278 = vmatprep.subr.mxu1 %v2277_v29  ;;  %v2300_v56 = vsub.f32 %v14900_v41, %v22371_v2  ;;  %v22380_v29 = vand.u32 4294901760, %v14929_v8  ;;  %23418 = vst [vmem:[#allocation14_spill] sm:$0xff] %v14948_v51  ;;  %v2010_v2 = vld [vmem:[%s22222_s3 + $0x28] sm:$0xff]  ;;  %v14957_v41 = vsub.f32 %v2021_v36, %v14939_v17 }
 0x177   :  { %2104 = vmatpush1.msra.mxu0 %v14854_v39  ;;  %23416 = vst [vmem:[#allocation12_spill] sm:$0xff] %v14937_v35  ;;  %2284 = vmatpush1.msra.mxu1 %v2283_v18  ;;  %v2295_v62 = vand.u32 4294901760, %v2294_v38  ;;  %v14954_v9 = vsub.f32 %v2022_v6, %v14937_v35  ;;  %v14959_v3 = vand.u32 4294901760, %v2017_v47  ;;  %v14966_v16 = vsub.f32 %v2018_v61, %v14948_v51  ;;  %v2009_v61 = vld [vmem:[%s22222_s3 + $0x20] sm:$0xff] }
 0x178   :  { %2106 = vmatprep.subr.mxu0 %v14874_v42  ;;  %v2301_v46 = vand.u32 4294901760, %v2300_v56  ;;  %23420 = vst [vmem:[#allocation16_spill] sm:$0xff] %v14957_v41  ;;  %2290 = vmatprep.subr.mxu1 %v2289_v27  ;;  %v2306_v38 = vsub.f32 %v14929_v8, %v22380_v29  ;;  %v14968_v18 = vand.u32 4294901760, %v2014_v52  ;;  %v14970_v56 = vand.u32 4294901760, %v2013_v55 }
 0x179   :  { %2108 = vmatpush1.msra.mxu0 %v14876_v32  ;;  %23419 = vst [vmem:[#allocation5_spill] sm:$0xff] %v14954_v9  ;;  %23421 = vst [vmem:[#allocation17_spill] sm:$0xff] %v14959_v3  ;;  %2296 = vmatpush1.msra.mxu1 %v2295_v62  ;;  %v22387_v6 = vand.u32 4294901760, %v14954_v9  ;;  %v14976_v27 = vsub.f32 %v2017_v47, %v14959_v3  ;;  %v14978_v54 = vand.u32 4294901760, %v2010_v2  ;;  %v22392_v8 = vand.u32 4294901760, %v14966_v16 }
 0x17a   :  { %2110 = vmatprep.subr.mxu0 %v14883_v13  ;;  %23422 = vst [vmem:[#allocation19_spill] sm:$0xff] %v14966_v16  ;;  %23423 = vst [vmem:[#allocation22_spill] sm:$0xff] %v14968_v18  ;;  %2302 = vmatprep.subr.mxu1 %v2301_v46  ;;  %v2307_v29 = vand.u32 4294901760, %v2306_v38  ;;  %v14986_v62 = vsub.f32 %v2014_v52, %v14968_v18  ;;  %v14989_v36 = vsub.f32 %v2013_v55, %v14970_v56 }
 0x17b   :  { %2112 = vmatpush1.msra.mxu0 %v14902_v22  ;;  %23424 = vst [vmem:[#allocation24_spill] sm:$0xff] %v14970_v56  ;;  %23425 = vst [vmem:[#allocation33_spill] sm:$0xff] %v14976_v27  ;;  %v2312_v47 = vsub.f32 %v14954_v9, %v22387_v6  ;;  %v23429_v12 = vand.u32 4294901760, %v14957_v41  ;;  %v15000_v38 = vsub.f32 %v2010_v2, %v14978_v54  ;;  %v15008_v9 = vand.u32 4294901760, %v2009_v61 }
 0x17c   :  { %2114 = vmatprep.subr.mxu0 %v14937_v35  ;;  %23426 = vst [vmem:[#allocation32_spill] sm:$0xff] %v14978_v54  ;;  %23427 = vst [vmem:[#allocation20_spill] sm:$0xff] %v14986_v62  ;;  %2308 = vmatpush1.msra.mxu1 %v2307_v29  ;;  %v2324_v52 = vsub.f32 %v14966_v16, %v22392_v8  ;;  %v22403_v55 = vand.u32 4294901760, %v14986_v62  ;;  %v23432_v29 = vand.u32 4294901760, %v14976_v27  ;;  %v2005_v8 = vld [vmem:[%s22222_s3] sm:$0xff] }
 0x17d   :  { %2116 = vmatpush1.msra.mxu0 %v14939_v17  ;;  %23428 = vst [vmem:[#allocation25_spill] sm:$0xff] %v14989_v36  ;;  %23430 = vst [vmem:[#allocation31_spill] sm:$0xff] %v15000_v38  ;;  %v2313_v2 = vand.u32 4294901760, %v2312_v47 }
 0x17e   :  { %2118 = vmatprep.subr.mxu0 %v14948_v51  ;;  %v2318_v51 = vsub.f32 %v14957_v41, %v23429_v12  ;;  %23431 = vst [vmem:[#allocation35_spill] sm:$0xff] %v15008_v9  ;;  %v2006_v12 = vld [vmem:[%s22222_s3 + $0x8] sm:$0xff]  ;;  %v2330_v41 = vsub.f32 %v14976_v27, %v23432_v29  ;;  %v2325_v6 = vand.u32 4294901760, %v2324_v52  ;;  %v2336_v16 = vsub.f32 %v14986_v62, %v22403_v55 }
 0x17f   :  { %2120 = vmatpush1.msra.mxu0 %v14959_v3  ;;  %2314 = vmatprep.subr.mxu1 %v2313_v2  ;;  %v15030_v27 = vsub.f32 %v2009_v61, %v15008_v9  ;;  %v15037_v62 = vand.u32 4294901760, %v2005_v8 }
 0x180   :  { %2122 = vmatprep.subr.mxu0 %v14968_v18  ;;  %v2319_v46 = vand.u32 4294901760, %v2318_v51  ;;  %v23433_v18 = vand.u32 4294901760, %v14989_v36  ;;  %v22407_v51 = vand.u32 4294901760, %v15000_v38  ;;  %v2331_v29 = vand.u32 4294901760, %v2330_v41 }
 0x181   :  { %2124 = vmatpush1.msra.mxu0 %v14970_v56  ;;  %23434 = vst [vmem:[#allocation36_spill] sm:$0xff] %v15030_v27  ;;  %v15032_v56 = vand.u32 4294901760, %v2006_v12  ;;  %v2337_v52 = vand.u32 4294901760, %v2336_v16  ;;  %23436 = vst [vmem:[#allocation38_spill] sm:$0xff] %v15037_v62  ;;  %v15045_v61 = vsub.f32 %v2005_v8, %v15037_v62 }
 0x182   :  { %2126 = vmatprep.subr.mxu0 %v14978_v54  ;;  %v2342_v47 = vsub.f32 %v14989_v36, %v23433_v18  ;;  %2320 = vmatpush1.msra.mxu1 %v2319_v46  ;;  %v2348_v55 = vsub.f32 %v15000_v38, %v22407_v51  ;;  %v22406_v18 = vand.u32 4294901760, %v15030_v27  ;;  %v23439_v38 = vld [vmem:[#allocation26_spill] sm:$0xff] }
 0x183   :  { %2128 = vmatpush1.msra.mxu0 %v15008_v9  ;;  %23435 = vst [vmem:[#allocation37_spill] sm:$0xff] %v15032_v56  ;;  %2326 = vmatprep.subr.mxu1 %v2325_v6  ;;  %v15041_v2 = vsub.f32 %v2006_v12, %v15032_v56  ;;  %23438 = vst [vmem:[#allocation40_spill] sm:$0xff] %v15045_v61  ;;  %v22418_v46 = vand.u32 4294901760, %v15045_v61  ;;  %v15062_v36 = vsub.s32 1, %v23439_v38  ;;  %v83_v38 = vld [vmem:[%s22220_s1] sm:$0xf] }
 0x184   :  { %v2343_v54 = vand.u32 4294901760, %v2342_v47  ;;  %2130 = vmatprep.subr.mxu0 %v15032_v56  ;;  %2332 = vmatpush1.msra.mxu1 %v2331_v29  ;;  %v2349_v41 = vand.u32 4294901760, %v2348_v55  ;;  %v2354_v16 = vsub.f32 %v15030_v27, %v22406_v18  ;;  %v541_v18 = vpop.f32.mrf.mxu1 }
 0x185   :  { %23437 = vst [vmem:[#allocation39_spill] sm:$0xff] %v15041_v2  ;;  %2132 = vmatpush1.msra.mxu0 %v15037_v62  ;;  %2338 = vmatprep.subr.mxu1 %v2337_v52  ;;  %v22411_v6 = vand.u32 4294901760, %v15041_v2  ;;  %v2366_v55 = vsub.f32 %v15045_v61, %v22418_v46  ;;  %23440 = vst [vmem:[#allocation26_spill] sm:$0xff] %v15062_v36  ;;  %v125_v56 = vrot.slane %v83_v38, %v15062_v36 }
 0x186   :  { %2411 = vmatprep.subr.mxu0 %v14657_v53  ;;  %2344 = vmatpush1.msra.mxu1 %v2343_v54  ;;  %v2355_v12 = vand.u32 4294901760, %v2354_v16  ;;  %v309_v54 = vpop.f32.mrf.mxu0  ;;  %v543_v16 = vpop.f32.mrf.mxu1 }
 0x187   :  { %2350 = vmatprep.subr.mxu1 %v2349_v41  ;;  %v2360_v8 = vsub.f32 %v15041_v2, %v22411_v6  ;;  %v2367_v29 = vand.u32 4294901760, %v2366_v55  ;;  %v542_v27 = vadd.f32 %v541_v18, %v309_v54 }
 0x188   :  { %2356 = vmatpush1.msra.mxu1 %v2355_v12  ;;  %v311_v52 = vpop.f32.mrf.mxu0 }
 0x189   :  { %v2361_v47 = vand.u32 4294901760, %v2360_v8  ;;  %v544_v53 = vadd.f32 %v543_v16, %v311_v52  ;;  %v86_v8 = vld [vmem:[%s22221_s2] sm:$0xf]  ;;  %v90_v52 = vpop.permute.xlu0 %89 }
 0x18a   :  { %v100_v46 = vrot.slane %v86_v8, %v15062_v36 }
 0x18b   :  { %2362 = vmatprep.subr.mxu1 %v2361_v47 }
 0x18c   :  { %2368 = vmatpush1.msra.mxu1 %v2367_v29  ;;  %v114_v16 = vmul.f32 %v100_v46, %v90_v52 }
 0x18d   :  { %2547 = vmatprep.subr.mxu1 %v14646_v57  ;;  %v23441_v57 = vld [vmem:[#allocation27_spill] sm:$0xff] }
 0x18e   :  { %v96_v62 = vrot.slane %v86_v8, %v23441_v57  ;;  %v121_v9 = vrot.slane %v83_v38, %v23441_v57 }
 0x196   :  { %v784_v6 = vpop.f32.mrf.mxu1 }
 0x198   :  { %v786_v47 = vpop.f32.mrf.mxu1 }
 0x19f   :  { %v678_v41 = vpop.f32.mrf.mxu0 }
 0x1a0   :  { %v679_v55 = vadd.f32 %v678_v41, %v542_v27  ;;  %v113_v27 = vmul.f32 %v96_v62, %v90_v52 }
 0x1a1   :  { %v680_v51 = vpop.f32.mrf.mxu0 }
 0x1a2   :  { %v681_v12 = vadd.f32 %v680_v51, %v544_v53  ;;  %v785_v54 = vadd.f32 %v784_v6, %v679_v55  ;;  %v138_v30 = vadd.f32 %v121_v9, %v113_v27 }
 0x1a4   :  { %v787_v61 = vadd.f32 %v786_v47, %v681_v12  ;;  %v139_v47 = vadd.f32 %v125_v56, %v114_v16  ;;  %v23443_v56 = vld [vmem:[#allocation28_spill] sm:$0xff] }
 0x1a5   :  { %v108_v9 = vrot.slane %v86_v8, %v23443_v56 }
 0x1b8   :  { %v1056_v18 = vpop.f32.mrf.mxu1 }
 0x1ba   :  { %v1058_v41 = vpop.f32.mrf.mxu1 }
 0x1c4   :  { %v952_v2 = vpop.f32.mrf.mxu0 }
 0x1c5   :  { %v953_v51 = vadd.f32 %v952_v2, %v785_v54  ;;  %v23442_v54 = vld [vmem:[#allocation29_spill] sm:$0xff] }
 0x1c6   :  { %v954_v29 = vpop.f32.mrf.mxu0  ;;  %v104_v57 = vrot.slane %v86_v8, %v23442_v54 }
 0x1c7   :  { %v955_v53 = vadd.f32 %v954_v29, %v787_v61  ;;  %v1057_v12 = vadd.f32 %v1056_v18, %v953_v51 }
 0x1c8   :  { %v115_v51 = vmul.f32 %v104_v57, %v90_v52 }
 0x1c9   :  { %v1059_v3 = vadd.f32 %v1058_v41, %v955_v53  ;;  %v1916_v58 = vadd.f32 %v1057_v12, %v138_v30  ;;  %v116_v41 = vmul.f32 %v108_v9, %v90_v52 }
 0x1cb   :  { %v1917_v17 = vadd.f32 %v1059_v3, %v139_v47  ;;  %v13146_v34 = vmul.f32 -1.442695, %v1916_v58 }
 0x1cd   :  { %v13148_v35 = vmul.f32 -1.442695, %v1917_v17 }
 0x1cf   :  { %13197 = vpow2.f32 %v13148_v35 }
 0x1d0   :  { %13199 = vpow2.f32 %v13146_v34  ;;  %v129_v34 = vrot.slane %v83_v38, %v23442_v54  ;;  %v23475_v54 = vld [vmem:[#allocation25_spill] sm:$0xff] }
 0x1d9   :  { %v1396_v61 = vpop.f32.mrf.mxu1 }
 0x1db   :  { %v1398_v46 = vpop.f32.mrf.mxu1 }
 0x1dc   :  { %v13198_v30 = vpop.eup %13197 }
 0x1dd   :  { %v13200_v58 = vpop.eup %13199  ;;  %v1936_v12 = vadd.f32 1.0, %v13198_v30  ;;  %v23444_v30 = vld [vmem:[#allocation30_spill] sm:$0xff] }
 0x1df   :  { %13201 = vrcp.f32 %v1936_v12 }
 0x1e4   :  { %v1164_v22 = vpop.f32.mrf.mxu0 }
 0x1e5   :  { %v1397_v55 = vadd.f32 %v1396_v61, %v1164_v22  ;;  %v133_v22 = vrot.slane %v83_v38, %v23443_v56  ;;  %v23474_v56 = vld [vmem:[#allocation20_spill] sm:$0xff] }
 0x1e6   :  { %v1166_v2 = vpop.f32.mrf.mxu0 }
 0x1e7   :  { %v1399_v53 = vadd.f32 %v1398_v46, %v1166_v2  ;;  %v1923_v2 = vadd.f32 1.0, %v13200_v58  ;;  %v140_v46 = vadd.f32 %v129_v34, %v115_v51  ;;  %v141_v57 = vadd.f32 %v133_v22, %v116_v41 }
 0x1e9   :  { %13203 = vrcp.f32 %v1923_v2  ;;  %v23451_v2 = vld [vmem:[#allocation13_spill] sm:$0xff] }
 0x1ec   :  { %v13202_v38 = vpop.eup %13201 }
 0x1f6   :  { %v13204_v52 = vpop.eup %13203 }
 0x1fd   :  { %v1639_v62 = vpop.f32.mrf.mxu1 }
 0x1ff   :  { %v1641_v17 = vpop.f32.mrf.mxu1 }
 0x205   :  { %v1533_v6 = vpop.f32.mrf.mxu0 }
 0x206   :  { %v1534_v18 = vadd.f32 %v1533_v6, %v1397_v55 }
 0x207   :  { %v1535_v29 = vpop.f32.mrf.mxu0 }
 0x208   :  { %v1536_v3 = vadd.f32 %v1535_v29, %v1399_v53  ;;  %v1640_v35 = vadd.f32 %v1639_v62, %v1534_v18 }
 0x20a   :  { %v1642_v61 = vadd.f32 %v1641_v17, %v1536_v3  ;;  %v1939_v3 = vmul.f32 %v13202_v38, %v23444_v30  ;;  %v23461_v38 = vld [vmem:[#allocation18_spill] sm:$0xff]  ;;  %v23464_v30 = vld [vmem:[#allocation32_spill] sm:$0xff] }
 0x21f   :  { %v1911_v16 = vpop.f32.mrf.mxu1 }
 0x221   :  { %v1913_v29 = vpop.f32.mrf.mxu1 }
 0x226   :  { %v1807_v27 = vpop.f32.mrf.mxu0 }
 0x227   :  { %v1808_v47 = vadd.f32 %v1807_v27, %v1640_v35 }
 0x228   :  { %v1809_v6 = vpop.f32.mrf.mxu0 }
 0x229   :  { %v1912_v8 = vadd.f32 %v1911_v16, %v1808_v47  ;;  %v1810_v55 = vadd.f32 %v1809_v6, %v1642_v61  ;;  %v23450_v61 = vld [vmem:[#allocation11_spill] sm:$0xff]  ;;  %v23452_v6 = vld [vmem:[#allocation12_spill] sm:$0xff] }
 0x22b   :  { %v1918_v53 = vadd.f32 %v1912_v8, %v140_v46  ;;  %v1914_v36 = vadd.f32 %v1913_v29, %v1810_v55  ;;  %v23453_v46 = vld [vmem:[#allocation7_spill] sm:$0xff]  ;;  %v23456_v29 = vld [vmem:[#allocation14_spill] sm:$0xff] }
 0x22c   :  { %v23454_v8 = vld [vmem:[#allocation23_spill] sm:$0xff] }
 0x22d   :  { %13205 = vtanh.f32 %v1918_v53  ;;  %v1919_v62 = vadd.f32 %v1914_v36, %v141_v57  ;;  %v23455_v55 = vld [vmem:[#allocation15_spill] sm:$0xff]  ;;  %v23457_v53 = vld [vmem:[#allocation8_spill] sm:$0xff]  ;;  %v23458_v57 = vld [vmem:[#allocation17_spill] sm:$0xff] }
 0x22f   :  { %v13147_v18 = vmul.f32 -1.442695, %v1919_v62  ;;  %v23459_v62 = vld [vmem:[#allocation9_spill] sm:$0xff] }
 0x231   :  { %13207 = vpow2.f32 %v13147_v18  ;;  %v23460_v18 = vld [vmem:[#allocation22_spill] sm:$0xff] }
 0x23a   :  { %v13206_v9 = vpop.eup %13205 }
 0x23b   :  { %v1940_v17 = vmul.f32 %v13206_v9, %v13204_v52  ;;  %v23462_v52 = vld [vmem:[#allocation24_spill] sm:$0xff]  ;;  %v23463_v9 = vld [vmem:[#allocation10_spill] sm:$0xff] }
 0x23d   :  { %v15079_v58 = vadd.f32 %v1940_v17, %v1939_v3  ;;  %v23465_v3 = vld [vmem:[#allocation21_spill] sm:$0xff]  ;;  %v23466_v17 = vld [vmem:[#allocation35_spill] sm:$0xff] }
 0x23e   :  { %v13208_v51 = vpop.eup %13207 }
 0x23f   :  { %23445 = vst [vmem:[#allocation30_spill] sm:$0xff] %v15079_v58  ;;  %v1930_v34 = vadd.f32 1.0, %v13208_v51  ;;  %13209 = vtanh.f32 %v15079_v58  ;;  %v23467_v51 = vld [vmem:[#allocation5_spill] sm:$0xff] }
 0x240   :  { %v23473_v58 = vld [vmem:[#allocation33_spill] sm:$0xff] }
 0x241   :  { %13211 = vrcp.f32 %v1930_v34  ;;  %v23468_v34 = vld [vmem:[#allocation37_spill] sm:$0xff] }
 0x24c   :  { %v13210_v35 = vpop.eup %13209 }
 0x24e   :  { %v13212_v16 = vpop.eup %13211 }
 0x24f   :  { %v1943_v27 = vmul.f32 %v13212_v16, %v13210_v35  ;;  %v23469_v35 = vld [vmem:[#allocation16_spill] sm:$0xff]  ;;  %v23470_v16 = vld [vmem:[#allocation38_spill] sm:$0xff] }
 0x251   :  { %13149 = vst [vmem:[%s22223_s4 + $0x8] sm:$0xff] %v1943_v27  ;;  %v15085_v36 = vand.u32 4294901760, %v1943_v27 }
 0x253   :  { %23446 = vst [vmem:[#allocation41_spill] sm:$0xff] %v15085_v36  ;;  %2403 = vmatmul.mubr.f32.vlgmr.msra.gmra.mxu1 %v15085_v36  ;;  %v15089_v22 = vsub.f32 %v1943_v27, %v15085_v36  ;;  %v23471_v27 = vld [vmem:[#allocation19_spill] sm:$0xff]  ;;  %v23477_v36 = vld [vmem:[#allocation36_spill] sm:$0xff] }
 0x254   :  { %2549 = vmatpush1.msra.mxu1 %v14651_v25  ;;  %2642 = vmatprep.mubr.f32.mxu1 %v23244_v20 }
 0x255   :  { %23447 = vst [vmem:[#allocation42_spill] sm:$0xff] %v15089_v22  ;;  %2551 = vmatprep.subr.mxu1 %v14659_v15  ;;  %v15095_v41 = vand.u32 4294901760, %v15089_v22 }
 0x256   :  { %2553 = vmatpush1.msra.mxu1 %v14668_v5 }
 0x257   :  { %23448 = vst [vmem:[#allocation43_spill] sm:$0xff] %v15095_v41  ;;  %2555 = vmatprep.subr.mxu1 %v14678_v31  ;;  %v2169_v12 = vsub.f32 %v15089_v22, %v15095_v41 }
 0x258   :  { %2557 = vmatpush1.msra.mxu1 %v14688_v33 }
 0x259   :  { %2559 = vmatprep.subr.mxu1 %v14709_v63  ;;  %v15103_v47 = vand.u32 4294901760, %v2169_v12  ;;  %v23472_v12 = vld [vmem:[#allocation6_spill] sm:$0xff] }
 0x25a   :  { %2561 = vmatpush1.msra.mxu1 %v14739_v11 }
 0x25b   :  { %23449 = vst [vmem:[#allocation44_spill] sm:$0xff] %v15103_v47  ;;  %2563 = vmatprep.subr.mxu1 %v14742_v45  ;;  %2171 = vmatmul.mubr.f32.vlgmr.msra.gmra.mxu0 %v15103_v47  ;;  %v23476_v47 = vld [vmem:[#allocation31_spill] sm:$0xff] }
 0x25c   :  { %2414 = vmatpush1.msra.mxu0 %v14666_v23  ;;  %2565 = vmatpush1.msra.mxu1 %v14753_v1 }
 0x25d   :  { %2417 = vmatprep.subr.mxu0 %v14676_v37  ;;  %2567 = vmatprep.subr.mxu1 %v14770_v60 }
 0x25e   :  { %2420 = vmatpush1.msra.mxu0 %v14686_v43  ;;  %2569 = vmatpush1.msra.mxu1 %v14772_v10 }
 0x25f   :  { %2423 = vmatprep.subr.mxu0 %v14699_v4  ;;  %2571 = vmatprep.subr.mxu1 %v14782_v48 }
 0x260   :  { %2426 = vmatpush1.msra.mxu0 %v14707_v49  ;;  %2573 = vmatpush1.msra.mxu1 %v14801_v44 }
 0x261   :  { %2429 = vmatprep.subr.mxu0 %v14728_v59  ;;  %2575 = vmatprep.subr.mxu1 %v14803_v7 }
 0x262   :  { %2432 = vmatpush1.msra.mxu0 %v14751_v28  ;;  %2577 = vmatpush1.msra.mxu1 %v14835_v50 }
 0x263   :  { %2435 = vmatprep.subr.mxu0 %v14763_v0  ;;  %2579 = vmatprep.subr.mxu1 %v14843_v40 }
 0x264   :  { %2438 = vmatpush1.msra.mxu0 %v14768_v19  ;;  %2581 = vmatpush1.msra.mxu1 %v14854_v39 }
 0x265   :  { %2441 = vmatprep.subr.mxu0 %v14789_v26  ;;  %2583 = vmatprep.subr.mxu1 %v14874_v42 }
 0x266   :  { %2444 = vmatpush1.msra.mxu0 %v14792_v21  ;;  %2585 = vmatpush1.msra.mxu1 %v14876_v32 }
 0x267   :  { %2447 = vmatprep.subr.mxu0 %v14799_v14  ;;  %2587 = vmatprep.subr.mxu1 %v14883_v13 }
 0x268   :  { %2450 = vmatpush1.msra.mxu0 %v14820_v24  ;;  %2589 = vmatpush1.msra.mxu1 %v23450_v61 }
 0x269   :  { %2453 = vmatprep.subr.mxu0 %v23451_v2  ;;  %2591 = vmatprep.subr.mxu1 %v23452_v6 }
 0x26a   :  { %2456 = vmatpush1.msra.mxu0 %v23453_v46  ;;  %2593 = vmatpush1.msra.mxu1 %v23454_v8 }
 0x26b   :  { %2459 = vmatprep.subr.mxu0 %v23455_v55  ;;  %2595 = vmatprep.subr.mxu1 %v23456_v29 }
 0x26c   :  { %2462 = vmatpush1.msra.mxu0 %v23457_v53  ;;  %2597 = vmatpush1.msra.mxu1 %v23458_v57 }
 0x26d   :  { %2465 = vmatprep.subr.mxu0 %v23459_v62  ;;  %2599 = vmatprep.subr.mxu1 %v23460_v18 }
 0x26e   :  { %2468 = vmatpush1.msra.mxu0 %v23461_v38  ;;  %2601 = vmatpush1.msra.mxu1 %v23462_v52 }
 0x26f   :  { %2471 = vmatprep.subr.mxu0 %v23463_v9  ;;  %2603 = vmatprep.subr.mxu1 %v23464_v30 }
 0x270   :  { %2474 = vmatpush1.msra.mxu0 %v23465_v3  ;;  %2605 = vmatpush1.msra.mxu1 %v23466_v17 }
 0x271   :  { %2477 = vmatprep.subr.mxu0 %v23467_v51  ;;  %2607 = vmatprep.subr.mxu1 %v23468_v34 }
 0x272   :  { %2480 = vmatpush1.msra.mxu0 %v23469_v35  ;;  %2609 = vmatpush1.msra.mxu1 %v23470_v16 }
 0x273   :  { %2483 = vmatprep.subr.mxu0 %v23471_v27  ;;  %2646 = vmatmul.mubr.f32.vlgmr.msra.gmra.mxu1 %v15095_v41 }
 0x274   :  { %2821 = vmatprep.subr.mxu1 %v23472_v12  ;;  %2486 = vmatpush1.msra.mxu0 %v23473_v58  ;;  %v23478_v12 = vld [vmem:[#allocation39_spill] sm:$0xff] }
 0x275   :  { %2823 = vmatpush1.msra.mxu1 %v14651_v25  ;;  %2489 = vmatprep.subr.mxu0 %v23474_v56  ;;  %v23479_v25 = vld [vmem:[#allocation40_spill] sm:$0xff] }
 0x276   :  { %2825 = vmatprep.subr.mxu1 %v14659_v15  ;;  %2492 = vmatpush1.msra.mxu0 %v23475_v54  ;;  %v2068_v15 = vld [vmem:[%s22222_s3 + $0x1f8] sm:$0xff] }
 0x277   :  { %2827 = vmatpush1.msra.mxu1 %v14668_v5  ;;  %2495 = vmatprep.subr.mxu0 %v23476_v47  ;;  %v23480_v5 = vld [vmem:[#allocation34_spill] sm:$0xff]  ;;  %v15187_v41 = vand.u32 4294901760, %v2068_v15 }
 0x278   :  { %2829 = vmatprep.subr.mxu1 %v14678_v31  ;;  %2498 = vmatpush1.msra.mxu0 %v23477_v36  ;;  %v23481_v31 = vand.u32 4294901760, %v23480_v5  ;;  %v2064_v5 = vld [vmem:[%s22222_s3 + $0x1d8] sm:$0xff] }
 0x279   :  { %2831 = vmatpush1.msra.mxu1 %v14688_v33  ;;  %2501 = vmatprep.subr.mxu0 %v23478_v12  ;;  %v23482_v33 = vand.u32 4294901760, %v14666_v23  ;;  %v23484_v23 = vand.u32 4294901760, %v14686_v43  ;;  %v23486_v43 = vand.u32 4294901760, %v14707_v49  ;;  %v2056_v49 = vld [vmem:[%s22222_s3 + $0x198] sm:$0xff] }
 0x27a   :  { %2833 = vmatprep.subr.mxu1 %v14709_v63  ;;  %2504 = vmatpush1.msra.mxu0 %v23479_v25  ;;  %v2067_v63 = vld [vmem:[%s22222_s3 + $0x1f0] sm:$0xff] }
 0x27b   :  { %2537 = vmatprep.mubr.f32.mxu0 %v23244_v20  ;;  %2835 = vmatpush1.msra.mxu1 %v14739_v11  ;;  %v23483_v11 = vand.u32 4294901760, %v14676_v37  ;;  %v23485_v37 = vand.u32 4294901760, %v14699_v4  ;;  %v23487_v4 = vand.u32 4294901760, %v14728_v59  ;;  %v2055_v59 = vld [vmem:[%s22222_s3 + $0x190] sm:$0xff] }
 0x27c   :  { %2540 = vmatmul.mubr.f32.vlgmr.msra.gmra.mxu0 %v15089_v22  ;;  %2655 = vmatprep.subr.mxu0 %v23481_v31  ;;  %v2060_v31 = vld [vmem:[%s22222_s3 + $0x1b8] sm:$0xff] }
 0x27d   :  { %2837 = vmatprep.subr.mxu1 %v14742_v45  ;;  %2659 = vmatpush1.msra.mxu0 %v23482_v33  ;;  %v2063_v45 = vld [vmem:[%s22222_s3 + $0x1d0] sm:$0xff]  ;;  %v15218_v33 = vsub.f32 %v2068_v15, %v15187_v41 }
 0x27e   :  { %2839 = vmatpush1.msra.mxu1 %v14753_v1  ;;  %2663 = vmatprep.subr.mxu0 %v23483_v11  ;;  %v15201_v1 = vand.u32 4294901760, %v2067_v63  ;;  %v15220_v11 = vand.u32 4294901760, %v2063_v45 }
 0x27f   :  { %2841 = vmatprep.subr.mxu1 %v14770_v60  ;;  %2667 = vmatpush1.msra.mxu0 %v23484_v23  ;;  %v15209_v60 = vand.u32 4294901760, %v2064_v5  ;;  %v15228_v23 = vand.u32 4294901760, %v2060_v31 }
 0x280   :  { %2843 = vmatpush1.msra.mxu1 %v14772_v10  ;;  %2671 = vmatprep.subr.mxu0 %v23485_v37  ;;  %v2059_v10 = vld [vmem:[%s22222_s3 + $0x1b0] sm:$0xff]  ;;  %v15237_v15 = vsub.f32 %v2067_v63, %v15201_v1  ;;  %v23493_v63 = vand.u32 4294901760, %v14789_v26 }
 0x281   :  { %2845 = vmatprep.subr.mxu1 %v14782_v48  ;;  %2675 = vmatpush1.msra.mxu0 %v23486_v43  ;;  %v23488_v48 = vand.u32 4294901760, %v14751_v28  ;;  %v15239_v37 = vand.u32 4294901760, %v2059_v10  ;;  %v2052_v28 = vld [vmem:[%s22222_s3 + $0x178] sm:$0xff]  ;;  %v15248_v43 = vsub.f32 %v2064_v5, %v15209_v60 }
 0x282   :  { %2847 = vmatpush1.msra.mxu1 %v14801_v44  ;;  %2679 = vmatprep.subr.mxu0 %v23487_v4  ;;  %v23489_v44 = vand.u32 4294901760, %v14763_v0  ;;  %23490 = vst [vmem:[#allocation11_spill] sm:$0xff] %v15237_v15  ;;  %v2051_v0 = vld [vmem:[%s22222_s3 + $0x170] sm:$0xff]  ;;  %v22452_v4 = vand.u32 4294901760, %v15218_v33  ;;  %v2048_v5 = vld [vmem:[%s22222_s3 + $0x158] sm:$0xff]  ;;  %v15273_v26 = vand.u32 4294901760, %v2052_v28 }
 0x283   :  { %2849 = vmatprep.subr.mxu1 %v14803_v7  ;;  %2683 = vmatpush1.msra.mxu0 %v23488_v48  ;;  %v23491_v7 = vand.u32 4294901760, %v14768_v19  ;;  %23492 = vst [vmem:[#allocation13_spill] sm:$0xff] %v15248_v43  ;;  %v15262_v19 = vand.u32 4294901760, %v2055_v59  ;;  %v23495_v48 = vand.u32 4294901760, %v14792_v21  ;;  %v15285_v21 = vand.u32 4294901760, %v2051_v0 }
 0x284   :  { %2851 = vmatpush1.msra.mxu1 %v14835_v50  ;;  %2687 = vmatprep.subr.mxu0 %v23489_v44  ;;  %v15250_v50 = vand.u32 4294901760, %v2056_v49  ;;  %v23497_v44 = vand.u32 4294901760, %v14799_v14 }
 0x285   :  { %2853 = vmatprep.subr.mxu1 %v14843_v40  ;;  %2691 = vmatpush1.msra.mxu0 %v23491_v7  ;;  %v15260_v40 = vsub.f32 %v2063_v45, %v15220_v11  ;;  %v2047_v45 = vld [vmem:[%s22222_s3 + $0x150] sm:$0xff]  ;;  %v22453_v7 = vand.u32 4294901760, %v15237_v15 }
 0x286   :  { %2855 = vmatpush1.msra.mxu1 %v14854_v39  ;;  %2695 = vmatprep.subr.mxu0 %v23493_v63  ;;  %v15271_v39 = vsub.f32 %v2060_v31, %v15228_v23  ;;  %v2044_v31 = vld [vmem:[%s22222_s3 + $0x138] sm:$0xff]  ;;  %v23499_v63 = vand.u32 4294901760, %v14820_v24  ;;  %v15295_v14 = vsub.f32 %v2056_v49, %v15250_v50  ;;  %v15312_v49 = vsub.f32 %v2055_v59, %v15262_v19 }
 0x287   :  { %23494 = vst [vmem:[#allocation12_spill] sm:$0xff] %v15260_v40  ;;  %2857 = vmatprep.subr.mxu1 %v14874_v42  ;;  %2699 = vmatpush1.msra.mxu0 %v23495_v48  ;;  %v15283_v42 = vsub.f32 %v2059_v10, %v15239_v37  ;;  %v15297_v48 = vand.u32 4294901760, %v2048_v5  ;;  %v2043_v10 = vld [vmem:[%s22222_s3 + $0x130] sm:$0xff]  ;;  %v23505_v59 = vand.u32 4294901760, %v23455_v55  ;;  %v15334_v24 = vsub.f32 %v15237_v15, %v22453_v7 }
 0x288   :  { %23496 = vst [vmem:[#allocation7_spill] sm:$0xff] %v15271_v39  ;;  %2859 = vmatpush1.msra.mxu1 %v14876_v32  ;;  %2703 = vmatprep.subr.mxu0 %v23497_v44  ;;  %23500 = vst [vmem:[#allocation15_spill] sm:$0xff] %v15295_v14  ;;  %v23501_v44 = vand.u32 4294901760, %v23451_v2  ;;  %v2040_v32 = vld [vmem:[%s22222_s3 + $0x118] sm:$0xff]  ;;  %v23508_v55 = vand.u32 4294901760, %v15248_v43  ;;  %v23510_v2 = vand.u32 4294901760, %v23459_v62 }
 0x289   :  { %23498 = vst [vmem:[#allocation23_spill] sm:$0xff] %v15283_v42  ;;  %2861 = vmatprep.subr.mxu1 %v14883_v13  ;;  %2707 = vmatpush1.msra.mxu0 %v23499_v63  ;;  %v15308_v13 = vsub.f32 %v15218_v33, %v22452_v4  ;;  %23502 = vst [vmem:[#allocation14_spill] sm:$0xff] %v15312_v49  ;;  %v15314_v63 = vand.u32 4294901760, %v2047_v45  ;;  %v15326_v4 = vand.u32 4294901760, %v2044_v31 }
 0x28a   :  { %2863 = vmatpush1.msra.mxu1 %v23450_v61  ;;  %2711 = vmatprep.subr.mxu0 %v23501_v44  ;;  %v23503_v61 = vand.u32 4294901760, %v23453_v46  ;;  %v15324_v44 = vsub.f32 %v2052_v28, %v15273_v26  ;;  %v15338_v46 = vsub.f32 %v2051_v0, %v15285_v21  ;;  %v2039_v28 = vld [vmem:[%s22222_s3 + $0x110] sm:$0xff]  ;;  %v15355_v0 = vsub.f32 %v2048_v5, %v15297_v48 }
 0x28b   :  { %2865 = vmatprep.subr.mxu1 %v23452_v6  ;;  %v15357_v6 = vand.u32 4294901760, %v2040_v32  ;;  %v15370_v7 = vsub.f32 %v2047_v45, %v15314_v63  ;;  %v23513_v5 = vand.u32 4294901760, %v23461_v38  ;;  %v2036_v45 = vld [vmem:[%s22222_s3 + $0xf8] sm:$0xff]  ;;  %v3042_v38 = vand.u32 4294901760, %v15334_v24  ;;  %2916 = vmatprep.mubr.f32.mxu1 %v23244_v20 }
 0x28c   :  { %2715 = vmatpush1.msra.mxu0 %v23503_v61  ;;  %23504 = vst [vmem:[#allocation8_spill] sm:$0xff] %v15324_v44  ;;  %2867 = vmatpush1.msra.mxu1 %v23454_v8  ;;  %23506 = vst [vmem:[#allocation17_spill] sm:$0xff] %v15338_v46  ;;  %v15340_v61 = vand.u32 4294901760, %v2043_v10  ;;  %v23507_v8 = vand.u32 4294901760, %v23457_v53  ;;  %v23511_v53 = vand.u32 4294901760, %v15260_v40  ;;  %v23530_v22 = vand.u32 4294901760, %v15355_v0 }
 0x28d   :  { %2719 = vmatprep.subr.mxu0 %v23505_v59  ;;  %2869 = vmatprep.subr.mxu1 %v23456_v29  ;;  %v15351_v59 = vsub.f32 %v15248_v43, %v23508_v55  ;;  %23509 = vst [vmem:[#allocation9_spill] sm:$0xff] %v15355_v0  ;;  %v3036_v29 = vand.u32 4294901760, %v15308_v13  ;;  %23512 = vst [vmem:[#allocation22_spill] sm:$0xff] %v15370_v7  ;;  %v23519_v55 = vand.u32 4294901760, %v23465_v3 }
 0x28e   :  { %2723 = vmatpush1.msra.mxu0 %v23507_v8  ;;  %2871 = vmatpush1.msra.mxu1 %v23458_v57  ;;  %v15366_v8 = vsub.f32 %v15260_v40, %v23511_v53  ;;  %v23514_v57 = vand.u32 4294901760, %v15271_v39  ;;  %v15384_v53 = vand.u32 4294901760, %v2039_v28  ;;  %v15400_v13 = vsub.f32 %v2043_v10, %v15340_v61  ;;  %v2035_v10 = vld [vmem:[%s22222_s3 + $0xf0] sm:$0xff] }
 0x28f   :  { %2727 = vmatprep.subr.mxu0 %v23510_v2  ;;  %2873 = vmatprep.subr.mxu1 %v23460_v18  ;;  %v15382_v2 = vsub.f32 %v2044_v31, %v15326_v4  ;;  %v23516_v18 = vand.u32 4294901760, %v23463_v9  ;;  %v23520_v9 = vand.u32 4294901760, %v15295_v14  ;;  %v2031_v31 = vld [vmem:[%s22222_s3 + $0xd0] sm:$0xff] }
 0x290   :  { %2731 = vmatpush1.msra.mxu0 %v23513_v5  ;;  %v15378_v62 = vsub.f32 %v15271_v39, %v23514_v57  ;;  %2875 = vmatpush1.msra.mxu1 %v23462_v52  ;;  %v23517_v5 = vand.u32 4294901760, %v15283_v42  ;;  %23518 = vst [vmem:[#allocation24_spill] sm:$0xff] %v15400_v13  ;;  %v3048_v52 = vand.u32 4294901760, %v15351_v59  ;;  %v3054_v3 = vand.u32 4294901760, %v15366_v8 }
 0x291   :  { %23515 = vst [vmem:[#allocation18_spill] sm:$0xff] %v15382_v2  ;;  %2735 = vmatprep.subr.mxu0 %v23516_v18  ;;  %2877 = vmatprep.subr.mxu1 %v23464_v30  ;;  %v15409_v24 = vsub.f32 %v15295_v14, %v23520_v9  ;;  %v23522_v30 = vand.u32 4294901760, %v23467_v51  ;;  %v23523_v59 = vand.u32 4294901760, %v15312_v49  ;;  %v2032_v18 = vld [vmem:[%s22222_s3 + $0xd8] sm:$0xff]  ;;  %v23525_v8 = vand.u32 4294901760, %v15324_v44 }
 0x292   :  { %v15396_v57 = vsub.f32 %v15283_v42, %v23517_v5  ;;  %2739 = vmatpush1.msra.mxu0 %v23519_v55  ;;  %v15413_v5 = vsub.f32 %v2040_v32, %v15357_v6  ;;  %2879 = vmatpush1.msra.mxu1 %v23466_v17  ;;  %v15428_v32 = vand.u32 4294901760, %v2036_v45  ;;  %v23524_v17 = vand.u32 4294901760, %v23469_v35 }
 0x293   :  { %2743 = vmatprep.subr.mxu0 %v23522_v30  ;;  %v15425_v55 = vsub.f32 %v15312_v49, %v23523_v59  ;;  %2881 = vmatprep.subr.mxu1 %v23468_v34  ;;  %v3060_v51 = vand.u32 4294901760, %v15378_v62  ;;  %v15440_v30 = vsub.f32 %v15324_v44, %v23525_v8  ;;  %v15444_v9 = vsub.f32 %v2039_v28, %v15384_v53  ;;  %v2028_v28 = vld [vmem:[%s22222_s3 + $0xb8] sm:$0xff]  ;;  %v2027_v44 = vld [vmem:[%s22222_s3 + $0xb0] sm:$0xff] }
 0x294   :  { %23521 = vst [vmem:[#allocation10_spill] sm:$0xff] %v15413_v5  ;;  %2747 = vmatpush1.msra.mxu0 %v23524_v17  ;;  %2883 = vmatpush1.msra.mxu1 %v23470_v16  ;;  %v3066_v34 = vand.u32 4294901760, %v15396_v57  ;;  %v23527_v35 = vand.u32 4294901760, %v15338_v46  ;;  %v15458_v8 = vand.u32 4294901760, %v2035_v10  ;;  %v23528_v59 = vand.u32 4294901760, %v23471_v27  ;;  %v23529_v16 = vld [vmem:[#allocation41_spill] sm:$0xff] }
 0x295   :  { %23526 = vst [vmem:[#allocation32_spill] sm:$0xff] %v15444_v9  ;;  %2918 = vmatmul.mubr.f32.vlgmr.msra.gmra.mxu1 %v23529_v16  ;;  %v3072_v57 = vand.u32 4294901760, %v15409_v24  ;;  %3037 = vmatprep.subr.mxu1 %v3036_v29  ;;  %v23531_v27 = vand.u32 4294901760, %v23473_v58  ;;  %v23532_v24 = vand.u32 4294901760, %v15370_v7  ;;  %v15489_v17 = vand.u32 4294901760, %v2031_v31 }
 0x296   :  { %v15455_v62 = vsub.f32 %v15338_v46, %v23527_v35  ;;  %2751 = vmatprep.subr.mxu0 %v23528_v59  ;;  %v15470_v35 = vsub.f32 %v15355_v0, %v23530_v22  ;;  %v15473_v46 = vand.u32 4294901760, %v2032_v18  ;;  %v3078_v59 = vand.u32 4294901760, %v15425_v55  ;;  %v2024_v0 = vld [vmem:[%s22222_s3 + $0x98] sm:$0xff]  ;;  %3043 = vmatpush1.msra.mxu1 %v3042_v38 }
 0x297   :  { %2755 = vmatpush1.msra.mxu0 %v23531_v27  ;;  %v15484_v49 = vsub.f32 %v15370_v7, %v23532_v24  ;;  %v15487_v22 = vsub.f32 %v2036_v45, %v15428_v32  ;;  %v23534_v58 = vand.u32 4294901760, %v23474_v56  ;;  %v3084_v29 = vand.u32 4294901760, %v15440_v30  ;;  %v2023_v7 = vld [vmem:[%s22222_s3 + $0x90] sm:$0xff]  ;;  %3049 = vmatprep.subr.mxu1 %v3048_v52 }
 0x298   :  { %v23535_v55 = vand.u32 4294901760, %v15382_v2  ;;  %v15503_v24 = vand.u32 4294901760, %v2028_v28  ;;  %v23537_v38 = vand.u32 4294901760, %v23475_v54  ;;  %v3090_v56 = vand.u32 4294901760, %v15455_v62  ;;  %3055 = vmatpush1.msra.mxu1 %v3054_v3  ;;  %2812 = vmatprep.mubr.f32.mxu0 %v23244_v20 }
 0x299   :  { %23533 = vst [vmem:[#allocation21_spill] sm:$0xff] %v15487_v22  ;;  %2759 = vmatprep.subr.mxu0 %v23534_v58  ;;  %v23538_v30 = vand.u32 4294901760, %v15400_v13  ;;  %v15519_v45 = vand.u32 4294901760, %v2027_v44  ;;  %v23540_v54 = vand.u32 4294901760, %v23476_v47  ;;  %v3096_v52 = vand.u32 4294901760, %v15470_v35  ;;  %3061 = vmatprep.subr.mxu1 %v3060_v51  ;;  %v2015_v35 = vld [vmem:[%s22222_s3 + $0x50] sm:$0xff] }
 0x29a   :  { %v15500_v27 = vsub.f32 %v15382_v2, %v23535_v55  ;;  %23536 = vst [vmem:[#allocation35_spill] sm:$0xff] %v15503_v24  ;;  %2763 = vmatpush1.msra.mxu0 %v23537_v38  ;;  %v15517_v55 = vsub.f32 %v2035_v10, %v15458_v8  ;;  %v2020_v2 = vld [vmem:[%s22222_s3 + $0x78] sm:$0xff]  ;;  %v23541_v62 = vand.u32 4294901760, %v15413_v5  ;;  %v15533_v10 = vsub.f32 %v2032_v18, %v15473_v46 }
 0x29b   :  { %v15514_v58 = vsub.f32 %v15400_v13, %v23538_v30  ;;  %2767 = vmatprep.subr.mxu0 %v23540_v54  ;;  %v15535_v30 = vand.u32 4294901760, %v2024_v0  ;;  %v2019_v13 = vld [vmem:[%s22222_s3 + $0x70] sm:$0xff]  ;;  %v23543_v47 = vand.u32 4294901760, %v23477_v36  ;;  %v3102_v3 = vand.u32 4294901760, %v15484_v49  ;;  %v2016_v18 = vld [vmem:[%s22222_s3 + $0x58] sm:$0xff]  ;;  %3067 = vmatpush1.msra.mxu1 %v3066_v34 }
 0x29c   :  { %23539 = vst [vmem:[#allocation5_spill] sm:$0xff] %v15517_v55  ;;  %v15530_v38 = vsub.f32 %v15413_v5, %v23541_v62  ;;  %23542 = vst [vmem:[#allocation37_spill] sm:$0xff] %v15533_v10  ;;  %v15545_v54 = vsub.f32 %v2031_v31, %v15489_v17  ;;  %v15547_v62 = vand.u32 4294901760, %v2023_v7  ;;  %v23544_v5 = vand.u32 4294901760, %v23478_v12  ;;  %3073 = vmatprep.subr.mxu1 %v3072_v57 }
 0x29d   :  { %2771 = vmatpush1.msra.mxu0 %v23543_v47  ;;  %v3108_v36 = vand.u32 4294901760, %v15500_v27  ;;  %v23545_v51 = vand.u32 4294901760, %v15444_v9  ;;  %v15561_v31 = vsub.f32 %v2028_v28, %v15503_v24  ;;  %v15563_v47 = vand.u32 4294901760, %v2020_v2  ;;  %v2012_v28 = vld [vmem:[%s22222_s3 + $0x38] sm:$0xff]  ;;  %3079 = vmatpush1.msra.mxu1 %v3078_v59 }
 0x29e   :  { %2775 = vmatprep.subr.mxu0 %v23544_v5  ;;  %v23546_v12 = vand.u32 4294901760, %v23479_v25  ;;  %v3114_v5 = vand.u32 4294901760, %v15514_v58  ;;  %v15573_v27 = vsub.f32 %v2027_v44, %v15519_v45  ;;  %v3120_v57 = vand.u32 4294901760, %v15530_v38  ;;  %v2011_v44 = vld [vmem:[%s22222_s3 + $0x30] sm:$0xff]  ;;  %3085 = vmatprep.subr.mxu1 %v3084_v29 }
 0x29f   :  { %v15558_v49 = vsub.f32 %v15444_v9, %v23545_v51  ;;  %v15575_v51 = vand.u32 4294901760, %v2019_v13  ;;  %v15584_v58 = vsub.f32 %v2024_v0, %v15535_v30  ;;  %v23547_v34 = vand.u32 4294901760, %v15487_v22  ;;  %v2008_v9 = vld [vmem:[%s22222_s3 + $0x18] sm:$0xff]  ;;  %3091 = vmatpush1.msra.mxu1 %v3090_v56  ;;  %3256 = vmatprep.mubr.f32.mxu1 %v23244_v20 }
 0x2a0   :  { %2779 = vmatpush1.msra.mxu0 %v23546_v12  ;;  %v15586_v12 = vand.u32 4294901760, %v2016_v18  ;;  %v15598_v25 = vsub.f32 %v2023_v7, %v15547_v62  ;;  %v15600_v0 = vand.u32 4294901760, %v2015_v35  ;;  %v15611_v38 = vand.u32 4294901760, %v2012_v28  ;;  %v2007_v7 = vld [vmem:[%s22222_s3 + $0x10] sm:$0xff]  ;;  %3097 = vmatprep.subr.mxu1 %v3096_v52 }
 0x2a1   :  { %2814 = vmatmul.mubr.f32.vlgmr.msra.gmra.mxu0 %v23529_v16  ;;  %2925 = vmatprep.subr.mxu0 %v15187_v41  ;;  %v3131_v59 = vsub.f32 %v15487_v22, %v23547_v34  ;;  %v3126_v14 = vand.u32 4294901760, %v15558_v49  ;;  %v15609_v34 = vsub.f32 %v2020_v2, %v15563_v47  ;;  %v23549_v29 = vand.u32 4294901760, %v15517_v55 }
 0x2a2   :  { %23548 = vst [vmem:[#allocation16_spill] sm:$0xff] %v15600_v0  ;;  %2927 = vmatpush1.msra.mxu0 %v15201_v1  ;;  %v15622_v42 = vsub.f32 %v2019_v13, %v15575_v51  ;;  %v15624_v2 = vand.u32 4294901760, %v2011_v44  ;;  %v23550_v39 = vand.u32 4294901760, %v15533_v10  ;;  %v15632_v43 = vsub.f32 %v2016_v18, %v15586_v12  ;;  %3103 = vmatpush1.msra.mxu1 %v3102_v3 }
 0x2a3   :  { %2929 = vmatprep.subr.mxu0 %v15209_v60  ;;  %v3137_v22 = vsub.f32 %v15517_v55, %v23549_v29  ;;  %v15634_v29 = vand.u32 4294901760, %v2008_v9  ;;  %v23551_v13 = vand.u32 4294901760, %v15545_v54  ;;  %v15642_v55 = vsub.f32 %v2015_v35, %v15600_v0  ;;  %3109 = vmatprep.subr.mxu1 %v3108_v36 }
 0x2a4   :  { %2931 = vmatpush1.msra.mxu0 %v15220_v11  ;;  %v3143_v56 = vsub.f32 %v15533_v10, %v23550_v39  ;;  %v15644_v39 = vand.u32 4294901760, %v2007_v7  ;;  %v3132_v18 = vand.u32 4294901760, %v3131_v59  ;;  %v23552_v40 = vand.u32 4294901760, %v15561_v31  ;;  %3115 = vmatpush1.msra.mxu1 %v3114_v5 }
 0x2a5   :  { %2933 = vmatprep.subr.mxu0 %v15228_v23  ;;  %v3149_v52 = vsub.f32 %v15545_v54, %v23551_v13  ;;  %v15652_v15 = vsub.f32 %v2012_v28, %v15611_v38  ;;  %v3138_v35 = vand.u32 4294901760, %v3137_v22  ;;  %v23553_v13 = vand.u32 4294901760, %v15573_v27  ;;  %3121 = vmatprep.subr.mxu1 %v3120_v57 }
 0x2a6   :  { %2935 = vmatpush1.msra.mxu0 %v15239_v37  ;;  %v3155_v3 = vsub.f32 %v15561_v31, %v23552_v40  ;;  %v15660_v59 = vsub.f32 %v2011_v44, %v15624_v2  ;;  %v3144_v40 = vand.u32 4294901760, %v3143_v56  ;;  %v23554_v28 = vand.u32 4294901760, %v15584_v58  ;;  %3127 = vmatpush1.msra.mxu1 %v3126_v14 }
 0x2a7   :  { %2937 = vmatprep.subr.mxu0 %v15250_v50  ;;  %v3161_v36 = vsub.f32 %v15573_v27, %v23553_v13  ;;  %v15668_v22 = vsub.f32 %v2008_v9, %v15634_v29  ;;  %v3150_v13 = vand.u32 4294901760, %v3149_v52  ;;  %v23555_v44 = vand.u32 4294901760, %v15598_v25  ;;  %3133 = vmatprep.subr.mxu1 %v3132_v18 }
 0x2a8   :  { %2939 = vmatpush1.msra.mxu0 %v15262_v19  ;;  %v3167_v5 = vsub.f32 %v15584_v58, %v23554_v28  ;;  %v15676_v56 = vsub.f32 %v2007_v7, %v15644_v39  ;;  %v3156_v28 = vand.u32 4294901760, %v3155_v3  ;;  %v23556_v9 = vand.u32 4294901760, %v15609_v34  ;;  %3139 = vmatpush1.msra.mxu1 %v3138_v35 }
 0x2a9   :  { %2941 = vmatprep.subr.mxu0 %v15273_v26  ;;  %v3173_v57 = vsub.f32 %v15598_v25, %v23555_v44  ;;  %v3162_v52 = vand.u32 4294901760, %v3161_v36  ;;  %v23557_v44 = vand.u32 4294901760, %v15622_v42  ;;  %3145 = vmatprep.subr.mxu1 %v3144_v40  ;;  %v23558_v3 = vand.u32 4294901760, %v15632_v43 }
 0x2aa   :  { %2943 = vmatpush1.msra.mxu0 %v15285_v21  ;;  %v3179_v14 = vsub.f32 %v15609_v34, %v23556_v9  ;;  %v3168_v18 = vand.u32 4294901760, %v3167_v5  ;;  %3151 = vmatpush1.msra.mxu1 %v3150_v13  ;;  %v23559_v36 = vand.u32 4294901760, %v15642_v55  ;;  %v22491_v7 = vand.u32 4294901760, %v15676_v56 }
 0x2ab   :  { %2945 = vmatprep.subr.mxu0 %v15297_v48  ;;  %v3185_v49 = vsub.f32 %v15622_v42, %v23557_v44  ;;  %v3191_v9 = vsub.f32 %v15632_v43, %v23558_v3  ;;  %v3174_v35 = vand.u32 4294901760, %v3173_v57  ;;  %3157 = vmatprep.subr.mxu1 %v3156_v28  ;;  %v23560_v5 = vand.u32 4294901760, %v15652_v15 }
 0x2ac   :  { %2947 = vmatpush1.msra.mxu0 %v15314_v63  ;;  %v3197_v44 = vsub.f32 %v15642_v55, %v23559_v36  ;;  %v3180_v40 = vand.u32 4294901760, %v3179_v14  ;;  %3163 = vmatpush1.msra.mxu1 %v3162_v52  ;;  %v23561_v57 = vand.u32 4294901760, %v15660_v59  ;;  %v23562_v28 = vand.u32 4294901760, %v15668_v22 }
 0x2ad   :  { %2949 = vmatprep.subr.mxu0 %v15326_v4  ;;  %v3203_v3 = vsub.f32 %v15652_v15, %v23560_v5  ;;  %v3186_v13 = vand.u32 4294901760, %v3185_v49  ;;  %3169 = vmatprep.subr.mxu1 %v3168_v18  ;;  %v3192_v36 = vand.u32 4294901760, %v3191_v9  ;;  %v3221_v49 = vsub.f32 %v15676_v56, %v22491_v7  ;;  %v23579_v7 = vld [vmem:[#allocation21_spill] sm:$0xff] }
 0x2ae   :  { %2951 = vmatpush1.msra.mxu0 %v15340_v61  ;;  %v3209_v10 = vsub.f32 %v15660_v59, %v23561_v57  ;;  %v3215_v14 = vsub.f32 %v15668_v22, %v23562_v28  ;;  %3175 = vmatpush1.msra.mxu1 %v3174_v35  ;;  %v3198_v5 = vand.u32 4294901760, %v3197_v44  ;;  %v23564_v44 = vld [vmem:[#allocation11_spill] sm:$0xff]  ;;  %v23570_v28 = vld [vmem:[#allocation14_spill] sm:$0xff] }
 0x2af   :  { %2953 = vmatprep.subr.mxu0 %v15357_v6  ;;  %3181 = vmatprep.subr.mxu1 %v3180_v40  ;;  %v3204_v52 = vand.u32 4294901760, %v3203_v3  ;;  %v3222_v35 = vand.u32 4294901760, %v3221_v49  ;;  %v23565_v40 = vld [vmem:[#allocation13_spill] sm:$0xff]  ;;  %v23566_v3 = vld [vmem:[#allocation12_spill] sm:$0xff]  ;;  %v23568_v57 = vld [vmem:[#allocation23_spill] sm:$0xff] }
 0x2b0   :  { %2955 = vmatpush1.msra.mxu0 %v15384_v53  ;;  %3187 = vmatpush1.msra.mxu1 %v3186_v13  ;;  %v3210_v18 = vand.u32 4294901760, %v3209_v10  ;;  %v3216_v9 = vand.u32 4294901760, %v3215_v14  ;;  %v23563_v10 = vld [vmem:[#allocation44_spill] sm:$0xff]  ;;  %v23567_v13 = vld [vmem:[#allocation7_spill] sm:$0xff]  ;;  %v23573_v49 = vld [vmem:[#allocation9_spill] sm:$0xff] }
 0x2b1   :  { %2957 = vmatprep.subr.mxu0 %v15428_v32  ;;  %3193 = vmatprep.subr.mxu1 %v3192_v36  ;;  %v23569_v36 = vld [vmem:[#allocation15_spill] sm:$0xff]  ;;  %v23571_v14 = vld [vmem:[#allocation8_spill] sm:$0xff] }
 0x2b2   :  { %2959 = vmatpush1.msra.mxu0 %v15458_v8  ;;  %3199 = vmatpush1.msra.mxu1 %v3198_v5  ;;  %v23572_v5 = vld [vmem:[#allocation17_spill] sm:$0xff] }
 0x2b3   :  { %2961 = vmatprep.subr.mxu0 %v15473_v46  ;;  %3205 = vmatprep.subr.mxu1 %v3204_v52  ;;  %v23574_v52 = vld [vmem:[#allocation22_spill] sm:$0xff] }
 0x2b4   :  { %2963 = vmatpush1.msra.mxu0 %v15489_v17  ;;  %3211 = vmatpush1.msra.mxu1 %v3210_v18  ;;  %v23575_v18 = vld [vmem:[#allocation18_spill] sm:$0xff] }
 0x2b5   :  { %2965 = vmatprep.subr.mxu0 %v15503_v24  ;;  %3217 = vmatprep.subr.mxu1 %v3216_v9  ;;  %v23576_v9 = vld [vmem:[#allocation24_spill] sm:$0xff] }
 0x2b6   :  { %2967 = vmatpush1.msra.mxu0 %v15519_v45  ;;  %3223 = vmatpush1.msra.mxu1 %v3222_v35  ;;  %v23577_v35 = vld [vmem:[#allocation10_spill] sm:$0xff] }
 0x2b7   :  { %2969 = vmatprep.subr.mxu0 %v15535_v30  ;;  %3258 = vmatmul.mubr.f32.vlgmr.msra.gmra.mxu1 %v23529_v16  ;;  %v23580_v16 = vld [vmem:[#allocation5_spill] sm:$0xff] }
 0x2b8   :  { %2971 = vmatpush1.msra.mxu0 %v15547_v62  ;;  %3402 = vmatprep.subr.mxu1 %v15187_v41 }
 0x2b9   :  { %2973 = vmatprep.subr.mxu0 %v15563_v47  ;;  %3404 = vmatpush1.msra.mxu1 %v15201_v1 }
 0x2ba   :  { %2975 = vmatpush1.msra.mxu0 %v15575_v51  ;;  %3406 = vmatprep.subr.mxu1 %v15209_v60 }
 0x2bb   :  { %2977 = vmatprep.subr.mxu0 %v15586_v12  ;;  %3408 = vmatpush1.msra.mxu1 %v15220_v11 }
 0x2bc   :  { %2979 = vmatpush1.msra.mxu0 %v15600_v0  ;;  %3410 = vmatprep.subr.mxu1 %v15228_v23 }
 0x2bd   :  { %2981 = vmatprep.subr.mxu0 %v15611_v38  ;;  %3412 = vmatpush1.msra.mxu1 %v15239_v37 }
 0x2be   :  { %2983 = vmatpush1.msra.mxu0 %v15624_v2  ;;  %3414 = vmatprep.subr.mxu1 %v15250_v50 }
 0x2bf   :  { %2985 = vmatprep.subr.mxu0 %v15634_v29  ;;  %3020 = vmatprep.mubr.f32.mxu0 %v23244_v20 }
 0x2c0   :  { %2987 = vmatpush1.msra.mxu0 %v15644_v39  ;;  %3416 = vmatpush1.msra.mxu1 %v15262_v19 }
 0x2c1   :  { %3026 = vmatmul.mubr.f32.vlgmr.msra.gmra.mxu0 %v23563_v10  ;;  %3266 = vmatprep.subr.mxu0 %v15218_v33  ;;  %v23578_v10 = vld [vmem:[#allocation32_spill] sm:$0xff] }
 0x2c2   :  { %3418 = vmatprep.subr.mxu1 %v15273_v26  ;;  %3269 = vmatpush1.msra.mxu0 %v23564_v44 }
 0x2c3   :  { %3420 = vmatpush1.msra.mxu1 %v15285_v21  ;;  %3272 = vmatprep.subr.mxu0 %v23565_v40 }
 0x2c4   :  { %3422 = vmatprep.subr.mxu1 %v15297_v48  ;;  %3275 = vmatpush1.msra.mxu0 %v23566_v3 }
 0x2c5   :  { %3424 = vmatpush1.msra.mxu1 %v15314_v63  ;;  %3278 = vmatprep.subr.mxu0 %v23567_v13 }
 0x2c6   :  { %3426 = vmatprep.subr.mxu1 %v15326_v4  ;;  %3281 = vmatpush1.msra.mxu0 %v23568_v57 }
 0x2c7   :  { %3428 = vmatpush1.msra.mxu1 %v15340_v61  ;;  %3284 = vmatprep.subr.mxu0 %v23569_v36 }
 0x2c8   :  { %3430 = vmatprep.subr.mxu1 %v15357_v6  ;;  %3287 = vmatpush1.msra.mxu0 %v23570_v28 }
 0x2c9   :  { %3432 = vmatpush1.msra.mxu1 %v15384_v53  ;;  %3290 = vmatprep.subr.mxu0 %v23571_v14 }
 0x2ca   :  { %3434 = vmatprep.subr.mxu1 %v15428_v32  ;;  %3293 = vmatpush1.msra.mxu0 %v23572_v5 }
 0x2cb   :  { %3436 = vmatpush1.msra.mxu1 %v15458_v8  ;;  %3296 = vmatprep.subr.mxu0 %v23573_v49 }
 0x2cc   :  { %3438 = vmatprep.subr.mxu1 %v15473_v46  ;;  %3299 = vmatpush1.msra.mxu0 %v23574_v52 }
 0x2cd   :  { %3440 = vmatpush1.msra.mxu1 %v15489_v17  ;;  %3302 = vmatprep.subr.mxu0 %v23575_v18 }
 0x2ce   :  { %3442 = vmatprep.subr.mxu1 %v15503_v24  ;;  %3305 = vmatpush1.msra.mxu0 %v23576_v9  ;;  %v23581_v24 = vld [vmem:[#allocation37_spill] sm:$0xff] }
 0x2cf   :  { %3444 = vmatpush1.msra.mxu1 %v15519_v45  ;;  %3308 = vmatprep.subr.mxu0 %v23577_v35 }
 0x2d0   :  { %3446 = vmatprep.subr.mxu1 %v15535_v30  ;;  %3311 = vmatpush1.msra.mxu0 %v23578_v10 }
 0x2d1   :  { %3448 = vmatpush1.msra.mxu1 %v15547_v62  ;;  %3314 = vmatprep.subr.mxu0 %v23579_v7 }
 0x2d2   :  { %3450 = vmatprep.subr.mxu1 %v15563_v47  ;;  %3317 = vmatpush1.msra.mxu0 %v23580_v16 }
 0x2d3   :  { %3452 = vmatpush1.msra.mxu1 %v15575_v51  ;;  %3320 = vmatprep.subr.mxu0 %v23581_v24 }
 0x2d4   :  { %3454 = vmatprep.subr.mxu1 %v15586_v12  ;;  %3323 = vmatpush1.msra.mxu0 %v15545_v54 }
 0x2d5   :  { %3456 = vmatpush1.msra.mxu1 %v15600_v0  ;;  %3326 = vmatprep.subr.mxu0 %v15561_v31  ;;  %v23582_v0 = vld [vmem:[#allocation43_spill] sm:$0xff] }
 0x2d6   :  { %3458 = vmatprep.subr.mxu1 %v15611_v38  ;;  %3329 = vmatpush1.msra.mxu0 %v15573_v27 }
 0x2d7   :  { %3460 = vmatpush1.msra.mxu1 %v15624_v2  ;;  %3332 = vmatprep.subr.mxu0 %v15584_v58 }
 0x2d8   :  { %3462 = vmatprep.subr.mxu1 %v15634_v29  ;;  %3335 = vmatpush1.msra.mxu0 %v15598_v25 }
 0x2d9   :  { %3464 = vmatpush1.msra.mxu1 %v15644_v39  ;;  %3497 = vmatprep.mubr.f32.mxu1 %v23244_v20 }
 0x2da   :  { %3338 = vmatprep.subr.mxu0 %v15609_v34  ;;  %3501 = vmatmul.mubr.f32.vlgmr.msra.gmra.mxu1 %v23582_v0  ;;  %v23605_v0 = vld [vmem:[#allocation16_spill] sm:$0xff] }
 0x2db   :  { %3676 = vmatprep.subr.mxu1 %v15187_v41  ;;  %3341 = vmatpush1.msra.mxu0 %v15622_v42  ;;  %v23583_v41 = vld [vmem:[#allocation42_spill] sm:$0xff] }
 0x2dc   :  { %3678 = vmatpush1.msra.mxu1 %v15201_v1  ;;  %3344 = vmatprep.subr.mxu0 %v15632_v43  ;;  %v23584_v1 = vand.u32 4294901760, %v15218_v33  ;;  %v23588_v33 = vand.u32 4294901760, %v23567_v13 }
 0x2dd   :  { %3680 = vmatprep.subr.mxu1 %v15209_v60  ;;  %3347 = vmatpush1.msra.mxu0 %v15642_v55  ;;  %v23585_v60 = vand.u32 4294901760, %v23564_v44 }
 0x2de   :  { %3682 = vmatpush1.msra.mxu1 %v15220_v11  ;;  %3350 = vmatprep.subr.mxu0 %v15652_v15  ;;  %v23586_v11 = vand.u32 4294901760, %v23565_v40 }
 0x2df   :  { %3684 = vmatprep.subr.mxu1 %v15228_v23  ;;  %3353 = vmatpush1.msra.mxu0 %v15660_v59  ;;  %v13150_v23 = vld [vmem:[%s22219_s0 + $0x10] sm:$0xff] }
 0x2e0   :  { %3686 = vmatpush1.msra.mxu1 %v15239_v37  ;;  %3356 = vmatprep.subr.mxu0 %v15668_v22  ;;  %v23587_v37 = vand.u32 4294901760, %v23566_v3  ;;  %v3921_v3 = vld [vmem:[%s22222_s3 + $0x1a8] sm:$0xff] }
 0x2e1   :  { %3688 = vmatprep.subr.mxu1 %v15250_v50  ;;  %3359 = vmatpush1.msra.mxu0 %v15676_v56  ;;  %v23589_v50 = vand.u32 4294901760, %v23568_v57 }
 0x2e2   :  { %3392 = vmatprep.mubr.f32.mxu0 %v23244_v20  ;;  %3690 = vmatpush1.msra.mxu1 %v15262_v19  ;;  %v23590_v19 = vand.u32 4294901760, %v23569_v36  ;;  %v15950_v36 = vand.u32 4294901760, %v3921_v3 }
 0x2e3   :  { %3395 = vmatmul.mubr.f32.vlgmr.msra.gmra.mxu0 %v23583_v41  ;;  %3510 = vmatprep.subr.mxu0 %v23584_v1  ;;  %v3916_v41 = vld [vmem:[%s22222_s3 + $0x180] sm:$0xff] }
 0x2e4   :  { %3692 = vmatprep.subr.mxu1 %v15273_v26  ;;  %3514 = vmatpush1.msra.mxu0 %v23585_v60  ;;  %v23591_v26 = vand.u32 4294901760, %v23570_v28  ;;  %v3920_v28 = vld [vmem:[%s22222_s3 + $0x1a0] sm:$0xff] }
 0x2e5   :  { %3694 = vmatpush1.msra.mxu1 %v15285_v21  ;;  %3518 = vmatprep.subr.mxu0 %v23586_v11  ;;  %v23592_v21 = vand.u32 4294901760, %v23571_v14 }
 0x2e6   :  { %3696 = vmatprep.subr.mxu1 %v15297_v48  ;;  %3522 = vmatpush1.msra.mxu0 %v23587_v37  ;;  %v23594_v48 = vand.u32 4294901760, %v23573_v49  ;;  %v15960_v49 = vand.u32 4294901760, %v3920_v28  ;;  %v3913_v37 = vld [vmem:[%s22222_s3 + $0x168] sm:$0xff] }
 0x2e7   :  { %3698 = vmatpush1.msra.mxu1 %v15314_v63  ;;  %3526 = vmatprep.subr.mxu0 %v23588_v33  ;;  %v23595_v63 = vand.u32 4294901760, %v23574_v52  ;;  %v3917_v52 = vld [vmem:[%s22222_s3 + $0x188] sm:$0xff] }
 0x2e8   :  { %3700 = vmatprep.subr.mxu1 %v15326_v4  ;;  %1952 = vperm.xlu1 %13184, %v13150_v23   ;;  %v23593_v4 = vand.u32 4294901760, %v23572_v5  ;;  %v15984_v11 = vsub.f32 %v3920_v28, %v15960_v49  ;;  %v15986_v23 = vand.u32 4294901760, %v3916_v41 }
 0x2e9   :  { %3530 = vmatpush1.msra.mxu0 %v23589_v50  ;;  %3702 = vmatpush1.msra.mxu1 %v15340_v61  ;;  %v23597_v61 = vld [vmem:[#allocation35_spill] sm:$0xff] }
 0x2ea   :  { %3534 = vmatprep.subr.mxu0 %v23590_v19  ;;  %3704 = vmatprep.subr.mxu1 %v15357_v6  ;;  %v23596_v6 = vand.u32 4294901760, %v23575_v18 }
 0x2eb   :  { %3538 = vmatpush1.msra.mxu0 %v23591_v26  ;;  %3706 = vmatpush1.msra.mxu1 %v15384_v53  ;;  %v23598_v53 = vand.u32 4294901760, %v23576_v9 }
 0x2ec   :  { %3542 = vmatprep.subr.mxu0 %v23592_v21  ;;  %3708 = vmatprep.subr.mxu1 %v15428_v32  ;;  %v23599_v32 = vand.u32 4294901760, %v23577_v35  ;;  %v15971_v35 = vsub.f32 %v3921_v3, %v15950_v36  ;;  %v3912_v21 = vld [vmem:[%s22222_s3 + $0x160] sm:$0xff] }
 0x2ed   :  { %3546 = vmatpush1.msra.mxu0 %v23593_v4  ;;  %3710 = vmatpush1.msra.mxu1 %v15458_v8  ;;  %v23602_v8 = vand.u32 4294901760, %v23580_v16  ;;  %v23607_v16 = vand.u32 4294901760, %v15573_v27  ;;  %v23611_v27 = vld [vmem:[#allocation41_spill] sm:$0xff] }
 0x2ee   :  { %3550 = vmatprep.subr.mxu0 %v23594_v48  ;;  %3712 = vmatprep.subr.mxu1 %v15473_v46  ;;  %v23600_v46 = vand.u32 4294901760, %v23578_v10  ;;  %v15973_v10 = vand.u32 4294901760, %v3917_v52  ;;  %v22508_v19 = vand.u32 4294901760, %v15971_v35 }
 0x2ef   :  { %3554 = vmatpush1.msra.mxu0 %v23595_v63  ;;  %3714 = vmatpush1.msra.mxu1 %v15489_v17  ;;  %v23601_v17 = vand.u32 4294901760, %v23579_v7  ;;  %v3924_v7 = vld [vmem:[%s22222_s3 + $0x1c0] sm:$0xff]  ;;  %v22507_v63 = vand.u32 4294901760, %v15984_v11 }
 0x2f0   :  { %3558 = vmatprep.subr.mxu0 %v23596_v6  ;;  %3716 = vmatprep.subr.mxu1 %v23597_v61  ;;  %v15940_v40 = vand.u32 4294901760, %v3924_v7  ;;  %v15997_v26 = vsub.f32 %v3917_v52, %v15973_v10  ;;  %v16008_v6 = vsub.f32 %v3916_v41, %v15986_v23  ;;  %v3909_v61 = vld [vmem:[%s22222_s3 + $0x148] sm:$0xff] }
 0x2f1   :  { %3562 = vmatpush1.msra.mxu0 %v23598_v53  ;;  %3718 = vmatpush1.msra.mxu1 %v15519_v45  ;;  %v23603_v45 = vand.u32 4294901760, %v23581_v24  ;;  %v23608_v24 = vand.u32 4294901760, %v15584_v58  ;;  %v23613_v58 = vand.u32 4294901760, %v15632_v43  ;;  %v23617_v43 = vand.u32 4294901760, %v15668_v22 }
 0x2f2   :  { %3566 = vmatprep.subr.mxu0 %v23599_v32  ;;  %3720 = vmatprep.subr.mxu1 %v15535_v30  ;;  %v23604_v30 = vand.u32 4294901760, %v15545_v54  ;;  %v23609_v54 = vand.u32 4294901760, %v15598_v25  ;;  %v23614_v25 = vand.u32 4294901760, %v15642_v55  ;;  %v3929_v55 = vld [vmem:[%s22222_s3 + $0x1e8] sm:$0xff]  ;;  %v15958_v5 = vsub.f32 %v3924_v7, %v15940_v40 }
 0x2f3   :  { %3570 = vmatpush1.msra.mxu0 %v23600_v46  ;;  %3722 = vmatpush1.msra.mxu1 %v15547_v62  ;;  %v23606_v62 = vand.u32 4294901760, %v15561_v31  ;;  %v23610_v31 = vand.u32 4294901760, %v15609_v34  ;;  %v23618_v34 = vand.u32 4294901760, %v15676_v56  ;;  %v4067_v32 = vsub.f32 %v15971_v35, %v22508_v19 }
 0x2f4   :  { %3574 = vmatprep.subr.mxu0 %v23601_v17  ;;  %3724 = vmatprep.subr.mxu1 %v15563_v47  ;;  %v13155_v47 = vld [vmem:[%s22219_s0 + $0x18] sm:$0xff]  ;;  %v22509_v60 = vand.u32 4294901760, %v15958_v5  ;;  %v22505_v46 = vand.u32 4294901760, %v15997_v26  ;;  %v16018_v17 = vand.u32 4294901760, %v3913_v37 }
 0x2f5   :  { %3578 = vmatpush1.msra.mxu0 %v23602_v8  ;;  %3726 = vmatpush1.msra.mxu1 %v15575_v51  ;;  %v23612_v51 = vand.u32 4294901760, %v15622_v42  ;;  %v23616_v42 = vand.u32 4294901760, %v15660_v59  ;;  %v3925_v59 = vld [vmem:[%s22222_s3 + $0x1c8] sm:$0xff]  ;;  %v3908_v8 = vld [vmem:[%s22222_s3 + $0x140] sm:$0xff] }
 0x2f6   :  { %3582 = vmatprep.subr.mxu0 %v23603_v45  ;;  %3728 = vmatprep.subr.mxu1 %v15586_v12  ;;  %v23615_v12 = vand.u32 4294901760, %v15652_v15  ;;  %v13175_v15 = vld [vmem:[%s22219_s0 + $0x38] sm:$0xff]  ;;  %v15931_v56 = vand.u32 4294901760, %v3925_v59  ;;  %v4061_v48 = vsub.f32 %v15958_v5, %v22509_v60 }
 0x2f7   :  { %3586 = vmatpush1.msra.mxu0 %v23604_v30  ;;  %3730 = vmatpush1.msra.mxu1 %v23605_v0  ;;  %v4073_v30 = vsub.f32 %v15984_v11, %v22507_v63  ;;  %v22504_v0 = vand.u32 4294901760, %v16008_v6 }
 0x2f8   :  { %3590 = vmatprep.subr.mxu0 %v23606_v62  ;;  %3732 = vmatprep.subr.mxu1 %v15611_v38  ;;  %v13165_v38 = vld [vmem:[%s22219_s0 + $0x28] sm:$0xff]  ;;  %v15948_v57 = vsub.f32 %v3925_v59, %v15931_v56  ;;  %v4062_v45 = vand.u32 4294901760, %v4061_v48  ;;  %v16027_v62 = vand.u32 4294901760, %v3912_v21 }
 0x2f9   :  { %3594 = vmatpush1.msra.mxu0 %v23607_v16  ;;  %3734 = vmatpush1.msra.mxu1 %v15624_v2  ;;  %v15918_v2 = vand.u32 4294901760, %v3929_v55  ;;  %v3905_v16 = vld [vmem:[%s22222_s3 + $0x128] sm:$0xff] }
 0x2fa   :  { %3598 = vmatprep.subr.mxu0 %v23608_v24  ;;  %3736 = vmatprep.subr.mxu1 %v15634_v29  ;;  %v3928_v29 = vld [vmem:[%s22222_s3 + $0x1e0] sm:$0xff]  ;;  %v22511_v9 = vand.u32 4294901760, %v15948_v57  ;;  %v4068_v24 = vand.u32 4294901760, %v4067_v32 }
 0x2fb   :  { %3602 = vmatpush1.msra.mxu0 %v23609_v54  ;;  %3738 = vmatpush1.msra.mxu1 %v15644_v39  ;;  %23619 = vst [vmem:[#allocation38_spill] sm:$0xff] %v15918_v2  ;;  %v15923_v39 = vand.u32 4294901760, %v3928_v29  ;;  %v15929_v22 = vsub.f32 %v3929_v55, %v15918_v2  ;;  %v4079_v54 = vsub.f32 %v15997_v26, %v22505_v46  ;;  %v3896_v32 = vld [vmem:[%s22222_s3 + $0xe0] sm:$0xff] }
 0x2fc   :  { %3771 = vmatprep.mubr.f32.mxu1 %v23244_v20  ;;  %3606 = vmatprep.subr.mxu0 %v23610_v31  ;;  %v4055_v50 = vsub.f32 %v15948_v57, %v22511_v9  ;;  %v16036_v31 = vsub.f32 %v3913_v37, %v16018_v17 }
 0x2fd   :  { %3773 = vmatmul.mubr.f32.vlgmr.msra.gmra.mxu1 %v23611_v27  ;;  %3610 = vmatpush1.msra.mxu0 %v23612_v51  ;;  %23620 = vst [vmem:[#allocation19_spill] sm:$0xff] %v15929_v22  ;;  %v15938_v44 = vsub.f32 %v3928_v29, %v15923_v39  ;;  %v22514_v13 = vand.u32 4294901760, %v15929_v22  ;;  %v4085_v51 = vsub.f32 %v16008_v6, %v22504_v0 }
 0x2fe   :  { %3614 = vmatprep.subr.mxu0 %v23613_v58  ;;  %3667 = vmatprep.mubr.f32.mxu0 %v23244_v20  ;;  %v4056_v53 = vand.u32 4294901760, %v4055_v50  ;;  %v16045_v58 = vsub.f32 %v3912_v21, %v16027_v62  ;;  %v3901_v50 = vld [vmem:[%s22222_s3 + $0x108] sm:$0xff] }
 0x2ff   :  { %3618 = vmatpush1.msra.mxu0 %v23614_v25  ;;  %3815 = vperm.xlu1 %13184, %v13155_v47   ;;  %v22512_v14 = vand.u32 4294901760, %v15938_v44  ;;  %v4043_v18 = vsub.f32 %v15929_v22, %v22514_v13  ;;  %v16038_v47 = vand.u32 4294901760, %v3909_v61  ;;  %v16047_v25 = vand.u32 4294901760, %v3908_v8 }
 0x300   :  { %3622 = vmatprep.subr.mxu0 %v23615_v12  ;;  %4264 = vmatprep.mubr.f32.mxu1 %v23244_v20  ;;  %v3904_v12 = vld [vmem:[%s22222_s3 + $0x120] sm:$0xff]  ;;  %v22501_v55 = vand.u32 4294901760, %v16045_v58 }
 0x301   :  { %3626 = vmatpush1.msra.mxu0 %v23616_v42  ;;  %v4049_v1 = vsub.f32 %v15938_v44, %v22512_v14  ;;  %v4044_v33 = vand.u32 4294901760, %v4043_v18  ;;  %v22503_v42 = vand.u32 4294901760, %v16036_v31  ;;  %v16062_v29 = vsub.f32 %v3908_v8, %v16047_v25 }
 0x302   :  { %3630 = vmatprep.subr.mxu0 %v23617_v43  ;;  %v16055_v43 = vsub.f32 %v3909_v61, %v16038_v47  ;;  %v16072_v28 = vand.u32 4294901760, %v3904_v12  ;;  %v4097_v52 = vsub.f32 %v16045_v58, %v22501_v55  ;;  %v3900_v61 = vld [vmem:[%s22222_s3 + $0x100] sm:$0xff] }
 0x303   :  { %3634 = vmatpush1.msra.mxu0 %v23618_v34  ;;  %7541 = vperm.xlu1 %13184, %v13165_v38   ;;  %v4050_v4 = vand.u32 4294901760, %v4049_v1  ;;  %v4080_v38 = vand.u32 4294901760, %v4079_v54  ;;  %v16057_v34 = vand.u32 4294901760, %v3905_v16  ;;  %v4091_v59 = vsub.f32 %v16036_v31, %v22503_v42 }
 0x304   :  { %3669 = vmatmul.mubr.f32.vlgmr.msra.gmra.mxu0 %v23611_v27  ;;  %3933 = vmatprep.subr.mxu0 %v15918_v2  ;;  %v4074_v27 = vand.u32 4294901760, %v4073_v30  ;;  %v22500_v7 = vand.u32 4294901760, %v16055_v43  ;;  %v22497_v18 = vand.u32 4294901760, %v16062_v29  ;;  %v4098_v21 = vand.u32 4294901760, %v4097_v52 }
 0x305   :  { %4028 = vmatprep.mubr.f32.mxu0 %v23244_v20  ;;  %3935 = vmatpush1.msra.mxu0 %v15923_v39  ;;  %v16070_v3 = vsub.f32 %v3905_v16, %v16057_v34  ;;  %v4092_v41 = vand.u32 4294901760, %v4091_v59  ;;  %v16106_v16 = vand.u32 4294901760, %v3901_v50  ;;  %v3892_v59 = vld [vmem:[%s22222_s3 + $0xc0] sm:$0xff] }
 0x306   :  { %3937 = vmatprep.subr.mxu0 %v15931_v56  ;;  %4045 = vmatprep.subr.mxu1 %v4044_v33  ;;  %v4103_v1 = vsub.f32 %v16055_v43, %v22500_v7  ;;  %v16084_v33 = vsub.f32 %v3904_v12, %v16072_v28  ;;  %v4109_v48 = vsub.f32 %v16062_v29, %v22497_v18 }
 0x307   :  { %11267 = vperm.xlu1 %13184, %v13175_v15   ;;  %3939 = vmatpush1.msra.mxu0 %v15940_v40  ;;  %v4086_v15 = vand.u32 4294901760, %v4085_v51  ;;  %v22496_v37 = vand.u32 4294901760, %v16070_v3 }
 0x308   :  { %3941 = vmatprep.subr.mxu0 %v15950_v36  ;;  %4051 = vmatpush1.msra.mxu1 %v4050_v4  ;;  %23621 = vst [vmem:[#allocation6_spill] sm:$0xff] %v16084_v33  ;;  %v4104_v4 = vand.u32 4294901760, %v4103_v1  ;;  %v4110_v8 = vand.u32 4294901760, %v4109_v48  ;;  %v22495_v30 = vand.u32 4294901760, %v16084_v33  ;;  %v3889_v48 = vld [vmem:[%s22222_s3 + $0xa8] sm:$0xff] }
 0x309   :  { %3943 = vmatpush1.msra.mxu0 %v15960_v49  ;;  %4057 = vmatprep.subr.mxu1 %v4056_v53  ;;  %v3897_v53 = vld [vmem:[%s22222_s3 + $0xe8] sm:$0xff]  ;;  %v16169_v18 = vand.u32 4294901760, %v3889_v48 }
 0x30a   :  { %3945 = vmatprep.subr.mxu0 %v15973_v10  ;;  %4063 = vmatpush1.msra.mxu1 %v4062_v45  ;;  %v4115_v45 = vsub.f32 %v16070_v3, %v22496_v37  ;;  %v16110_v54 = vand.u32 4294901760, %v3897_v53  ;;  %v4121_v12 = vsub.f32 %v16084_v33, %v22495_v30 }
 0x30b   :  { %3947 = vmatpush1.msra.mxu0 %v15986_v23  ;;  %4069 = vmatprep.subr.mxu1 %v4068_v24  ;;  %v16108_v24 = vand.u32 4294901760, %v3900_v61  ;;  %v16189_v46 = vsub.f32 %v3889_v48, %v16169_v18 }
 0x30c   :  { %3949 = vmatprep.subr.mxu0 %v16018_v17  ;;  %4075 = vmatpush1.msra.mxu1 %v4074_v27  ;;  %v3893_v27 = vld [vmem:[%s22222_s3 + $0xc8] sm:$0xff]  ;;  %v4116_v51 = vand.u32 4294901760, %v4115_v45  ;;  %v4122_v1 = vand.u32 4294901760, %v4121_v12  ;;  %v3888_v45 = vld [vmem:[%s22222_s3 + $0xa0] sm:$0xff] }
 0x30d   :  { %3951 = vmatpush1.msra.mxu0 %v16027_v62  ;;  %4081 = vmatprep.subr.mxu1 %v4080_v38  ;;  %v16119_v38 = vsub.f32 %v3901_v50, %v16106_v16  ;;  %v16128_v52 = vsub.f32 %v3900_v61, %v16108_v24  ;;  %v16179_v55 = vand.u32 4294901760, %v3888_v45  ;;  %23629 = vst [vmem:[#allocation34_spill] sm:$0xff] %v16189_v46  ;;  %v22519_v60 = vand.u32 4294901760, %v16189_v46 }
 0x30e   :  { %3953 = vmatprep.subr.mxu0 %v16038_v47  ;;  %4087 = vmatpush1.msra.mxu1 %v4086_v15  ;;  %v16121_v15 = vand.u32 4294901760, %v3896_v32 }
 0x30f   :  { %3955 = vmatpush1.msra.mxu0 %v16047_v25  ;;  %4093 = vmatprep.subr.mxu1 %v4092_v41  ;;  %23622 = vst [vmem:[#allocation33_spill] sm:$0xff] %v16119_v38  ;;  %23623 = vst [vmem:[#allocation20_spill] sm:$0xff] %v16128_v52  ;;  %v16131_v41 = vsub.f32 %v3897_v53, %v16110_v54  ;;  %v22498_v50 = vand.u32 4294901760, %v16119_v38  ;;  %v22499_v61 = vand.u32 4294901760, %v16128_v52 }
 0x310   :  { %3957 = vmatprep.subr.mxu0 %v16057_v34  ;;  %4099 = vmatpush1.msra.mxu1 %v4098_v21  ;;  %v16136_v21 = vsub.f32 %v3896_v32, %v16121_v15  ;;  %23628 = vst [vmem:[#allocation40_spill] sm:$0xff] %v16179_v55 }
 0x311   :  { %3959 = vmatpush1.msra.mxu0 %v16072_v28  ;;  %4105 = vmatprep.subr.mxu1 %v4104_v4  ;;  %23624 = vst [vmem:[#allocation25_spill] sm:$0xff] %v16131_v41  ;;  %v16138_v4 = vand.u32 4294901760, %v3893_v27  ;;  %v22502_v53 = vand.u32 4294901760, %v16131_v41  ;;  %v4127_v32 = vsub.f32 %v16119_v38, %v22498_v50  ;;  %v4133_v30 = vsub.f32 %v16128_v52, %v22499_v61 }
 0x312   :  { %4111 = vmatpush1.msra.mxu1 %v4110_v8  ;;  %3961 = vmatprep.subr.mxu0 %v16106_v16  ;;  %23625 = vst [vmem:[#allocation31_spill] sm:$0xff] %v16136_v21  ;;  %v16146_v8 = vand.u32 4294901760, %v3892_v59 }
 0x313   :  { %3963 = vmatpush1.msra.mxu0 %v16108_v24  ;;  %4117 = vmatprep.subr.mxu1 %v4116_v51  ;;  %v22506_v51 = vand.u32 4294901760, %v16136_v21  ;;  %v16157_v12 = vsub.f32 %v3893_v27, %v16138_v4  ;;  %v4139_v37 = vsub.f32 %v16131_v41, %v22502_v53  ;;  %v3885_v27 = vld [vmem:[%s22222_s3 + $0x88] sm:$0xff]  ;;  %v4128_v50 = vand.u32 4294901760, %v4127_v32 }
 0x314   :  { %3965 = vmatprep.subr.mxu0 %v16110_v54  ;;  %4123 = vmatpush1.msra.mxu1 %v4122_v1  ;;  %v16167_v1 = vsub.f32 %v3892_v59, %v16146_v8  ;;  %v3884_v59 = vld [vmem:[%s22222_s3 + $0x80] sm:$0xff]  ;;  %v3881_v53 = vld [vmem:[%s22222_s3 + $0x68] sm:$0xff]  ;;  %v4134_v42 = vand.u32 4294901760, %v4133_v30  ;;  %v16199_v30 = vsub.f32 %v3888_v45, %v16179_v55 }
 0x315   :  { %3967 = vmatpush1.msra.mxu0 %v16121_v15  ;;  %23626 = vst [vmem:[#allocation36_spill] sm:$0xff] %v16157_v12  ;;  %v4145_v61 = vsub.f32 %v16136_v21, %v22506_v51  ;;  %v22510_v7 = vand.u32 4294901760, %v16157_v12  ;;  %v4140_v0 = vand.u32 4294901760, %v4139_v37  ;;  %v3880_v51 = vld [vmem:[%s22222_s3 + $0x60] sm:$0xff]  ;;  %4129 = vmatprep.subr.mxu1 %v4128_v50  ;;  %v16201_v37 = vand.u32 4294901760, %v3885_v27  ;;  %v3877_v45 = vld [vmem:[%s22222_s3 + $0x48] sm:$0xff] }
 0x316   :  { %3969 = vmatprep.subr.mxu0 %v16138_v4  ;;  %23627 = vst [vmem:[#allocation39_spill] sm:$0xff] %v16167_v1  ;;  %v22513_v32 = vand.u32 4294901760, %v16167_v1  ;;  %23630 = vst [vmem:[#allocation44_spill] sm:$0xff] %v16199_v30  ;;  %4135 = vmatpush1.msra.mxu1 %v4134_v42  ;;  %v16208_v50 = vand.u32 4294901760, %v3884_v59  ;;  %v22520_v9 = vand.u32 4294901760, %v16199_v30  ;;  %v16219_v14 = vand.u32 4294901760, %v3880_v51 }
 0x317   :  { %3971 = vmatpush1.msra.mxu0 %v16146_v8  ;;  %v4146_v63 = vand.u32 4294901760, %v4145_v61  ;;  %v4151_v19 = vsub.f32 %v16157_v12, %v22510_v7  ;;  %23631 = vst [vmem:[#allocation11_spill] sm:$0xff] %v16201_v37  ;;  %v16210_v61 = vand.u32 4294901760, %v3881_v53  ;;  %4141 = vmatprep.subr.mxu1 %v4140_v0  ;;  %v16217_v42 = vsub.f32 %v3885_v27, %v16201_v37 }
 0x318   :  { %3973 = vmatprep.subr.mxu0 %v16169_v18  ;;  %v4157_v48 = vsub.f32 %v16167_v1, %v22513_v32  ;;  %23632 = vst [vmem:[#allocation13_spill] sm:$0xff] %v16208_v50  ;;  %23635 = vst [vmem:[#allocation23_spill] sm:$0xff] %v16219_v14  ;;  %v3876_v32 = vld [vmem:[%s22222_s3 + $0x40] sm:$0xff]  ;;  %v4163_v0 = vsub.f32 %v16189_v46, %v22519_v60  ;;  %v4169_v1 = vsub.f32 %v16199_v30, %v22520_v9 }
 0x319   :  { %3975 = vmatpush1.msra.mxu0 %v16179_v55  ;;  %23633 = vst [vmem:[#allocation12_spill] sm:$0xff] %v16210_v61  ;;  %v4152_v7 = vand.u32 4294901760, %v4151_v19  ;;  %23634 = vst [vmem:[#allocation7_spill] sm:$0xff] %v16217_v42  ;;  %4147 = vmatpush1.msra.mxu1 %v4146_v63  ;;  %v16229_v19 = vsub.f32 %v3884_v59, %v16208_v50  ;;  %v16232_v27 = vsub.f32 %v3881_v53, %v16210_v61  ;;  %v3873_v59 = vld [vmem:[%s22222_s3 + $0x28] sm:$0xff] }
 0x31a   :  { %3977 = vmatprep.subr.mxu0 %v16201_v37  ;;  %v4158_v13 = vand.u32 4294901760, %v4157_v48  ;;  %v16240_v48 = vsub.f32 %v3880_v51, %v16219_v14  ;;  %v16242_v12 = vand.u32 4294901760, %v3877_v45  ;;  %v4164_v53 = vand.u32 4294901760, %v4163_v0  ;;  %v3872_v51 = vld [vmem:[%s22222_s3 + $0x20] sm:$0xff] }
 0x31b   :  { %23636 = vst [vmem:[#allocation15_spill] sm:$0xff] %v16229_v19  ;;  %23637 = vst [vmem:[#allocation14_spill] sm:$0xff] %v16232_v27  ;;  %3979 = vmatpush1.msra.mxu0 %v16208_v50  ;;  %4153 = vmatprep.subr.mxu1 %v4152_v7  ;;  %v22531_v7 = vand.u32 4294901760, %v16229_v19  ;;  %v16250_v9 = vand.u32 4294901760, %v3876_v32  ;;  %v4170_v63 = vand.u32 4294901760, %v4169_v1  ;;  %v23641_v30 = vand.u32 4294901760, %v16217_v42 }
 0x31c   :  { %23638 = vst [vmem:[#allocation8_spill] sm:$0xff] %v16240_v48  ;;  %23639 = vst [vmem:[#allocation17_spill] sm:$0xff] %v16242_v12  ;;  %3981 = vmatprep.subr.mxu0 %v16210_v61  ;;  %4159 = vmatpush1.msra.mxu1 %v4158_v13  ;;  %v22536_v13 = vand.u32 4294901760, %v16240_v48  ;;  %v16261_v0 = vsub.f32 %v3877_v45, %v16242_v12  ;;  %v23643_v21 = vand.u32 4294901760, %v16232_v27 }
 0x31d   :  { %23640 = vst [vmem:[#allocation9_spill] sm:$0xff] %v16250_v9  ;;  %3983 = vmatpush1.msra.mxu0 %v16219_v14  ;;  %v4175_v46 = vsub.f32 %v16217_v42, %v23641_v30  ;;  %4165 = vmatprep.subr.mxu1 %v4164_v53  ;;  %v4181_v60 = vsub.f32 %v16229_v19, %v22531_v7  ;;  %v16273_v30 = vand.u32 4294901760, %v3873_v59  ;;  %v16280_v7 = vand.u32 4294901760, %v3872_v51 }
 0x31e   :  { %23642 = vst [vmem:[#allocation22_spill] sm:$0xff] %v16261_v0  ;;  %3985 = vmatprep.subr.mxu0 %v16242_v12  ;;  %v4187_v1 = vsub.f32 %v16232_v27, %v23643_v21  ;;  %v16271_v14 = vsub.f32 %v3876_v32, %v16250_v9  ;;  %4171 = vmatpush1.msra.mxu1 %v4170_v63  ;;  %v22541_v42 = vand.u32 4294901760, %v16261_v0  ;;  %v3869_v32 = vld [vmem:[%s22222_s3 + $0x8] sm:$0xff] }
 0x31f   :  { %23645 = vst [vmem:[#allocation24_spill] sm:$0xff] %v16273_v30  ;;  %3987 = vmatpush1.msra.mxu0 %v16250_v9  ;;  %v4176_v45 = vand.u32 4294901760, %v4175_v46  ;;  %v4193_v53 = vsub.f32 %v16240_v48, %v22536_v13  ;;  %23646 = vst [vmem:[#allocation10_spill] sm:$0xff] %v16280_v7  ;;  %v4182_v19 = vand.u32 4294901760, %v4181_v60  ;;  %v3868_v46 = vld [vmem:[%s22222_s3] sm:$0xff]  ;;  %v16301_v13 = vsub.f32 %v3872_v51, %v16280_v7 }
 0x320   :  { %23644 = vst [vmem:[#allocation18_spill] sm:$0xff] %v16271_v14  ;;  %v4188_v12 = vand.u32 4294901760, %v4187_v1  ;;  %v22542_v21 = vand.u32 4294901760, %v16271_v14  ;;  %3989 = vmatprep.subr.mxu0 %v16273_v30  ;;  %v4199_v60 = vsub.f32 %v16261_v0, %v22541_v42  ;;  %v16303_v27 = vand.u32 4294901760, %v3869_v32  ;;  %v23654_v0 = vld [vmem:[#allocation27_spill] sm:$0xff] }
 0x321   :  { %4177 = vmatprep.subr.mxu1 %v4176_v45  ;;  %3991 = vmatpush1.msra.mxu0 %v16280_v7  ;;  %v4194_v63 = vand.u32 4294901760, %v4193_v53  ;;  %v16298_v45 = vsub.f32 %v3873_v59, %v16273_v30  ;;  %23648 = vst [vmem:[#allocation21_spill] sm:$0xff] %v16301_v13  ;;  %v22544_v42 = vand.u32 4294901760, %v16301_v13 }
 0x322   :  { %4183 = vmatpush1.msra.mxu1 %v4182_v19  ;;  %v4205_v1 = vsub.f32 %v16271_v14, %v22542_v21  ;;  %v4200_v48 = vand.u32 4294901760, %v4199_v60  ;;  %23649 = vst [vmem:[#allocation5_spill] sm:$0xff] %v16303_v27  ;;  %v16305_v19 = vand.u32 4294901760, %v3868_v46  ;;  %v16310_v21 = vsub.f32 %v3869_v32, %v16303_v27  ;;  %3993 = vmatprep.subr.mxu0 %v16303_v27 }
 0x323   :  { %4189 = vmatprep.subr.mxu1 %v4188_v12  ;;  %23647 = vst [vmem:[#allocation32_spill] sm:$0xff] %v16298_v45  ;;  %v22543_v12 = vand.u32 4294901760, %v16298_v45 }
 0x324   :  { %4195 = vmatpush1.msra.mxu1 %v4194_v63  ;;  %23650 = vst [vmem:[#allocation37_spill] sm:$0xff] %v16305_v19  ;;  %v4206_v53 = vand.u32 4294901760, %v4205_v1  ;;  %23651 = vst [vmem:[#allocation43_spill] sm:$0xff] %v16310_v21  ;;  %3995 = vmatpush1.msra.mxu0 %v16305_v19  ;;  %v22550_v51 = vand.u32 4294901760, %v16310_v21  ;;  %v16322_v63 = vsub.f32 %v3868_v46, %v16305_v19 }
 0x325   :  { %4201 = vmatprep.subr.mxu1 %v4200_v48  ;;  %v4211_v59 = vsub.f32 %v16298_v45, %v22543_v12  ;;  %v4217_v48 = vsub.f32 %v16301_v13, %v22544_v42  ;;  %4274 = vmatprep.subr.mxu0 %v15929_v22  ;;  %v2404_v22 = vpop.f32.mrf.mxu1 }
 0x326   :  { %4207 = vmatpush1.msra.mxu1 %v4206_v53  ;;  %23652 = vst [vmem:[#allocation42_spill] sm:$0xff] %v16322_v63  ;;  %v4223_v1 = vsub.f32 %v16310_v21, %v22550_v51  ;;  %v22555_v12 = vand.u32 4294901760, %v16322_v63 }
 0x327   :  { %v4212_v32 = vand.u32 4294901760, %v4211_v59  ;;  %v4218_v60 = vand.u32 4294901760, %v4217_v48  ;;  %v2172_v59 = vpop.f32.mrf.mxu0  ;;  %v2406_v45 = vpop.f32.mrf.mxu1 }
 0x328   :  { %v4224_v53 = vand.u32 4294901760, %v4223_v1  ;;  %v4229_v42 = vsub.f32 %v16322_v63, %v22555_v12  ;;  %v2405_v1 = vadd.f32 %v2404_v22, %v2172_v59 }
 0x329   :  { %4213 = vmatprep.subr.mxu1 %v4212_v32  ;;  %v2174_v48 = vpop.f32.mrf.mxu0 }
 0x32a   :  { %4219 = vmatpush1.msra.mxu1 %v4218_v60  ;;  %v4230_v46 = vand.u32 4294901760, %v4229_v42  ;;  %v2407_v32 = vadd.f32 %v2406_v45, %v2174_v48  ;;  %v23653_v42 = vld [vmem:[#allocation26_spill] sm:$0xff]  ;;  %v1946_v45 = vld [vmem:[%s22220_s1] sm:$0xf] }
 0x32b   :  { %4225 = vmatprep.subr.mxu1 %v4224_v53  ;;  %v1949_v53 = vld [vmem:[%s22221_s2] sm:$0xf] }
 0x32c   :  { %4231 = vmatpush1.msra.mxu1 %v4230_v46  ;;  %v1963_v46 = vrot.slane %v1949_v53, %v23653_v42 }
 0x32d   :  { %4410 = vmatprep.subr.mxu1 %v15918_v2  ;;  %v1959_v2 = vrot.slane %v1949_v53, %v23654_v0 }
 0x333   :  { %v2647_v21 = vpop.f32.mrf.mxu1 }
 0x335   :  { %v2649_v63 = vpop.f32.mrf.mxu1 }
 0x33c   :  { %v2541_v13 = vpop.f32.mrf.mxu0 }
 0x33d   :  { %v2542_v12 = vadd.f32 %v2541_v13, %v2405_v1  ;;  %v1984_v13 = vrot.slane %v1946_v45, %v23654_v0 }
 0x33e   :  { %v2543_v51 = vpop.f32.mrf.mxu0 }
 0x33f   :  { %v2544_v60 = vadd.f32 %v2543_v51, %v2407_v32  ;;  %v2648_v48 = vadd.f32 %v2647_v21, %v2542_v12  ;;  %v1988_v32 = vrot.slane %v1946_v45, %v23653_v42  ;;  %v23689_v42 = vld [vmem:[#allocation18_spill] sm:$0xff] }
 0x341   :  { %v2650_v22 = vadd.f32 %v2649_v63, %v2544_v60 }
 0x355   :  { %v2919_v59 = vpop.f32.mrf.mxu1 }
 0x357   :  { %v2921_v9 = vpop.f32.mrf.mxu1 }
 0x361   :  { %v2815_v14 = vpop.f32.mrf.mxu0 }
 0x362   :  { %v2816_v1 = vadd.f32 %v2815_v14, %v2648_v48  ;;  %v23655_v14 = vld [vmem:[#allocation29_spill] sm:$0xff] }
 0x363   :  { %v2817_v19 = vpop.f32.mrf.mxu0  ;;  %v1953_v27 = vpop.permute.xlu1 %1952  ;;  %v1967_v48 = vrot.slane %v1949_v53, %v23655_v14 }
 0x364   :  { %v1977_v51 = vmul.f32 %v1963_v46, %v1953_v27  ;;  %v2818_v7 = vadd.f32 %v2817_v19, %v2650_v22  ;;  %v1976_v30 = vmul.f32 %v1959_v2, %v1953_v27  ;;  %v2920_v52 = vadd.f32 %v2919_v59, %v2816_v1 }
 0x366   :  { %v2002_v61 = vadd.f32 %v1988_v32, %v1977_v51  ;;  %v2922_v41 = vadd.f32 %v2921_v9, %v2818_v7  ;;  %v2001_v50 = vadd.f32 %v1984_v13, %v1976_v30  ;;  %v23656_v7 = vld [vmem:[#allocation28_spill] sm:$0xff] }
 0x367   :  { %v1971_v30 = vrot.slane %v1949_v53, %v23656_v7  ;;  %v1996_v32 = vrot.slane %v1946_v45, %v23656_v7  ;;  %v23687_v7 = vld [vmem:[#allocation8_spill] sm:$0xff] }
 0x368   :  { %v3780_v37 = vadd.f32 %v2922_v41, %v2002_v61  ;;  %v3779_v38 = vadd.f32 %v2920_v52, %v2001_v50  ;;  %v1978_v50 = vmul.f32 %v1967_v48, %v1953_v27 }
 0x369   :  { %v1979_v13 = vmul.f32 %v1971_v30, %v1953_v27 }
 0x36a   :  { %v13153_v55 = vmul.f32 -1.442695, %v3780_v37  ;;  %v13151_v33 = vmul.f32 -1.442695, %v3779_v38 }
 0x36b   :  { %v2004_v48 = vadd.f32 %v1996_v32, %v1979_v13 }
 0x36c   :  { %13213 = vpow2.f32 %v13153_v55  ;;  %v1992_v55 = vrot.slane %v1946_v45, %v23655_v14  ;;  %v23688_v14 = vld [vmem:[#allocation22_spill] sm:$0xff] }
 0x36d   :  { %13215 = vpow2.f32 %v13151_v33 }
 0x377   :  { %v3259_v21 = vpop.f32.mrf.mxu1 }
 0x379   :  { %v3261_v19 = vpop.f32.mrf.mxu1  ;;  %v13214_v52 = vpop.eup %13213 }
 0x37a   :  { %v13216_v38 = vpop.eup %13215  ;;  %v3799_v1 = vadd.f32 1.0, %v13214_v52  ;;  %v23657_v52 = vld [vmem:[#allocation30_spill] sm:$0xff] }
 0x37c   :  { %13217 = vrcp.f32 %v3799_v1 }
 0x381   :  { %v3027_v63 = vpop.f32.mrf.mxu0 }
 0x382   :  { %v3260_v2 = vadd.f32 %v3259_v21, %v3027_v63 }
 0x383   :  { %v3029_v12 = vpop.f32.mrf.mxu0 }
 0x384   :  { %v3262_v51 = vadd.f32 %v3261_v19, %v3029_v12  ;;  %v3786_v12 = vadd.f32 1.0, %v13216_v38  ;;  %v2003_v19 = vadd.f32 %v1992_v55, %v1978_v50 }
 0x386   :  { %13219 = vrcp.f32 %v3786_v12  ;;  %v23664_v12 = vld [vmem:[#allocation40_spill] sm:$0xff] }
 0x389   :  { %v13218_v45 = vpop.eup %13217 }
 0x393   :  { %v13220_v27 = vpop.eup %13219 }
 0x39a   :  { %v3502_v46 = vpop.f32.mrf.mxu1 }
 0x39c   :  { %v3504_v37 = vpop.f32.mrf.mxu1 }
 0x3a3   :  { %v3396_v60 = vpop.f32.mrf.mxu0 }
 0x3a4   :  { %v3397_v9 = vadd.f32 %v3396_v60, %v3260_v2 }
 0x3a5   :  { %v3398_v22 = vpop.f32.mrf.mxu0 }
 0x3a6   :  { %v3399_v41 = vadd.f32 %v3398_v22, %v3262_v51  ;;  %v3503_v33 = vadd.f32 %v3502_v46, %v3397_v9 }
 0x3a8   :  { %v3505_v21 = vadd.f32 %v3504_v37, %v3399_v41  ;;  %v3802_v41 = vmul.f32 %v13218_v45, %v23657_v52  ;;  %v23674_v45 = vld [vmem:[#allocation17_spill] sm:$0xff]  ;;  %v23677_v52 = vld [vmem:[#allocation34_spill] sm:$0xff] }
 0x3bd   :  { %v3774_v61 = vpop.f32.mrf.mxu1 }
 0x3bf   :  { %v3776_v22 = vpop.f32.mrf.mxu1 }
 0x3c4   :  { %v3670_v59 = vpop.f32.mrf.mxu0 }
 0x3c5   :  { %v3671_v63 = vadd.f32 %v3670_v59, %v3503_v33 }
 0x3c6   :  { %v3672_v60 = vpop.f32.mrf.mxu0 }
 0x3c7   :  { %v3775_v53 = vadd.f32 %v3774_v61, %v3671_v63  ;;  %v3673_v2 = vadd.f32 %v3672_v60, %v3505_v21  ;;  %v23663_v21 = vld [vmem:[#allocation6_spill] sm:$0xff]  ;;  %v23665_v60 = vld [vmem:[#allocation33_spill] sm:$0xff] }
 0x3c9   :  { %v3781_v51 = vadd.f32 %v3775_v53, %v2003_v19  ;;  %v3777_v0 = vadd.f32 %v3776_v22, %v3673_v2  ;;  %v23666_v19 = vld [vmem:[#allocation11_spill] sm:$0xff]  ;;  %v23667_v53 = vld [vmem:[#allocation20_spill] sm:$0xff]  ;;  %v23668_v2 = vld [vmem:[#allocation13_spill] sm:$0xff] }
 0x3ca   :  { %v23669_v22 = vld [vmem:[#allocation25_spill] sm:$0xff] }
 0x3cb   :  { %13221 = vtanh.f32 %v3781_v51  ;;  %v3782_v46 = vadd.f32 %v3777_v0, %v2004_v48  ;;  %v23670_v51 = vld [vmem:[#allocation12_spill] sm:$0xff]  ;;  %v23671_v48 = vld [vmem:[#allocation31_spill] sm:$0xff] }
 0x3cd   :  { %v13152_v9 = vmul.f32 -1.442695, %v3782_v46  ;;  %v23672_v46 = vld [vmem:[#allocation23_spill] sm:$0xff] }
 0x3cf   :  { %13223 = vpow2.f32 %v13152_v9  ;;  %v23673_v9 = vld [vmem:[#allocation36_spill] sm:$0xff] }
 0x3d8   :  { %v13222_v30 = vpop.eup %13221 }
 0x3d9   :  { %v3803_v37 = vmul.f32 %v13222_v30, %v13220_v27  ;;  %v23675_v27 = vld [vmem:[#allocation39_spill] sm:$0xff]  ;;  %v23676_v30 = vld [vmem:[#allocation9_spill] sm:$0xff] }
 0x3db   :  { %v16348_v38 = vadd.f32 %v3803_v37, %v3802_v41  ;;  %v23678_v41 = vld [vmem:[#allocation24_spill] sm:$0xff] }
 0x3dc   :  { %v13224_v50 = vpop.eup %13223  ;;  %v23679_v37 = vld [vmem:[#allocation44_spill] sm:$0xff] }
 0x3dd   :  { %23658 = vst [vmem:[#allocation35_spill] sm:$0xff] %v16348_v38  ;;  %v3793_v55 = vadd.f32 1.0, %v13224_v50  ;;  %13225 = vtanh.f32 %v16348_v38  ;;  %v23680_v50 = vld [vmem:[#allocation10_spill] sm:$0xff] }
 0x3de   :  { %v23686_v38 = vld [vmem:[#allocation38_spill] sm:$0xff] }
 0x3df   :  { %13227 = vrcp.f32 %v3793_v55  ;;  %v23681_v55 = vld [vmem:[#allocation7_spill] sm:$0xff] }
 0x3ea   :  { %v13226_v33 = vpop.eup %13225 }
 0x3ec   :  { %v13228_v61 = vpop.eup %13227 }
 0x3ed   :  { %v3806_v59 = vmul.f32 %v13228_v61, %v13226_v33  ;;  %v23682_v33 = vld [vmem:[#allocation5_spill] sm:$0xff]  ;;  %v23683_v61 = vld [vmem:[#allocation15_spill] sm:$0xff] }
 0x3ef   :  { %13154 = vst [vmem:[%s22223_s4 + $0x10] sm:$0xff] %v3806_v59  ;;  %v16354_v0 = vand.u32 4294901760, %v3806_v59 }
 0x3f1   :  { %23659 = vst [vmem:[#allocation16_spill] sm:$0xff] %v16354_v0  ;;  %4266 = vmatmul.mubr.f32.vlgmr.msra.gmra.mxu1 %v16354_v0  ;;  %v16358_v32 = vsub.f32 %v3806_v59, %v16354_v0  ;;  %v23684_v59 = vld [vmem:[#allocation37_spill] sm:$0xff] }
 0x3f2   :  { %4412 = vmatpush1.msra.mxu1 %v15923_v39  ;;  %4505 = vmatprep.mubr.f32.mxu1 %v23244_v20  ;;  %v23691_v0 = vld [vmem:[#allocation21_spill] sm:$0xff] }
 0x3f3   :  { %23660 = vst [vmem:[#allocation41_spill] sm:$0xff] %v16358_v32  ;;  %4414 = vmatprep.subr.mxu1 %v15931_v56  ;;  %v16364_v13 = vand.u32 4294901760, %v16358_v32 }
 0x3f4   :  { %4416 = vmatpush1.msra.mxu1 %v15940_v40 }
 0x3f5   :  { %23661 = vst [vmem:[#allocation30_spill] sm:$0xff] %v16364_v13  ;;  %4418 = vmatprep.subr.mxu1 %v15950_v36  ;;  %v4032_v1 = vsub.f32 %v16358_v32, %v16364_v13 }
 0x3f6   :  { %4420 = vmatpush1.msra.mxu1 %v15960_v49 }
 0x3f7   :  { %4422 = vmatprep.subr.mxu1 %v15973_v10  ;;  %v16372_v63 = vand.u32 4294901760, %v4032_v1  ;;  %v23685_v1 = vld [vmem:[#allocation14_spill] sm:$0xff] }
 0x3f8   :  { %4424 = vmatpush1.msra.mxu1 %v15986_v23 }
 0x3f9   :  { %23662 = vst [vmem:[#allocation45_spill] sm:$0xff] %v16372_v63  ;;  %4426 = vmatprep.subr.mxu1 %v16018_v17  ;;  %4034 = vmatmul.mubr.f32.vlgmr.msra.gmra.mxu0 %v16372_v63  ;;  %v23690_v63 = vld [vmem:[#allocation32_spill] sm:$0xff] }
 0x3fa   :  { %4277 = vmatpush1.msra.mxu0 %v15938_v44  ;;  %4428 = vmatpush1.msra.mxu1 %v16027_v62 }
 0x3fb   :  { %4280 = vmatprep.subr.mxu0 %v15948_v57  ;;  %4430 = vmatprep.subr.mxu1 %v16038_v47 }
 0x3fc   :  { %4283 = vmatpush1.msra.mxu0 %v15958_v5  ;;  %4432 = vmatpush1.msra.mxu1 %v16047_v25 }
 0x3fd   :  { %4286 = vmatprep.subr.mxu0 %v15971_v35  ;;  %4434 = vmatprep.subr.mxu1 %v16057_v34 }
 0x3fe   :  { %4289 = vmatpush1.msra.mxu0 %v15984_v11  ;;  %4436 = vmatpush1.msra.mxu1 %v16072_v28 }
 0x3ff   :  { %4292 = vmatprep.subr.mxu0 %v15997_v26  ;;  %4438 = vmatprep.subr.mxu1 %v16106_v16 }
 0x400   :  { %4295 = vmatpush1.msra.mxu0 %v16008_v6  ;;  %4440 = vmatpush1.msra.mxu1 %v16108_v24 }
 0x401   :  { %4298 = vmatprep.subr.mxu0 %v16036_v31  ;;  %4442 = vmatprep.subr.mxu1 %v16110_v54 }
 0x402   :  { %4301 = vmatpush1.msra.mxu0 %v16045_v58  ;;  %4444 = vmatpush1.msra.mxu1 %v16121_v15 }
 0x403   :  { %4304 = vmatprep.subr.mxu0 %v16055_v43  ;;  %4446 = vmatprep.subr.mxu1 %v16138_v4 }
 0x404   :  { %4307 = vmatpush1.msra.mxu0 %v16062_v29  ;;  %4448 = vmatpush1.msra.mxu1 %v16146_v8 }
 0x405   :  { %4310 = vmatprep.subr.mxu0 %v16070_v3  ;;  %4450 = vmatprep.subr.mxu1 %v16169_v18 }
 0x406   :  { %4313 = vmatpush1.msra.mxu0 %v23663_v21  ;;  %4452 = vmatpush1.msra.mxu1 %v23664_v12 }
 0x407   :  { %4316 = vmatprep.subr.mxu0 %v23665_v60  ;;  %4454 = vmatprep.subr.mxu1 %v23666_v19 }
 0x408   :  { %4319 = vmatpush1.msra.mxu0 %v23667_v53  ;;  %4456 = vmatpush1.msra.mxu1 %v23668_v2 }
 0x409   :  { %4322 = vmatprep.subr.mxu0 %v23669_v22  ;;  %4458 = vmatprep.subr.mxu1 %v23670_v51 }
 0x40a   :  { %4325 = vmatpush1.msra.mxu0 %v23671_v48  ;;  %4460 = vmatpush1.msra.mxu1 %v23672_v46 }
 0x40b   :  { %4328 = vmatprep.subr.mxu0 %v23673_v9  ;;  %4462 = vmatprep.subr.mxu1 %v23674_v45 }
 0x40c   :  { %4331 = vmatpush1.msra.mxu0 %v23675_v27  ;;  %4464 = vmatpush1.msra.mxu1 %v23676_v30 }
 0x40d   :  { %4334 = vmatprep.subr.mxu0 %v23677_v52  ;;  %4466 = vmatprep.subr.mxu1 %v23678_v41 }
 0x40e   :  { %4337 = vmatpush1.msra.mxu0 %v23679_v37  ;;  %4468 = vmatpush1.msra.mxu1 %v23680_v50 }
 0x40f   :  { %4340 = vmatprep.subr.mxu0 %v23681_v55  ;;  %4470 = vmatprep.subr.mxu1 %v23682_v33 }
 0x410   :  { %4343 = vmatpush1.msra.mxu0 %v23683_v61  ;;  %4472 = vmatpush1.msra.mxu1 %v23684_v59 }
 0x411   :  { %4346 = vmatprep.subr.mxu0 %v23685_v1  ;;  %4509 = vmatmul.mubr.f32.vlgmr.msra.gmra.mxu1 %v16364_v13 }
 0x412   :  { %4684 = vmatprep.subr.mxu1 %v23686_v38  ;;  %4349 = vmatpush1.msra.mxu0 %v23687_v7  ;;  %v23692_v38 = vld [vmem:[#allocation43_spill] sm:$0xff] }
 0x413   :  { %4686 = vmatpush1.msra.mxu1 %v15923_v39  ;;  %4352 = vmatprep.subr.mxu0 %v23688_v14  ;;  %v23693_v39 = vld [vmem:[#allocation42_spill] sm:$0xff] }
 0x414   :  { %4688 = vmatprep.subr.mxu1 %v15931_v56  ;;  %4355 = vmatpush1.msra.mxu0 %v23689_v42  ;;  %v23694_v56 = vld [vmem:[#allocation19_spill] sm:$0xff] }
 0x415   :  { %4690 = vmatpush1.msra.mxu1 %v15940_v40  ;;  %4358 = vmatprep.subr.mxu0 %v23690_v63  ;;  %v23695_v40 = vand.u32 4294901760, %v23694_v56  ;;  %v3927_v56 = vld [vmem:[%s22222_s3 + $0x1d8] sm:$0xff] }
 0x416   :  { %4692 = vmatprep.subr.mxu1 %v15950_v36  ;;  %4361 = vmatpush1.msra.mxu0 %v23691_v0  ;;  %v3931_v36 = vld [vmem:[%s22222_s3 + $0x1f8] sm:$0xff] }
 0x417   :  { %4694 = vmatpush1.msra.mxu1 %v15960_v49  ;;  %4364 = vmatprep.subr.mxu0 %v23692_v38  ;;  %v23696_v49 = vand.u32 4294901760, %v15938_v44  ;;  %v16462_v44 = vand.u32 4294901760, %v3931_v36 }
 0x418   :  { %4696 = vmatprep.subr.mxu1 %v15973_v10  ;;  %4367 = vmatpush1.msra.mxu0 %v23693_v39  ;;  %v3930_v10 = vld [vmem:[%s22222_s3 + $0x1f0] sm:$0xff] }
 0x419   :  { %4400 = vmatprep.mubr.f32.mxu0 %v23244_v20  ;;  %4698 = vmatpush1.msra.mxu1 %v15986_v23  ;;  %v23697_v23 = vand.u32 4294901760, %v15948_v57  ;;  %v23699_v57 = vand.u32 4294901760, %v15971_v35  ;;  %v23701_v35 = vand.u32 4294901760, %v15997_v26  ;;  %v3918_v26 = vld [vmem:[%s22222_s3 + $0x190] sm:$0xff] }
 0x41a   :  { %4403 = vmatmul.mubr.f32.vlgmr.msra.gmra.mxu0 %v16358_v32  ;;  %4518 = vmatprep.subr.mxu0 %v23695_v40  ;;  %v3926_v40 = vld [vmem:[%s22222_s3 + $0x1d0] sm:$0xff]  ;;  %v23722_v32 = vand.u32 4294901760, %v23671_v48 }
 0x41b   :  { %4700 = vmatprep.subr.mxu1 %v16018_v17  ;;  %4522 = vmatpush1.msra.mxu0 %v23696_v49  ;;  %v23698_v17 = vand.u32 4294901760, %v15958_v5  ;;  %v23700_v5 = vand.u32 4294901760, %v15984_v11  ;;  %v16478_v49 = vand.u32 4294901760, %v3927_v56  ;;  %v23702_v11 = vand.u32 4294901760, %v16008_v6  ;;  %v3915_v6 = vld [vmem:[%s22222_s3 + $0x178] sm:$0xff] }
 0x41c   :  { %4702 = vmatpush1.msra.mxu1 %v16027_v62  ;;  %4526 = vmatprep.subr.mxu0 %v23697_v23  ;;  %v16470_v62 = vand.u32 4294901760, %v3930_v10  ;;  %v16486_v23 = vand.u32 4294901760, %v3926_v40 }
 0x41d   :  { %4704 = vmatprep.subr.mxu1 %v16038_v47  ;;  %4530 = vmatpush1.msra.mxu0 %v23698_v17  ;;  %v3923_v47 = vld [vmem:[%s22222_s3 + $0x1b8] sm:$0xff]  ;;  %v16495_v17 = vsub.f32 %v3931_v36, %v16462_v44  ;;  %v23705_v36 = vand.u32 4294901760, %v16045_v58 }
 0x41e   :  { %4706 = vmatpush1.msra.mxu1 %v16047_v25  ;;  %4534 = vmatprep.subr.mxu0 %v23699_v57  ;;  %v3922_v25 = vld [vmem:[%s22222_s3 + $0x1b0] sm:$0xff]  ;;  %v16497_v57 = vand.u32 4294901760, %v3923_v47  ;;  %v3911_v58 = vld [vmem:[%s22222_s3 + $0x158] sm:$0xff] }
 0x41f   :  { %4708 = vmatprep.subr.mxu1 %v16057_v34  ;;  %4538 = vmatpush1.msra.mxu0 %v23700_v5  ;;  %v3919_v34 = vld [vmem:[%s22222_s3 + $0x198] sm:$0xff]  ;;  %v16506_v5 = vsub.f32 %v3930_v10, %v16470_v62  ;;  %v23707_v10 = vand.u32 4294901760, %v16055_v43  ;;  %v16542_v43 = vand.u32 4294901760, %v3915_v6 }
 0x420   :  { %4710 = vmatpush1.msra.mxu1 %v16072_v28  ;;  %4542 = vmatprep.subr.mxu0 %v23701_v35  ;;  %v23703_v28 = vand.u32 4294901760, %v16036_v31  ;;  %v16517_v35 = vsub.f32 %v3927_v56, %v16478_v49  ;;  %v3914_v31 = vld [vmem:[%s22222_s3 + $0x170] sm:$0xff]  ;;  %v23709_v56 = vand.u32 4294901760, %v16062_v29 }
 0x421   :  { %4712 = vmatprep.subr.mxu1 %v16106_v16  ;;  %4546 = vmatpush1.msra.mxu0 %v23702_v11  ;;  %23704 = vst [vmem:[#allocation6_spill] sm:$0xff] %v16506_v5  ;;  %v16508_v16 = vand.u32 4294901760, %v3922_v25  ;;  %v16528_v11 = vsub.f32 %v3926_v40, %v16486_v23  ;;  %v3910_v40 = vld [vmem:[%s22222_s3 + $0x150] sm:$0xff] }
 0x422   :  { %4714 = vmatpush1.msra.mxu1 %v16108_v24  ;;  %4550 = vmatprep.subr.mxu0 %v23703_v28  ;;  %23706 = vst [vmem:[#allocation40_spill] sm:$0xff] %v16517_v35  ;;  %v16519_v24 = vand.u32 4294901760, %v3919_v34  ;;  %v22595_v28 = vand.u32 4294901760, %v16495_v17 }
 0x423   :  { %4716 = vmatprep.subr.mxu1 %v16110_v54  ;;  %4554 = vmatpush1.msra.mxu0 %v23705_v36  ;;  %23708 = vst [vmem:[#allocation33_spill] sm:$0xff] %v16528_v11  ;;  %v16530_v54 = vand.u32 4294901760, %v3918_v26  ;;  %v23711_v36 = vand.u32 4294901760, %v16070_v3  ;;  %v16552_v29 = vsub.f32 %v3922_v25, %v16508_v16  ;;  %v3906_v25 = vld [vmem:[%s22222_s3 + $0x130] sm:$0xff] }
 0x424   :  { %4718 = vmatpush1.msra.mxu1 %v16121_v15  ;;  %4558 = vmatprep.subr.mxu0 %v23707_v10  ;;  %v16540_v15 = vsub.f32 %v3923_v47, %v16497_v57  ;;  %v16554_v10 = vand.u32 4294901760, %v3914_v31  ;;  %v3907_v47 = vld [vmem:[%s22222_s3 + $0x138] sm:$0xff]  ;;  %v16564_v3 = vsub.f32 %v3919_v34, %v16519_v24 }
 0x425   :  { %4720 = vmatprep.subr.mxu1 %v16138_v4  ;;  %4562 = vmatpush1.msra.mxu0 %v23709_v56  ;;  %23712 = vst [vmem:[#allocation20_spill] sm:$0xff] %v16552_v29  ;;  %v23713_v56 = vand.u32 4294901760, %v23663_v21  ;;  %v23715_v4 = vand.u32 4294901760, %v23665_v60  ;;  %v16576_v21 = vsub.f32 %v3918_v26, %v16530_v54  ;;  %v3903_v34 = vld [vmem:[%s22222_s3 + $0x118] sm:$0xff]  ;;  %v16593_v26 = vsub.f32 %v3915_v6, %v16542_v43 }
 0x426   :  { %23710 = vst [vmem:[#allocation11_spill] sm:$0xff] %v16540_v15  ;;  %4722 = vmatpush1.msra.mxu1 %v16146_v8  ;;  %4566 = vmatprep.subr.mxu0 %v23711_v36  ;;  %23714 = vst [vmem:[#allocation13_spill] sm:$0xff] %v16564_v3  ;;  %v16566_v36 = vand.u32 4294901760, %v3911_v58  ;;  %v23717_v8 = vand.u32 4294901760, %v23667_v53  ;;  %v23720_v53 = vand.u32 4294901760, %v16506_v5  ;;  %v16610_v6 = vsub.f32 %v3914_v31, %v16554_v10 }
 0x427   :  { %4724 = vmatprep.subr.mxu1 %v16169_v18  ;;  %4570 = vmatpush1.msra.mxu0 %v23713_v56  ;;  %23716 = vst [vmem:[#allocation25_spill] sm:$0xff] %v16576_v21  ;;  %v16578_v56 = vand.u32 4294901760, %v3910_v40  ;;  %23718 = vst [vmem:[#allocation12_spill] sm:$0xff] %v16593_v26  ;;  %v3902_v18 = vld [vmem:[%s22222_s3 + $0x110] sm:$0xff]  ;;  %v16612_v60 = vand.u32 4294901760, %v3906_v25  ;;  %v23725_v31 = vand.u32 4294901760, %v23673_v9 }
 0x428   :  { %4726 = vmatpush1.msra.mxu1 %v23664_v12  ;;  %4574 = vmatprep.subr.mxu0 %v23715_v4  ;;  %v16589_v12 = vsub.f32 %v16495_v17, %v22595_v28  ;;  %v16595_v4 = vand.u32 4294901760, %v3907_v47  ;;  %23721 = vst [vmem:[#allocation31_spill] sm:$0xff] %v16610_v6  ;;  %v16626_v28 = vand.u32 4294901760, %v3903_v34  ;;  %v23729_v9 = vand.u32 4294901760, %v16540_v15 }
 0x429   :  { %4728 = vmatprep.subr.mxu1 %v23666_v19  ;;  %4578 = vmatpush1.msra.mxu0 %v23717_v8  ;;  %v23719_v19 = vand.u32 4294901760, %v23669_v22  ;;  %v16606_v8 = vsub.f32 %v16506_v5, %v23720_v53  ;;  %v16624_v53 = vsub.f32 %v3911_v58, %v16566_v36  ;;  %v23728_v58 = vand.u32 4294901760, %v23675_v27 }
 0x42a   :  { %4730 = vmatpush1.msra.mxu1 %v23668_v2  ;;  %v23723_v2 = vand.u32 4294901760, %v16517_v35  ;;  %v16653_v48 = vsub.f32 %v3907_v47, %v16595_v4  ;;  %v23732_v27 = vand.u32 4294901760, %v16552_v29  ;;  %v3899_v47 = vld [vmem:[%s22222_s3 + $0xf8] sm:$0xff]  ;;  %4779 = vmatprep.mubr.f32.mxu1 %v23244_v20 }
 0x42b   :  { %4582 = vmatprep.subr.mxu0 %v23719_v19  ;;  %4732 = vmatprep.subr.mxu1 %v23670_v51  ;;  %23724 = vst [vmem:[#allocation23_spill] sm:$0xff] %v16624_v53  ;;  %v23726_v51 = vand.u32 4294901760, %v16528_v11  ;;  %v16640_v19 = vand.u32 4294901760, %v3902_v18  ;;  %v23744_v13 = vand.u32 4294901760, %v16624_v53 }
 0x42c   :  { %4586 = vmatpush1.msra.mxu0 %v23722_v32  ;;  %v16620_v22 = vsub.f32 %v16517_v35, %v23723_v2  ;;  %4734 = vmatpush1.msra.mxu1 %v23672_v46  ;;  %v16638_v2 = vsub.f32 %v3910_v40, %v16578_v56  ;;  %v4899_v46 = vand.u32 4294901760, %v16589_v12  ;;  %23730 = vst [vmem:[#allocation17_spill] sm:$0xff] %v16653_v48  ;;  %v23731_v40 = vand.u32 4294901760, %v23677_v52 }
 0x42d   :  { %4590 = vmatprep.subr.mxu0 %v23725_v31  ;;  %v16634_v32 = vsub.f32 %v16528_v11, %v23726_v51  ;;  %4736 = vmatprep.subr.mxu1 %v23674_v45  ;;  %v16649_v31 = vsub.f32 %v16540_v15, %v23729_v9  ;;  %v22597_v51 = vand.u32 4294901760, %v16593_v26  ;;  %v4905_v45 = vand.u32 4294901760, %v16606_v8 }
 0x42e   :  { %23727 = vst [vmem:[#allocation36_spill] sm:$0xff] %v16638_v2  ;;  %4594 = vmatpush1.msra.mxu0 %v23728_v58  ;;  %4738 = vmatpush1.msra.mxu1 %v23676_v30  ;;  %v16662_v12 = vsub.f32 %v16552_v29, %v23732_v27  ;;  %v16666_v9 = vsub.f32 %v3906_v25, %v16612_v60  ;;  %v23734_v30 = vand.u32 4294901760, %v23679_v37  ;;  %v4911_v52 = vand.u32 4294901760, %v16620_v22  ;;  %v3898_v58 = vld [vmem:[%s22222_s3 + $0xf0] sm:$0xff]  ;;  %v3895_v27 = vld [vmem:[%s22222_s3 + $0xd8] sm:$0xff] }
 0x42f   :  { %4598 = vmatprep.subr.mxu0 %v23731_v40  ;;  %4740 = vmatprep.subr.mxu1 %v23678_v41  ;;  %v23735_v8 = vand.u32 4294901760, %v16564_v3  ;;  %v16682_v25 = vsub.f32 %v3903_v34, %v16626_v28  ;;  %v23737_v41 = vand.u32 4294901760, %v23681_v55  ;;  %v4917_v37 = vand.u32 4294901760, %v16634_v32  ;;  %v3870_v29 = vld [vmem:[%s22222_s3 + $0x10] sm:$0xff] }
 0x430   :  { %23733 = vst [vmem:[#allocation39_spill] sm:$0xff] %v16666_v9  ;;  %4602 = vmatpush1.msra.mxu0 %v23734_v30  ;;  %4742 = vmatpush1.msra.mxu1 %v23680_v50  ;;  %v23738_v22 = vand.u32 4294901760, %v16576_v21  ;;  %v16698_v34 = vsub.f32 %v3902_v18, %v16640_v19  ;;  %v23740_v50 = vand.u32 4294901760, %v23683_v61  ;;  %v4923_v55 = vand.u32 4294901760, %v16649_v31 }
 0x431   :  { %v16678_v40 = vsub.f32 %v16564_v3, %v23735_v8  ;;  %23736 = vst [vmem:[#allocation9_spill] sm:$0xff] %v16682_v25  ;;  %4606 = vmatprep.subr.mxu0 %v23737_v41  ;;  %4744 = vmatprep.subr.mxu1 %v23682_v33  ;;  %v16710_v32 = vsub.f32 %v16593_v26, %v22597_v51  ;;  %v16713_v18 = vand.u32 4294901760, %v3899_v47  ;;  %v4929_v33 = vand.u32 4294901760, %v16662_v12  ;;  %v3891_v41 = vld [vmem:[%s22222_s3 + $0xb8] sm:$0xff]  ;;  %v3890_v26 = vld [vmem:[%s22222_s3 + $0xb0] sm:$0xff] }
 0x432   :  { %v16694_v30 = vsub.f32 %v16576_v21, %v23738_v22  ;;  %23739 = vst [vmem:[#allocation34_spill] sm:$0xff] %v16698_v34  ;;  %4610 = vmatpush1.msra.mxu0 %v23740_v50  ;;  %v3894_v22 = vld [vmem:[%s22222_s3 + $0xd0] sm:$0xff]  ;;  %4746 = vmatpush1.msra.mxu1 %v23684_v59  ;;  %v23741_v61 = vand.u32 4294901760, %v16610_v6  ;;  %v16727_v51 = vand.u32 4294901760, %v3898_v58  ;;  %v23742_v8 = vand.u32 4294901760, %v23685_v1  ;;  %v23743_v59 = vld [vmem:[#allocation16_spill] sm:$0xff] }
 0x433   :  { %4781 = vmatmul.mubr.f32.vlgmr.msra.gmra.mxu1 %v23743_v59  ;;  %v4935_v12 = vand.u32 4294901760, %v16678_v40  ;;  %4900 = vmatprep.subr.mxu1 %v4899_v46  ;;  %v23745_v1 = vand.u32 4294901760, %v23687_v7  ;;  %v23746_v40 = vand.u32 4294901760, %v16638_v2  ;;  %v16756_v50 = vand.u32 4294901760, %v3894_v22 }
 0x434   :  { %v16724_v31 = vsub.f32 %v16610_v6, %v23741_v61  ;;  %4614 = vmatprep.subr.mxu0 %v23742_v8  ;;  %v16739_v61 = vsub.f32 %v16624_v53, %v23744_v13  ;;  %v16742_v6 = vand.u32 4294901760, %v3895_v27  ;;  %v4941_v8 = vand.u32 4294901760, %v16694_v30  ;;  %v3887_v53 = vld [vmem:[%s22222_s3 + $0x98] sm:$0xff]  ;;  %4906 = vmatpush1.msra.mxu1 %v4905_v45 }
 0x435   :  { %4618 = vmatpush1.msra.mxu0 %v23745_v1  ;;  %v16753_v21 = vsub.f32 %v16638_v2, %v23746_v40  ;;  %v23747_v46 = vand.u32 4294901760, %v23688_v14  ;;  %v4947_v7 = vand.u32 4294901760, %v16710_v32  ;;  %v23748_v30 = vand.u32 4294901760, %v16653_v48  ;;  %v3886_v2 = vld [vmem:[%s22222_s3 + $0x90] sm:$0xff]  ;;  %4912 = vmatprep.subr.mxu1 %v4911_v52 }
 0x436   :  { %v16770_v40 = vsub.f32 %v3899_v47, %v16713_v18  ;;  %v16772_v13 = vand.u32 4294901760, %v3891_v41  ;;  %v23751_v14 = vand.u32 4294901760, %v23689_v42  ;;  %v4953_v45 = vand.u32 4294901760, %v16724_v31  ;;  %4918 = vmatpush1.msra.mxu1 %v4917_v37  ;;  %4675 = vmatprep.mubr.f32.mxu0 %v23244_v20 }
 0x437   :  { %4622 = vmatprep.subr.mxu0 %v23747_v46  ;;  %v16767_v1 = vsub.f32 %v16653_v48, %v23748_v30  ;;  %v23752_v32 = vand.u32 4294901760, %v16666_v9  ;;  %v16786_v47 = vsub.f32 %v3898_v58, %v16727_v51  ;;  %v16788_v30 = vand.u32 4294901760, %v3890_v26  ;;  %v3883_v48 = vld [vmem:[%s22222_s3 + $0x78] sm:$0xff]  ;;  %4924 = vmatprep.subr.mxu1 %v4923_v55 }
 0x438   :  { %23749 = vst [vmem:[#allocation24_spill] sm:$0xff] %v16770_v40  ;;  %23750 = vst [vmem:[#allocation44_spill] sm:$0xff] %v16772_v13  ;;  %4626 = vmatpush1.msra.mxu0 %v23751_v14  ;;  %v23754_v42 = vand.u32 4294901760, %v23690_v63  ;;  %v4959_v52 = vand.u32 4294901760, %v16739_v61  ;;  %v23755_v31 = vand.u32 4294901760, %v16682_v25  ;;  %v16802_v58 = vsub.f32 %v3895_v27, %v16742_v6  ;;  %4930 = vmatpush1.msra.mxu1 %v4929_v33 }
 0x439   :  { %v16783_v46 = vsub.f32 %v16666_v9, %v23752_v32  ;;  %23753 = vst [vmem:[#allocation10_spill] sm:$0xff] %v16786_v47  ;;  %v16804_v32 = vand.u32 4294901760, %v3887_v53  ;;  %v3882_v9 = vld [vmem:[%s22222_s3 + $0x70] sm:$0xff]  ;;  %v23757_v63 = vand.u32 4294901760, %v23691_v0  ;;  %v4965_v37 = vand.u32 4294901760, %v16753_v21  ;;  %4936 = vmatprep.subr.mxu1 %v4935_v12  ;;  %5119 = vmatprep.mubr.f32.mxu1 %v23244_v20 }
 0x43a   :  { %4630 = vmatprep.subr.mxu0 %v23754_v42  ;;  %v16799_v14 = vsub.f32 %v16682_v25, %v23755_v31  ;;  %23756 = vst [vmem:[#allocation7_spill] sm:$0xff] %v16802_v58  ;;  %v23758_v61 = vand.u32 4294901760, %v16698_v34  ;;  %v16818_v27 = vsub.f32 %v3894_v22, %v16756_v50  ;;  %v16820_v31 = vand.u32 4294901760, %v3886_v2  ;;  %v3879_v25 = vld [vmem:[%s22222_s3 + $0x58] sm:$0xff]  ;;  %v3878_v22 = vld [vmem:[%s22222_s3 + $0x50] sm:$0xff]  ;;  %4942 = vmatpush1.msra.mxu1 %v4941_v8 }
 0x43b   :  { %4634 = vmatpush1.msra.mxu0 %v23757_v63  ;;  %v23759_v0 = vand.u32 4294901760, %v23692_v38  ;;  %v4971_v21 = vand.u32 4294901760, %v16767_v1  ;;  %v22623_v55 = vand.u32 4294901760, %v16770_v40  ;;  %v16830_v63 = vsub.f32 %v3891_v41, %v16772_v13  ;;  %v3875_v41 = vld [vmem:[%s22222_s3 + $0x38] sm:$0xff]  ;;  %4948 = vmatprep.subr.mxu1 %v4947_v7 }
 0x43c   :  { %v16815_v42 = vsub.f32 %v16698_v34, %v23758_v61  ;;  %v16832_v61 = vand.u32 4294901760, %v3883_v48  ;;  %v23760_v34 = vand.u32 4294901760, %v23693_v39  ;;  %v4977_v38 = vand.u32 4294901760, %v16783_v46  ;;  %4954 = vmatpush1.msra.mxu1 %v4953_v45 }
 0x43d   :  { %4638 = vmatprep.subr.mxu0 %v23759_v0  ;;  %v16842_v1 = vsub.f32 %v3890_v26, %v16788_v30  ;;  %v16844_v0 = vand.u32 4294901760, %v3882_v9  ;;  %v4983_v12 = vand.u32 4294901760, %v16799_v14  ;;  %v16855_v46 = vand.u32 4294901760, %v3879_v25  ;;  %v3874_v26 = vld [vmem:[%s22222_s3 + $0x30] sm:$0xff]  ;;  %4960 = vmatprep.subr.mxu1 %v4959_v52 }
 0x43e   :  { %4642 = vmatpush1.msra.mxu0 %v23760_v34  ;;  %v16853_v34 = vsub.f32 %v3887_v53, %v16804_v32  ;;  %v4989_v33 = vand.u32 4294901760, %v16815_v42  ;;  %v16865_v14 = vsub.f32 %v3886_v2, %v16820_v31  ;;  %v16867_v39 = vand.u32 4294901760, %v3878_v22  ;;  %v3871_v53 = vld [vmem:[%s22222_s3 + $0x18] sm:$0xff]  ;;  %4966 = vmatpush1.msra.mxu1 %v4965_v37 }
 0x43f   :  { %4677 = vmatmul.mubr.f32.vlgmr.msra.gmra.mxu0 %v23743_v59  ;;  %4788 = vmatprep.subr.mxu0 %v16462_v44  ;;  %v4994_v3 = vsub.f32 %v16770_v40, %v22623_v55  ;;  %v16878_v8 = vsub.f32 %v3883_v48, %v16832_v61  ;;  %v16880_v2 = vand.u32 4294901760, %v3875_v41  ;;  %v23762_v7 = vand.u32 4294901760, %v16786_v47 }
 0x440   :  { %23761 = vst [vmem:[#allocation5_spill] sm:$0xff] %v16867_v39  ;;  %4790 = vmatpush1.msra.mxu0 %v16470_v62  ;;  %v16891_v42 = vsub.f32 %v3882_v9, %v16844_v0  ;;  %v16893_v48 = vand.u32 4294901760, %v3874_v26  ;;  %v23763_v40 = vand.u32 4294901760, %v16802_v58  ;;  %v16901_v35 = vsub.f32 %v3879_v25, %v16855_v46  ;;  %4972 = vmatprep.subr.mxu1 %v4971_v21 }
 0x441   :  { %4792 = vmatprep.subr.mxu0 %v16478_v49  ;;  %v5000_v15 = vsub.f32 %v16786_v47, %v23762_v7  ;;  %v16903_v7 = vand.u32 4294901760, %v3871_v53  ;;  %v23764_v9 = vand.u32 4294901760, %v16818_v27  ;;  %v16911_v47 = vsub.f32 %v3878_v22, %v16867_v39  ;;  %4978 = vmatpush1.msra.mxu1 %v4977_v38 }
 0x442   :  { %4794 = vmatpush1.msra.mxu0 %v16486_v23  ;;  %v5006_v45 = vsub.f32 %v16802_v58, %v23763_v40  ;;  %v16913_v40 = vand.u32 4294901760, %v3870_v29  ;;  %v4995_v25 = vand.u32 4294901760, %v4994_v3  ;;  %v23765_v11 = vand.u32 4294901760, %v16830_v63  ;;  %4984 = vmatprep.subr.mxu1 %v4983_v12 }
 0x443   :  { %4796 = vmatprep.subr.mxu0 %v16497_v57  ;;  %v5012_v52 = vsub.f32 %v16818_v27, %v23764_v9  ;;  %v16921_v5 = vsub.f32 %v3875_v41, %v16880_v2  ;;  %v5001_v22 = vand.u32 4294901760, %v5000_v15  ;;  %v23766_v9 = vand.u32 4294901760, %v16842_v1  ;;  %4990 = vmatpush1.msra.mxu1 %v4989_v33 }
 0x444   :  { %4798 = vmatpush1.msra.mxu0 %v16508_v16  ;;  %v5018_v37 = vsub.f32 %v16830_v63, %v23765_v11  ;;  %v16929_v3 = vsub.f32 %v3874_v26, %v16893_v48  ;;  %v5007_v11 = vand.u32 4294901760, %v5006_v45  ;;  %v23767_v41 = vand.u32 4294901760, %v16853_v34  ;;  %4996 = vmatprep.subr.mxu1 %v4995_v25 }
 0x445   :  { %4800 = vmatprep.subr.mxu0 %v16519_v24  ;;  %v5024_v21 = vsub.f32 %v16842_v1, %v23766_v9  ;;  %v16937_v15 = vsub.f32 %v3871_v53, %v16903_v7  ;;  %v5013_v9 = vand.u32 4294901760, %v5012_v52  ;;  %v23768_v26 = vand.u32 4294901760, %v16865_v14  ;;  %5002 = vmatpush1.msra.mxu1 %v5001_v22 }
 0x446   :  { %4802 = vmatpush1.msra.mxu0 %v16530_v54  ;;  %v5030_v38 = vsub.f32 %v16853_v34, %v23767_v41  ;;  %v16945_v45 = vsub.f32 %v3870_v29, %v16913_v40  ;;  %v5019_v41 = vand.u32 4294901760, %v5018_v37  ;;  %v23769_v53 = vand.u32 4294901760, %v16878_v8  ;;  %5008 = vmatprep.subr.mxu1 %v5007_v11 }
 0x447   :  { %4804 = vmatprep.subr.mxu0 %v16542_v43  ;;  %v5036_v12 = vsub.f32 %v16865_v14, %v23768_v26  ;;  %v5025_v52 = vand.u32 4294901760, %v5024_v21  ;;  %v23770_v26 = vand.u32 4294901760, %v16891_v42  ;;  %v23771_v37 = vand.u32 4294901760, %v16901_v35  ;;  %5014 = vmatpush1.msra.mxu1 %v5013_v9 }
 0x448   :  { %4806 = vmatpush1.msra.mxu0 %v16554_v10  ;;  %v5042_v33 = vsub.f32 %v16878_v8, %v23769_v53  ;;  %v5031_v25 = vand.u32 4294901760, %v5030_v38  ;;  %v23772_v21 = vand.u32 4294901760, %v16911_v47  ;;  %v22636_v29 = vand.u32 4294901760, %v16945_v45  ;;  %5020 = vmatprep.subr.mxu1 %v5019_v41 }
 0x449   :  { %4808 = vmatprep.subr.mxu0 %v16566_v36  ;;  %v5048_v55 = vsub.f32 %v16891_v42, %v23770_v26  ;;  %v5054_v53 = vsub.f32 %v16901_v35, %v23771_v37  ;;  %v5037_v22 = vand.u32 4294901760, %v5036_v12  ;;  %v23773_v38 = vand.u32 4294901760, %v16921_v5  ;;  %5026 = vmatpush1.msra.mxu1 %v5025_v52 }
 0x44a   :  { %4810 = vmatpush1.msra.mxu0 %v16578_v56  ;;  %v5060_v26 = vsub.f32 %v16911_v47, %v23772_v21  ;;  %v5043_v11 = vand.u32 4294901760, %v5042_v33  ;;  %v23774_v12 = vand.u32 4294901760, %v16929_v3  ;;  %5032 = vmatprep.subr.mxu1 %v5031_v25  ;;  %v23775_v41 = vand.u32 4294901760, %v16937_v15 }
 0x44b   :  { %4812 = vmatprep.subr.mxu0 %v16595_v4  ;;  %v5066_v37 = vsub.f32 %v16921_v5, %v23773_v38  ;;  %v5049_v9 = vand.u32 4294901760, %v5048_v55  ;;  %v5055_v21 = vand.u32 4294901760, %v5054_v53  ;;  %5038 = vmatpush1.msra.mxu1 %v5037_v22  ;;  %v5084_v55 = vsub.f32 %v16945_v45, %v22636_v29  ;;  %v23792_v29 = vld [vmem:[#allocation24_spill] sm:$0xff] }
 0x44c   :  { %4814 = vmatpush1.msra.mxu0 %v16612_v60  ;;  %v5072_v58 = vsub.f32 %v16929_v3, %v23774_v12  ;;  %v5078_v33 = vsub.f32 %v16937_v15, %v23775_v41  ;;  %v5061_v38 = vand.u32 4294901760, %v5060_v26  ;;  %5044 = vmatprep.subr.mxu1 %v5043_v11  ;;  %v23777_v26 = vld [vmem:[#allocation6_spill] sm:$0xff]  ;;  %v23778_v11 = vld [vmem:[#allocation40_spill] sm:$0xff]  ;;  %v23783_v41 = vld [vmem:[#allocation25_spill] sm:$0xff] }
 0x44d   :  { %4816 = vmatprep.subr.mxu0 %v16626_v28  ;;  %v5067_v52 = vand.u32 4294901760, %v5066_v37  ;;  %5050 = vmatpush1.msra.mxu1 %v5049_v9  ;;  %v5085_v22 = vand.u32 4294901760, %v5084_v55  ;;  %v23779_v37 = vld [vmem:[#allocation33_spill] sm:$0xff]  ;;  %v23780_v9 = vld [vmem:[#allocation11_spill] sm:$0xff]  ;;  %v23781_v12 = vld [vmem:[#allocation20_spill] sm:$0xff] }
 0x44e   :  { %4818 = vmatpush1.msra.mxu0 %v16640_v19  ;;  %v5073_v25 = vand.u32 4294901760, %v5072_v58  ;;  %5056 = vmatprep.subr.mxu1 %v5055_v21  ;;  %v5079_v53 = vand.u32 4294901760, %v5078_v33  ;;  %v23776_v58 = vld [vmem:[#allocation45_spill] sm:$0xff]  ;;  %v23784_v33 = vld [vmem:[#allocation12_spill] sm:$0xff]  ;;  %v23786_v55 = vld [vmem:[#allocation23_spill] sm:$0xff] }
 0x44f   :  { %4820 = vmatprep.subr.mxu0 %v16713_v18  ;;  %5062 = vmatpush1.msra.mxu1 %v5061_v38  ;;  %v23782_v21 = vld [vmem:[#allocation13_spill] sm:$0xff]  ;;  %v23785_v38 = vld [vmem:[#allocation31_spill] sm:$0xff] }
 0x450   :  { %4822 = vmatpush1.msra.mxu0 %v16727_v51  ;;  %5068 = vmatprep.subr.mxu1 %v5067_v52  ;;  %v23787_v52 = vld [vmem:[#allocation36_spill] sm:$0xff] }
 0x451   :  { %4824 = vmatprep.subr.mxu0 %v16742_v6  ;;  %5074 = vmatpush1.msra.mxu1 %v5073_v25  ;;  %v23788_v25 = vld [vmem:[#allocation17_spill] sm:$0xff] }
 0x452   :  { %4826 = vmatpush1.msra.mxu0 %v16756_v50  ;;  %5080 = vmatprep.subr.mxu1 %v5079_v53  ;;  %v23789_v53 = vld [vmem:[#allocation39_spill] sm:$0xff] }
 0x453   :  { %4828 = vmatprep.subr.mxu0 %v16772_v13  ;;  %5086 = vmatpush1.msra.mxu1 %v5085_v22  ;;  %v23790_v22 = vld [vmem:[#allocation9_spill] sm:$0xff] }
 0x454   :  { %4830 = vmatpush1.msra.mxu0 %v16788_v30  ;;  %5121 = vmatmul.mubr.f32.vlgmr.msra.gmra.mxu1 %v23743_v59  ;;  %v23793_v59 = vld [vmem:[#allocation10_spill] sm:$0xff] }
 0x455   :  { %4832 = vmatprep.subr.mxu0 %v16804_v32  ;;  %5265 = vmatprep.subr.mxu1 %v16462_v44 }
 0x456   :  { %4834 = vmatpush1.msra.mxu0 %v16820_v31  ;;  %5267 = vmatpush1.msra.mxu1 %v16470_v62 }
 0x457   :  { %4836 = vmatprep.subr.mxu0 %v16832_v61  ;;  %5269 = vmatprep.subr.mxu1 %v16478_v49 }
 0x458   :  { %4838 = vmatpush1.msra.mxu0 %v16844_v0  ;;  %5271 = vmatpush1.msra.mxu1 %v16486_v23 }
 0x459   :  { %4840 = vmatprep.subr.mxu0 %v16855_v46  ;;  %5273 = vmatprep.subr.mxu1 %v16497_v57 }
 0x45a   :  { %4842 = vmatpush1.msra.mxu0 %v16867_v39  ;;  %5275 = vmatpush1.msra.mxu1 %v16508_v16 }
 0x45b   :  { %4844 = vmatprep.subr.mxu0 %v16880_v2  ;;  %5277 = vmatprep.subr.mxu1 %v16519_v24 }
 0x45c   :  { %4846 = vmatpush1.msra.mxu0 %v16893_v48  ;;  %4883 = vmatprep.mubr.f32.mxu0 %v23244_v20 }
 0x45d   :  { %4848 = vmatprep.subr.mxu0 %v16903_v7  ;;  %5279 = vmatpush1.msra.mxu1 %v16530_v54 }
 0x45e   :  { %4850 = vmatpush1.msra.mxu0 %v16913_v40  ;;  %5281 = vmatprep.subr.mxu1 %v16542_v43 }
 0x45f   :  { %4889 = vmatmul.mubr.f32.vlgmr.msra.gmra.mxu0 %v23776_v58  ;;  %5129 = vmatprep.subr.mxu0 %v16495_v17  ;;  %v23791_v58 = vld [vmem:[#allocation34_spill] sm:$0xff] }
 0x460   :  { %5132 = vmatpush1.msra.mxu0 %v23777_v26  ;;  %5283 = vmatpush1.msra.mxu1 %v16554_v10 }
 0x461   :  { %5135 = vmatprep.subr.mxu0 %v23778_v11  ;;  %5285 = vmatprep.subr.mxu1 %v16566_v36 }
 0x462   :  { %5138 = vmatpush1.msra.mxu0 %v23779_v37  ;;  %5287 = vmatpush1.msra.mxu1 %v16578_v56 }
 0x463   :  { %5141 = vmatprep.subr.mxu0 %v23780_v9  ;;  %5289 = vmatprep.subr.mxu1 %v16595_v4 }
 0x464   :  { %5144 = vmatpush1.msra.mxu0 %v23781_v12  ;;  %5291 = vmatpush1.msra.mxu1 %v16612_v60 }
 0x465   :  { %5147 = vmatprep.subr.mxu0 %v23782_v21  ;;  %5293 = vmatprep.subr.mxu1 %v16626_v28 }
 0x466   :  { %5150 = vmatpush1.msra.mxu0 %v23783_v41  ;;  %5295 = vmatpush1.msra.mxu1 %v16640_v19 }
 0x467   :  { %5153 = vmatprep.subr.mxu0 %v23784_v33  ;;  %5297 = vmatprep.subr.mxu1 %v16713_v18 }
 0x468   :  { %5156 = vmatpush1.msra.mxu0 %v23785_v38  ;;  %5299 = vmatpush1.msra.mxu1 %v16727_v51 }
 0x469   :  { %5159 = vmatprep.subr.mxu0 %v23786_v55  ;;  %5301 = vmatprep.subr.mxu1 %v16742_v6 }
 0x46a   :  { %5162 = vmatpush1.msra.mxu0 %v23787_v52  ;;  %5303 = vmatpush1.msra.mxu1 %v16756_v50 }
 0x46b   :  { %5165 = vmatprep.subr.mxu0 %v23788_v25  ;;  %5305 = vmatprep.subr.mxu1 %v16772_v13  ;;  %v23794_v13 = vld [vmem:[#allocation7_spill] sm:$0xff] }
 0x46c   :  { %5168 = vmatpush1.msra.mxu0 %v23789_v53  ;;  %5307 = vmatpush1.msra.mxu1 %v16788_v30 }
 0x46d   :  { %5171 = vmatprep.subr.mxu0 %v23790_v22  ;;  %5309 = vmatprep.subr.mxu1 %v16804_v32 }
 0x46e   :  { %5174 = vmatpush1.msra.mxu0 %v23791_v58  ;;  %5311 = vmatpush1.msra.mxu1 %v16820_v31 }
 0x46f   :  { %5177 = vmatprep.subr.mxu0 %v23792_v29  ;;  %5313 = vmatprep.subr.mxu1 %v16832_v61 }
 0x470   :  { %5180 = vmatpush1.msra.mxu0 %v23793_v59  ;;  %5315 = vmatpush1.msra.mxu1 %v16844_v0 }
 0x471   :  { %5183 = vmatprep.subr.mxu0 %v23794_v13  ;;  %5317 = vmatprep.subr.mxu1 %v16855_v46 }
 0x472   :  { %5186 = vmatpush1.msra.mxu0 %v16818_v27  ;;  %5319 = vmatpush1.msra.mxu1 %v16867_v39  ;;  %v23795_v39 = vld [vmem:[#allocation30_spill] sm:$0xff] }
 0x473   :  { %5189 = vmatprep.subr.mxu0 %v16830_v63  ;;  %5321 = vmatprep.subr.mxu1 %v16880_v2 }
 0x474   :  { %5192 = vmatpush1.msra.mxu0 %v16842_v1  ;;  %5323 = vmatpush1.msra.mxu1 %v16893_v48 }
 0x475   :  { %5195 = vmatprep.subr.mxu0 %v16853_v34  ;;  %5325 = vmatprep.subr.mxu1 %v16903_v7 }
 0x476   :  { %5198 = vmatpush1.msra.mxu0 %v16865_v14  ;;  %5327 = vmatpush1.msra.mxu1 %v16913_v40 }
 0x477   :  { %5360 = vmatprep.mubr.f32.mxu1 %v23244_v20  ;;  %5201 = vmatprep.subr.mxu0 %v16878_v8 }
 0x478   :  { %5364 = vmatmul.mubr.f32.vlgmr.msra.gmra.mxu1 %v23795_v39  ;;  %5539 = vmatprep.subr.mxu1 %v16462_v44  ;;  %v23796_v44 = vld [vmem:[#allocation41_spill] sm:$0xff]  ;;  %v23827_v39 = vand.u32 4294901760, %v16911_v47 }
 0x479   :  { %5204 = vmatpush1.msra.mxu0 %v16891_v42  ;;  %5541 = vmatpush1.msra.mxu1 %v16470_v62  ;;  %v23797_v62 = vand.u32 4294901760, %v16495_v17  ;;  %v23801_v17 = vand.u32 4294901760, %v23780_v9 }
 0x47a   :  { %5207 = vmatprep.subr.mxu0 %v16901_v35  ;;  %5543 = vmatprep.subr.mxu1 %v16478_v49  ;;  %v23798_v49 = vand.u32 4294901760, %v23777_v26 }
 0x47b   :  { %5210 = vmatpush1.msra.mxu0 %v16911_v47  ;;  %5545 = vmatpush1.msra.mxu1 %v16486_v23  ;;  %v23799_v23 = vand.u32 4294901760, %v23778_v11 }
 0x47c   :  { %5213 = vmatprep.subr.mxu0 %v16921_v5  ;;  %5547 = vmatprep.subr.mxu1 %v16497_v57  ;;  %v23800_v57 = vand.u32 4294901760, %v23779_v37  ;;  %v5783_v37 = vld [vmem:[%s22222_s3 + $0x1a0] sm:$0xff] }
 0x47d   :  { %5216 = vmatpush1.msra.mxu0 %v16929_v3  ;;  %5549 = vmatpush1.msra.mxu1 %v16508_v16  ;;  %v23802_v16 = vand.u32 4294901760, %v23781_v12 }
 0x47e   :  { %5219 = vmatprep.subr.mxu0 %v16937_v15  ;;  %5551 = vmatprep.subr.mxu1 %v16519_v24  ;;  %v23803_v24 = vand.u32 4294901760, %v23782_v21  ;;  %v17217_v21 = vand.u32 4294901760, %v5783_v37 }
 0x47f   :  { %5222 = vmatpush1.msra.mxu0 %v16945_v45  ;;  %5255 = vmatprep.mubr.f32.mxu0 %v23244_v20 }
 0x480   :  { %5553 = vmatpush1.msra.mxu1 %v16530_v54  ;;  %5258 = vmatmul.mubr.f32.vlgmr.msra.gmra.mxu0 %v23796_v44  ;;  %v23804_v54 = vand.u32 4294901760, %v23783_v41  ;;  %v5780_v41 = vld [vmem:[%s22222_s3 + $0x188] sm:$0xff] }
 0x481   :  { %5373 = vmatprep.subr.mxu0 %v23797_v62  ;;  %5555 = vmatprep.subr.mxu1 %v16542_v43  ;;  %v23805_v43 = vand.u32 4294901760, %v23784_v33  ;;  %v5776_v62 = vld [vmem:[%s22222_s3 + $0x168] sm:$0xff] }
 0x482   :  { %5377 = vmatpush1.msra.mxu0 %v23798_v49  ;;  %5557 = vmatpush1.msra.mxu1 %v16554_v10  ;;  %v23806_v10 = vand.u32 4294901760, %v23785_v38 }
 0x483   :  { %5381 = vmatprep.subr.mxu0 %v23799_v23  ;;  %5559 = vmatprep.subr.mxu1 %v16566_v36  ;;  %v23807_v36 = vand.u32 4294901760, %v23786_v55 }
 0x484   :  { %5385 = vmatpush1.msra.mxu0 %v23800_v57  ;;  %5561 = vmatpush1.msra.mxu1 %v16578_v56  ;;  %v23809_v56 = vand.u32 4294901760, %v23788_v25  ;;  %v5779_v25 = vld [vmem:[%s22222_s3 + $0x180] sm:$0xff] }
 0x485   :  { %5389 = vmatprep.subr.mxu0 %v23801_v17  ;;  %5563 = vmatprep.subr.mxu1 %v16595_v4  ;;  %v23811_v4 = vand.u32 4294901760, %v23789_v53  ;;  %v17243_v44 = vand.u32 4294901760, %v5779_v25 }
 0x486   :  { %5393 = vmatpush1.msra.mxu0 %v23802_v16  ;;  %5565 = vmatpush1.msra.mxu1 %v16612_v60  ;;  %v23810_v60 = vld [vmem:[#allocation44_spill] sm:$0xff] }
 0x487   :  { %5397 = vmatprep.subr.mxu0 %v23803_v24  ;;  %5567 = vmatprep.subr.mxu1 %v16626_v28  ;;  %v23808_v28 = vand.u32 4294901760, %v23787_v52  ;;  %v17230_v52 = vand.u32 4294901760, %v5780_v41  ;;  %v5775_v16 = vld [vmem:[%s22222_s3 + $0x160] sm:$0xff] }
 0x488   :  { %5401 = vmatpush1.msra.mxu0 %v23804_v54  ;;  %5569 = vmatpush1.msra.mxu1 %v16640_v19  ;;  %v23812_v19 = vand.u32 4294901760, %v23790_v22 }
 0x489   :  { %5405 = vmatprep.subr.mxu0 %v23805_v43  ;;  %5571 = vmatprep.subr.mxu1 %v16713_v18  ;;  %v23815_v18 = vand.u32 4294901760, %v23793_v59  ;;  %v23820_v59 = vand.u32 4294901760, %v16842_v1  ;;  %v23825_v1 = vand.u32 4294901760, %v16891_v42  ;;  %v17254_v17 = vsub.f32 %v5780_v41, %v17230_v52 }
 0x48a   :  { %5409 = vmatpush1.msra.mxu0 %v23806_v10  ;;  %5573 = vmatpush1.msra.mxu1 %v16727_v51  ;;  %v23814_v51 = vand.u32 4294901760, %v23792_v29  ;;  %v17265_v10 = vsub.f32 %v5779_v25, %v17243_v44 }
 0x48b   :  { %5413 = vmatprep.subr.mxu0 %v23807_v36  ;;  %5575 = vmatprep.subr.mxu1 %v16742_v6  ;;  %v23813_v6 = vand.u32 4294901760, %v23791_v58  ;;  %v17241_v58 = vsub.f32 %v5783_v37, %v17217_v21  ;;  %v5772_v36 = vld [vmem:[%s22222_s3 + $0x148] sm:$0xff] }
 0x48c   :  { %5417 = vmatpush1.msra.mxu0 %v23808_v28  ;;  %5577 = vmatpush1.msra.mxu1 %v16756_v50  ;;  %v23816_v50 = vand.u32 4294901760, %v23794_v13  ;;  %v23821_v13 = vand.u32 4294901760, %v16853_v34  ;;  %v23828_v34 = vand.u32 4294901760, %v16921_v5  ;;  %v5791_v5 = vld [vmem:[%s22222_s3 + $0x1e0] sm:$0xff] }
 0x48d   :  { %5421 = vmatprep.subr.mxu0 %v23809_v56  ;;  %5579 = vmatprep.subr.mxu1 %v23810_v60  ;;  %v17180_v42 = vand.u32 4294901760, %v5791_v5  ;;  %v22654_v43 = vand.u32 4294901760, %v17241_v58  ;;  %v22652_v60 = vand.u32 4294901760, %v17254_v17 }
 0x48e   :  { %5425 = vmatpush1.msra.mxu0 %v23811_v4  ;;  %5581 = vmatpush1.msra.mxu1 %v16788_v30  ;;  %v23817_v30 = vand.u32 4294901760, %v16818_v27  ;;  %v23822_v27 = vand.u32 4294901760, %v16865_v14  ;;  %v23831_v14 = vand.u32 4294901760, %v16945_v45  ;;  %v5784_v45 = vld [vmem:[%s22222_s3 + $0x1a8] sm:$0xff]  ;;  %v17275_v4 = vand.u32 4294901760, %v5776_v62 }
 0x48f   :  { %5429 = vmatprep.subr.mxu0 %v23812_v19  ;;  %5583 = vmatprep.subr.mxu1 %v16804_v32  ;;  %v23818_v32 = vld [vmem:[#allocation5_spill] sm:$0xff]  ;;  %v17207_v11 = vand.u32 4294901760, %v5784_v45  ;;  %v5771_v19 = vld [vmem:[%s22222_s3 + $0x140] sm:$0xff] }
 0x490   :  { %5433 = vmatpush1.msra.mxu0 %v23813_v6  ;;  %5585 = vmatpush1.msra.mxu1 %v16820_v31  ;;  %v23819_v31 = vand.u32 4294901760, %v16830_v63  ;;  %v23823_v63 = vand.u32 4294901760, %v16878_v8  ;;  %v23830_v8 = vand.u32 4294901760, %v16937_v15 }
 0x491   :  { %5437 = vmatprep.subr.mxu0 %v23814_v51  ;;  %5587 = vmatprep.subr.mxu1 %v16832_v61  ;;  %v23824_v61 = vld [vmem:[#allocation16_spill] sm:$0xff]  ;;  %v17228_v55 = vsub.f32 %v5784_v45, %v17207_v11  ;;  %v5936_v51 = vsub.f32 %v17241_v58, %v22654_v43 }
 0x492   :  { %5441 = vmatpush1.msra.mxu0 %v23815_v18  ;;  %5589 = vmatpush1.msra.mxu1 %v16844_v0  ;;  %v23826_v0 = vand.u32 4294901760, %v16901_v35  ;;  %v5792_v35 = vld [vmem:[%s22222_s3 + $0x1e8] sm:$0xff]  ;;  %v22650_v18 = vand.u32 4294901760, %v17265_v10 }
 0x493   :  { %5445 = vmatprep.subr.mxu0 %v23816_v50  ;;  %5591 = vmatprep.subr.mxu1 %v16855_v46  ;;  %v23829_v46 = vand.u32 4294901760, %v16929_v3  ;;  %v17175_v47 = vand.u32 4294901760, %v5792_v35  ;;  %v17195_v3 = vsub.f32 %v5791_v5, %v17180_v42  ;;  %v22655_v57 = vand.u32 4294901760, %v17228_v55 }
 0x494   :  { %5449 = vmatpush1.msra.mxu0 %v23817_v30  ;;  %5593 = vmatpush1.msra.mxu1 %v23818_v32  ;;  %v17284_v50 = vand.u32 4294901760, %v5775_v16  ;;  %v5768_v30 = vld [vmem:[%s22222_s3 + $0x128] sm:$0xff] }
 0x495   :  { %5453 = vmatprep.subr.mxu0 %v23819_v31  ;;  %5595 = vmatprep.subr.mxu1 %v16880_v2  ;;  %23832 = vst [vmem:[#allocation15_spill] sm:$0xff] %v17175_v47  ;;  %v5788_v2 = vld [vmem:[%s22222_s3 + $0x1c8] sm:$0xff]  ;;  %v22659_v9 = vand.u32 4294901760, %v17195_v3  ;;  %v5930_v56 = vsub.f32 %v17228_v55, %v22655_v57  ;;  %v5942_v31 = vsub.f32 %v17254_v17, %v22652_v60 }
 0x496   :  { %5457 = vmatpush1.msra.mxu0 %v23820_v59  ;;  %5597 = vmatpush1.msra.mxu1 %v16893_v48  ;;  %v17186_v48 = vsub.f32 %v5792_v35, %v17175_v47  ;;  %v17293_v59 = vsub.f32 %v5776_v62, %v17275_v4  ;;  %v5763_v35 = vld [vmem:[%s22222_s3 + $0x100] sm:$0xff] }
 0x497   :  { %5461 = vmatprep.subr.mxu0 %v23821_v13  ;;  %5599 = vmatprep.subr.mxu1 %v16903_v7  ;;  %v17188_v7 = vand.u32 4294901760, %v5788_v2  ;;  %v5912_v53 = vsub.f32 %v17195_v3, %v22659_v9  ;;  %v5931_v32 = vand.u32 4294901760, %v5930_v56  ;;  %v17295_v13 = vand.u32 4294901760, %v5772_v36  ;;  %v5759_v56 = vld [vmem:[%s22222_s3 + $0xe0] sm:$0xff] }
 0x498   :  { %5465 = vmatpush1.msra.mxu0 %v23822_v27  ;;  %5601 = vmatpush1.msra.mxu1 %v16913_v40  ;;  %23833 = vst [vmem:[#allocation37_spill] sm:$0xff] %v17186_v48  ;;  %v5787_v40 = vld [vmem:[%s22222_s3 + $0x1c0] sm:$0xff]  ;;  %v22661_v29 = vand.u32 4294901760, %v17186_v48 }
 0x499   :  { %5634 = vmatprep.mubr.f32.mxu1 %v23244_v20  ;;  %5469 = vmatprep.subr.mxu0 %v23823_v63  ;;  %v17197_v15 = vand.u32 4294901760, %v5787_v40  ;;  %v17205_v26 = vsub.f32 %v5788_v2, %v17188_v7  ;;  %v5913_v24 = vand.u32 4294901760, %v5912_v53  ;;  %v5767_v27 = vld [vmem:[%s22222_s3 + $0x120] sm:$0xff]  ;;  %v5937_v63 = vand.u32 4294901760, %v5936_v51 }
 0x49a   :  { %5636 = vmatmul.mubr.f32.vlgmr.msra.gmra.mxu1 %v23824_v61  ;;  %5473 = vmatpush1.msra.mxu0 %v23825_v1  ;;  %v5906_v33 = vsub.f32 %v17186_v48, %v22661_v29  ;;  %v17305_v1 = vsub.f32 %v5775_v16, %v17284_v50  ;;  %v17327_v45 = vand.u32 4294901760, %v5767_v27  ;;  %v5760_v16 = vld [vmem:[%s22222_s3 + $0xe8] sm:$0xff] }
 0x49b   :  { %5530 = vmatprep.mubr.f32.mxu0 %v23244_v20  ;;  %5477 = vmatprep.subr.mxu0 %v23826_v0  ;;  %v17215_v12 = vsub.f32 %v5787_v40, %v17197_v15  ;;  %v22658_v38 = vand.u32 4294901760, %v17205_v26  ;;  %v17307_v0 = vand.u32 4294901760, %v5771_v19 }
 0x49c   :  { %6127 = vmatprep.mubr.f32.mxu1 %v23244_v20  ;;  %5481 = vmatpush1.msra.mxu0 %v23827_v39  ;;  %v5907_v49 = vand.u32 4294901760, %v5906_v33  ;;  %v5764_v39 = vld [vmem:[%s22222_s3 + $0x108] sm:$0xff]  ;;  %v22648_v2 = vand.u32 4294901760, %v17305_v1 }
 0x49d   :  { %5485 = vmatprep.subr.mxu0 %v23828_v34  ;;  %v22656_v22 = vand.u32 4294901760, %v17215_v12  ;;  %v5918_v23 = vsub.f32 %v17205_v26, %v22658_v38  ;;  %v5943_v34 = vand.u32 4294901760, %v5942_v31  ;;  %v17325_v40 = vsub.f32 %v5771_v19, %v17307_v0 }
 0x49e   :  { %5489 = vmatpush1.msra.mxu0 %v23829_v46  ;;  %5908 = vmatprep.subr.mxu1 %v5907_v49  ;;  %v22649_v46 = vand.u32 4294901760, %v17293_v59  ;;  %v17337_v25 = vand.u32 4294901760, %v5764_v39  ;;  %v5960_v53 = vsub.f32 %v17305_v1, %v22648_v2  ;;  %v17345_v49 = vsub.f32 %v5767_v27, %v17327_v45 }
 0x49f   :  { %5493 = vmatprep.subr.mxu0 %v23830_v8  ;;  %v5924_v54 = vsub.f32 %v17215_v12, %v22656_v22  ;;  %v5919_v28 = vand.u32 4294901760, %v5918_v23  ;;  %5914 = vmatpush1.msra.mxu1 %v5913_v24  ;;  %v17315_v8 = vsub.f32 %v5772_v36, %v17295_v13  ;;  %v22643_v62 = vand.u32 4294901760, %v17325_v40 }
 0x4a0   :  { %5497 = vmatpush1.msra.mxu0 %v23831_v14  ;;  %v17317_v14 = vand.u32 4294901760, %v5768_v30  ;;  %v5954_v37 = vsub.f32 %v17293_v59, %v22649_v46  ;;  %v17347_v23 = vand.u32 4294901760, %v5763_v35  ;;  %v5961_v19 = vand.u32 4294901760, %v5960_v53 }
 0x4a1   :  { %5532 = vmatmul.mubr.f32.vlgmr.msra.gmra.mxu0 %v23824_v61  ;;  %5796 = vmatprep.subr.mxu0 %v17175_v47  ;;  %v5925_v6 = vand.u32 4294901760, %v5924_v54  ;;  %v5948_v61 = vsub.f32 %v17265_v10, %v22650_v18  ;;  %v22645_v41 = vand.u32 4294901760, %v17315_v8  ;;  %v22642_v51 = vand.u32 4294901760, %v17345_v49 }
 0x4a2   :  { %5891 = vmatprep.mubr.f32.mxu0 %v23244_v20  ;;  %5798 = vmatpush1.msra.mxu0 %v17180_v42  ;;  %v17335_v33 = vsub.f32 %v5768_v30, %v17317_v14  ;;  %v5955_v24 = vand.u32 4294901760, %v5954_v37  ;;  %v17369_v30 = vsub.f32 %v5763_v35, %v17347_v23  ;;  %v17388_v37 = vand.u32 4294901760, %v5759_v56 }
 0x4a3   :  { %5800 = vmatprep.subr.mxu0 %v17188_v7  ;;  %5920 = vmatprep.subr.mxu1 %v5919_v28  ;;  %v5949_v5 = vand.u32 4294901760, %v5948_v61  ;;  %v5966_v54 = vsub.f32 %v17315_v8, %v22645_v41  ;;  %v17358_v28 = vsub.f32 %v5764_v39, %v17337_v25  ;;  %v17379_v61 = vand.u32 4294901760, %v5760_v16  ;;  %v5755_v39 = vld [vmem:[%s22222_s3 + $0xc0] sm:$0xff] }
 0x4a4   :  { %5802 = vmatpush1.msra.mxu0 %v17197_v15  ;;  %5926 = vmatpush1.msra.mxu1 %v5925_v6  ;;  %v22640_v36 = vand.u32 4294901760, %v17335_v33  ;;  %v5972_v6 = vsub.f32 %v17325_v40, %v22643_v62  ;;  %23835 = vst [vmem:[#allocation38_spill] sm:$0xff] %v17369_v30  ;;  %v5984_v35 = vsub.f32 %v17345_v49, %v22642_v51 }
 0x4a5   :  { %5804 = vmatprep.subr.mxu0 %v17207_v11  ;;  %5932 = vmatprep.subr.mxu1 %v5931_v32  ;;  %23834 = vst [vmem:[#allocation14_spill] sm:$0xff] %v17358_v28  ;;  %v5756_v32 = vld [vmem:[%s22222_s3 + $0xc8] sm:$0xff]  ;;  %v5967_v31 = vand.u32 4294901760, %v5966_v54  ;;  %v17394_v54 = vsub.f32 %v5760_v16, %v17379_v61 }
 0x4a6   :  { %5806 = vmatpush1.msra.mxu0 %v17217_v21  ;;  %5938 = vmatpush1.msra.mxu1 %v5937_v63  ;;  %v5978_v27 = vsub.f32 %v17335_v33, %v22640_v36  ;;  %v22641_v63 = vand.u32 4294901760, %v17358_v28  ;;  %v17396_v36 = vand.u32 4294901760, %v5756_v32 }
 0x4a7   :  { %5808 = vmatprep.subr.mxu0 %v17230_v52  ;;  %5944 = vmatprep.subr.mxu1 %v5943_v34  ;;  %v5973_v34 = vand.u32 4294901760, %v5972_v6  ;;  %23836 = vst [vmem:[#allocation8_spill] sm:$0xff] %v17394_v54  ;;  %v5985_v6 = vand.u32 4294901760, %v5984_v35  ;;  %v22646_v51 = vand.u32 4294901760, %v17394_v54 }
 0x4a8   :  { %5810 = vmatpush1.msra.mxu0 %v17243_v44  ;;  %5950 = vmatpush1.msra.mxu1 %v5949_v5  ;;  %v22644_v5 = vand.u32 4294901760, %v17369_v30  ;;  %v5979_v53 = vand.u32 4294901760, %v5978_v27  ;;  %v17406_v27 = vsub.f32 %v5759_v56, %v17388_v37  ;;  %v17413_v62 = vsub.f32 %v5756_v32, %v17396_v36 }
 0x4a9   :  { %5812 = vmatprep.subr.mxu0 %v17275_v4  ;;  %5956 = vmatprep.subr.mxu1 %v5955_v24  ;;  %v5990_v24 = vsub.f32 %v17358_v28, %v22641_v63  ;;  %v17408_v63 = vand.u32 4294901760, %v5755_v39  ;;  %v6002_v32 = vsub.f32 %v17394_v54, %v22646_v51 }
 0x4aa   :  { %5814 = vmatpush1.msra.mxu0 %v17284_v50  ;;  %5962 = vmatpush1.msra.mxu1 %v5961_v19  ;;  %v5752_v19 = vld [vmem:[%s22222_s3 + $0xa8] sm:$0xff]  ;;  %23837 = vst [vmem:[#allocation22_spill] sm:$0xff] %v17406_v27  ;;  %23838 = vst [vmem:[#allocation18_spill] sm:$0xff] %v17413_v62  ;;  %v22647_v35 = vand.u32 4294901760, %v17406_v27 }
 0x4ab   :  { %5816 = vmatprep.subr.mxu0 %v17295_v13  ;;  %5968 = vmatprep.subr.mxu1 %v5967_v31  ;;  %v5996_v31 = vsub.f32 %v17369_v30, %v22644_v5  ;;  %v5991_v16 = vand.u32 4294901760, %v5990_v24  ;;  %v17421_v5 = vsub.f32 %v5755_v39, %v17408_v63  ;;  %v22651_v24 = vand.u32 4294901760, %v17413_v62 }
 0x4ac   :  { %5818 = vmatpush1.msra.mxu0 %v17307_v0  ;;  %5974 = vmatpush1.msra.mxu1 %v5973_v34  ;;  %v5751_v34 = vld [vmem:[%s22222_s3 + $0xa0] sm:$0xff]  ;;  %v6003_v51 = vand.u32 4294901760, %v6002_v32  ;;  %v5744_v32 = vld [vmem:[%s22222_s3 + $0x68] sm:$0xff] }
 0x4ad   :  { %5820 = vmatprep.subr.mxu0 %v17317_v14  ;;  %5980 = vmatprep.subr.mxu1 %v5979_v53  ;;  %v5997_v56 = vand.u32 4294901760, %v5996_v31  ;;  %23839 = vst [vmem:[#allocation32_spill] sm:$0xff] %v17421_v5  ;;  %v17423_v53 = vand.u32 4294901760, %v5752_v19  ;;  %v22653_v31 = vand.u32 4294901760, %v17421_v5  ;;  %v17437_v41 = vand.u32 4294901760, %v5751_v34 }
 0x4ae   :  { %5822 = vmatpush1.msra.mxu0 %v17327_v45  ;;  %5986 = vmatpush1.msra.mxu1 %v5985_v6  ;;  %v6008_v6 = vsub.f32 %v17406_v27, %v22647_v35  ;;  %v5747_v35 = vld [vmem:[%s22222_s3 + $0x80] sm:$0xff]  ;;  %v17477_v22 = vand.u32 4294901760, %v5744_v32 }
 0x4af   :  { %5824 = vmatprep.subr.mxu0 %v17337_v25  ;;  %5992 = vmatprep.subr.mxu1 %v5991_v16  ;;  %v17435_v39 = vsub.f32 %v5752_v19, %v17423_v53  ;;  %23841 = vst [vmem:[#allocation43_spill] sm:$0xff] %v17437_v41  ;;  %v5748_v16 = vld [vmem:[%s22222_s3 + $0x88] sm:$0xff]  ;;  %v6020_v19 = vsub.f32 %v17421_v5, %v22653_v31  ;;  %v17469_v57 = vand.u32 4294901760, %v5747_v35 }
 0x4b0   :  { %5826 = vmatpush1.msra.mxu0 %v17347_v23  ;;  %5998 = vmatpush1.msra.mxu1 %v5997_v56  ;;  %v6014_v56 = vsub.f32 %v17413_v62, %v22651_v24  ;;  %v6009_v2 = vand.u32 4294901760, %v6008_v6  ;;  %v17454_v18 = vsub.f32 %v5751_v34, %v17437_v41  ;;  %v17460_v60 = vand.u32 4294901760, %v5748_v16  ;;  %v5743_v6 = vld [vmem:[%s22222_s3 + $0x60] sm:$0xff]  ;;  %23846 = vst [vmem:[#allocation40_spill] sm:$0xff] %v17477_v22 }
 0x4b1   :  { %5828 = vmatprep.subr.mxu0 %v17379_v61  ;;  %23840 = vst [vmem:[#allocation21_spill] sm:$0xff] %v17435_v39  ;;  %v22657_v46 = vand.u32 4294901760, %v17435_v39  ;;  %6004 = vmatprep.subr.mxu1 %v6003_v51  ;;  %v6021_v31 = vand.u32 4294901760, %v6020_v19  ;;  %23844 = vst [vmem:[#allocation45_spill] sm:$0xff] %v17469_v57  ;;  %v5740_v51 = vld [vmem:[%s22222_s3 + $0x48] sm:$0xff]  ;;  %v17487_v38 = vsub.f32 %v5747_v35, %v17469_v57  ;;  %v5735_v35 = vld [vmem:[%s22222_s3 + $0x20] sm:$0xff] }
 0x4b2   :  { %5830 = vmatpush1.msra.mxu0 %v17388_v37  ;;  %23842 = vst [vmem:[#allocation42_spill] sm:$0xff] %v17454_v18  ;;  %v6015_v24 = vand.u32 4294901760, %v6014_v56  ;;  %23843 = vst [vmem:[#allocation19_spill] sm:$0xff] %v17460_v60  ;;  %6010 = vmatpush1.msra.mxu1 %v6009_v2  ;;  %v22660_v43 = vand.u32 4294901760, %v17454_v18  ;;  %v17475_v56 = vsub.f32 %v5748_v16, %v17460_v60  ;;  %v5739_v2 = vld [vmem:[%s22222_s3 + $0x40] sm:$0xff]  ;;  %v5736_v16 = vld [vmem:[%s22222_s3 + $0x28] sm:$0xff] }
 0x4b3   :  { %5832 = vmatprep.subr.mxu0 %v17396_v36  ;;  %v6026_v34 = vsub.f32 %v17435_v39, %v22657_v46  ;;  %23847 = vst [vmem:[#allocation33_spill] sm:$0xff] %v17487_v38  ;;  %v22675_v29 = vand.u32 4294901760, %v17487_v38  ;;  %v17509_v39 = vand.u32 4294901760, %v5739_v2 }
 0x4b4   :  { %5834 = vmatpush1.msra.mxu0 %v17408_v63  ;;  %6016 = vmatprep.subr.mxu1 %v6015_v24  ;;  %23845 = vst [vmem:[#allocation6_spill] sm:$0xff] %v17475_v56  ;;  %v6032_v46 = vsub.f32 %v17454_v18, %v22660_v43  ;;  %v17489_v24 = vand.u32 4294901760, %v5743_v6  ;;  %v22672_v9 = vand.u32 4294901760, %v17475_v56 }
 0x4b5   :  { %5836 = vmatprep.subr.mxu0 %v17423_v53  ;;  %6022 = vmatpush1.msra.mxu1 %v6021_v31  ;;  %v6027_v19 = vand.u32 4294901760, %v6026_v34  ;;  %v17497_v31 = vsub.f32 %v5744_v32, %v17477_v22  ;;  %v17499_v34 = vand.u32 4294901760, %v5740_v51  ;;  %23852 = vst [vmem:[#allocation12_spill] sm:$0xff] %v17509_v39 }
 0x4b6   :  { %5838 = vmatpush1.msra.mxu0 %v17437_v41  ;;  %23848 = vst [vmem:[#allocation11_spill] sm:$0xff] %v17489_v24  ;;  %v6033_v43 = vand.u32 4294901760, %v6032_v46  ;;  %v17507_v18 = vsub.f32 %v5743_v6, %v17489_v24  ;;  %v6038_v32 = vsub.f32 %v17475_v56, %v22672_v9  ;;  %v6044_v46 = vsub.f32 %v17487_v38, %v22675_v29 }
 0x4b7   :  { %5840 = vmatprep.subr.mxu0 %v17460_v60  ;;  %23849 = vst [vmem:[#allocation20_spill] sm:$0xff] %v17497_v31  ;;  %23850 = vst [vmem:[#allocation13_spill] sm:$0xff] %v17499_v34  ;;  %6028 = vmatprep.subr.mxu1 %v6027_v19  ;;  %v17517_v62 = vsub.f32 %v5740_v51, %v17499_v34  ;;  %v17519_v19 = vand.u32 4294901760, %v5736_v16  ;;  %v17529_v9 = vand.u32 4294901760, %v5735_v35  ;;  %v5732_v51 = vld [vmem:[%s22222_s3 + $0x8] sm:$0xff] }
 0x4b8   :  { %5842 = vmatpush1.msra.mxu0 %v17469_v57  ;;  %23851 = vst [vmem:[#allocation25_spill] sm:$0xff] %v17507_v18  ;;  %6034 = vmatpush1.msra.mxu1 %v6033_v43  ;;  %v6039_v5 = vand.u32 4294901760, %v6038_v32  ;;  %v23857_v43 = vand.u32 4294901760, %v17497_v31  ;;  %v6045_v38 = vand.u32 4294901760, %v6044_v46  ;;  %v17558_v46 = vand.u32 4294901760, %v5732_v51 }
 0x4b9   :  { %5844 = vmatprep.subr.mxu0 %v17477_v22  ;;  %23853 = vst [vmem:[#allocation31_spill] sm:$0xff] %v17517_v62  ;;  %23854 = vst [vmem:[#allocation23_spill] sm:$0xff] %v17519_v19  ;;  %v22690_v29 = vand.u32 4294901760, %v17517_v62  ;;  %v17540_v6 = vsub.f32 %v5736_v16, %v17519_v19 }
 0x4ba   :  { %5846 = vmatpush1.msra.mxu0 %v17489_v24  ;;  %v17527_v24 = vsub.f32 %v5739_v2, %v17509_v39  ;;  %23856 = vst [vmem:[#allocation17_spill] sm:$0xff] %v17529_v9  ;;  %v6050_v56 = vsub.f32 %v17497_v31, %v23857_v43  ;;  %v5731_v2 = vld [vmem:[%s22222_s3] sm:$0xff]  ;;  %v17551_v43 = vsub.f32 %v5735_v35, %v17529_v9  ;;  %23861 = vst [vmem:[#allocation34_spill] sm:$0xff] %v17558_v46 }
 0x4bb   :  { %5848 = vmatprep.subr.mxu0 %v17499_v34  ;;  %23858 = vst [vmem:[#allocation39_spill] sm:$0xff] %v17540_v6  ;;  %v23859_v34 = vand.u32 4294901760, %v17507_v18  ;;  %6040 = vmatprep.subr.mxu1 %v6039_v5  ;;  %v6062_v31 = vsub.f32 %v17517_v62, %v22690_v29  ;;  %v17570_v29 = vsub.f32 %v5732_v51, %v17558_v46  ;;  %v23866_v62 = vld [vmem:[#allocation27_spill] sm:$0xff] }
 0x4bc   :  { %23855 = vst [vmem:[#allocation36_spill] sm:$0xff] %v17527_v24  ;;  %5850 = vmatpush1.msra.mxu0 %v17509_v39  ;;  %v22691_v39 = vand.u32 4294901760, %v17527_v24  ;;  %23860 = vst [vmem:[#allocation9_spill] sm:$0xff] %v17551_v43  ;;  %v6051_v16 = vand.u32 4294901760, %v6050_v56  ;;  %6046 = vmatpush1.msra.mxu1 %v6045_v38  ;;  %v22692_v35 = vand.u32 4294901760, %v17551_v43 }
 0x4bd   :  { %5852 = vmatprep.subr.mxu0 %v17519_v19  ;;  %v6056_v32 = vsub.f32 %v17507_v18, %v23859_v34  ;;  %v22693_v19 = vand.u32 4294901760, %v17540_v6  ;;  %v17564_v18 = vand.u32 4294901760, %v5731_v2  ;;  %v6063_v5 = vand.u32 4294901760, %v6062_v31  ;;  %23863 = vst [vmem:[#allocation10_spill] sm:$0xff] %v17570_v29 }
 0x4be   :  { %5854 = vmatpush1.msra.mxu0 %v17529_v9  ;;  %v6068_v34 = vsub.f32 %v17527_v24, %v22691_v39  ;;  %6052 = vmatprep.subr.mxu1 %v6051_v16  ;;  %v22699_v16 = vand.u32 4294901760, %v17570_v29 }
 0x4bf   :  { %v6057_v27 = vand.u32 4294901760, %v6056_v32  ;;  %23862 = vst [vmem:[#allocation24_spill] sm:$0xff] %v17564_v18  ;;  %v6074_v56 = vsub.f32 %v17540_v6, %v22693_v19  ;;  %5856 = vmatprep.subr.mxu0 %v17558_v46  ;;  %v6080_v32 = vsub.f32 %v17551_v43, %v22692_v35  ;;  %v17577_v39 = vsub.f32 %v5731_v2, %v17564_v18  ;;  %v4267_v35 = vpop.f32.mrf.mxu1 }
 0x4c0   :  { %v6069_v38 = vand.u32 4294901760, %v6068_v34  ;;  %5858 = vmatpush1.msra.mxu0 %v17564_v18  ;;  %v6086_v34 = vsub.f32 %v17570_v29, %v22699_v16 }
 0x4c1   :  { %6058 = vmatpush1.msra.mxu1 %v6057_v27  ;;  %23864 = vst [vmem:[#allocation7_spill] sm:$0xff] %v17577_v39  ;;  %v6075_v31 = vand.u32 4294901760, %v6074_v56  ;;  %6137 = vmatprep.subr.mxu0 %v17186_v48  ;;  %v6081_v51 = vand.u32 4294901760, %v6080_v32  ;;  %v22702_v27 = vand.u32 4294901760, %v17577_v39 }
 0x4c2   :  { %6064 = vmatprep.subr.mxu1 %v6063_v5  ;;  %v6087_v5 = vand.u32 4294901760, %v6086_v34  ;;  %v3812_v34 = vld [vmem:[%s22221_s2] sm:$0xf] }
 0x4c3   :  { %6070 = vmatpush1.msra.mxu1 %v6069_v38  ;;  %v6092_v2 = vsub.f32 %v17577_v39, %v22702_v27  ;;  %v4035_v38 = vpop.f32.mrf.mxu0  ;;  %v23865_v27 = vld [vmem:[#allocation26_spill] sm:$0xff] }
 0x4c4   :  { %6076 = vmatprep.subr.mxu1 %v6075_v31  ;;  %v4269_v31 = vpop.f32.mrf.mxu1  ;;  %v4268_v6 = vadd.f32 %v4267_v35, %v4035_v38  ;;  %v3826_v39 = vrot.slane %v3812_v34, %v23865_v27  ;;  %v3809_v35 = vld [vmem:[%s22220_s1] sm:$0xf] }
 0x4c5   :  { %6082 = vmatpush1.msra.mxu1 %v6081_v51  ;;  %v6093_v56 = vand.u32 4294901760, %v6092_v2  ;;  %v4037_v32 = vpop.f32.mrf.mxu0  ;;  %v3851_v46 = vrot.slane %v3809_v35, %v23865_v27  ;;  %v3847_v9 = vrot.slane %v3809_v35, %v23866_v62 }
 0x4c6   :  { %6088 = vmatprep.subr.mxu1 %v6087_v5  ;;  %v4270_v43 = vadd.f32 %v4269_v31, %v4037_v32 }
 0x4c7   :  { %6094 = vmatpush1.msra.mxu1 %v6093_v56 }
 0x4c8   :  { %6273 = vmatprep.subr.mxu1 %v17175_v47  ;;  %v3822_v47 = vrot.slane %v3812_v34, %v23866_v62 }
 0x4d1   :  { %v4510_v16 = vpop.f32.mrf.mxu1 }
 0x4d3   :  { %v4512_v5 = vpop.f32.mrf.mxu1 }
 0x4da   :  { %v4404_v19 = vpop.f32.mrf.mxu0 }
 0x4db   :  { %v4405_v2 = vadd.f32 %v4404_v19, %v4268_v6 }
 0x4dc   :  { %v4406_v48 = vpop.f32.mrf.mxu0 }
 0x4dd   :  { %v4407_v29 = vadd.f32 %v4406_v48, %v4270_v43  ;;  %v4511_v38 = vadd.f32 %v4510_v16, %v4405_v2  ;;  %v3816_v48 = vpop.permute.xlu1 %3815 }
 0x4de   :  { %v3840_v31 = vmul.f32 %v3826_v39, %v3816_v48  ;;  %v3839_v19 = vmul.f32 %v3822_v47, %v3816_v48 }
 0x4df   :  { %v4513_v24 = vadd.f32 %v4512_v5, %v4407_v29 }
 0x4e0   :  { %v3865_v5 = vadd.f32 %v3851_v46, %v3840_v31  ;;  %v3864_v54 = vadd.f32 %v3847_v9, %v3839_v19  ;;  %v23868_v46 = vld [vmem:[#allocation28_spill] sm:$0xff] }
 0x4e1   :  { %v3834_v9 = vrot.slane %v3812_v34, %v23868_v46 }
 0x4f3   :  { %v4782_v18 = vpop.f32.mrf.mxu1 }
 0x4f5   :  { %v4784_v6 = vpop.f32.mrf.mxu1 }
 0x4ff   :  { %v4678_v51 = vpop.f32.mrf.mxu0 }
 0x500   :  { %v4679_v43 = vadd.f32 %v4678_v51, %v4511_v38  ;;  %v23867_v38 = vld [vmem:[#allocation29_spill] sm:$0xff] }
 0x501   :  { %v4680_v56 = vpop.f32.mrf.mxu0  ;;  %v3830_v62 = vrot.slane %v3812_v34, %v23867_v38 }
 0x502   :  { %v4681_v32 = vadd.f32 %v4680_v56, %v4513_v24  ;;  %v4783_v29 = vadd.f32 %v4782_v18, %v4679_v43 }
 0x503   :  { %v3841_v43 = vmul.f32 %v3830_v62, %v3816_v48 }
 0x504   :  { %v4785_v22 = vadd.f32 %v4784_v6, %v4681_v32  ;;  %v5642_v30 = vadd.f32 %v4783_v29, %v3864_v54  ;;  %v3842_v6 = vmul.f32 %v3834_v9, %v3816_v48 }
 0x506   :  { %v5643_v57 = vadd.f32 %v4785_v22, %v3865_v5  ;;  %v13156_v28 = vmul.f32 -1.442695, %v5642_v30 }
 0x508   :  { %v13158_v60 = vmul.f32 -1.442695, %v5643_v57 }
 0x50a   :  { %13229 = vpow2.f32 %v13158_v60  ;;  %v3855_v60 = vrot.slane %v3809_v35, %v23867_v38  ;;  %v23900_v38 = vld [vmem:[#allocation36_spill] sm:$0xff] }
 0x50b   :  { %13231 = vpow2.f32 %v13156_v28 }
 0x514   :  { %v5122_v24 = vpop.f32.mrf.mxu1 }
 0x516   :  { %v5124_v51 = vpop.f32.mrf.mxu1 }
 0x517   :  { %v13230_v54 = vpop.eup %13229 }
 0x518   :  { %v13232_v30 = vpop.eup %13231  ;;  %v5662_v29 = vadd.f32 1.0, %v13230_v54  ;;  %v23869_v54 = vld [vmem:[#allocation35_spill] sm:$0xff] }
 0x51a   :  { %13233 = vrcp.f32 %v5662_v29 }
 0x51f   :  { %v4890_v41 = vpop.f32.mrf.mxu0 }
 0x520   :  { %v5123_v2 = vadd.f32 %v5122_v24, %v4890_v41  ;;  %v3859_v41 = vrot.slane %v3809_v35, %v23868_v46  ;;  %v23899_v46 = vld [vmem:[#allocation31_spill] sm:$0xff] }
 0x521   :  { %v4892_v16 = vpop.f32.mrf.mxu0 }
 0x522   :  { %v5125_v32 = vadd.f32 %v5124_v51, %v4892_v16  ;;  %v5649_v16 = vadd.f32 1.0, %v13232_v30  ;;  %v3866_v51 = vadd.f32 %v3855_v60, %v3841_v43  ;;  %v3867_v62 = vadd.f32 %v3859_v41, %v3842_v6 }
 0x524   :  { %13235 = vrcp.f32 %v5649_v16  ;;  %v23876_v16 = vld [vmem:[#allocation14_spill] sm:$0xff] }
 0x527   :  { %v13234_v35 = vpop.eup %13233 }
 0x531   :  { %v13236_v48 = vpop.eup %13235 }
 0x538   :  { %v5365_v47 = vpop.f32.mrf.mxu1 }
 0x53a   :  { %v5367_v57 = vpop.f32.mrf.mxu1 }
 0x540   :  { %v5259_v39 = vpop.f32.mrf.mxu0 }
 0x541   :  { %v5260_v18 = vadd.f32 %v5259_v39, %v5123_v2 }
 0x542   :  { %v5261_v56 = vpop.f32.mrf.mxu0 }
 0x543   :  { %v5262_v22 = vadd.f32 %v5261_v56, %v5125_v32  ;;  %v5366_v28 = vadd.f32 %v5365_v47, %v5260_v18 }
 0x545   :  { %v5368_v24 = vadd.f32 %v5367_v57, %v5262_v22  ;;  %v5665_v22 = vmul.f32 %v13234_v35, %v23869_v54  ;;  %v23886_v35 = vld [vmem:[#allocation32_spill] sm:$0xff]  ;;  %v23889_v54 = vld [vmem:[#allocation23_spill] sm:$0xff] }
 0x55a   :  { %v5637_v31 = vpop.f32.mrf.mxu1 }
 0x55c   :  { %v5639_v56 = vpop.f32.mrf.mxu1 }
 0x561   :  { %v5533_v19 = vpop.f32.mrf.mxu0 }
 0x562   :  { %v5534_v5 = vadd.f32 %v5533_v19, %v5366_v28 }
 0x563   :  { %v5535_v39 = vpop.f32.mrf.mxu0 }
 0x564   :  { %v5638_v34 = vadd.f32 %v5637_v31, %v5534_v5  ;;  %v5536_v2 = vadd.f32 %v5535_v39, %v5368_v24  ;;  %v23875_v24 = vld [vmem:[#allocation43_spill] sm:$0xff] }
 0x565   :  { %v23877_v39 = vld [vmem:[#allocation19_spill] sm:$0xff] }
 0x566   :  { %v5644_v32 = vadd.f32 %v5638_v34, %v3866_v51  ;;  %v5640_v27 = vadd.f32 %v5639_v56, %v5536_v2  ;;  %v23878_v51 = vld [vmem:[#allocation38_spill] sm:$0xff]  ;;  %v23879_v34 = vld [vmem:[#allocation45_spill] sm:$0xff]  ;;  %v23880_v2 = vld [vmem:[#allocation8_spill] sm:$0xff] }
 0x567   :  { %v23881_v56 = vld [vmem:[#allocation40_spill] sm:$0xff] }
 0x568   :  { %13237 = vtanh.f32 %v5644_v32  ;;  %v5645_v47 = vadd.f32 %v5640_v27, %v3867_v62  ;;  %v23882_v32 = vld [vmem:[#allocation22_spill] sm:$0xff]  ;;  %v23883_v62 = vld [vmem:[#allocation11_spill] sm:$0xff] }
 0x56a   :  { %v13157_v18 = vmul.f32 -1.442695, %v5645_v47  ;;  %v23884_v47 = vld [vmem:[#allocation18_spill] sm:$0xff] }
 0x56c   :  { %13239 = vpow2.f32 %v13157_v18  ;;  %v23885_v18 = vld [vmem:[#allocation13_spill] sm:$0xff] }
 0x575   :  { %v13238_v9 = vpop.eup %13237 }
 0x576   :  { %v5666_v57 = vmul.f32 %v13238_v9, %v13236_v48  ;;  %v23887_v48 = vld [vmem:[#allocation12_spill] sm:$0xff]  ;;  %v23888_v9 = vld [vmem:[#allocation21_spill] sm:$0xff] }
 0x578   :  { %v17605_v30 = vadd.f32 %v5666_v57, %v5665_v22  ;;  %v23890_v22 = vld [vmem:[#allocation42_spill] sm:$0xff]  ;;  %v23891_v57 = vld [vmem:[#allocation17_spill] sm:$0xff] }
 0x579   :  { %v13240_v43 = vpop.eup %13239 }
 0x57a   :  { %23870 = vst [vmem:[#allocation30_spill] sm:$0xff] %v17605_v30  ;;  %v5656_v60 = vadd.f32 1.0, %v13240_v43  ;;  %13241 = vtanh.f32 %v17605_v30  ;;  %v23892_v43 = vld [vmem:[#allocation6_spill] sm:$0xff]  ;;  %v23898_v30 = vld [vmem:[#allocation25_spill] sm:$0xff] }
 0x57c   :  { %13243 = vrcp.f32 %v5656_v60  ;;  %v23893_v60 = vld [vmem:[#allocation34_spill] sm:$0xff] }
 0x587   :  { %v13242_v28 = vpop.eup %13241 }
 0x589   :  { %v13244_v31 = vpop.eup %13243 }
 0x58a   :  { %v5669_v19 = vmul.f32 %v13244_v31, %v13242_v28  ;;  %v23894_v28 = vld [vmem:[#allocation33_spill] sm:$0xff]  ;;  %v23895_v31 = vld [vmem:[#allocation24_spill] sm:$0xff] }
 0x58c   :  { %13159 = vst [vmem:[%s22223_s4 + $0x18] sm:$0xff] %v5669_v19  ;;  %v17611_v27 = vand.u32 4294901760, %v5669_v19 }
 0x58e   :  { %23871 = vst [vmem:[#allocation41_spill] sm:$0xff] %v17611_v27  ;;  %6129 = vmatmul.mubr.f32.vlgmr.msra.gmra.mxu1 %v17611_v27  ;;  %v17615_v41 = vsub.f32 %v5669_v19, %v17611_v27  ;;  %v23896_v19 = vld [vmem:[#allocation20_spill] sm:$0xff]  ;;  %v23902_v27 = vld [vmem:[#allocation9_spill] sm:$0xff] }
 0x58f   :  { %6275 = vmatpush1.msra.mxu1 %v17180_v42  ;;  %6368 = vmatprep.mubr.f32.mxu1 %v23244_v20 }
 0x590   :  { %23872 = vst [vmem:[#allocation44_spill] sm:$0xff] %v17615_v41  ;;  %6277 = vmatprep.subr.mxu1 %v17188_v7  ;;  %v17621_v6 = vand.u32 4294901760, %v17615_v41 }
 0x591   :  { %6279 = vmatpush1.msra.mxu1 %v17197_v15 }
 0x592   :  { %23873 = vst [vmem:[#allocation5_spill] sm:$0xff] %v17621_v6  ;;  %6281 = vmatprep.subr.mxu1 %v17207_v11  ;;  %v5895_v29 = vsub.f32 %v17615_v41, %v17621_v6 }
 0x593   :  { %6283 = vmatpush1.msra.mxu1 %v17217_v21 }
 0x594   :  { %6285 = vmatprep.subr.mxu1 %v17230_v52  ;;  %v17629_v5 = vand.u32 4294901760, %v5895_v29  ;;  %v23897_v29 = vld [vmem:[#allocation15_spill] sm:$0xff] }
 0x595   :  { %6287 = vmatpush1.msra.mxu1 %v17243_v44 }
 0x596   :  { %23874 = vst [vmem:[#allocation16_spill] sm:$0xff] %v17629_v5  ;;  %6289 = vmatprep.subr.mxu1 %v17275_v4  ;;  %5897 = vmatmul.mubr.f32.vlgmr.msra.gmra.mxu0 %v17629_v5  ;;  %v23901_v5 = vld [vmem:[#allocation39_spill] sm:$0xff] }
 0x597   :  { %6140 = vmatpush1.msra.mxu0 %v17195_v3  ;;  %6291 = vmatpush1.msra.mxu1 %v17284_v50 }
 0x598   :  { %6143 = vmatprep.subr.mxu0 %v17205_v26  ;;  %6293 = vmatprep.subr.mxu1 %v17295_v13 }
 0x599   :  { %6146 = vmatpush1.msra.mxu0 %v17215_v12  ;;  %6295 = vmatpush1.msra.mxu1 %v17307_v0 }
 0x59a   :  { %6149 = vmatprep.subr.mxu0 %v17228_v55  ;;  %6297 = vmatprep.subr.mxu1 %v17317_v14 }
 0x59b   :  { %6152 = vmatpush1.msra.mxu0 %v17241_v58  ;;  %6299 = vmatpush1.msra.mxu1 %v17327_v45 }
 0x59c   :  { %6155 = vmatprep.subr.mxu0 %v17254_v17  ;;  %6301 = vmatprep.subr.mxu1 %v17337_v25 }
 0x59d   :  { %6158 = vmatpush1.msra.mxu0 %v17265_v10  ;;  %6303 = vmatpush1.msra.mxu1 %v17347_v23 }
 0x59e   :  { %6161 = vmatprep.subr.mxu0 %v17293_v59  ;;  %6305 = vmatprep.subr.mxu1 %v17379_v61 }
 0x59f   :  { %6164 = vmatpush1.msra.mxu0 %v17305_v1  ;;  %6307 = vmatpush1.msra.mxu1 %v17388_v37 }
 0x5a0   :  { %6167 = vmatprep.subr.mxu0 %v17315_v8  ;;  %6309 = vmatprep.subr.mxu1 %v17396_v36 }
 0x5a1   :  { %6170 = vmatpush1.msra.mxu0 %v17325_v40  ;;  %6311 = vmatpush1.msra.mxu1 %v17408_v63 }
 0x5a2   :  { %6173 = vmatprep.subr.mxu0 %v17335_v33  ;;  %6313 = vmatprep.subr.mxu1 %v17423_v53 }
 0x5a3   :  { %6176 = vmatpush1.msra.mxu0 %v17345_v49  ;;  %6315 = vmatpush1.msra.mxu1 %v23875_v24 }
 0x5a4   :  { %6179 = vmatprep.subr.mxu0 %v23876_v16  ;;  %6317 = vmatprep.subr.mxu1 %v23877_v39 }
 0x5a5   :  { %6182 = vmatpush1.msra.mxu0 %v23878_v51  ;;  %6319 = vmatpush1.msra.mxu1 %v23879_v34 }
 0x5a6   :  { %6185 = vmatprep.subr.mxu0 %v23880_v2  ;;  %6321 = vmatprep.subr.mxu1 %v23881_v56 }
 0x5a7   :  { %6188 = vmatpush1.msra.mxu0 %v23882_v32  ;;  %6323 = vmatpush1.msra.mxu1 %v23883_v62 }
 0x5a8   :  { %6191 = vmatprep.subr.mxu0 %v23884_v47  ;;  %6325 = vmatprep.subr.mxu1 %v23885_v18 }
 0x5a9   :  { %6194 = vmatpush1.msra.mxu0 %v23886_v35  ;;  %6327 = vmatpush1.msra.mxu1 %v23887_v48 }
 0x5aa   :  { %6197 = vmatprep.subr.mxu0 %v23888_v9  ;;  %6329 = vmatprep.subr.mxu1 %v23889_v54 }
 0x5ab   :  { %6200 = vmatpush1.msra.mxu0 %v23890_v22  ;;  %6331 = vmatpush1.msra.mxu1 %v23891_v57 }
 0x5ac   :  { %6203 = vmatprep.subr.mxu0 %v23892_v43  ;;  %6333 = vmatprep.subr.mxu1 %v23893_v60 }
 0x5ad   :  { %6206 = vmatpush1.msra.mxu0 %v23894_v28  ;;  %6335 = vmatpush1.msra.mxu1 %v23895_v31 }
 0x5ae   :  { %6209 = vmatprep.subr.mxu0 %v23896_v19  ;;  %6372 = vmatmul.mubr.f32.vlgmr.msra.gmra.mxu1 %v17621_v6 }
 0x5af   :  { %6547 = vmatprep.subr.mxu1 %v23897_v29  ;;  %6212 = vmatpush1.msra.mxu0 %v23898_v30  ;;  %v23903_v29 = vld [vmem:[#allocation10_spill] sm:$0xff] }
 0x5b0   :  { %6549 = vmatpush1.msra.mxu1 %v17180_v42  ;;  %6215 = vmatprep.subr.mxu0 %v23899_v46  ;;  %v23904_v42 = vld [vmem:[#allocation7_spill] sm:$0xff] }
 0x5b1   :  { %6551 = vmatprep.subr.mxu1 %v17188_v7  ;;  %6218 = vmatpush1.msra.mxu0 %v23900_v38  ;;  %v5794_v7 = vld [vmem:[%s22222_s3 + $0x1f8] sm:$0xff] }
 0x5b2   :  { %6553 = vmatpush1.msra.mxu1 %v17197_v15  ;;  %6221 = vmatprep.subr.mxu0 %v23901_v5  ;;  %v23905_v15 = vld [vmem:[#allocation37_spill] sm:$0xff]  ;;  %v17713_v6 = vand.u32 4294901760, %v5794_v7 }
 0x5b3   :  { %6555 = vmatprep.subr.mxu1 %v17207_v11  ;;  %6224 = vmatpush1.msra.mxu0 %v23902_v27  ;;  %v23906_v11 = vand.u32 4294901760, %v23905_v15  ;;  %v5790_v15 = vld [vmem:[%s22222_s3 + $0x1d8] sm:$0xff] }
 0x5b4   :  { %6557 = vmatpush1.msra.mxu1 %v17217_v21  ;;  %6227 = vmatprep.subr.mxu0 %v23903_v29  ;;  %v23907_v21 = vand.u32 4294901760, %v17195_v3  ;;  %v23909_v3 = vand.u32 4294901760, %v17215_v12  ;;  %v23911_v12 = vand.u32 4294901760, %v17241_v58  ;;  %v5782_v58 = vld [vmem:[%s22222_s3 + $0x198] sm:$0xff] }
 0x5b5   :  { %6559 = vmatprep.subr.mxu1 %v17230_v52  ;;  %6230 = vmatpush1.msra.mxu0 %v23904_v42  ;;  %v5793_v52 = vld [vmem:[%s22222_s3 + $0x1f0] sm:$0xff] }
 0x5b6   :  { %6263 = vmatprep.mubr.f32.mxu0 %v23244_v20  ;;  %6561 = vmatpush1.msra.mxu1 %v17243_v44  ;;  %v23908_v44 = vand.u32 4294901760, %v17205_v26  ;;  %v23910_v26 = vand.u32 4294901760, %v17228_v55  ;;  %v23912_v55 = vand.u32 4294901760, %v17254_v17  ;;  %v5781_v17 = vld [vmem:[%s22222_s3 + $0x190] sm:$0xff] }
 0x5b7   :  { %6266 = vmatmul.mubr.f32.vlgmr.msra.gmra.mxu0 %v17615_v41  ;;  %6381 = vmatprep.subr.mxu0 %v23906_v11  ;;  %v5786_v11 = vld [vmem:[%s22222_s3 + $0x1b8] sm:$0xff] }
 0x5b8   :  { %6563 = vmatprep.subr.mxu1 %v17275_v4  ;;  %6385 = vmatpush1.msra.mxu0 %v23907_v21  ;;  %v5789_v4 = vld [vmem:[%s22222_s3 + $0x1d0] sm:$0xff]  ;;  %v17744_v21 = vsub.f32 %v5794_v7, %v17713_v6 }
 0x5b9   :  { %6565 = vmatpush1.msra.mxu1 %v17284_v50  ;;  %6389 = vmatprep.subr.mxu0 %v23908_v44  ;;  %v17727_v50 = vand.u32 4294901760, %v5793_v52  ;;  %v17746_v44 = vand.u32 4294901760, %v5789_v4 }
 0x5ba   :  { %6567 = vmatprep.subr.mxu1 %v17295_v13  ;;  %6393 = vmatpush1.msra.mxu0 %v23909_v3  ;;  %v17735_v13 = vand.u32 4294901760, %v5790_v15  ;;  %v17754_v3 = vand.u32 4294901760, %v5786_v11 }
 0x5bb   :  { %6569 = vmatpush1.msra.mxu1 %v17307_v0  ;;  %6397 = vmatprep.subr.mxu0 %v23910_v26  ;;  %v5785_v0 = vld [vmem:[%s22222_s3 + $0x1b0] sm:$0xff]  ;;  %v17763_v7 = vsub.f32 %v5793_v52, %v17727_v50  ;;  %v23918_v52 = vand.u32 4294901760, %v17315_v8 }
 0x5bc   :  { %6571 = vmatprep.subr.mxu1 %v17317_v14  ;;  %6401 = vmatpush1.msra.mxu0 %v23911_v12  ;;  %v23913_v14 = vand.u32 4294901760, %v17265_v10  ;;  %v17765_v26 = vand.u32 4294901760, %v5785_v0  ;;  %v5778_v10 = vld [vmem:[%s22222_s3 + $0x178] sm:$0xff]  ;;  %v17774_v12 = vsub.f32 %v5790_v15, %v17735_v13 }
 0x5bd   :  { %6573 = vmatpush1.msra.mxu1 %v17327_v45  ;;  %6405 = vmatprep.subr.mxu0 %v23912_v55  ;;  %v23914_v45 = vand.u32 4294901760, %v17293_v59  ;;  %23915 = vst [vmem:[#allocation35_spill] sm:$0xff] %v17763_v7  ;;  %v5777_v59 = vld [vmem:[%s22222_s3 + $0x170] sm:$0xff]  ;;  %v22739_v55 = vand.u32 4294901760, %v17744_v21  ;;  %v5774_v15 = vld [vmem:[%s22222_s3 + $0x158] sm:$0xff]  ;;  %v17799_v8 = vand.u32 4294901760, %v5778_v10 }
 0x5be   :  { %6575 = vmatprep.subr.mxu1 %v17337_v25  ;;  %6409 = vmatpush1.msra.mxu0 %v23913_v14  ;;  %v23916_v25 = vand.u32 4294901760, %v17305_v1  ;;  %23917 = vst [vmem:[#allocation43_spill] sm:$0xff] %v17774_v12  ;;  %v17788_v1 = vand.u32 4294901760, %v5781_v17  ;;  %v23920_v14 = vand.u32 4294901760, %v17325_v40  ;;  %v17811_v40 = vand.u32 4294901760, %v5777_v59 }
 0x5bf   :  { %6577 = vmatpush1.msra.mxu1 %v17347_v23  ;;  %6413 = vmatprep.subr.mxu0 %v23914_v45  ;;  %v17776_v23 = vand.u32 4294901760, %v5782_v58  ;;  %v23922_v45 = vand.u32 4294901760, %v17335_v33 }
 0x5c0   :  { %6579 = vmatprep.subr.mxu1 %v17379_v61  ;;  %6417 = vmatpush1.msra.mxu0 %v23916_v25  ;;  %v17786_v61 = vsub.f32 %v5789_v4, %v17746_v44  ;;  %v5773_v4 = vld [vmem:[%s22222_s3 + $0x150] sm:$0xff]  ;;  %v22740_v25 = vand.u32 4294901760, %v17763_v7 }
 0x5c1   :  { %6581 = vmatpush1.msra.mxu1 %v17388_v37  ;;  %6421 = vmatprep.subr.mxu0 %v23918_v52  ;;  %v17797_v37 = vsub.f32 %v5786_v11, %v17754_v3  ;;  %v5770_v11 = vld [vmem:[%s22222_s3 + $0x138] sm:$0xff]  ;;  %v23924_v52 = vand.u32 4294901760, %v17345_v49  ;;  %v17821_v33 = vsub.f32 %v5782_v58, %v17776_v23  ;;  %v17834_v49 = vsub.f32 %v17744_v21, %v22739_v55 }
 0x5c2   :  { %23919 = vst [vmem:[#allocation14_spill] sm:$0xff] %v17786_v61  ;;  %6583 = vmatprep.subr.mxu1 %v17396_v36  ;;  %6425 = vmatpush1.msra.mxu0 %v23920_v14  ;;  %v17809_v36 = vsub.f32 %v5785_v0, %v17765_v26  ;;  %v17823_v14 = vand.u32 4294901760, %v5774_v15  ;;  %v5769_v0 = vld [vmem:[%s22222_s3 + $0x130] sm:$0xff]  ;;  %v17838_v58 = vsub.f32 %v5781_v17, %v17788_v1  ;;  %v17852_v55 = vand.u32 4294901760, %v5770_v11 }
 0x5c3   :  { %23921 = vst [vmem:[#allocation19_spill] sm:$0xff] %v17797_v37  ;;  %6585 = vmatpush1.msra.mxu1 %v17408_v63  ;;  %6429 = vmatprep.subr.mxu0 %v23922_v45  ;;  %23925 = vst [vmem:[#allocation45_spill] sm:$0xff] %v17821_v33  ;;  %v23926_v45 = vand.u32 4294901760, %v23876_v16  ;;  %v5766_v63 = vld [vmem:[%s22222_s3 + $0x118] sm:$0xff]  ;;  %v23930_v17 = vand.u32 4294901760, %v23880_v2  ;;  %v23933_v2 = vand.u32 4294901760, %v17774_v12 }
 0x5c4   :  { %23923 = vst [vmem:[#allocation38_spill] sm:$0xff] %v17809_v36  ;;  %6587 = vmatprep.subr.mxu1 %v17423_v53  ;;  %6433 = vmatpush1.msra.mxu0 %v23924_v52  ;;  %23927 = vst [vmem:[#allocation8_spill] sm:$0xff] %v17838_v58  ;;  %v17840_v52 = vand.u32 4294901760, %v5773_v4  ;;  %v17860_v53 = vsub.f32 %v17763_v7, %v22740_v25  ;;  %v23935_v16 = vand.u32 4294901760, %v23884_v47 }
 0x5c5   :  { %6589 = vmatpush1.msra.mxu1 %v23875_v24  ;;  %6437 = vmatprep.subr.mxu0 %v23926_v45  ;;  %v23928_v24 = vand.u32 4294901760, %v23878_v51  ;;  %v17850_v45 = vsub.f32 %v5778_v10, %v17799_v8  ;;  %v17864_v51 = vsub.f32 %v5777_v59, %v17811_v40  ;;  %v5765_v10 = vld [vmem:[%s22222_s3 + $0x110] sm:$0xff]  ;;  %v17881_v59 = vsub.f32 %v5774_v15, %v17823_v14 }
 0x5c6   :  { %6591 = vmatprep.subr.mxu1 %v23877_v39  ;;  %v17883_v39 = vand.u32 4294901760, %v5766_v63  ;;  %v17896_v25 = vsub.f32 %v5773_v4, %v17840_v52  ;;  %v23938_v15 = vand.u32 4294901760, %v23886_v35  ;;  %v5762_v4 = vld [vmem:[%s22222_s3 + $0xf8] sm:$0xff]  ;;  %v6768_v35 = vand.u32 4294901760, %v17860_v53  ;;  %6642 = vmatprep.mubr.f32.mxu1 %v23244_v20 }
 0x5c7   :  { %6441 = vmatpush1.msra.mxu0 %v23928_v24  ;;  %23929 = vst [vmem:[#allocation40_spill] sm:$0xff] %v17850_v45  ;;  %6593 = vmatpush1.msra.mxu1 %v23879_v34  ;;  %23931 = vst [vmem:[#allocation22_spill] sm:$0xff] %v17864_v51  ;;  %v17866_v24 = vand.u32 4294901760, %v5769_v0  ;;  %v23932_v34 = vand.u32 4294901760, %v23882_v32  ;;  %v23936_v32 = vand.u32 4294901760, %v17786_v61  ;;  %v23955_v41 = vand.u32 4294901760, %v17881_v59 }
 0x5c8   :  { %6445 = vmatprep.subr.mxu0 %v23930_v17  ;;  %6595 = vmatprep.subr.mxu1 %v23881_v56  ;;  %v17877_v17 = vsub.f32 %v17774_v12, %v23933_v2  ;;  %23934 = vst [vmem:[#allocation11_spill] sm:$0xff] %v17881_v59  ;;  %v6762_v56 = vand.u32 4294901760, %v17834_v49  ;;  %23937 = vst [vmem:[#allocation18_spill] sm:$0xff] %v17896_v25  ;;  %v23944_v2 = vand.u32 4294901760, %v23890_v22 }
 0x5c9   :  { %6449 = vmatpush1.msra.mxu0 %v23932_v34  ;;  %6597 = vmatpush1.msra.mxu1 %v23883_v62  ;;  %v17892_v34 = vsub.f32 %v17786_v61, %v23936_v32  ;;  %v23939_v62 = vand.u32 4294901760, %v17797_v37  ;;  %v17910_v32 = vand.u32 4294901760, %v5765_v10  ;;  %v17926_v49 = vsub.f32 %v5769_v0, %v17866_v24  ;;  %v5761_v0 = vld [vmem:[%s22222_s3 + $0xf0] sm:$0xff] }
 0x5ca   :  { %6453 = vmatprep.subr.mxu0 %v23935_v16  ;;  %6599 = vmatprep.subr.mxu1 %v23885_v18  ;;  %v17908_v16 = vsub.f32 %v5770_v11, %v17852_v55  ;;  %v23941_v18 = vand.u32 4294901760, %v23888_v9  ;;  %v23945_v9 = vand.u32 4294901760, %v17821_v33  ;;  %v5757_v11 = vld [vmem:[%s22222_s3 + $0xd0] sm:$0xff] }
 0x5cb   :  { %6457 = vmatpush1.msra.mxu0 %v23938_v15  ;;  %v17904_v47 = vsub.f32 %v17797_v37, %v23939_v62  ;;  %6601 = vmatpush1.msra.mxu1 %v23887_v48  ;;  %v23942_v15 = vand.u32 4294901760, %v17809_v36  ;;  %23943 = vst [vmem:[#allocation32_spill] sm:$0xff] %v17926_v49  ;;  %v6774_v48 = vand.u32 4294901760, %v17877_v17  ;;  %v6780_v22 = vand.u32 4294901760, %v17892_v34 }
 0x5cc   :  { %23940 = vst [vmem:[#allocation13_spill] sm:$0xff] %v17908_v16  ;;  %6461 = vmatprep.subr.mxu0 %v23941_v18  ;;  %6603 = vmatprep.subr.mxu1 %v23889_v54  ;;  %v17935_v53 = vsub.f32 %v17821_v33, %v23945_v9  ;;  %v23947_v54 = vand.u32 4294901760, %v23892_v43  ;;  %v23948_v17 = vand.u32 4294901760, %v17838_v58  ;;  %v5758_v18 = vld [vmem:[%s22222_s3 + $0xd8] sm:$0xff]  ;;  %v23950_v34 = vand.u32 4294901760, %v17850_v45 }
 0x5cd   :  { %v17922_v62 = vsub.f32 %v17809_v36, %v23942_v15  ;;  %6465 = vmatpush1.msra.mxu0 %v23944_v2  ;;  %v17939_v15 = vsub.f32 %v5766_v63, %v17883_v39  ;;  %6605 = vmatpush1.msra.mxu1 %v23891_v57  ;;  %v17954_v63 = vand.u32 4294901760, %v5762_v4  ;;  %v23949_v57 = vand.u32 4294901760, %v23894_v28 }
 0x5ce   :  { %6469 = vmatprep.subr.mxu0 %v23947_v54  ;;  %v17951_v2 = vsub.f32 %v17838_v58, %v23948_v17  ;;  %6607 = vmatprep.subr.mxu1 %v23893_v60  ;;  %v6786_v43 = vand.u32 4294901760, %v17904_v47  ;;  %v17966_v54 = vsub.f32 %v17850_v45, %v23950_v34  ;;  %v17970_v9 = vsub.f32 %v5765_v10, %v17910_v32  ;;  %v5754_v10 = vld [vmem:[%s22222_s3 + $0xb8] sm:$0xff]  ;;  %v5753_v45 = vld [vmem:[%s22222_s3 + $0xb0] sm:$0xff] }
 0x5cf   :  { %23946 = vst [vmem:[#allocation12_spill] sm:$0xff] %v17939_v15  ;;  %6473 = vmatpush1.msra.mxu0 %v23949_v57  ;;  %6609 = vmatpush1.msra.mxu1 %v23895_v31  ;;  %v6792_v60 = vand.u32 4294901760, %v17922_v62  ;;  %v23952_v28 = vand.u32 4294901760, %v17864_v51  ;;  %v17984_v34 = vand.u32 4294901760, %v5761_v0  ;;  %v23953_v17 = vand.u32 4294901760, %v23896_v19  ;;  %v23954_v31 = vld [vmem:[#allocation41_spill] sm:$0xff] }
 0x5d0   :  { %23951 = vst [vmem:[#allocation21_spill] sm:$0xff] %v17970_v9  ;;  %6644 = vmatmul.mubr.f32.vlgmr.msra.gmra.mxu1 %v23954_v31  ;;  %v6798_v62 = vand.u32 4294901760, %v17935_v53  ;;  %6763 = vmatprep.subr.mxu1 %v6762_v56  ;;  %v23956_v19 = vand.u32 4294901760, %v23898_v30  ;;  %v23957_v53 = vand.u32 4294901760, %v17896_v25  ;;  %v18015_v57 = vand.u32 4294901760, %v5757_v11 }
 0x5d1   :  { %v17981_v47 = vsub.f32 %v17864_v51, %v23952_v28  ;;  %6477 = vmatprep.subr.mxu0 %v23953_v17  ;;  %v17996_v28 = vsub.f32 %v17881_v59, %v23955_v41  ;;  %v17999_v51 = vand.u32 4294901760, %v5758_v18  ;;  %v6804_v17 = vand.u32 4294901760, %v17951_v2  ;;  %v5750_v59 = vld [vmem:[%s22222_s3 + $0x98] sm:$0xff]  ;;  %6769 = vmatpush1.msra.mxu1 %v6768_v35 }
 0x5d2   :  { %6481 = vmatpush1.msra.mxu0 %v23956_v19  ;;  %v18010_v58 = vsub.f32 %v17896_v25, %v23957_v53  ;;  %v18013_v41 = vsub.f32 %v5762_v4, %v17954_v63  ;;  %v23959_v30 = vand.u32 4294901760, %v23899_v46  ;;  %v6810_v56 = vand.u32 4294901760, %v17966_v54  ;;  %v5749_v25 = vld [vmem:[%s22222_s3 + $0x90] sm:$0xff]  ;;  %6775 = vmatprep.subr.mxu1 %v6774_v48 }
 0x5d3   :  { %v23960_v2 = vand.u32 4294901760, %v17908_v16  ;;  %v18029_v53 = vand.u32 4294901760, %v5754_v10  ;;  %v23962_v35 = vand.u32 4294901760, %v23900_v38  ;;  %v6816_v46 = vand.u32 4294901760, %v17981_v47  ;;  %6781 = vmatpush1.msra.mxu1 %v6780_v22  ;;  %6538 = vmatprep.mubr.f32.mxu0 %v23244_v20 }
 0x5d4   :  { %23958 = vst [vmem:[#allocation23_spill] sm:$0xff] %v18013_v41  ;;  %6485 = vmatprep.subr.mxu0 %v23959_v30  ;;  %v23963_v54 = vand.u32 4294901760, %v17926_v49  ;;  %v18045_v4 = vand.u32 4294901760, %v5753_v45  ;;  %v23965_v38 = vand.u32 4294901760, %v23901_v5  ;;  %v6822_v48 = vand.u32 4294901760, %v17996_v28  ;;  %6787 = vmatprep.subr.mxu1 %v6786_v43  ;;  %v5741_v28 = vld [vmem:[%s22222_s3 + $0x50] sm:$0xff] }
 0x5d5   :  { %v18026_v19 = vsub.f32 %v17908_v16, %v23960_v2  ;;  %23961 = vst [vmem:[#allocation42_spill] sm:$0xff] %v18029_v53  ;;  %6489 = vmatpush1.msra.mxu0 %v23962_v35  ;;  %v18043_v2 = vsub.f32 %v5761_v0, %v17984_v34  ;;  %v5746_v16 = vld [vmem:[%s22222_s3 + $0x78] sm:$0xff]  ;;  %v23966_v47 = vand.u32 4294901760, %v17939_v15  ;;  %v18059_v0 = vsub.f32 %v5758_v18, %v17999_v51 }
 0x5d6   :  { %v18040_v30 = vsub.f32 %v17926_v49, %v23963_v54  ;;  %6493 = vmatprep.subr.mxu0 %v23965_v38  ;;  %v18061_v54 = vand.u32 4294901760, %v5750_v59  ;;  %v5745_v49 = vld [vmem:[%s22222_s3 + $0x70] sm:$0xff]  ;;  %v23968_v5 = vand.u32 4294901760, %v23902_v27  ;;  %v6828_v22 = vand.u32 4294901760, %v18010_v58  ;;  %v5742_v18 = vld [vmem:[%s22222_s3 + $0x58] sm:$0xff]  ;;  %6793 = vmatpush1.msra.mxu1 %v6792_v60 }
 0x5d7   :  { %23964 = vst [vmem:[#allocation17_spill] sm:$0xff] %v18043_v2  ;;  %v18056_v35 = vsub.f32 %v17939_v15, %v23966_v47  ;;  %23967 = vst [vmem:[#allocation6_spill] sm:$0xff] %v18059_v0  ;;  %v18071_v38 = vsub.f32 %v5757_v11, %v18015_v57  ;;  %v18073_v47 = vand.u32 4294901760, %v5749_v25  ;;  %v23969_v15 = vand.u32 4294901760, %v23903_v29  ;;  %6799 = vmatprep.subr.mxu1 %v6798_v62 }
 0x5d8   :  { %6497 = vmatpush1.msra.mxu0 %v23968_v5  ;;  %v6834_v27 = vand.u32 4294901760, %v18026_v19  ;;  %v23970_v43 = vand.u32 4294901760, %v17970_v9  ;;  %v18087_v11 = vsub.f32 %v5754_v10, %v18029_v53  ;;  %v18089_v5 = vand.u32 4294901760, %v5746_v16  ;;  %v5738_v10 = vld [vmem:[%s22222_s3 + $0x38] sm:$0xff]  ;;  %6805 = vmatpush1.msra.mxu1 %v6804_v17 }
 0x5d9   :  { %6501 = vmatprep.subr.mxu0 %v23969_v15  ;;  %v23971_v29 = vand.u32 4294901760, %v23904_v42  ;;  %v6840_v15 = vand.u32 4294901760, %v18040_v30  ;;  %v18099_v19 = vsub.f32 %v5753_v45, %v18045_v4  ;;  %v6846_v62 = vand.u32 4294901760, %v18056_v35  ;;  %v5737_v45 = vld [vmem:[%s22222_s3 + $0x30] sm:$0xff]  ;;  %6811 = vmatprep.subr.mxu1 %v6810_v56 }
 0x5da   :  { %v18084_v58 = vsub.f32 %v17970_v9, %v23970_v43  ;;  %v18101_v43 = vand.u32 4294901760, %v5745_v49  ;;  %v18110_v30 = vsub.f32 %v5750_v59, %v18061_v54  ;;  %v23972_v60 = vand.u32 4294901760, %v18013_v41  ;;  %v5734_v9 = vld [vmem:[%s22222_s3 + $0x18] sm:$0xff]  ;;  %6817 = vmatpush1.msra.mxu1 %v6816_v46  ;;  %6982 = vmatprep.mubr.f32.mxu1 %v23244_v20 }
 0x5db   :  { %6505 = vmatpush1.msra.mxu0 %v23971_v29  ;;  %v18112_v29 = vand.u32 4294901760, %v5742_v18  ;;  %v18124_v42 = vsub.f32 %v5749_v25, %v18073_v47  ;;  %v18126_v59 = vand.u32 4294901760, %v5741_v28  ;;  %v18137_v35 = vand.u32 4294901760, %v5738_v10  ;;  %v5733_v25 = vld [vmem:[%s22222_s3 + $0x10] sm:$0xff]  ;;  %6823 = vmatprep.subr.mxu1 %v6822_v48 }
 0x5dc   :  { %6540 = vmatmul.mubr.f32.vlgmr.msra.gmra.mxu0 %v23954_v31  ;;  %6651 = vmatprep.subr.mxu0 %v17713_v6  ;;  %v6857_v17 = vsub.f32 %v18013_v41, %v23972_v60  ;;  %v6852_v33 = vand.u32 4294901760, %v18084_v58  ;;  %v18135_v60 = vsub.f32 %v5746_v16, %v18089_v5  ;;  %v23974_v56 = vand.u32 4294901760, %v18043_v2 }
 0x5dd   :  { %23973 = vst [vmem:[#allocation34_spill] sm:$0xff] %v18126_v59  ;;  %6653 = vmatpush1.msra.mxu0 %v17727_v50  ;;  %v18148_v36 = vsub.f32 %v5745_v49, %v18101_v43  ;;  %v18150_v16 = vand.u32 4294901760, %v5737_v45  ;;  %v23975_v37 = vand.u32 4294901760, %v18059_v0  ;;  %v18158_v12 = vsub.f32 %v5742_v18, %v18112_v29  ;;  %6829 = vmatpush1.msra.mxu1 %v6828_v22 }
 0x5de   :  { %6655 = vmatprep.subr.mxu0 %v17735_v13  ;;  %v6863_v41 = vsub.f32 %v18043_v2, %v23974_v56  ;;  %v18160_v56 = vand.u32 4294901760, %v5734_v9  ;;  %v23976_v49 = vand.u32 4294901760, %v18071_v38  ;;  %v18168_v2 = vsub.f32 %v5741_v28, %v18126_v59  ;;  %6835 = vmatprep.subr.mxu1 %v6834_v27 }
 0x5df   :  { %6657 = vmatpush1.msra.mxu0 %v17746_v44  ;;  %v6869_v46 = vsub.f32 %v18059_v0, %v23975_v37  ;;  %v18170_v37 = vand.u32 4294901760, %v5733_v25  ;;  %v6858_v18 = vand.u32 4294901760, %v6857_v17  ;;  %v23977_v61 = vand.u32 4294901760, %v18087_v11  ;;  %6841 = vmatpush1.msra.mxu1 %v6840_v15 }
 0x5e0   :  { %6659 = vmatprep.subr.mxu0 %v17754_v3  ;;  %v6875_v48 = vsub.f32 %v18071_v38, %v23976_v49  ;;  %v18178_v7 = vsub.f32 %v5738_v10, %v18137_v35  ;;  %v6864_v28 = vand.u32 4294901760, %v6863_v41  ;;  %v23978_v49 = vand.u32 4294901760, %v18099_v19  ;;  %6847 = vmatprep.subr.mxu1 %v6846_v62 }
 0x5e1   :  { %6661 = vmatpush1.msra.mxu0 %v17765_v26  ;;  %v6881_v22 = vsub.f32 %v18087_v11, %v23977_v61  ;;  %v18186_v17 = vsub.f32 %v5737_v45, %v18150_v16  ;;  %v6870_v61 = vand.u32 4294901760, %v6869_v46  ;;  %v23979_v10 = vand.u32 4294901760, %v18110_v30  ;;  %6853 = vmatpush1.msra.mxu1 %v6852_v33 }
 0x5e2   :  { %6663 = vmatprep.subr.mxu0 %v17776_v23  ;;  %v6887_v27 = vsub.f32 %v18099_v19, %v23978_v49  ;;  %v18194_v41 = vsub.f32 %v5734_v9, %v18160_v56  ;;  %v6876_v49 = vand.u32 4294901760, %v6875_v48  ;;  %v23980_v45 = vand.u32 4294901760, %v18124_v42  ;;  %6859 = vmatprep.subr.mxu1 %v6858_v18 }
 0x5e3   :  { %6665 = vmatpush1.msra.mxu0 %v17788_v1  ;;  %v6893_v15 = vsub.f32 %v18110_v30, %v23979_v10  ;;  %v18202_v46 = vsub.f32 %v5733_v25, %v18170_v37  ;;  %v6882_v10 = vand.u32 4294901760, %v6881_v22  ;;  %v23981_v9 = vand.u32 4294901760, %v18135_v60  ;;  %6865 = vmatpush1.msra.mxu1 %v6864_v28 }
 0x5e4   :  { %6667 = vmatprep.subr.mxu0 %v17799_v8  ;;  %v6899_v62 = vsub.f32 %v18124_v42, %v23980_v45  ;;  %v6888_v48 = vand.u32 4294901760, %v6887_v27  ;;  %v23982_v45 = vand.u32 4294901760, %v18148_v36  ;;  %6871 = vmatprep.subr.mxu1 %v6870_v61  ;;  %v23983_v22 = vand.u32 4294901760, %v18158_v12 }
 0x5e5   :  { %6669 = vmatpush1.msra.mxu0 %v17811_v40  ;;  %v6905_v33 = vsub.f32 %v18135_v60, %v23981_v9  ;;  %v6894_v18 = vand.u32 4294901760, %v6893_v15  ;;  %6877 = vmatpush1.msra.mxu1 %v6876_v49  ;;  %v23984_v27 = vand.u32 4294901760, %v18168_v2  ;;  %v22778_v25 = vand.u32 4294901760, %v18202_v46 }
 0x5e6   :  { %6671 = vmatprep.subr.mxu0 %v17823_v14  ;;  %v6911_v58 = vsub.f32 %v18148_v36, %v23982_v45  ;;  %v6917_v9 = vsub.f32 %v18158_v12, %v23983_v22  ;;  %v6900_v28 = vand.u32 4294901760, %v6899_v62  ;;  %6883 = vmatprep.subr.mxu1 %v6882_v10  ;;  %v23985_v15 = vand.u32 4294901760, %v18178_v7 }
 0x5e7   :  { %6673 = vmatpush1.msra.mxu0 %v17840_v52  ;;  %v6923_v45 = vsub.f32 %v18168_v2, %v23984_v27  ;;  %v6906_v61 = vand.u32 4294901760, %v6905_v33  ;;  %6889 = vmatpush1.msra.mxu1 %v6888_v48  ;;  %v23986_v62 = vand.u32 4294901760, %v18186_v17  ;;  %v23987_v10 = vand.u32 4294901760, %v18194_v41 }
 0x5e8   :  { %6675 = vmatprep.subr.mxu0 %v17852_v55  ;;  %v6929_v22 = vsub.f32 %v18178_v7, %v23985_v15  ;;  %v6912_v49 = vand.u32 4294901760, %v6911_v58  ;;  %6895 = vmatprep.subr.mxu1 %v6894_v18  ;;  %v6918_v27 = vand.u32 4294901760, %v6917_v9  ;;  %v6947_v58 = vsub.f32 %v18202_v46, %v22778_v25  ;;  %v24004_v25 = vld [vmem:[#allocation23_spill] sm:$0xff] }
 0x5e9   :  { %6677 = vmatpush1.msra.mxu0 %v17866_v24  ;;  %v6935_v0 = vsub.f32 %v18186_v17, %v23986_v62  ;;  %v6941_v33 = vsub.f32 %v18194_v41, %v23987_v10  ;;  %6901 = vmatpush1.msra.mxu1 %v6900_v28  ;;  %v6924_v15 = vand.u32 4294901760, %v6923_v45  ;;  %v23989_v45 = vld [vmem:[#allocation35_spill] sm:$0xff]  ;;  %v23993_v62 = vld [vmem:[#allocation38_spill] sm:$0xff]  ;;  %v23995_v10 = vld [vmem:[#allocation8_spill] sm:$0xff] }
 0x5ea   :  { %6679 = vmatprep.subr.mxu0 %v17883_v39  ;;  %6907 = vmatprep.subr.mxu1 %v6906_v61  ;;  %v6930_v48 = vand.u32 4294901760, %v6929_v22  ;;  %v6948_v28 = vand.u32 4294901760, %v6947_v58  ;;  %v23990_v61 = vld [vmem:[#allocation43_spill] sm:$0xff]  ;;  %v23991_v22 = vld [vmem:[#allocation14_spill] sm:$0xff] }
 0x5eb   :  { %6681 = vmatpush1.msra.mxu0 %v17910_v32  ;;  %6913 = vmatpush1.msra.mxu1 %v6912_v49  ;;  %v6936_v18 = vand.u32 4294901760, %v6935_v0  ;;  %v6942_v9 = vand.u32 4294901760, %v6941_v33  ;;  %v23988_v0 = vld [vmem:[#allocation16_spill] sm:$0xff]  ;;  %v23992_v49 = vld [vmem:[#allocation19_spill] sm:$0xff] }
 0x5ec   :  { %6683 = vmatprep.subr.mxu0 %v17954_v63  ;;  %6919 = vmatprep.subr.mxu1 %v6918_v27  ;;  %v23994_v27 = vld [vmem:[#allocation45_spill] sm:$0xff]  ;;  %v23996_v33 = vld [vmem:[#allocation40_spill] sm:$0xff]  ;;  %v23998_v58 = vld [vmem:[#allocation11_spill] sm:$0xff] }
 0x5ed   :  { %6685 = vmatpush1.msra.mxu0 %v17984_v34  ;;  %6925 = vmatpush1.msra.mxu1 %v6924_v15  ;;  %v23997_v15 = vld [vmem:[#allocation22_spill] sm:$0xff] }
 0x5ee   :  { %6687 = vmatprep.subr.mxu0 %v17999_v51  ;;  %6931 = vmatprep.subr.mxu1 %v6930_v48  ;;  %v23999_v48 = vld [vmem:[#allocation18_spill] sm:$0xff] }
 0x5ef   :  { %6689 = vmatpush1.msra.mxu0 %v18015_v57  ;;  %6937 = vmatpush1.msra.mxu1 %v6936_v18  ;;  %v24000_v18 = vld [vmem:[#allocation13_spill] sm:$0xff] }
 0x5f0   :  { %6691 = vmatprep.subr.mxu0 %v18029_v53  ;;  %6943 = vmatprep.subr.mxu1 %v6942_v9  ;;  %v24001_v9 = vld [vmem:[#allocation32_spill] sm:$0xff] }
 0x5f1   :  { %6693 = vmatpush1.msra.mxu0 %v18045_v4  ;;  %6949 = vmatpush1.msra.mxu1 %v6948_v28  ;;  %v24002_v28 = vld [vmem:[#allocation12_spill] sm:$0xff] }
 0x5f2   :  { %6695 = vmatprep.subr.mxu0 %v18061_v54  ;;  %6984 = vmatmul.mubr.f32.vlgmr.msra.gmra.mxu1 %v23954_v31  ;;  %v24005_v31 = vld [vmem:[#allocation17_spill] sm:$0xff] }
 0x5f3   :  { %6697 = vmatpush1.msra.mxu0 %v18073_v47  ;;  %7128 = vmatprep.subr.mxu1 %v17713_v6 }
 0x5f4   :  { %6699 = vmatprep.subr.mxu0 %v18089_v5  ;;  %7130 = vmatpush1.msra.mxu1 %v17727_v50 }
 0x5f5   :  { %6701 = vmatpush1.msra.mxu0 %v18101_v43  ;;  %7132 = vmatprep.subr.mxu1 %v17735_v13 }
 0x5f6   :  { %6703 = vmatprep.subr.mxu0 %v18112_v29  ;;  %7134 = vmatpush1.msra.mxu1 %v17746_v44 }
 0x5f7   :  { %6705 = vmatpush1.msra.mxu0 %v18126_v59  ;;  %7136 = vmatprep.subr.mxu1 %v17754_v3 }
 0x5f8   :  { %6707 = vmatprep.subr.mxu0 %v18137_v35  ;;  %7138 = vmatpush1.msra.mxu1 %v17765_v26 }
 0x5f9   :  { %6709 = vmatpush1.msra.mxu0 %v18150_v16  ;;  %7140 = vmatprep.subr.mxu1 %v17776_v23 }
 0x5fa   :  { %6711 = vmatprep.subr.mxu0 %v18160_v56  ;;  %6746 = vmatprep.mubr.f32.mxu0 %v23244_v20 }
 0x5fb   :  { %6713 = vmatpush1.msra.mxu0 %v18170_v37  ;;  %7142 = vmatpush1.msra.mxu1 %v17788_v1 }
 0x5fc   :  { %6752 = vmatmul.mubr.f32.vlgmr.msra.gmra.mxu0 %v23988_v0  ;;  %6992 = vmatprep.subr.mxu0 %v17744_v21  ;;  %v24003_v0 = vld [vmem:[#allocation21_spill] sm:$0xff] }
 0x5fd   :  { %7144 = vmatprep.subr.mxu1 %v17799_v8  ;;  %6995 = vmatpush1.msra.mxu0 %v23989_v45 }
 0x5fe   :  { %7146 = vmatpush1.msra.mxu1 %v17811_v40  ;;  %6998 = vmatprep.subr.mxu0 %v23990_v61 }
 0x5ff   :  { %7148 = vmatprep.subr.mxu1 %v17823_v14  ;;  %7001 = vmatpush1.msra.mxu0 %v23991_v22 }
 0x600   :  { %7150 = vmatpush1.msra.mxu1 %v17840_v52  ;;  %7004 = vmatprep.subr.mxu0 %v23992_v49 }
 0x601   :  { %7152 = vmatprep.subr.mxu1 %v17852_v55  ;;  %7007 = vmatpush1.msra.mxu0 %v23993_v62 }
 0x602   :  { %7154 = vmatpush1.msra.mxu1 %v17866_v24  ;;  %7010 = vmatprep.subr.mxu0 %v23994_v27 }
 0x603   :  { %7156 = vmatprep.subr.mxu1 %v17883_v39  ;;  %7013 = vmatpush1.msra.mxu0 %v23995_v10 }
 0x604   :  { %7158 = vmatpush1.msra.mxu1 %v17910_v32  ;;  %7016 = vmatprep.subr.mxu0 %v23996_v33 }
 0x605   :  { %7160 = vmatprep.subr.mxu1 %v17954_v63  ;;  %7019 = vmatpush1.msra.mxu0 %v23997_v15 }
 0x606   :  { %7162 = vmatpush1.msra.mxu1 %v17984_v34  ;;  %7022 = vmatprep.subr.mxu0 %v23998_v58 }
 0x607   :  { %7164 = vmatprep.subr.mxu1 %v17999_v51  ;;  %7025 = vmatpush1.msra.mxu0 %v23999_v48 }
 0x608   :  { %7166 = vmatpush1.msra.mxu1 %v18015_v57  ;;  %7028 = vmatprep.subr.mxu0 %v24000_v18 }
 0x609   :  { %7168 = vmatprep.subr.mxu1 %v18029_v53  ;;  %7031 = vmatpush1.msra.mxu0 %v24001_v9  ;;  %v24006_v53 = vld [vmem:[#allocation6_spill] sm:$0xff] }
 0x60a   :  { %7170 = vmatpush1.msra.mxu1 %v18045_v4  ;;  %7034 = vmatprep.subr.mxu0 %v24002_v28 }
 0x60b   :  { %7172 = vmatprep.subr.mxu1 %v18061_v54  ;;  %7037 = vmatpush1.msra.mxu0 %v24003_v0 }
 0x60c   :  { %7174 = vmatpush1.msra.mxu1 %v18073_v47  ;;  %7040 = vmatprep.subr.mxu0 %v24004_v25 }
 0x60d   :  { %7176 = vmatprep.subr.mxu1 %v18089_v5  ;;  %7043 = vmatpush1.msra.mxu0 %v24005_v31 }
 0x60e   :  { %7178 = vmatpush1.msra.mxu1 %v18101_v43  ;;  %7046 = vmatprep.subr.mxu0 %v24006_v53 }
 0x60f   :  { %7180 = vmatprep.subr.mxu1 %v18112_v29  ;;  %7049 = vmatpush1.msra.mxu0 %v18071_v38 }
 0x610   :  { %7182 = vmatpush1.msra.mxu1 %v18126_v59  ;;  %7052 = vmatprep.subr.mxu0 %v18087_v11  ;;  %v24007_v59 = vld [vmem:[#allocation5_spill] sm:$0xff] }
 0x611   :  { %7184 = vmatprep.subr.mxu1 %v18137_v35  ;;  %7055 = vmatpush1.msra.mxu0 %v18099_v19 }
 0x612   :  { %7186 = vmatpush1.msra.mxu1 %v18150_v16  ;;  %7058 = vmatprep.subr.mxu0 %v18110_v30 }
 0x613   :  { %7188 = vmatprep.subr.mxu1 %v18160_v56  ;;  %7061 = vmatpush1.msra.mxu0 %v18124_v42 }
 0x614   :  { %7190 = vmatpush1.msra.mxu1 %v18170_v37  ;;  %7223 = vmatprep.mubr.f32.mxu1 %v23244_v20 }
 0x615   :  { %7064 = vmatprep.subr.mxu0 %v18135_v60  ;;  %7227 = vmatmul.mubr.f32.vlgmr.msra.gmra.mxu1 %v24007_v59 }
 0x616   :  { %7402 = vmatprep.subr.mxu1 %v17713_v6  ;;  %7067 = vmatpush1.msra.mxu0 %v18148_v36  ;;  %v24008_v6 = vld [vmem:[#allocation44_spill] sm:$0xff] }
 0x617   :  { %7404 = vmatpush1.msra.mxu1 %v17727_v50  ;;  %7070 = vmatprep.subr.mxu0 %v18158_v12  ;;  %v24009_v50 = vand.u32 4294901760, %v17744_v21  ;;  %v24013_v21 = vand.u32 4294901760, %v23992_v49 }
 0x618   :  { %7406 = vmatprep.subr.mxu1 %v17735_v13  ;;  %7073 = vmatpush1.msra.mxu0 %v18168_v2  ;;  %v24010_v13 = vand.u32 4294901760, %v23989_v45 }
 0x619   :  { %7408 = vmatpush1.msra.mxu1 %v17746_v44  ;;  %7076 = vmatprep.subr.mxu0 %v18178_v7  ;;  %v24011_v44 = vand.u32 4294901760, %v23990_v61 }
 0x61a   :  { %7410 = vmatprep.subr.mxu1 %v17754_v3  ;;  %7079 = vmatpush1.msra.mxu0 %v18186_v17  ;;  %v24012_v3 = vand.u32 4294901760, %v23991_v22  ;;  %v7646_v22 = vld [vmem:[%s22222_s3 + $0x1a0] sm:$0xff] }
 0x61b   :  { %7412 = vmatpush1.msra.mxu1 %v17765_v26  ;;  %7082 = vmatprep.subr.mxu0 %v18194_v41  ;;  %v24014_v26 = vand.u32 4294901760, %v23993_v62 }
 0x61c   :  { %7414 = vmatprep.subr.mxu1 %v17776_v23  ;;  %7085 = vmatpush1.msra.mxu0 %v18202_v46  ;;  %v24015_v23 = vand.u32 4294901760, %v23994_v27  ;;  %v18474_v27 = vand.u32 4294901760, %v7646_v22 }
 0x61d   :  { %7118 = vmatprep.mubr.f32.mxu0 %v23244_v20  ;;  %7416 = vmatpush1.msra.mxu1 %v17788_v1  ;;  %v24016_v1 = vand.u32 4294901760, %v23995_v10  ;;  %v7643_v10 = vld [vmem:[%s22222_s3 + $0x188] sm:$0xff] }
 0x61e   :  { %7121 = vmatmul.mubr.f32.vlgmr.msra.gmra.mxu0 %v24008_v6  ;;  %7236 = vmatprep.subr.mxu0 %v24009_v50  ;;  %v7639_v50 = vld [vmem:[%s22222_s3 + $0x168] sm:$0xff] }
 0x61f   :  { %7418 = vmatprep.subr.mxu1 %v17799_v8  ;;  %7240 = vmatpush1.msra.mxu0 %v24010_v13  ;;  %v24017_v8 = vand.u32 4294901760, %v23996_v33 }
 0x620   :  { %7420 = vmatpush1.msra.mxu1 %v17811_v40  ;;  %7244 = vmatprep.subr.mxu0 %v24011_v44  ;;  %v24019_v40 = vand.u32 4294901760, %v23998_v58 }
 0x621   :  { %7422 = vmatprep.subr.mxu1 %v17823_v14  ;;  %7248 = vmatpush1.msra.mxu0 %v24012_v3  ;;  %v24020_v14 = vand.u32 4294901760, %v23999_v48  ;;  %v18487_v48 = vand.u32 4294901760, %v7643_v10 }
 0x622   :  { %7424 = vmatpush1.msra.mxu1 %v17840_v52  ;;  %7252 = vmatprep.subr.mxu0 %v24013_v21  ;;  %v24021_v52 = vand.u32 4294901760, %v24000_v18  ;;  %v7642_v18 = vld [vmem:[%s22222_s3 + $0x180] sm:$0xff] }
 0x623   :  { %7426 = vmatprep.subr.mxu1 %v17852_v55  ;;  %7256 = vmatpush1.msra.mxu0 %v24014_v26  ;;  %v24018_v55 = vand.u32 4294901760, %v23997_v15  ;;  %v18500_v6 = vand.u32 4294901760, %v7642_v18  ;;  %v18511_v21 = vsub.f32 %v7643_v10, %v18487_v48  ;;  %v7638_v26 = vld [vmem:[%s22222_s3 + $0x160] sm:$0xff] }
 0x624   :  { %7428 = vmatpush1.msra.mxu1 %v17866_v24  ;;  %7260 = vmatprep.subr.mxu0 %v24015_v23  ;;  %v24023_v24 = vand.u32 4294901760, %v24001_v9 }
 0x625   :  { %7430 = vmatprep.subr.mxu1 %v17883_v39  ;;  %7264 = vmatpush1.msra.mxu0 %v24016_v1  ;;  %v24022_v39 = vld [vmem:[#allocation42_spill] sm:$0xff] }
 0x626   :  { %7432 = vmatpush1.msra.mxu1 %v17910_v32  ;;  %7268 = vmatprep.subr.mxu0 %v24017_v8  ;;  %v24024_v32 = vand.u32 4294901760, %v24002_v28 }
 0x627   :  { %7434 = vmatprep.subr.mxu1 %v17954_v63  ;;  %7272 = vmatpush1.msra.mxu0 %v24018_v55  ;;  %v24026_v63 = vand.u32 4294901760, %v24004_v25  ;;  %v18522_v55 = vsub.f32 %v7642_v18, %v18500_v6 }
 0x628   :  { %7436 = vmatpush1.msra.mxu1 %v17984_v34  ;;  %7276 = vmatprep.subr.mxu0 %v24019_v40  ;;  %v24028_v34 = vand.u32 4294901760, %v24006_v53  ;;  %v24033_v53 = vand.u32 4294901760, %v18110_v30  ;;  %v24040_v30 = vand.u32 4294901760, %v18178_v7  ;;  %v7654_v7 = vld [vmem:[%s22222_s3 + $0x1e0] sm:$0xff]  ;;  %v7635_v40 = vld [vmem:[%s22222_s3 + $0x148] sm:$0xff] }
 0x629   :  { %7438 = vmatprep.subr.mxu1 %v17999_v51  ;;  %7280 = vmatpush1.msra.mxu0 %v24020_v14  ;;  %v24025_v51 = vand.u32 4294901760, %v24003_v0  ;;  %v18437_v59 = vand.u32 4294901760, %v7654_v7  ;;  %v18498_v0 = vsub.f32 %v7646_v22, %v18474_v27 }
 0x62a   :  { %7440 = vmatpush1.msra.mxu1 %v18015_v57  ;;  %7284 = vmatprep.subr.mxu0 %v24021_v52  ;;  %v24027_v57 = vand.u32 4294901760, %v24005_v31  ;;  %v24032_v31 = vand.u32 4294901760, %v18099_v19  ;;  %v24037_v19 = vand.u32 4294901760, %v18148_v36  ;;  %v24043_v36 = vand.u32 4294901760, %v18202_v46  ;;  %v7647_v46 = vld [vmem:[%s22222_s3 + $0x1a8] sm:$0xff] }
 0x62b   :  { %7442 = vmatprep.subr.mxu1 %v24022_v39  ;;  %7288 = vmatpush1.msra.mxu0 %v24023_v24  ;;  %v18464_v61 = vand.u32 4294901760, %v7647_v46  ;;  %v22795_v8 = vand.u32 4294901760, %v18498_v0  ;;  %v22793_v39 = vand.u32 4294901760, %v18511_v21  ;;  %v18532_v24 = vand.u32 4294901760, %v7639_v50 }
 0x62c   :  { %7444 = vmatpush1.msra.mxu1 %v18045_v4  ;;  %7292 = vmatprep.subr.mxu0 %v24024_v32  ;;  %v24029_v4 = vand.u32 4294901760, %v18071_v38  ;;  %v24034_v38 = vand.u32 4294901760, %v18124_v42  ;;  %v24039_v42 = vand.u32 4294901760, %v18168_v2  ;;  %v7634_v32 = vld [vmem:[%s22222_s3 + $0x140] sm:$0xff] }
 0x62d   :  { %7446 = vmatprep.subr.mxu1 %v18061_v54  ;;  %7296 = vmatpush1.msra.mxu0 %v24025_v51  ;;  %v24030_v54 = vld [vmem:[#allocation34_spill] sm:$0xff]  ;;  %v18485_v58 = vsub.f32 %v7647_v46, %v18464_v61 }
 0x62e   :  { %7448 = vmatpush1.msra.mxu1 %v18073_v47  ;;  %7300 = vmatprep.subr.mxu0 %v24026_v63  ;;  %v24031_v47 = vand.u32 4294901760, %v18087_v11  ;;  %v24035_v11 = vand.u32 4294901760, %v18135_v60  ;;  %v7651_v60 = vld [vmem:[%s22222_s3 + $0x1c8] sm:$0xff]  ;;  %v7799_v63 = vsub.f32 %v18498_v0, %v22795_v8 }
 0x62f   :  { %7450 = vmatprep.subr.mxu1 %v18089_v5  ;;  %7304 = vmatpush1.msra.mxu0 %v24027_v57  ;;  %v24036_v5 = vld [vmem:[#allocation41_spill] sm:$0xff]  ;;  %v22797_v3 = vand.u32 4294901760, %v18485_v58  ;;  %v22791_v57 = vand.u32 4294901760, %v18522_v55 }
 0x630   :  { %7452 = vmatpush1.msra.mxu1 %v18101_v43  ;;  %7308 = vmatprep.subr.mxu0 %v24028_v34  ;;  %v24038_v43 = vand.u32 4294901760, %v18158_v12  ;;  %v7655_v12 = vld [vmem:[%s22222_s3 + $0x1e8] sm:$0xff]  ;;  %v18541_v34 = vand.u32 4294901760, %v7638_v26 }
 0x631   :  { %7454 = vmatprep.subr.mxu1 %v18112_v29  ;;  %7312 = vmatpush1.msra.mxu0 %v24029_v4  ;;  %v24041_v29 = vand.u32 4294901760, %v18186_v17  ;;  %v18432_v2 = vand.u32 4294901760, %v7655_v12  ;;  %v18452_v17 = vsub.f32 %v7654_v7, %v18437_v59  ;;  %v7793_v52 = vsub.f32 %v18485_v58, %v22797_v3  ;;  %v7631_v4 = vld [vmem:[%s22222_s3 + $0x128] sm:$0xff] }
 0x632   :  { %7456 = vmatpush1.msra.mxu1 %v24030_v54  ;;  %7316 = vmatprep.subr.mxu0 %v24031_v47  ;;  %v7805_v47 = vsub.f32 %v18511_v21, %v22793_v39 }
 0x633   :  { %7458 = vmatprep.subr.mxu1 %v18137_v35  ;;  %7320 = vmatpush1.msra.mxu0 %v24032_v31  ;;  %v24042_v35 = vand.u32 4294901760, %v18194_v41  ;;  %24044 = vst [vmem:[#allocation33_spill] sm:$0xff] %v18432_v2  ;;  %v22802_v49 = vand.u32 4294901760, %v18452_v17  ;;  %v7794_v54 = vand.u32 4294901760, %v7793_v52  ;;  %v18550_v31 = vsub.f32 %v7639_v50, %v18532_v24  ;;  %v7622_v52 = vld [vmem:[%s22222_s3 + $0xe0] sm:$0xff] }
 0x634   :  { %7460 = vmatpush1.msra.mxu1 %v18150_v16  ;;  %7324 = vmatprep.subr.mxu0 %v24033_v53  ;;  %v18443_v16 = vsub.f32 %v7655_v12, %v18432_v2  ;;  %v18552_v53 = vand.u32 4294901760, %v7635_v40  ;;  %v7626_v12 = vld [vmem:[%s22222_s3 + $0x100] sm:$0xff] }
 0x635   :  { %7462 = vmatprep.subr.mxu1 %v18160_v56  ;;  %7328 = vmatpush1.msra.mxu0 %v24034_v38  ;;  %v18445_v56 = vand.u32 4294901760, %v7651_v60  ;;  %v7775_v9 = vsub.f32 %v18452_v17, %v22802_v49  ;;  %v7630_v38 = vld [vmem:[%s22222_s3 + $0x120] sm:$0xff] }
 0x636   :  { %7464 = vmatpush1.msra.mxu1 %v18170_v37  ;;  %7497 = vmatprep.mubr.f32.mxu1 %v23244_v20  ;;  %24045 = vst [vmem:[#allocation24_spill] sm:$0xff] %v18443_v16  ;;  %v7650_v37 = vld [vmem:[%s22222_s3 + $0x1c0] sm:$0xff]  ;;  %v22803_v25 = vand.u32 4294901760, %v18443_v16  ;;  %v18584_v46 = vand.u32 4294901760, %v7630_v38 }
 0x637   :  { %7332 = vmatprep.subr.mxu0 %v24035_v11  ;;  %7499 = vmatmul.mubr.f32.vlgmr.msra.gmra.mxu1 %v24036_v5  ;;  %v18454_v41 = vand.u32 4294901760, %v7650_v37  ;;  %v18462_v45 = vsub.f32 %v7651_v60, %v18445_v56  ;;  %v7776_v23 = vand.u32 4294901760, %v7775_v9  ;;  %v7800_v11 = vand.u32 4294901760, %v7799_v63 }
 0x638   :  { %7336 = vmatpush1.msra.mxu0 %v24037_v19  ;;  %7393 = vmatprep.mubr.f32.mxu0 %v23244_v20  ;;  %v7769_v33 = vsub.f32 %v18443_v16, %v22803_v25  ;;  %v18562_v19 = vsub.f32 %v7638_v26, %v18541_v34  ;;  %v7623_v26 = vld [vmem:[%s22222_s3 + $0xe8] sm:$0xff] }
 0x639   :  { %7340 = vmatprep.subr.mxu0 %v24038_v43  ;;  %7990 = vmatprep.mubr.f32.mxu1 %v23244_v20  ;;  %v18472_v62 = vsub.f32 %v7650_v37, %v18454_v41  ;;  %v22799_v15 = vand.u32 4294901760, %v18462_v45  ;;  %v18564_v43 = vand.u32 4294901760, %v7634_v32 }
 0x63a   :  { %7344 = vmatpush1.msra.mxu0 %v24039_v42  ;;  %v7770_v13 = vand.u32 4294901760, %v7769_v33  ;;  %v7627_v42 = vld [vmem:[%s22222_s3 + $0x108] sm:$0xff]  ;;  %v22788_v60 = vand.u32 4294901760, %v18562_v19 }
 0x63b   :  { %7348 = vmatprep.subr.mxu0 %v24040_v30  ;;  %v22798_v28 = vand.u32 4294901760, %v18472_v62  ;;  %v7781_v44 = vsub.f32 %v18462_v45, %v22799_v15  ;;  %v7806_v30 = vand.u32 4294901760, %v7805_v47  ;;  %v18582_v37 = vsub.f32 %v7634_v32, %v18564_v43 }
 0x63c   :  { %7352 = vmatpush1.msra.mxu0 %v24041_v29  ;;  %7771 = vmatprep.subr.mxu1 %v7770_v13  ;;  %v22789_v29 = vand.u32 4294901760, %v18550_v31  ;;  %v18594_v18 = vand.u32 4294901760, %v7627_v42  ;;  %v7823_v9 = vsub.f32 %v18562_v19, %v22788_v60  ;;  %v18602_v13 = vsub.f32 %v7630_v38, %v18584_v46 }
 0x63d   :  { %7356 = vmatprep.subr.mxu0 %v24042_v35  ;;  %v7787_v1 = vsub.f32 %v18472_v62, %v22798_v28  ;;  %v7782_v14 = vand.u32 4294901760, %v7781_v44  ;;  %7777 = vmatpush1.msra.mxu1 %v7776_v23  ;;  %v18572_v35 = vsub.f32 %v7635_v40, %v18552_v53  ;;  %v22785_v50 = vand.u32 4294901760, %v18582_v37 }
 0x63e   :  { %7360 = vmatpush1.msra.mxu0 %v24043_v36  ;;  %v18574_v36 = vand.u32 4294901760, %v7631_v4  ;;  %v7817_v22 = vsub.f32 %v18550_v31, %v22789_v29  ;;  %v18604_v44 = vand.u32 4294901760, %v7626_v12  ;;  %v7824_v32 = vand.u32 4294901760, %v7823_v9  ;;  %v7615_v9 = vld [vmem:[%s22222_s3 + $0xa8] sm:$0xff] }
 0x63f   :  { %7395 = vmatmul.mubr.f32.vlgmr.msra.gmra.mxu0 %v24036_v5  ;;  %7659 = vmatprep.subr.mxu0 %v18432_v2  ;;  %v7788_v51 = vand.u32 4294901760, %v7787_v1  ;;  %v7811_v5 = vsub.f32 %v18522_v55, %v22791_v57  ;;  %v22786_v10 = vand.u32 4294901760, %v18572_v35  ;;  %v22782_v63 = vand.u32 4294901760, %v18602_v13 }
 0x640   :  { %7754 = vmatprep.mubr.f32.mxu0 %v23244_v20  ;;  %7661 = vmatpush1.msra.mxu0 %v18437_v59  ;;  %v18592_v33 = vsub.f32 %v7631_v4, %v18574_v36  ;;  %v7818_v23 = vand.u32 4294901760, %v7817_v22  ;;  %v18626_v4 = vsub.f32 %v7626_v12, %v18604_v44  ;;  %v18645_v22 = vand.u32 4294901760, %v7622_v52 }
 0x641   :  { %7663 = vmatprep.subr.mxu0 %v18445_v56  ;;  %7783 = vmatprep.subr.mxu1 %v7782_v14  ;;  %v7812_v7 = vand.u32 4294901760, %v7811_v5  ;;  %v7829_v1 = vsub.f32 %v18572_v35, %v22786_v10  ;;  %v18615_v14 = vsub.f32 %v7627_v42, %v18594_v18  ;;  %v18636_v5 = vand.u32 4294901760, %v7623_v26  ;;  %v7618_v42 = vld [vmem:[%s22222_s3 + $0xc0] sm:$0xff] }
 0x642   :  { %7665 = vmatpush1.msra.mxu0 %v18454_v41  ;;  %7789 = vmatpush1.msra.mxu1 %v7788_v51  ;;  %v22783_v40 = vand.u32 4294901760, %v18592_v33  ;;  %v7835_v51 = vsub.f32 %v18582_v37, %v22785_v50  ;;  %24047 = vst [vmem:[#allocation15_spill] sm:$0xff] %v18626_v4  ;;  %v7847_v12 = vsub.f32 %v18602_v13, %v22782_v63  ;;  %v7614_v63 = vld [vmem:[%s22222_s3 + $0xa0] sm:$0xff] }
 0x643   :  { %7667 = vmatprep.subr.mxu0 %v18464_v61  ;;  %7795 = vmatprep.subr.mxu1 %v7794_v54  ;;  %24046 = vst [vmem:[#allocation20_spill] sm:$0xff] %v18615_v14  ;;  %v7619_v54 = vld [vmem:[%s22222_s3 + $0xc8] sm:$0xff]  ;;  %v7830_v47 = vand.u32 4294901760, %v7829_v1 }
 0x644   :  { %7669 = vmatpush1.msra.mxu0 %v18474_v27  ;;  %7801 = vmatpush1.msra.mxu1 %v7800_v11  ;;  %v7841_v38 = vsub.f32 %v18592_v33, %v22783_v40  ;;  %v22784_v11 = vand.u32 4294901760, %v18615_v14  ;;  %v7848_v40 = vand.u32 4294901760, %v7847_v12  ;;  %v7611_v12 = vld [vmem:[%s22222_s3 + $0x88] sm:$0xff] }
 0x645   :  { %7671 = vmatprep.subr.mxu0 %v18487_v48  ;;  %7807 = vmatprep.subr.mxu1 %v7806_v30  ;;  %v7836_v30 = vand.u32 4294901760, %v7835_v51  ;;  %v18656_v51 = vand.u32 4294901760, %v7619_v54 }
 0x646   :  { %7673 = vmatpush1.msra.mxu0 %v18500_v6  ;;  %7813 = vmatpush1.msra.mxu1 %v7812_v7  ;;  %v22787_v7 = vand.u32 4294901760, %v18626_v4  ;;  %v7853_v1 = vsub.f32 %v18615_v14, %v22784_v11  ;;  %v18668_v11 = vand.u32 4294901760, %v7618_v42 }
 0x647   :  { %7675 = vmatprep.subr.mxu0 %v18532_v24  ;;  %7819 = vmatprep.subr.mxu1 %v7818_v23  ;;  %v7842_v23 = vand.u32 4294901760, %v7841_v38  ;;  %v18666_v38 = vsub.f32 %v7622_v52, %v18645_v22  ;;  %v18673_v10 = vsub.f32 %v7619_v54, %v18656_v51 }
 0x648   :  { %7677 = vmatpush1.msra.mxu0 %v18541_v34  ;;  %7825 = vmatpush1.msra.mxu1 %v7824_v32  ;;  %v18654_v32 = vsub.f32 %v7623_v26, %v18636_v5  ;;  %v7854_v26 = vand.u32 4294901760, %v7853_v1  ;;  %v18685_v1 = vand.u32 4294901760, %v7614_v63 }
 0x649   :  { %7679 = vmatprep.subr.mxu0 %v18552_v53  ;;  %7831 = vmatprep.subr.mxu1 %v7830_v47  ;;  %v7859_v47 = vsub.f32 %v18626_v4, %v22787_v7  ;;  %24049 = vst [vmem:[#allocation31_spill] sm:$0xff] %v18666_v38  ;;  %24050 = vst [vmem:[#allocation36_spill] sm:$0xff] %v18673_v10  ;;  %v22792_v7 = vand.u32 4294901760, %v18666_v38  ;;  %v22794_v60 = vand.u32 4294901760, %v18673_v10 }
 0x64a   :  { %7681 = vmatpush1.msra.mxu0 %v18564_v43  ;;  %24048 = vst [vmem:[#allocation25_spill] sm:$0xff] %v18654_v32  ;;  %7837 = vmatpush1.msra.mxu1 %v7836_v30  ;;  %v22790_v50 = vand.u32 4294901760, %v18654_v32  ;;  %v18675_v30 = vand.u32 4294901760, %v7615_v9  ;;  %24052 = vst [vmem:[#allocation9_spill] sm:$0xff] %v18685_v1 }
 0x64b   :  { %7683 = vmatprep.subr.mxu0 %v18574_v36  ;;  %7843 = vmatprep.subr.mxu1 %v7842_v23  ;;  %v7860_v52 = vand.u32 4294901760, %v7859_v47  ;;  %v18683_v23 = vsub.f32 %v7618_v42, %v18668_v11  ;;  %v18701_v47 = vsub.f32 %v7614_v63, %v18685_v1 }
 0x64c   :  { %7685 = vmatpush1.msra.mxu0 %v18584_v46  ;;  %7849 = vmatpush1.msra.mxu1 %v7848_v40  ;;  %v7865_v54 = vsub.f32 %v18654_v32, %v22790_v50  ;;  %v18693_v29 = vsub.f32 %v7615_v9, %v18675_v30  ;;  %v7871_v40 = vsub.f32 %v18666_v38, %v22792_v7 }
 0x64d   :  { %7687 = vmatprep.subr.mxu0 %v18594_v18  ;;  %24051 = vst [vmem:[#allocation39_spill] sm:$0xff] %v18683_v23  ;;  %7855 = vmatprep.subr.mxu1 %v7854_v26  ;;  %v22796_v42 = vand.u32 4294901760, %v18683_v23  ;;  %24054 = vst [vmem:[#allocation7_spill] sm:$0xff] %v18701_v47  ;;  %v18703_v26 = vand.u32 4294901760, %v7611_v12  ;;  %v7877_v9 = vsub.f32 %v18673_v10, %v22794_v60  ;;  %v22801_v39 = vand.u32 4294901760, %v18701_v47 }
 0x64e   :  { %7689 = vmatpush1.msra.mxu0 %v18604_v44  ;;  %24053 = vst [vmem:[#allocation10_spill] sm:$0xff] %v18693_v29  ;;  %7861 = vmatpush1.msra.mxu1 %v7860_v52  ;;  %v7866_v50 = vand.u32 4294901760, %v7865_v54  ;;  %v7610_v52 = vld [vmem:[%s22222_s3 + $0x80] sm:$0xff]  ;;  %v7872_v57 = vand.u32 4294901760, %v7871_v40  ;;  %v22800_v63 = vand.u32 4294901760, %v18693_v29  ;;  %v7607_v54 = vld [vmem:[%s22222_s3 + $0x68] sm:$0xff] }
 0x64f   :  { %7691 = vmatprep.subr.mxu0 %v18636_v5  ;;  %24055 = vst [vmem:[#allocation37_spill] sm:$0xff] %v18703_v26  ;;  %v7883_v7 = vsub.f32 %v18683_v23, %v22796_v42  ;;  %v7878_v60 = vand.u32 4294901760, %v7877_v9  ;;  %v18722_v8 = vsub.f32 %v7611_v12, %v18703_v26  ;;  %v7606_v40 = vld [vmem:[%s22222_s3 + $0x60] sm:$0xff]  ;;  %v7895_v28 = vsub.f32 %v18701_v47, %v22801_v39 }
 0x650   :  { %7693 = vmatpush1.msra.mxu0 %v18645_v22  ;;  %7867 = vmatprep.subr.mxu1 %v7866_v50  ;;  %v7889_v3 = vsub.f32 %v18693_v29, %v22800_v63  ;;  %v18733_v15 = vand.u32 4294901760, %v7610_v52  ;;  %v18736_v12 = vand.u32 4294901760, %v7607_v54  ;;  %v18747_v49 = vand.u32 4294901760, %v7606_v40  ;;  %v7598_v29 = vld [vmem:[%s22222_s3 + $0x20] sm:$0xff] }
 0x651   :  { %7695 = vmatprep.subr.mxu0 %v18656_v51  ;;  %24056 = vst [vmem:[#allocation16_spill] sm:$0xff] %v18722_v8  ;;  %7873 = vmatpush1.msra.mxu1 %v7872_v57  ;;  %v7884_v42 = vand.u32 4294901760, %v7883_v7  ;;  %v22808_v50 = vand.u32 4294901760, %v18722_v8  ;;  %v7603_v57 = vld [vmem:[%s22222_s3 + $0x48] sm:$0xff]  ;;  %v7602_v7 = vld [vmem:[%s22222_s3 + $0x40] sm:$0xff]  ;;  %v7896_v63 = vand.u32 4294901760, %v7895_v28 }
 0x652   :  { %7697 = vmatpush1.msra.mxu0 %v18668_v11  ;;  %24057 = vst [vmem:[#allocation35_spill] sm:$0xff] %v18733_v15  ;;  %7879 = vmatprep.subr.mxu1 %v7878_v60  ;;  %24058 = vst [vmem:[#allocation43_spill] sm:$0xff] %v18736_v12  ;;  %v7890_v9 = vand.u32 4294901760, %v7889_v3  ;;  %v18745_v39 = vsub.f32 %v7610_v52, %v18733_v15  ;;  %v7599_v60 = vld [vmem:[%s22222_s3 + $0x28] sm:$0xff]  ;;  %v18757_v47 = vsub.f32 %v7607_v54, %v18736_v12 }
 0x653   :  { %7699 = vmatprep.subr.mxu0 %v18675_v30  ;;  %7885 = vmatpush1.msra.mxu1 %v7884_v42  ;;  %24060 = vst [vmem:[#allocation19_spill] sm:$0xff] %v18747_v49  ;;  %v7901_v25 = vsub.f32 %v18722_v8, %v22808_v50  ;;  %v18762_v3 = vsub.f32 %v7606_v40, %v18747_v49  ;;  %v18764_v42 = vand.u32 4294901760, %v7603_v57  ;;  %v18766_v52 = vand.u32 4294901760, %v7602_v7  ;;  %v7595_v54 = vld [vmem:[%s22222_s3 + $0x8] sm:$0xff] }
 0x654   :  { %7701 = vmatpush1.msra.mxu0 %v18685_v1  ;;  %24059 = vst [vmem:[#allocation14_spill] sm:$0xff] %v18745_v39  ;;  %24061 = vst [vmem:[#allocation38_spill] sm:$0xff] %v18757_v47  ;;  %7891 = vmatprep.subr.mxu1 %v7890_v9  ;;  %v22819_v28 = vand.u32 4294901760, %v18745_v39  ;;  %v22820_v50 = vand.u32 4294901760, %v18757_v47  ;;  %v18776_v40 = vand.u32 4294901760, %v7599_v60 }
 0x655   :  { %7703 = vmatprep.subr.mxu0 %v18703_v26  ;;  %24062 = vst [vmem:[#allocation45_spill] sm:$0xff] %v18762_v3  ;;  %24063 = vst [vmem:[#allocation8_spill] sm:$0xff] %v18764_v42  ;;  %7897 = vmatpush1.msra.mxu1 %v7896_v63  ;;  %v7902_v9 = vand.u32 4294901760, %v7901_v25  ;;  %v22829_v23 = vand.u32 4294901760, %v18762_v3  ;;  %v18783_v10 = vsub.f32 %v7603_v57, %v18764_v42  ;;  %v7594_v57 = vld [vmem:[%s22222_s3] sm:$0xff] }
 0x656   :  { %7705 = vmatpush1.msra.mxu0 %v18733_v15  ;;  %24064 = vst [vmem:[#allocation40_spill] sm:$0xff] %v18766_v52  ;;  %24065 = vst [vmem:[#allocation22_spill] sm:$0xff] %v18776_v40  ;;  %v7907_v8 = vsub.f32 %v18745_v39, %v22819_v28  ;;  %v18786_v38 = vsub.f32 %v7602_v7, %v18766_v52  ;;  %v7913_v25 = vsub.f32 %v18757_v47, %v22820_v50 }
 0x657   :  { %7707 = vmatprep.subr.mxu0 %v18736_v12  ;;  %24066 = vst [vmem:[#allocation11_spill] sm:$0xff] %v18783_v10  ;;  %7903 = vmatprep.subr.mxu1 %v7902_v9  ;;  %v18793_v63 = vsub.f32 %v7599_v60, %v18776_v40  ;;  %v18797_v28 = vand.u32 4294901760, %v7595_v54  ;;  %v7919_v9 = vsub.f32 %v18762_v3, %v22829_v23  ;;  %v22832_v50 = vand.u32 4294901760, %v18783_v10 }
 0x658   :  { %7709 = vmatpush1.msra.mxu0 %v18747_v49  ;;  %24067 = vst [vmem:[#allocation18_spill] sm:$0xff] %v18786_v38  ;;  %v18795_v49 = vand.u32 4294901760, %v7598_v29  ;;  %v7908_v7 = vand.u32 4294901760, %v7907_v8  ;;  %v22835_v60 = vand.u32 4294901760, %v18786_v38  ;;  %v7914_v47 = vand.u32 4294901760, %v7913_v25 }
 0x659   :  { %7711 = vmatprep.subr.mxu0 %v18764_v42  ;;  %24068 = vst [vmem:[#allocation13_spill] sm:$0xff] %v18793_v63  ;;  %24070 = vst [vmem:[#allocation12_spill] sm:$0xff] %v18797_v28  ;;  %v22836_v39 = vand.u32 4294901760, %v18793_v63  ;;  %v18814_v12 = vsub.f32 %v7595_v54, %v18797_v28  ;;  %v7920_v8 = vand.u32 4294901760, %v7919_v9  ;;  %v7925_v23 = vsub.f32 %v18783_v10, %v22832_v50 }
 0x65a   :  { %24069 = vst [vmem:[#allocation32_spill] sm:$0xff] %v18795_v49  ;;  %7713 = vmatpush1.msra.mxu0 %v18766_v52  ;;  %v18811_v42 = vsub.f32 %v7598_v29, %v18795_v49  ;;  %7909 = vmatpush1.msra.mxu1 %v7908_v7  ;;  %v7931_v25 = vsub.f32 %v18786_v38, %v22835_v60  ;;  %v18823_v3 = vand.u32 4294901760, %v7594_v57 }
 0x65b   :  { %7715 = vmatprep.subr.mxu0 %v18776_v40  ;;  %24072 = vst [vmem:[#allocation23_spill] sm:$0xff] %v18814_v12  ;;  %7915 = vmatprep.subr.mxu1 %v7914_v47  ;;  %v7937_v29 = vsub.f32 %v18793_v63, %v22836_v39  ;;  %v22837_v7 = vand.u32 4294901760, %v18814_v12  ;;  %v7926_v9 = vand.u32 4294901760, %v7925_v23 }
 0x65c   :  { %24071 = vst [vmem:[#allocation21_spill] sm:$0xff] %v18811_v42  ;;  %7717 = vmatpush1.msra.mxu0 %v18795_v49  ;;  %24073 = vst [vmem:[#allocation17_spill] sm:$0xff] %v18823_v3  ;;  %v22838_v54 = vand.u32 4294901760, %v18811_v42  ;;  %7921 = vmatpush1.msra.mxu1 %v7920_v8  ;;  %v7932_v50 = vand.u32 4294901760, %v7931_v25  ;;  %v18832_v10 = vsub.f32 %v7594_v57, %v18823_v3 }
 0x65d   :  { %7719 = vmatprep.subr.mxu0 %v18797_v28  ;;  %v7938_v60 = vand.u32 4294901760, %v7937_v29  ;;  %v7949_v39 = vsub.f32 %v18814_v12, %v22837_v7  ;;  %7927 = vmatprep.subr.mxu1 %v7926_v9  ;;  %v5898_v7 = vpop.f32.mrf.mxu0  ;;  %v5679_v28 = vpop.permute.xlu0 %5678 }
 0x65e   :  { %24074 = vst [vmem:[#allocation6_spill] sm:$0xff] %v18832_v10  ;;  %7721 = vmatpush1.msra.mxu0 %v18823_v3  ;;  %v7943_v47 = vsub.f32 %v18811_v42, %v22838_v54  ;;  %v22846_v23 = vand.u32 4294901760, %v18832_v10  ;;  %7933 = vmatpush1.msra.mxu1 %v7932_v50 }
 0x65f   :  { %8000 = vmatprep.subr.mxu0 %v18443_v16  ;;  %v7950_v57 = vand.u32 4294901760, %v7949_v39  ;;  %7939 = vmatprep.subr.mxu1 %v7938_v60  ;;  %v5900_v54 = vpop.f32.mrf.mxu0  ;;  %v6130_v16 = vpop.f32.mrf.mxu1 }
 0x660   :  { %v7944_v8 = vand.u32 4294901760, %v7943_v47  ;;  %v7955_v25 = vsub.f32 %v18832_v10, %v22846_v23  ;;  %v6131_v47 = vadd.f32 %v6130_v16, %v5898_v7  ;;  %v24075_v23 = vld [vmem:[#allocation26_spill] sm:$0xff]  ;;  %v5672_v16 = vld [vmem:[%s22220_s1] sm:$0xf] }
 0x661   :  { %v6132_v12 = vpop.f32.mrf.mxu1 }
 0x662   :  { %7945 = vmatpush1.msra.mxu1 %v7944_v8  ;;  %v7956_v29 = vand.u32 4294901760, %v7955_v25  ;;  %v6133_v50 = vadd.f32 %v6132_v12, %v5900_v54  ;;  %v5675_v8 = vld [vmem:[%s22221_s2] sm:$0xf] }
 0x663   :  { %7951 = vmatprep.subr.mxu1 %v7950_v57  ;;  %v5689_v10 = vrot.slane %v5675_v8, %v24075_v23 }
 0x664   :  { %7957 = vmatpush1.msra.mxu1 %v7956_v29 }
 0x665   :  { %8136 = vmatprep.subr.mxu1 %v18432_v2  ;;  %v24076_v2 = vld [vmem:[#allocation27_spill] sm:$0xff]  ;;  %v5703_v7 = vmul.f32 %v5689_v10, %v5679_v28 }
 0x666   :  { %v5685_v3 = vrot.slane %v5675_v8, %v24076_v2  ;;  %v5710_v40 = vrot.slane %v5672_v16, %v24076_v2 }
 0x66e   :  { %v6373_v39 = vpop.f32.mrf.mxu1 }
 0x670   :  { %v6375_v25 = vpop.f32.mrf.mxu1 }
 0x677   :  { %v6267_v9 = vpop.f32.mrf.mxu0 }
 0x678   :  { %v6268_v57 = vadd.f32 %v6267_v9, %v6131_v47  ;;  %v5702_v9 = vmul.f32 %v5685_v3, %v5679_v28 }
 0x679   :  { %v6269_v42 = vpop.f32.mrf.mxu0 }
 0x67a   :  { %v6270_v63 = vadd.f32 %v6269_v42, %v6133_v50  ;;  %v6374_v12 = vadd.f32 %v6373_v39, %v6268_v57  ;;  %v5714_v50 = vrot.slane %v5672_v16, %v24075_v23  ;;  %v5727_v32 = vadd.f32 %v5710_v40, %v5702_v9 }
 0x67c   :  { %v6376_v38 = vadd.f32 %v6375_v25, %v6270_v63  ;;  %v5728_v25 = vadd.f32 %v5714_v50, %v5703_v7 }
 0x690   :  { %v6645_v49 = vpop.f32.mrf.mxu1 }
 0x692   :  { %v6647_v47 = vpop.f32.mrf.mxu1 }
 0x69c   :  { %v6541_v60 = vpop.f32.mrf.mxu0 }
 0x69d   :  { %v6542_v54 = vadd.f32 %v6541_v60, %v6374_v12  ;;  %v24077_v12 = vld [vmem:[#allocation29_spill] sm:$0xff] }
 0x69e   :  { %v6543_v29 = vpop.f32.mrf.mxu0  ;;  %v5693_v2 = vrot.slane %v5675_v8, %v24077_v12 }
 0x69f   :  { %v6544_v42 = vadd.f32 %v6543_v29, %v6376_v38  ;;  %v6646_v63 = vadd.f32 %v6645_v49, %v6542_v54  ;;  %v24078_v54 = vld [vmem:[#allocation28_spill] sm:$0xff] }
 0x6a0   :  { %v5697_v40 = vrot.slane %v5675_v8, %v24078_v54  ;;  %v5704_v7 = vmul.f32 %v5693_v2, %v5679_v28 }
 0x6a1   :  { %v6648_v52 = vadd.f32 %v6647_v47, %v6544_v42  ;;  %v7505_v4 = vadd.f32 %v6646_v63, %v5727_v32 }
 0x6a2   :  { %v5705_v47 = vmul.f32 %v5697_v40, %v5679_v28 }
 0x6a3   :  { %v7506_v15 = vadd.f32 %v6648_v52, %v5728_v25  ;;  %v13161_v14 = vmul.f32 -1.442695, %v7505_v4 }
 0x6a5   :  { %v13163_v26 = vmul.f32 -1.442695, %v7506_v15 }
 0x6a7   :  { %13245 = vpow2.f32 %v13163_v26 }
 0x6a8   :  { %13247 = vpow2.f32 %v13161_v14  ;;  %v5718_v14 = vrot.slane %v5672_v16, %v24077_v12  ;;  %v24110_v12 = vld [vmem:[#allocation18_spill] sm:$0xff] }
 0x6b2   :  { %v6985_v38 = vpop.f32.mrf.mxu1 }
 0x6b4   :  { %v6987_v60 = vpop.f32.mrf.mxu1  ;;  %v13246_v32 = vpop.eup %13245 }
 0x6b5   :  { %v13248_v4 = vpop.eup %13247  ;;  %v7525_v63 = vadd.f32 1.0, %v13246_v32  ;;  %v24079_v32 = vld [vmem:[#allocation30_spill] sm:$0xff] }
 0x6b7   :  { %13249 = vrcp.f32 %v7525_v63 }
 0x6bc   :  { %v6753_v1 = vpop.f32.mrf.mxu0 }
 0x6bd   :  { %v6986_v57 = vadd.f32 %v6985_v38, %v6753_v1  ;;  %v5722_v1 = vrot.slane %v5672_v16, %v24078_v54  ;;  %v24109_v54 = vld [vmem:[#allocation11_spill] sm:$0xff] }
 0x6be   :  { %v6755_v39 = vpop.f32.mrf.mxu0 }
 0x6bf   :  { %v6988_v42 = vadd.f32 %v6987_v60, %v6755_v39  ;;  %v7512_v39 = vadd.f32 1.0, %v13248_v4  ;;  %v5729_v60 = vadd.f32 %v5718_v14, %v5704_v7  ;;  %v5730_v2 = vadd.f32 %v5722_v1, %v5705_v47 }
 0x6c1   :  { %13251 = vrcp.f32 %v7512_v39  ;;  %v24086_v39 = vld [vmem:[#allocation20_spill] sm:$0xff] }
 0x6c4   :  { %v13250_v16 = vpop.eup %13249 }
 0x6ce   :  { %v13252_v28 = vpop.eup %13251 }
 0x6d5   :  { %v7228_v3 = vpop.f32.mrf.mxu1 }
 0x6d7   :  { %v7230_v15 = vpop.f32.mrf.mxu1 }
 0x6de   :  { %v7122_v10 = vpop.f32.mrf.mxu0 }
 0x6df   :  { %v7123_v49 = vadd.f32 %v7122_v10, %v6986_v57 }
 0x6e0   :  { %v7124_v29 = vpop.f32.mrf.mxu0 }
 0x6e1   :  { %v7125_v52 = vadd.f32 %v7124_v29, %v6988_v42  ;;  %v7229_v26 = vadd.f32 %v7228_v3, %v7123_v49 }
 0x6e3   :  { %v7231_v38 = vadd.f32 %v7230_v15, %v7125_v52  ;;  %v7528_v52 = vmul.f32 %v13250_v16, %v24079_v32  ;;  %v24096_v16 = vld [vmem:[#allocation39_spill] sm:$0xff]  ;;  %v24099_v32 = vld [vmem:[#allocation22_spill] sm:$0xff] }
 0x6f7   :  { %v7500_v50 = vpop.f32.mrf.mxu1 }
 0x6f9   :  { %v7502_v29 = vpop.f32.mrf.mxu1 }
 0x6ff   :  { %v7396_v9 = vpop.f32.mrf.mxu0 }
 0x700   :  { %v7397_v25 = vadd.f32 %v7396_v9, %v7229_v26 }
 0x701   :  { %v7398_v10 = vpop.f32.mrf.mxu0 }
 0x702   :  { %v7501_v8 = vadd.f32 %v7500_v50, %v7397_v25  ;;  %v7399_v57 = vadd.f32 %v7398_v10, %v7231_v38  ;;  %v24085_v38 = vld [vmem:[#allocation9_spill] sm:$0xff] }
 0x703   :  { %v24087_v10 = vld [vmem:[#allocation37_spill] sm:$0xff] }
 0x704   :  { %v7507_v42 = vadd.f32 %v7501_v8, %v5729_v60  ;;  %v7503_v23 = vadd.f32 %v7502_v29, %v7399_v57  ;;  %v24088_v60 = vld [vmem:[#allocation15_spill] sm:$0xff]  ;;  %v24090_v57 = vld [vmem:[#allocation25_spill] sm:$0xff] }
 0x705   :  { %v24089_v8 = vld [vmem:[#allocation35_spill] sm:$0xff] }
 0x706   :  { %13253 = vtanh.f32 %v7507_v42  ;;  %v7508_v3 = vadd.f32 %v7503_v23, %v5730_v2  ;;  %v24091_v29 = vld [vmem:[#allocation43_spill] sm:$0xff] }
 0x707   :  { %v24092_v42 = vld [vmem:[#allocation31_spill] sm:$0xff] }
 0x708   :  { %v13162_v49 = vmul.f32 -1.442695, %v7508_v3  ;;  %v24093_v2 = vld [vmem:[#allocation19_spill] sm:$0xff]  ;;  %v24094_v3 = vld [vmem:[#allocation36_spill] sm:$0xff] }
 0x70a   :  { %13255 = vpow2.f32 %v13162_v49  ;;  %v24095_v49 = vld [vmem:[#allocation8_spill] sm:$0xff] }
 0x713   :  { %v13254_v40 = vpop.eup %13253 }
 0x714   :  { %v7529_v15 = vmul.f32 %v13254_v40, %v13252_v28  ;;  %v24097_v28 = vld [vmem:[#allocation40_spill] sm:$0xff]  ;;  %v24098_v40 = vld [vmem:[#allocation10_spill] sm:$0xff] }
 0x716   :  { %v18862_v4 = vadd.f32 %v7529_v15, %v7528_v52  ;;  %v24100_v52 = vld [vmem:[#allocation7_spill] sm:$0xff]  ;;  %v24101_v15 = vld [vmem:[#allocation32_spill] sm:$0xff] }
 0x717   :  { %v13256_v7 = vpop.eup %13255 }
 0x718   :  { %24080 = vst [vmem:[#allocation5_spill] sm:$0xff] %v18862_v4  ;;  %v7519_v14 = vadd.f32 1.0, %v13256_v7  ;;  %13257 = vtanh.f32 %v18862_v4  ;;  %v24102_v7 = vld [vmem:[#allocation16_spill] sm:$0xff]  ;;  %v24108_v4 = vld [vmem:[#allocation45_spill] sm:$0xff] }
 0x71a   :  { %13259 = vrcp.f32 %v7519_v14  ;;  %v24103_v14 = vld [vmem:[#allocation12_spill] sm:$0xff] }
 0x725   :  { %v13258_v26 = vpop.eup %13257 }
 0x727   :  { %v13260_v50 = vpop.eup %13259 }
 0x728   :  { %v7532_v9 = vmul.f32 %v13260_v50, %v13258_v26  ;;  %v24104_v26 = vld [vmem:[#allocation14_spill] sm:$0xff]  ;;  %v24105_v50 = vld [vmem:[#allocation17_spill] sm:$0xff] }
 0x72a   :  { %13164 = vst [vmem:[%s22223_s4 + $0x20] sm:$0xff] %v7532_v9  ;;  %v18868_v23 = vand.u32 4294901760, %v7532_v9 }
 0x72c   :  { %24081 = vst [vmem:[#allocation44_spill] sm:$0xff] %v18868_v23  ;;  %7992 = vmatmul.mubr.f32.vlgmr.msra.gmra.mxu1 %v18868_v23  ;;  %v18872_v1 = vsub.f32 %v7532_v9, %v18868_v23  ;;  %v24106_v9 = vld [vmem:[#allocation38_spill] sm:$0xff]  ;;  %v24112_v23 = vld [vmem:[#allocation21_spill] sm:$0xff] }
 0x72d   :  { %8138 = vmatpush1.msra.mxu1 %v18437_v59  ;;  %8231 = vmatprep.mubr.f32.mxu1 %v23244_v20 }
 0x72e   :  { %24082 = vst [vmem:[#allocation42_spill] sm:$0xff] %v18872_v1  ;;  %8140 = vmatprep.subr.mxu1 %v18445_v56  ;;  %v18878_v47 = vand.u32 4294901760, %v18872_v1 }
 0x72f   :  { %8142 = vmatpush1.msra.mxu1 %v18454_v41 }
 0x730   :  { %24083 = vst [vmem:[#allocation34_spill] sm:$0xff] %v18878_v47  ;;  %8144 = vmatprep.subr.mxu1 %v18464_v61  ;;  %v7758_v63 = vsub.f32 %v18872_v1, %v18878_v47 }
 0x731   :  { %8146 = vmatpush1.msra.mxu1 %v18474_v27 }
 0x732   :  { %8148 = vmatprep.subr.mxu1 %v18487_v48  ;;  %v18886_v25 = vand.u32 4294901760, %v7758_v63  ;;  %v24107_v63 = vld [vmem:[#allocation33_spill] sm:$0xff] }
 0x733   :  { %8150 = vmatpush1.msra.mxu1 %v18500_v6 }
 0x734   :  { %24084 = vst [vmem:[#allocation41_spill] sm:$0xff] %v18886_v25  ;;  %8152 = vmatprep.subr.mxu1 %v18532_v24  ;;  %7760 = vmatmul.mubr.f32.vlgmr.msra.gmra.mxu0 %v18886_v25  ;;  %v24111_v25 = vld [vmem:[#allocation13_spill] sm:$0xff] }
 0x735   :  { %8003 = vmatpush1.msra.mxu0 %v18452_v17  ;;  %8154 = vmatpush1.msra.mxu1 %v18541_v34 }
 0x736   :  { %8006 = vmatprep.subr.mxu0 %v18462_v45  ;;  %8156 = vmatprep.subr.mxu1 %v18552_v53 }
 0x737   :  { %8009 = vmatpush1.msra.mxu0 %v18472_v62  ;;  %8158 = vmatpush1.msra.mxu1 %v18564_v43 }
 0x738   :  { %8012 = vmatprep.subr.mxu0 %v18485_v58  ;;  %8160 = vmatprep.subr.mxu1 %v18574_v36 }
 0x739   :  { %8015 = vmatpush1.msra.mxu0 %v18498_v0  ;;  %8162 = vmatpush1.msra.mxu1 %v18584_v46 }
 0x73a   :  { %8018 = vmatprep.subr.mxu0 %v18511_v21  ;;  %8164 = vmatprep.subr.mxu1 %v18594_v18 }
 0x73b   :  { %8021 = vmatpush1.msra.mxu0 %v18522_v55  ;;  %8166 = vmatpush1.msra.mxu1 %v18604_v44 }
 0x73c   :  { %8024 = vmatprep.subr.mxu0 %v18550_v31  ;;  %8168 = vmatprep.subr.mxu1 %v18636_v5 }
 0x73d   :  { %8027 = vmatpush1.msra.mxu0 %v18562_v19  ;;  %8170 = vmatpush1.msra.mxu1 %v18645_v22 }
 0x73e   :  { %8030 = vmatprep.subr.mxu0 %v18572_v35  ;;  %8172 = vmatprep.subr.mxu1 %v18656_v51 }
 0x73f   :  { %8033 = vmatpush1.msra.mxu0 %v18582_v37  ;;  %8174 = vmatpush1.msra.mxu1 %v18668_v11 }
 0x740   :  { %8036 = vmatprep.subr.mxu0 %v18592_v33  ;;  %8176 = vmatprep.subr.mxu1 %v18675_v30 }
 0x741   :  { %8039 = vmatpush1.msra.mxu0 %v18602_v13  ;;  %8178 = vmatpush1.msra.mxu1 %v24085_v38 }
 0x742   :  { %8042 = vmatprep.subr.mxu0 %v24086_v39  ;;  %8180 = vmatprep.subr.mxu1 %v24087_v10 }
 0x743   :  { %8045 = vmatpush1.msra.mxu0 %v24088_v60  ;;  %8182 = vmatpush1.msra.mxu1 %v24089_v8 }
 0x744   :  { %8048 = vmatprep.subr.mxu0 %v24090_v57  ;;  %8184 = vmatprep.subr.mxu1 %v24091_v29 }
 0x745   :  { %8051 = vmatpush1.msra.mxu0 %v24092_v42  ;;  %8186 = vmatpush1.msra.mxu1 %v24093_v2 }
 0x746   :  { %8054 = vmatprep.subr.mxu0 %v24094_v3  ;;  %8188 = vmatprep.subr.mxu1 %v24095_v49 }
 0x747   :  { %8057 = vmatpush1.msra.mxu0 %v24096_v16  ;;  %8190 = vmatpush1.msra.mxu1 %v24097_v28 }
 0x748   :  { %8060 = vmatprep.subr.mxu0 %v24098_v40  ;;  %8192 = vmatprep.subr.mxu1 %v24099_v32 }
 0x749   :  { %8063 = vmatpush1.msra.mxu0 %v24100_v52  ;;  %8194 = vmatpush1.msra.mxu1 %v24101_v15 }
 0x74a   :  { %8066 = vmatprep.subr.mxu0 %v24102_v7  ;;  %8196 = vmatprep.subr.mxu1 %v24103_v14 }
 0x74b   :  { %8069 = vmatpush1.msra.mxu0 %v24104_v26  ;;  %8198 = vmatpush1.msra.mxu1 %v24105_v50 }
 0x74c   :  { %8072 = vmatprep.subr.mxu0 %v24106_v9  ;;  %8235 = vmatmul.mubr.f32.vlgmr.msra.gmra.mxu1 %v18878_v47 }
 0x74d   :  { %8410 = vmatprep.subr.mxu1 %v24107_v63  ;;  %8075 = vmatpush1.msra.mxu0 %v24108_v4  ;;  %v24113_v63 = vld [vmem:[#allocation23_spill] sm:$0xff] }
 0x74e   :  { %8412 = vmatpush1.msra.mxu1 %v18437_v59  ;;  %8078 = vmatprep.subr.mxu0 %v24109_v54  ;;  %v24114_v59 = vld [vmem:[#allocation6_spill] sm:$0xff] }
 0x74f   :  { %8414 = vmatprep.subr.mxu1 %v18445_v56  ;;  %8081 = vmatpush1.msra.mxu0 %v24110_v12  ;;  %v7657_v56 = vld [vmem:[%s22222_s3 + $0x1f8] sm:$0xff] }
 0x750   :  { %8416 = vmatpush1.msra.mxu1 %v18454_v41  ;;  %8084 = vmatprep.subr.mxu0 %v24111_v25  ;;  %v24115_v41 = vld [vmem:[#allocation24_spill] sm:$0xff]  ;;  %v18970_v47 = vand.u32 4294901760, %v7657_v56 }
 0x751   :  { %8418 = vmatprep.subr.mxu1 %v18464_v61  ;;  %8087 = vmatpush1.msra.mxu0 %v24112_v23  ;;  %v24116_v61 = vand.u32 4294901760, %v24115_v41  ;;  %v7653_v41 = vld [vmem:[%s22222_s3 + $0x1d8] sm:$0xff] }
 0x752   :  { %8420 = vmatpush1.msra.mxu1 %v18474_v27  ;;  %8090 = vmatprep.subr.mxu0 %v24113_v63  ;;  %v24117_v27 = vand.u32 4294901760, %v18452_v17  ;;  %v24119_v17 = vand.u32 4294901760, %v18472_v62  ;;  %v24121_v62 = vand.u32 4294901760, %v18498_v0  ;;  %v7645_v0 = vld [vmem:[%s22222_s3 + $0x198] sm:$0xff] }
 0x753   :  { %8422 = vmatprep.subr.mxu1 %v18487_v48  ;;  %8093 = vmatpush1.msra.mxu0 %v24114_v59  ;;  %v7656_v48 = vld [vmem:[%s22222_s3 + $0x1f0] sm:$0xff] }
 0x754   :  { %8126 = vmatprep.mubr.f32.mxu0 %v23244_v20  ;;  %8424 = vmatpush1.msra.mxu1 %v18500_v6  ;;  %v24118_v6 = vand.u32 4294901760, %v18462_v45  ;;  %v24120_v45 = vand.u32 4294901760, %v18485_v58  ;;  %v24122_v58 = vand.u32 4294901760, %v18511_v21  ;;  %v7644_v21 = vld [vmem:[%s22222_s3 + $0x190] sm:$0xff] }
 0x755   :  { %8129 = vmatmul.mubr.f32.vlgmr.msra.gmra.mxu0 %v18872_v1  ;;  %8244 = vmatprep.subr.mxu0 %v24116_v61  ;;  %v7649_v61 = vld [vmem:[%s22222_s3 + $0x1b8] sm:$0xff] }
 0x756   :  { %8426 = vmatprep.subr.mxu1 %v18532_v24  ;;  %8248 = vmatpush1.msra.mxu0 %v24117_v27  ;;  %v7652_v24 = vld [vmem:[%s22222_s3 + $0x1d0] sm:$0xff]  ;;  %v19001_v27 = vsub.f32 %v7657_v56, %v18970_v47 }
 0x757   :  { %8428 = vmatpush1.msra.mxu1 %v18541_v34  ;;  %8252 = vmatprep.subr.mxu0 %v24118_v6  ;;  %v18984_v34 = vand.u32 4294901760, %v7656_v48  ;;  %v19003_v6 = vand.u32 4294901760, %v7652_v24 }
 0x758   :  { %8430 = vmatprep.subr.mxu1 %v18552_v53  ;;  %8256 = vmatpush1.msra.mxu0 %v24119_v17  ;;  %v18992_v53 = vand.u32 4294901760, %v7653_v41  ;;  %v19011_v17 = vand.u32 4294901760, %v7649_v61 }
 0x759   :  { %8432 = vmatpush1.msra.mxu1 %v18564_v43  ;;  %8260 = vmatprep.subr.mxu0 %v24120_v45  ;;  %v7648_v43 = vld [vmem:[%s22222_s3 + $0x1b0] sm:$0xff]  ;;  %v19020_v56 = vsub.f32 %v7656_v48, %v18984_v34  ;;  %v24128_v48 = vand.u32 4294901760, %v18572_v35 }
 0x75a   :  { %8434 = vmatprep.subr.mxu1 %v18574_v36  ;;  %8264 = vmatpush1.msra.mxu0 %v24121_v62  ;;  %v24123_v36 = vand.u32 4294901760, %v18522_v55  ;;  %v19022_v45 = vand.u32 4294901760, %v7648_v43  ;;  %v7641_v55 = vld [vmem:[%s22222_s3 + $0x178] sm:$0xff]  ;;  %v19031_v62 = vsub.f32 %v7653_v41, %v18992_v53 }
 0x75b   :  { %8436 = vmatpush1.msra.mxu1 %v18584_v46  ;;  %8268 = vmatprep.subr.mxu0 %v24122_v58  ;;  %v24124_v46 = vand.u32 4294901760, %v18550_v31  ;;  %24125 = vst [vmem:[#allocation30_spill] sm:$0xff] %v19020_v56  ;;  %v7640_v31 = vld [vmem:[%s22222_s3 + $0x170] sm:$0xff]  ;;  %v22883_v58 = vand.u32 4294901760, %v19001_v27  ;;  %v7637_v41 = vld [vmem:[%s22222_s3 + $0x158] sm:$0xff]  ;;  %v19056_v35 = vand.u32 4294901760, %v7641_v55 }
 0x75c   :  { %8438 = vmatprep.subr.mxu1 %v18594_v18  ;;  %8272 = vmatpush1.msra.mxu0 %v24123_v36  ;;  %v24126_v18 = vand.u32 4294901760, %v18562_v19  ;;  %24127 = vst [vmem:[#allocation9_spill] sm:$0xff] %v19031_v62  ;;  %v19045_v19 = vand.u32 4294901760, %v7644_v21  ;;  %v24130_v36 = vand.u32 4294901760, %v18582_v37  ;;  %v19068_v37 = vand.u32 4294901760, %v7640_v31 }
 0x75d   :  { %8440 = vmatpush1.msra.mxu1 %v18604_v44  ;;  %8276 = vmatprep.subr.mxu0 %v24124_v46  ;;  %v19033_v44 = vand.u32 4294901760, %v7645_v0  ;;  %v24132_v46 = vand.u32 4294901760, %v18592_v33 }
 0x75e   :  { %8442 = vmatprep.subr.mxu1 %v18636_v5  ;;  %8280 = vmatpush1.msra.mxu0 %v24126_v18  ;;  %v19043_v5 = vsub.f32 %v7652_v24, %v19003_v6  ;;  %v7636_v24 = vld [vmem:[%s22222_s3 + $0x150] sm:$0xff]  ;;  %v22884_v18 = vand.u32 4294901760, %v19020_v56 }
 0x75f   :  { %8444 = vmatpush1.msra.mxu1 %v18645_v22  ;;  %8284 = vmatprep.subr.mxu0 %v24128_v48  ;;  %v19054_v22 = vsub.f32 %v7649_v61, %v19011_v17  ;;  %v7633_v61 = vld [vmem:[%s22222_s3 + $0x138] sm:$0xff]  ;;  %v24134_v48 = vand.u32 4294901760, %v18602_v13  ;;  %v19078_v33 = vsub.f32 %v7645_v0, %v19033_v44  ;;  %v19091_v13 = vsub.f32 %v19001_v27, %v22883_v58 }
 0x760   :  { %24129 = vst [vmem:[#allocation20_spill] sm:$0xff] %v19043_v5  ;;  %8446 = vmatprep.subr.mxu1 %v18656_v51  ;;  %8288 = vmatpush1.msra.mxu0 %v24130_v36  ;;  %v19066_v51 = vsub.f32 %v7648_v43, %v19022_v45  ;;  %v19080_v36 = vand.u32 4294901760, %v7637_v41  ;;  %v7632_v43 = vld [vmem:[%s22222_s3 + $0x130] sm:$0xff]  ;;  %v19095_v0 = vsub.f32 %v7644_v21, %v19045_v19  ;;  %v19109_v58 = vand.u32 4294901760, %v7633_v61 }
 0x761   :  { %24131 = vst [vmem:[#allocation37_spill] sm:$0xff] %v19054_v22  ;;  %8448 = vmatpush1.msra.mxu1 %v18668_v11  ;;  %8292 = vmatprep.subr.mxu0 %v24132_v46  ;;  %24135 = vst [vmem:[#allocation35_spill] sm:$0xff] %v19078_v33  ;;  %v24136_v46 = vand.u32 4294901760, %v24086_v39  ;;  %v7629_v11 = vld [vmem:[%s22222_s3 + $0x118] sm:$0xff]  ;;  %v24140_v21 = vand.u32 4294901760, %v24090_v57  ;;  %v24143_v57 = vand.u32 4294901760, %v19031_v62 }
 0x762   :  { %24133 = vst [vmem:[#allocation15_spill] sm:$0xff] %v19066_v51  ;;  %8450 = vmatprep.subr.mxu1 %v18675_v30  ;;  %8296 = vmatpush1.msra.mxu0 %v24134_v48  ;;  %24137 = vst [vmem:[#allocation25_spill] sm:$0xff] %v19095_v0  ;;  %v19097_v48 = vand.u32 4294901760, %v7636_v24  ;;  %v19117_v30 = vsub.f32 %v19020_v56, %v22884_v18  ;;  %v24145_v39 = vand.u32 4294901760, %v24094_v3 }
 0x763   :  { %8452 = vmatpush1.msra.mxu1 %v24085_v38  ;;  %8300 = vmatprep.subr.mxu0 %v24136_v46  ;;  %v24138_v38 = vand.u32 4294901760, %v24088_v60  ;;  %v19107_v46 = vsub.f32 %v7641_v55, %v19056_v35  ;;  %v19121_v60 = vsub.f32 %v7640_v31, %v19068_v37  ;;  %v7628_v55 = vld [vmem:[%s22222_s3 + $0x110] sm:$0xff]  ;;  %v19138_v31 = vsub.f32 %v7637_v41, %v19080_v36 }
 0x764   :  { %8454 = vmatprep.subr.mxu1 %v24087_v10  ;;  %v19140_v10 = vand.u32 4294901760, %v7629_v11  ;;  %v19153_v18 = vsub.f32 %v7636_v24, %v19097_v48  ;;  %v24148_v41 = vand.u32 4294901760, %v24096_v16  ;;  %v7625_v24 = vld [vmem:[%s22222_s3 + $0xf8] sm:$0xff]  ;;  %v8631_v16 = vand.u32 4294901760, %v19117_v30  ;;  %8505 = vmatprep.mubr.f32.mxu1 %v23244_v20 }
 0x765   :  { %8304 = vmatpush1.msra.mxu0 %v24138_v38  ;;  %24139 = vst [vmem:[#allocation43_spill] sm:$0xff] %v19107_v46  ;;  %8456 = vmatpush1.msra.mxu1 %v24089_v8  ;;  %24141 = vst [vmem:[#allocation31_spill] sm:$0xff] %v19121_v60  ;;  %v19123_v38 = vand.u32 4294901760, %v7632_v43  ;;  %v24142_v8 = vand.u32 4294901760, %v24092_v42  ;;  %v24146_v42 = vand.u32 4294901760, %v19043_v5  ;;  %v24165_v1 = vand.u32 4294901760, %v19138_v31 }
 0x766   :  { %8308 = vmatprep.subr.mxu0 %v24140_v21  ;;  %8458 = vmatprep.subr.mxu1 %v24091_v29  ;;  %v19134_v21 = vsub.f32 %v19031_v62, %v24143_v57  ;;  %24144 = vst [vmem:[#allocation19_spill] sm:$0xff] %v19138_v31  ;;  %v8625_v29 = vand.u32 4294901760, %v19091_v13  ;;  %24147 = vst [vmem:[#allocation36_spill] sm:$0xff] %v19153_v18  ;;  %v24154_v57 = vand.u32 4294901760, %v24100_v52 }
 0x767   :  { %8312 = vmatpush1.msra.mxu0 %v24142_v8  ;;  %8460 = vmatpush1.msra.mxu1 %v24093_v2  ;;  %v19149_v8 = vsub.f32 %v19043_v5, %v24146_v42  ;;  %v24149_v2 = vand.u32 4294901760, %v19054_v22  ;;  %v19167_v42 = vand.u32 4294901760, %v7628_v55  ;;  %v19183_v13 = vsub.f32 %v7632_v43, %v19123_v38  ;;  %v7624_v43 = vld [vmem:[%s22222_s3 + $0xf0] sm:$0xff] }
 0x768   :  { %8316 = vmatprep.subr.mxu0 %v24145_v39  ;;  %8462 = vmatprep.subr.mxu1 %v24095_v49  ;;  %v19165_v39 = vsub.f32 %v7633_v61, %v19109_v58  ;;  %v24151_v49 = vand.u32 4294901760, %v24098_v40  ;;  %v24155_v40 = vand.u32 4294901760, %v19078_v33  ;;  %v7620_v61 = vld [vmem:[%s22222_s3 + $0xd0] sm:$0xff] }
 0x769   :  { %8320 = vmatpush1.msra.mxu0 %v24148_v41  ;;  %v19161_v3 = vsub.f32 %v19054_v22, %v24149_v2  ;;  %8464 = vmatpush1.msra.mxu1 %v24097_v28  ;;  %v24152_v41 = vand.u32 4294901760, %v19066_v51  ;;  %24153 = vst [vmem:[#allocation39_spill] sm:$0xff] %v19183_v13  ;;  %v8637_v28 = vand.u32 4294901760, %v19134_v21  ;;  %v8643_v52 = vand.u32 4294901760, %v19149_v8 }
 0x76a   :  { %24150 = vst [vmem:[#allocation8_spill] sm:$0xff] %v19165_v39  ;;  %8324 = vmatprep.subr.mxu0 %v24151_v49  ;;  %8466 = vmatprep.subr.mxu1 %v24099_v32  ;;  %v19192_v30 = vsub.f32 %v19078_v33, %v24155_v40  ;;  %v24157_v32 = vand.u32 4294901760, %v24102_v7  ;;  %v24158_v21 = vand.u32 4294901760, %v19095_v0  ;;  %v7621_v49 = vld [vmem:[%s22222_s3 + $0xd8] sm:$0xff]  ;;  %v24160_v8 = vand.u32 4294901760, %v19107_v46 }
 0x76b   :  { %v19179_v2 = vsub.f32 %v19066_v51, %v24152_v41  ;;  %8328 = vmatpush1.msra.mxu0 %v24154_v57  ;;  %v19196_v41 = vsub.f32 %v7629_v11, %v19140_v10  ;;  %8468 = vmatpush1.msra.mxu1 %v24101_v15  ;;  %v19211_v11 = vand.u32 4294901760, %v7625_v24  ;;  %v24159_v15 = vand.u32 4294901760, %v24104_v26 }
 0x76c   :  { %8332 = vmatprep.subr.mxu0 %v24157_v32  ;;  %v19208_v57 = vsub.f32 %v19095_v0, %v24158_v21  ;;  %8470 = vmatprep.subr.mxu1 %v24103_v14  ;;  %v8649_v7 = vand.u32 4294901760, %v19161_v3  ;;  %v19223_v32 = vsub.f32 %v19107_v46, %v24160_v8  ;;  %v19227_v40 = vsub.f32 %v7628_v55, %v19167_v42  ;;  %v7617_v55 = vld [vmem:[%s22222_s3 + $0xb8] sm:$0xff]  ;;  %v7616_v46 = vld [vmem:[%s22222_s3 + $0xb0] sm:$0xff] }
 0x76d   :  { %24156 = vst [vmem:[#allocation40_spill] sm:$0xff] %v19196_v41  ;;  %8336 = vmatpush1.msra.mxu0 %v24159_v15  ;;  %8472 = vmatpush1.msra.mxu1 %v24105_v50  ;;  %v8655_v14 = vand.u32 4294901760, %v19179_v2  ;;  %v24162_v26 = vand.u32 4294901760, %v19121_v60  ;;  %v19241_v8 = vand.u32 4294901760, %v7624_v43  ;;  %v24163_v21 = vand.u32 4294901760, %v24106_v9  ;;  %v24164_v50 = vld [vmem:[#allocation44_spill] sm:$0xff] }
 0x76e   :  { %24161 = vst [vmem:[#allocation10_spill] sm:$0xff] %v19227_v40  ;;  %8507 = vmatmul.mubr.f32.vlgmr.msra.gmra.mxu1 %v24164_v50  ;;  %v8661_v2 = vand.u32 4294901760, %v19192_v30  ;;  %8626 = vmatprep.subr.mxu1 %v8625_v29  ;;  %v24166_v9 = vand.u32 4294901760, %v24108_v4  ;;  %v24167_v30 = vand.u32 4294901760, %v19153_v18  ;;  %v19272_v15 = vand.u32 4294901760, %v7620_v61 }
 0x76f   :  { %v19238_v3 = vsub.f32 %v19121_v60, %v24162_v26  ;;  %8340 = vmatprep.subr.mxu0 %v24163_v21  ;;  %v19253_v26 = vsub.f32 %v19138_v31, %v24165_v1  ;;  %v19256_v60 = vand.u32 4294901760, %v7621_v49  ;;  %v8667_v21 = vand.u32 4294901760, %v19208_v57  ;;  %v7613_v31 = vld [vmem:[%s22222_s3 + $0x98] sm:$0xff]  ;;  %8632 = vmatpush1.msra.mxu1 %v8631_v16 }
 0x770   :  { %8344 = vmatpush1.msra.mxu0 %v24166_v9  ;;  %v19267_v0 = vsub.f32 %v19153_v18, %v24167_v30  ;;  %v19270_v1 = vsub.f32 %v7625_v24, %v19211_v11  ;;  %v24169_v4 = vand.u32 4294901760, %v24109_v54  ;;  %v8673_v29 = vand.u32 4294901760, %v19223_v32  ;;  %v7612_v18 = vld [vmem:[%s22222_s3 + $0x90] sm:$0xff]  ;;  %8638 = vmatprep.subr.mxu1 %v8637_v28 }
 0x771   :  { %v24170_v57 = vand.u32 4294901760, %v19165_v39  ;;  %v19286_v30 = vand.u32 4294901760, %v7617_v55  ;;  %v24172_v16 = vand.u32 4294901760, %v24110_v12  ;;  %v8679_v54 = vand.u32 4294901760, %v19238_v3  ;;  %8644 = vmatpush1.msra.mxu1 %v8643_v52  ;;  %8401 = vmatprep.mubr.f32.mxu0 %v23244_v20 }
 0x772   :  { %24168 = vst [vmem:[#allocation22_spill] sm:$0xff] %v19270_v1  ;;  %8348 = vmatprep.subr.mxu0 %v24169_v4  ;;  %v24173_v32 = vand.u32 4294901760, %v19183_v13  ;;  %v19302_v24 = vand.u32 4294901760, %v7616_v46  ;;  %v24175_v12 = vand.u32 4294901760, %v24111_v25  ;;  %v8685_v28 = vand.u32 4294901760, %v19253_v26  ;;  %8650 = vmatprep.subr.mxu1 %v8649_v7  ;;  %v7604_v26 = vld [vmem:[%s22222_s3 + $0x50] sm:$0xff] }
 0x773   :  { %v19283_v9 = vsub.f32 %v19165_v39, %v24170_v57  ;;  %24171 = vst [vmem:[#allocation7_spill] sm:$0xff] %v19286_v30  ;;  %8352 = vmatpush1.msra.mxu0 %v24172_v16  ;;  %v19300_v57 = vsub.f32 %v7624_v43, %v19241_v8  ;;  %v7609_v39 = vld [vmem:[%s22222_s3 + $0x78] sm:$0xff]  ;;  %v24176_v3 = vand.u32 4294901760, %v19196_v41  ;;  %v19316_v43 = vsub.f32 %v7621_v49, %v19256_v60 }
 0x774   :  { %v19297_v4 = vsub.f32 %v19183_v13, %v24173_v32  ;;  %8356 = vmatprep.subr.mxu0 %v24175_v12  ;;  %v19318_v32 = vand.u32 4294901760, %v7613_v31  ;;  %v7608_v13 = vld [vmem:[%s22222_s3 + $0x70] sm:$0xff]  ;;  %v24178_v25 = vand.u32 4294901760, %v24112_v23  ;;  %v8691_v52 = vand.u32 4294901760, %v19267_v0  ;;  %v7605_v49 = vld [vmem:[%s22222_s3 + $0x58] sm:$0xff]  ;;  %8656 = vmatpush1.msra.mxu1 %v8655_v14 }
 0x775   :  { %24174 = vst [vmem:[#allocation32_spill] sm:$0xff] %v19300_v57  ;;  %v19313_v16 = vsub.f32 %v19196_v41, %v24176_v3  ;;  %24177 = vst [vmem:[#allocation16_spill] sm:$0xff] %v19316_v43  ;;  %v19328_v12 = vsub.f32 %v7620_v61, %v19272_v15  ;;  %v19330_v3 = vand.u32 4294901760, %v7612_v18  ;;  %v24179_v41 = vand.u32 4294901760, %v24113_v63  ;;  %8662 = vmatprep.subr.mxu1 %v8661_v2 }
 0x776   :  { %8360 = vmatpush1.msra.mxu0 %v24178_v25  ;;  %v8697_v23 = vand.u32 4294901760, %v19283_v9  ;;  %v24180_v7 = vand.u32 4294901760, %v19227_v40  ;;  %v19344_v61 = vsub.f32 %v7617_v55, %v19286_v30  ;;  %v19346_v25 = vand.u32 4294901760, %v7609_v39  ;;  %v7601_v55 = vld [vmem:[%s22222_s3 + $0x38] sm:$0xff]  ;;  %8668 = vmatpush1.msra.mxu1 %v8667_v21 }
 0x777   :  { %8364 = vmatprep.subr.mxu0 %v24179_v41  ;;  %v24181_v63 = vand.u32 4294901760, %v24114_v59  ;;  %v8703_v41 = vand.u32 4294901760, %v19297_v4  ;;  %v19356_v9 = vsub.f32 %v7616_v46, %v19302_v24  ;;  %v8709_v2 = vand.u32 4294901760, %v19313_v16  ;;  %v7600_v46 = vld [vmem:[%s22222_s3 + $0x30] sm:$0xff]  ;;  %8674 = vmatprep.subr.mxu1 %v8673_v29 }
 0x778   :  { %v19341_v0 = vsub.f32 %v19227_v40, %v24180_v7  ;;  %v19358_v7 = vand.u32 4294901760, %v7608_v13  ;;  %v19367_v4 = vsub.f32 %v7613_v31, %v19318_v32  ;;  %v24182_v14 = vand.u32 4294901760, %v19270_v1  ;;  %v7597_v40 = vld [vmem:[%s22222_s3 + $0x18] sm:$0xff]  ;;  %8680 = vmatpush1.msra.mxu1 %v8679_v54  ;;  %8845 = vmatprep.mubr.f32.mxu1 %v23244_v20 }
 0x779   :  { %8368 = vmatpush1.msra.mxu0 %v24181_v63  ;;  %v19369_v63 = vand.u32 4294901760, %v7605_v49  ;;  %v19381_v59 = vsub.f32 %v7612_v18, %v19330_v3  ;;  %v19383_v31 = vand.u32 4294901760, %v7604_v26  ;;  %v19394_v16 = vand.u32 4294901760, %v7601_v55  ;;  %v7596_v18 = vld [vmem:[%s22222_s3 + $0x10] sm:$0xff]  ;;  %8686 = vmatprep.subr.mxu1 %v8685_v28 }
 0x77a   :  { %8403 = vmatmul.mubr.f32.vlgmr.msra.gmra.mxu0 %v24164_v50  ;;  %8514 = vmatprep.subr.mxu0 %v18970_v47  ;;  %v8720_v21 = vsub.f32 %v19270_v1, %v24182_v14  ;;  %v8715_v33 = vand.u32 4294901760, %v19341_v0  ;;  %v19392_v14 = vsub.f32 %v7609_v39, %v19346_v25  ;;  %v24184_v29 = vand.u32 4294901760, %v19300_v57 }
 0x77b   :  { %24183 = vst [vmem:[#allocation12_spill] sm:$0xff] %v19383_v31  ;;  %8516 = vmatpush1.msra.mxu0 %v18984_v34  ;;  %v19405_v51 = vsub.f32 %v7608_v13, %v19358_v7  ;;  %v19407_v39 = vand.u32 4294901760, %v7600_v46  ;;  %v24185_v22 = vand.u32 4294901760, %v19316_v43  ;;  %v19415_v62 = vsub.f32 %v7605_v49, %v19369_v63  ;;  %8692 = vmatpush1.msra.mxu1 %v8691_v52 }
 0x77c   :  { %8518 = vmatprep.subr.mxu0 %v18992_v53  ;;  %v8726_v1 = vsub.f32 %v19300_v57, %v24184_v29  ;;  %v19417_v29 = vand.u32 4294901760, %v7597_v40  ;;  %v24186_v13 = vand.u32 4294901760, %v19328_v12  ;;  %v19425_v57 = vsub.f32 %v7604_v26, %v19383_v31  ;;  %8698 = vmatprep.subr.mxu1 %v8697_v23 }
 0x77d   :  { %8520 = vmatpush1.msra.mxu0 %v19003_v6  ;;  %v8732_v54 = vsub.f32 %v19316_v43, %v24185_v22  ;;  %v19427_v22 = vand.u32 4294901760, %v7596_v18  ;;  %v8721_v49 = vand.u32 4294901760, %v8720_v21  ;;  %v24187_v5 = vand.u32 4294901760, %v19344_v61  ;;  %8704 = vmatpush1.msra.mxu1 %v8703_v41 }
 0x77e   :  { %8522 = vmatprep.subr.mxu0 %v19011_v17  ;;  %v8738_v28 = vsub.f32 %v19328_v12, %v24186_v13  ;;  %v19435_v56 = vsub.f32 %v7601_v55, %v19394_v16  ;;  %v8727_v26 = vand.u32 4294901760, %v8726_v1  ;;  %v24188_v13 = vand.u32 4294901760, %v19356_v9  ;;  %8710 = vmatprep.subr.mxu1 %v8709_v2 }
 0x77f   :  { %8524 = vmatpush1.msra.mxu0 %v19022_v45  ;;  %v8744_v52 = vsub.f32 %v19344_v61, %v24187_v5  ;;  %v19443_v21 = vsub.f32 %v7600_v46, %v19407_v39  ;;  %v8733_v5 = vand.u32 4294901760, %v8732_v54  ;;  %v24189_v55 = vand.u32 4294901760, %v19367_v4  ;;  %8716 = vmatpush1.msra.mxu1 %v8715_v33 }
 0x780   :  { %8526 = vmatprep.subr.mxu0 %v19033_v44  ;;  %v8750_v23 = vsub.f32 %v19356_v9, %v24188_v13  ;;  %v19451_v1 = vsub.f32 %v7597_v40, %v19417_v29  ;;  %v8739_v13 = vand.u32 4294901760, %v8738_v28  ;;  %v24190_v46 = vand.u32 4294901760, %v19381_v59  ;;  %8722 = vmatprep.subr.mxu1 %v8721_v49 }
 0x781   :  { %8528 = vmatpush1.msra.mxu0 %v19045_v19  ;;  %v8756_v41 = vsub.f32 %v19367_v4, %v24189_v55  ;;  %v19459_v54 = vsub.f32 %v7596_v18, %v19427_v22  ;;  %v8745_v55 = vand.u32 4294901760, %v8744_v52  ;;  %v24191_v40 = vand.u32 4294901760, %v19392_v14  ;;  %8728 = vmatpush1.msra.mxu1 %v8727_v26 }
 0x782   :  { %8530 = vmatprep.subr.mxu0 %v19056_v35  ;;  %v8762_v2 = vsub.f32 %v19381_v59, %v24190_v46  ;;  %v8751_v28 = vand.u32 4294901760, %v8750_v23  ;;  %v24192_v46 = vand.u32 4294901760, %v19405_v51  ;;  %8734 = vmatprep.subr.mxu1 %v8733_v5  ;;  %v24193_v52 = vand.u32 4294901760, %v19415_v62 }
 0x783   :  { %8532 = vmatpush1.msra.mxu0 %v19068_v37  ;;  %v8768_v33 = vsub.f32 %v19392_v14, %v24191_v40  ;;  %v8757_v49 = vand.u32 4294901760, %v8756_v41  ;;  %8740 = vmatpush1.msra.mxu1 %v8739_v13  ;;  %v24194_v23 = vand.u32 4294901760, %v19425_v57  ;;  %v22922_v18 = vand.u32 4294901760, %v19459_v54 }
 0x784   :  { %8534 = vmatprep.subr.mxu0 %v19080_v36  ;;  %v8774_v0 = vsub.f32 %v19405_v51, %v24192_v46  ;;  %v8780_v40 = vsub.f32 %v19415_v62, %v24193_v52  ;;  %v8763_v26 = vand.u32 4294901760, %v8762_v2  ;;  %8746 = vmatprep.subr.mxu1 %v8745_v55  ;;  %v24195_v41 = vand.u32 4294901760, %v19435_v56 }
 0x785   :  { %8536 = vmatpush1.msra.mxu0 %v19097_v48  ;;  %v8786_v46 = vsub.f32 %v19425_v57, %v24194_v23  ;;  %v8769_v5 = vand.u32 4294901760, %v8768_v33  ;;  %8752 = vmatpush1.msra.mxu1 %v8751_v28  ;;  %v24196_v2 = vand.u32 4294901760, %v19443_v21  ;;  %v24197_v55 = vand.u32 4294901760, %v19451_v1 }
 0x786   :  { %8538 = vmatprep.subr.mxu0 %v19109_v58  ;;  %v8792_v52 = vsub.f32 %v19435_v56, %v24195_v41  ;;  %v8775_v13 = vand.u32 4294901760, %v8774_v0  ;;  %8758 = vmatprep.subr.mxu1 %v8757_v49  ;;  %v8781_v23 = vand.u32 4294901760, %v8780_v40  ;;  %v8810_v0 = vsub.f32 %v19459_v54, %v22922_v18  ;;  %v24214_v18 = vld [vmem:[#allocation22_spill] sm:$0xff] }
 0x787   :  { %8540 = vmatpush1.msra.mxu0 %v19123_v38  ;;  %v8798_v43 = vsub.f32 %v19443_v21, %v24196_v2  ;;  %v8804_v33 = vsub.f32 %v19451_v1, %v24197_v55  ;;  %8764 = vmatpush1.msra.mxu1 %v8763_v26  ;;  %v8787_v41 = vand.u32 4294901760, %v8786_v46  ;;  %v24199_v46 = vld [vmem:[#allocation30_spill] sm:$0xff]  ;;  %v24203_v2 = vld [vmem:[#allocation15_spill] sm:$0xff]  ;;  %v24205_v55 = vld [vmem:[#allocation25_spill] sm:$0xff] }
 0x788   :  { %8542 = vmatprep.subr.mxu0 %v19140_v10  ;;  %8770 = vmatprep.subr.mxu1 %v8769_v5  ;;  %v8793_v28 = vand.u32 4294901760, %v8792_v52  ;;  %v8811_v26 = vand.u32 4294901760, %v8810_v0  ;;  %v24200_v5 = vld [vmem:[#allocation9_spill] sm:$0xff]  ;;  %v24201_v52 = vld [vmem:[#allocation20_spill] sm:$0xff]  ;;  %v24208_v0 = vld [vmem:[#allocation19_spill] sm:$0xff] }
 0x789   :  { %8544 = vmatpush1.msra.mxu0 %v19167_v42  ;;  %8776 = vmatpush1.msra.mxu1 %v8775_v13  ;;  %v8799_v49 = vand.u32 4294901760, %v8798_v43  ;;  %v8805_v40 = vand.u32 4294901760, %v8804_v33  ;;  %v24198_v43 = vld [vmem:[#allocation41_spill] sm:$0xff]  ;;  %v24206_v33 = vld [vmem:[#allocation43_spill] sm:$0xff] }
 0x78a   :  { %8546 = vmatprep.subr.mxu0 %v19211_v11  ;;  %8782 = vmatprep.subr.mxu1 %v8781_v23  ;;  %v24202_v13 = vld [vmem:[#allocation37_spill] sm:$0xff]  ;;  %v24204_v23 = vld [vmem:[#allocation35_spill] sm:$0xff] }
 0x78b   :  { %8548 = vmatpush1.msra.mxu0 %v19241_v8  ;;  %8788 = vmatpush1.msra.mxu1 %v8787_v41  ;;  %v24207_v41 = vld [vmem:[#allocation31_spill] sm:$0xff] }
 0x78c   :  { %8550 = vmatprep.subr.mxu0 %v19256_v60  ;;  %8794 = vmatprep.subr.mxu1 %v8793_v28  ;;  %v24209_v28 = vld [vmem:[#allocation36_spill] sm:$0xff] }
 0x78d   :  { %8552 = vmatpush1.msra.mxu0 %v19272_v15  ;;  %8800 = vmatpush1.msra.mxu1 %v8799_v49  ;;  %v24210_v49 = vld [vmem:[#allocation8_spill] sm:$0xff] }
 0x78e   :  { %8554 = vmatprep.subr.mxu0 %v19286_v30  ;;  %8806 = vmatprep.subr.mxu1 %v8805_v40  ;;  %v24211_v40 = vld [vmem:[#allocation39_spill] sm:$0xff] }
 0x78f   :  { %8556 = vmatpush1.msra.mxu0 %v19302_v24  ;;  %8812 = vmatpush1.msra.mxu1 %v8811_v26  ;;  %v24212_v26 = vld [vmem:[#allocation40_spill] sm:$0xff] }
 0x790   :  { %8558 = vmatprep.subr.mxu0 %v19318_v32  ;;  %8847 = vmatmul.mubr.f32.vlgmr.msra.gmra.mxu1 %v24164_v50  ;;  %v24215_v50 = vld [vmem:[#allocation32_spill] sm:$0xff] }
 0x791   :  { %8560 = vmatpush1.msra.mxu0 %v19330_v3  ;;  %8991 = vmatprep.subr.mxu1 %v18970_v47 }
 0x792   :  { %8562 = vmatprep.subr.mxu0 %v19346_v25  ;;  %8993 = vmatpush1.msra.mxu1 %v18984_v34 }
 0x793   :  { %8564 = vmatpush1.msra.mxu0 %v19358_v7  ;;  %8995 = vmatprep.subr.mxu1 %v18992_v53 }
 0x794   :  { %8566 = vmatprep.subr.mxu0 %v19369_v63  ;;  %8997 = vmatpush1.msra.mxu1 %v19003_v6 }
 0x795   :  { %8568 = vmatpush1.msra.mxu0 %v19383_v31  ;;  %8999 = vmatprep.subr.mxu1 %v19011_v17 }
 0x796   :  { %8570 = vmatprep.subr.mxu0 %v19394_v16  ;;  %9001 = vmatpush1.msra.mxu1 %v19022_v45 }
 0x797   :  { %8572 = vmatpush1.msra.mxu0 %v19407_v39  ;;  %9003 = vmatprep.subr.mxu1 %v19033_v44 }
 0x798   :  { %8574 = vmatprep.subr.mxu0 %v19417_v29  ;;  %8609 = vmatprep.mubr.f32.mxu0 %v23244_v20 }
 0x799   :  { %8576 = vmatpush1.msra.mxu0 %v19427_v22  ;;  %9005 = vmatpush1.msra.mxu1 %v19045_v19 }
 0x79a   :  { %8615 = vmatmul.mubr.f32.vlgmr.msra.gmra.mxu0 %v24198_v43  ;;  %8855 = vmatprep.subr.mxu0 %v19001_v27  ;;  %v24213_v43 = vld [vmem:[#allocation10_spill] sm:$0xff] }
 0x79b   :  { %9007 = vmatprep.subr.mxu1 %v19056_v35  ;;  %8858 = vmatpush1.msra.mxu0 %v24199_v46 }
 0x79c   :  { %9009 = vmatpush1.msra.mxu1 %v19068_v37  ;;  %8861 = vmatprep.subr.mxu0 %v24200_v5 }
 0x79d   :  { %9011 = vmatprep.subr.mxu1 %v19080_v36  ;;  %8864 = vmatpush1.msra.mxu0 %v24201_v52 }
 0x79e   :  { %9013 = vmatpush1.msra.mxu1 %v19097_v48  ;;  %8867 = vmatprep.subr.mxu0 %v24202_v13 }
 0x79f   :  { %9015 = vmatprep.subr.mxu1 %v19109_v58  ;;  %8870 = vmatpush1.msra.mxu0 %v24203_v2 }
 0x7a0   :  { %9017 = vmatpush1.msra.mxu1 %v19123_v38  ;;  %8873 = vmatprep.subr.mxu0 %v24204_v23 }
 0x7a1   :  { %9019 = vmatprep.subr.mxu1 %v19140_v10  ;;  %8876 = vmatpush1.msra.mxu0 %v24205_v55 }
 0x7a2   :  { %9021 = vmatpush1.msra.mxu1 %v19167_v42  ;;  %8879 = vmatprep.subr.mxu0 %v24206_v33 }
 0x7a3   :  { %9023 = vmatprep.subr.mxu1 %v19211_v11  ;;  %8882 = vmatpush1.msra.mxu0 %v24207_v41 }
 0x7a4   :  { %9025 = vmatpush1.msra.mxu1 %v19241_v8  ;;  %8885 = vmatprep.subr.mxu0 %v24208_v0 }
 0x7a5   :  { %9027 = vmatprep.subr.mxu1 %v19256_v60  ;;  %8888 = vmatpush1.msra.mxu0 %v24209_v28 }
 0x7a6   :  { %9029 = vmatpush1.msra.mxu1 %v19272_v15  ;;  %8891 = vmatprep.subr.mxu0 %v24210_v49 }
 0x7a7   :  { %9031 = vmatprep.subr.mxu1 %v19286_v30  ;;  %8894 = vmatpush1.msra.mxu0 %v24211_v40  ;;  %v24216_v30 = vld [vmem:[#allocation16_spill] sm:$0xff] }
 0x7a8   :  { %9033 = vmatpush1.msra.mxu1 %v19302_v24  ;;  %8897 = vmatprep.subr.mxu0 %v24212_v26 }
 0x7a9   :  { %9035 = vmatprep.subr.mxu1 %v19318_v32  ;;  %8900 = vmatpush1.msra.mxu0 %v24213_v43 }
 0x7aa   :  { %9037 = vmatpush1.msra.mxu1 %v19330_v3  ;;  %8903 = vmatprep.subr.mxu0 %v24214_v18 }
 0x7ab   :  { %9039 = vmatprep.subr.mxu1 %v19346_v25  ;;  %8906 = vmatpush1.msra.mxu0 %v24215_v50 }
 0x7ac   :  { %9041 = vmatpush1.msra.mxu1 %v19358_v7  ;;  %8909 = vmatprep.subr.mxu0 %v24216_v30 }
 0x7ad   :  { %9043 = vmatprep.subr.mxu1 %v19369_v63  ;;  %8912 = vmatpush1.msra.mxu0 %v19328_v12 }
 0x7ae   :  { %9045 = vmatpush1.msra.mxu1 %v19383_v31  ;;  %8915 = vmatprep.subr.mxu0 %v19344_v61  ;;  %v24217_v31 = vld [vmem:[#allocation34_spill] sm:$0xff] }
 0x7af   :  { %9047 = vmatprep.subr.mxu1 %v19394_v16  ;;  %8918 = vmatpush1.msra.mxu0 %v19356_v9 }
 0x7b0   :  { %9049 = vmatpush1.msra.mxu1 %v19407_v39  ;;  %8921 = vmatprep.subr.mxu0 %v19367_v4 }
 0x7b1   :  { %9051 = vmatprep.subr.mxu1 %v19417_v29  ;;  %8924 = vmatpush1.msra.mxu0 %v19381_v59 }
 0x7b2   :  { %9053 = vmatpush1.msra.mxu1 %v19427_v22  ;;  %9086 = vmatprep.mubr.f32.mxu1 %v23244_v20 }
 0x7b3   :  { %8927 = vmatprep.subr.mxu0 %v19392_v14  ;;  %9090 = vmatmul.mubr.f32.vlgmr.msra.gmra.mxu1 %v24217_v31 }
 0x7b4   :  { %9265 = vmatprep.subr.mxu1 %v18970_v47  ;;  %8930 = vmatpush1.msra.mxu0 %v19405_v51  ;;  %v24218_v47 = vld [vmem:[#allocation42_spill] sm:$0xff] }
 0x7b5   :  { %9267 = vmatpush1.msra.mxu1 %v18984_v34  ;;  %8933 = vmatprep.subr.mxu0 %v19415_v62  ;;  %v24219_v34 = vand.u32 4294901760, %v19001_v27  ;;  %v24223_v27 = vand.u32 4294901760, %v24202_v13 }
 0x7b6   :  { %9269 = vmatprep.subr.mxu1 %v18992_v53  ;;  %8936 = vmatpush1.msra.mxu0 %v19425_v57  ;;  %v24220_v53 = vand.u32 4294901760, %v24199_v46 }
 0x7b7   :  { %9271 = vmatpush1.msra.mxu1 %v19003_v6  ;;  %8939 = vmatprep.subr.mxu0 %v19435_v56  ;;  %v24221_v6 = vand.u32 4294901760, %v24200_v5 }
 0x7b8   :  { %9273 = vmatprep.subr.mxu1 %v19011_v17  ;;  %8942 = vmatpush1.msra.mxu0 %v19443_v21  ;;  %v24222_v17 = vand.u32 4294901760, %v24201_v52  ;;  %v9509_v52 = vld [vmem:[%s22222_s3 + $0x1a0] sm:$0xff] }
 0x7b9   :  { %9275 = vmatpush1.msra.mxu1 %v19022_v45  ;;  %8945 = vmatprep.subr.mxu0 %v19451_v1  ;;  %v24224_v45 = vand.u32 4294901760, %v24203_v2 }
 0x7ba   :  { %9277 = vmatprep.subr.mxu1 %v19033_v44  ;;  %8948 = vmatpush1.msra.mxu0 %v19459_v54  ;;  %v24225_v44 = vand.u32 4294901760, %v24204_v23  ;;  %v19731_v23 = vand.u32 4294901760, %v9509_v52 }
 0x7bb   :  { %8981 = vmatprep.mubr.f32.mxu0 %v23244_v20  ;;  %9279 = vmatpush1.msra.mxu1 %v19045_v19  ;;  %v24226_v19 = vand.u32 4294901760, %v24205_v55  ;;  %v9506_v55 = vld [vmem:[%s22222_s3 + $0x188] sm:$0xff] }
 0x7bc   :  { %8984 = vmatmul.mubr.f32.vlgmr.msra.gmra.mxu0 %v24218_v47  ;;  %9099 = vmatprep.subr.mxu0 %v24219_v34  ;;  %v9502_v34 = vld [vmem:[%s22222_s3 + $0x168] sm:$0xff] }
 0x7bd   :  { %9281 = vmatprep.subr.mxu1 %v19056_v35  ;;  %9103 = vmatpush1.msra.mxu0 %v24220_v53  ;;  %v24227_v35 = vand.u32 4294901760, %v24206_v33 }
 0x7be   :  { %9283 = vmatpush1.msra.mxu1 %v19068_v37  ;;  %9107 = vmatprep.subr.mxu0 %v24221_v6  ;;  %v24229_v37 = vand.u32 4294901760, %v24208_v0 }
 0x7bf   :  { %9285 = vmatprep.subr.mxu1 %v19080_v36  ;;  %9111 = vmatpush1.msra.mxu0 %v24222_v17  ;;  %v24230_v36 = vand.u32 4294901760, %v24209_v28  ;;  %v19744_v28 = vand.u32 4294901760, %v9506_v55 }
 0x7c0   :  { %9287 = vmatpush1.msra.mxu1 %v19097_v48  ;;  %9115 = vmatprep.subr.mxu0 %v24223_v27  ;;  %v24231_v48 = vand.u32 4294901760, %v24210_v49  ;;  %v9505_v49 = vld [vmem:[%s22222_s3 + $0x180] sm:$0xff] }
 0x7c1   :  { %9289 = vmatprep.subr.mxu1 %v19109_v58  ;;  %9119 = vmatpush1.msra.mxu0 %v24224_v45  ;;  %v24228_v58 = vand.u32 4294901760, %v24207_v41  ;;  %v19757_v47 = vand.u32 4294901760, %v9505_v49  ;;  %v19768_v27 = vsub.f32 %v9506_v55, %v19744_v28  ;;  %v9501_v45 = vld [vmem:[%s22222_s3 + $0x160] sm:$0xff] }
 0x7c2   :  { %9291 = vmatpush1.msra.mxu1 %v19123_v38  ;;  %9123 = vmatprep.subr.mxu0 %v24225_v44  ;;  %v24233_v38 = vand.u32 4294901760, %v24211_v40 }
 0x7c3   :  { %9293 = vmatprep.subr.mxu1 %v19140_v10  ;;  %9127 = vmatpush1.msra.mxu0 %v24226_v19  ;;  %v24232_v10 = vld [vmem:[#allocation7_spill] sm:$0xff] }
 0x7c4   :  { %9295 = vmatpush1.msra.mxu1 %v19167_v42  ;;  %9131 = vmatprep.subr.mxu0 %v24227_v35  ;;  %v24234_v42 = vand.u32 4294901760, %v24212_v26 }
 0x7c5   :  { %9297 = vmatprep.subr.mxu1 %v19211_v11  ;;  %9135 = vmatpush1.msra.mxu0 %v24228_v58  ;;  %v24236_v11 = vand.u32 4294901760, %v24214_v18  ;;  %v19779_v58 = vsub.f32 %v9505_v49, %v19757_v47 }
 0x7c6   :  { %9299 = vmatpush1.msra.mxu1 %v19241_v8  ;;  %9139 = vmatprep.subr.mxu0 %v24229_v37  ;;  %v24238_v8 = vand.u32 4294901760, %v24216_v30  ;;  %v24243_v30 = vand.u32 4294901760, %v19367_v4  ;;  %v24250_v4 = vand.u32 4294901760, %v19435_v56  ;;  %v9517_v56 = vld [vmem:[%s22222_s3 + $0x1e0] sm:$0xff]  ;;  %v9498_v37 = vld [vmem:[%s22222_s3 + $0x148] sm:$0xff] }
 0x7c7   :  { %9301 = vmatprep.subr.mxu1 %v19256_v60  ;;  %9143 = vmatpush1.msra.mxu0 %v24230_v36  ;;  %v24235_v60 = vand.u32 4294901760, %v24213_v43  ;;  %v19694_v31 = vand.u32 4294901760, %v9517_v56  ;;  %v19755_v43 = vsub.f32 %v9509_v52, %v19731_v23 }
 0x7c8   :  { %9303 = vmatpush1.msra.mxu1 %v19272_v15  ;;  %9147 = vmatprep.subr.mxu0 %v24231_v48  ;;  %v24237_v15 = vand.u32 4294901760, %v24215_v50  ;;  %v24242_v50 = vand.u32 4294901760, %v19356_v9  ;;  %v24247_v9 = vand.u32 4294901760, %v19405_v51  ;;  %v24253_v51 = vand.u32 4294901760, %v19459_v54  ;;  %v9510_v54 = vld [vmem:[%s22222_s3 + $0x1a8] sm:$0xff] }
 0x7c9   :  { %9305 = vmatprep.subr.mxu1 %v24232_v10  ;;  %9151 = vmatpush1.msra.mxu0 %v24233_v38  ;;  %v19721_v5 = vand.u32 4294901760, %v9510_v54  ;;  %v22939_v35 = vand.u32 4294901760, %v19755_v43  ;;  %v22937_v10 = vand.u32 4294901760, %v19768_v27  ;;  %v19789_v38 = vand.u32 4294901760, %v9502_v34 }
 0x7ca   :  { %9307 = vmatpush1.msra.mxu1 %v19302_v24  ;;  %9155 = vmatprep.subr.mxu0 %v24234_v42  ;;  %v24239_v24 = vand.u32 4294901760, %v19328_v12  ;;  %v24244_v12 = vand.u32 4294901760, %v19381_v59  ;;  %v24249_v59 = vand.u32 4294901760, %v19425_v57  ;;  %v9497_v42 = vld [vmem:[%s22222_s3 + $0x140] sm:$0xff] }
 0x7cb   :  { %9309 = vmatprep.subr.mxu1 %v19318_v32  ;;  %9159 = vmatpush1.msra.mxu0 %v24235_v60  ;;  %v24240_v32 = vld [vmem:[#allocation12_spill] sm:$0xff]  ;;  %v19742_v0 = vsub.f32 %v9510_v54, %v19721_v5 }
 0x7cc   :  { %9311 = vmatpush1.msra.mxu1 %v19330_v3  ;;  %9163 = vmatprep.subr.mxu0 %v24236_v11  ;;  %v24241_v3 = vand.u32 4294901760, %v19344_v61  ;;  %v24245_v61 = vand.u32 4294901760, %v19392_v14  ;;  %v9514_v14 = vld [vmem:[%s22222_s3 + $0x1c8] sm:$0xff]  ;;  %v9662_v11 = vsub.f32 %v19755_v43, %v22939_v35 }
 0x7cd   :  { %9313 = vmatprep.subr.mxu1 %v19346_v25  ;;  %9167 = vmatpush1.msra.mxu0 %v24237_v15  ;;  %v24246_v25 = vld [vmem:[#allocation44_spill] sm:$0xff]  ;;  %v22941_v17 = vand.u32 4294901760, %v19742_v0  ;;  %v22935_v15 = vand.u32 4294901760, %v19779_v58 }
 0x7ce   :  { %9315 = vmatpush1.msra.mxu1 %v19358_v7  ;;  %9171 = vmatprep.subr.mxu0 %v24238_v8  ;;  %v24248_v7 = vand.u32 4294901760, %v19415_v62  ;;  %v9518_v62 = vld [vmem:[%s22222_s3 + $0x1e8] sm:$0xff]  ;;  %v19798_v8 = vand.u32 4294901760, %v9501_v45 }
 0x7cf   :  { %9317 = vmatprep.subr.mxu1 %v19369_v63  ;;  %9175 = vmatpush1.msra.mxu0 %v24239_v24  ;;  %v24251_v63 = vand.u32 4294901760, %v19443_v21  ;;  %v19689_v57 = vand.u32 4294901760, %v9518_v62  ;;  %v19709_v21 = vsub.f32 %v9517_v56, %v19694_v31  ;;  %v9656_v48 = vsub.f32 %v19742_v0, %v22941_v17  ;;  %v9494_v24 = vld [vmem:[%s22222_s3 + $0x128] sm:$0xff] }
 0x7d0   :  { %9319 = vmatpush1.msra.mxu1 %v24240_v32  ;;  %9179 = vmatprep.subr.mxu0 %v24241_v3  ;;  %v9668_v3 = vsub.f32 %v19768_v27, %v22937_v10 }
 0x7d1   :  { %9321 = vmatprep.subr.mxu1 %v19394_v16  ;;  %9183 = vmatpush1.msra.mxu0 %v24242_v50  ;;  %v24252_v16 = vand.u32 4294901760, %v19451_v1  ;;  %24254 = vst [vmem:[#allocation14_spill] sm:$0xff] %v19689_v57  ;;  %v22946_v13 = vand.u32 4294901760, %v19709_v21  ;;  %v9657_v32 = vand.u32 4294901760, %v9656_v48  ;;  %v19807_v50 = vsub.f32 %v9502_v34, %v19789_v38  ;;  %v9485_v48 = vld [vmem:[%s22222_s3 + $0xe0] sm:$0xff] }
 0x7d2   :  { %9323 = vmatpush1.msra.mxu1 %v19407_v39  ;;  %9187 = vmatprep.subr.mxu0 %v24243_v30  ;;  %v19700_v39 = vsub.f32 %v9518_v62, %v19689_v57  ;;  %v19809_v30 = vand.u32 4294901760, %v9498_v37  ;;  %v9489_v62 = vld [vmem:[%s22222_s3 + $0x100] sm:$0xff] }
 0x7d3   :  { %9325 = vmatprep.subr.mxu1 %v19417_v29  ;;  %9191 = vmatpush1.msra.mxu0 %v24244_v12  ;;  %v19702_v29 = vand.u32 4294901760, %v9514_v14  ;;  %v9638_v40 = vsub.f32 %v19709_v21, %v22946_v13  ;;  %v9493_v12 = vld [vmem:[%s22222_s3 + $0x120] sm:$0xff] }
 0x7d4   :  { %9327 = vmatpush1.msra.mxu1 %v19427_v22  ;;  %9360 = vmatprep.mubr.f32.mxu1 %v23244_v20  ;;  %24255 = vst [vmem:[#allocation17_spill] sm:$0xff] %v19700_v39  ;;  %v9513_v22 = vld [vmem:[%s22222_s3 + $0x1c0] sm:$0xff]  ;;  %v22947_v18 = vand.u32 4294901760, %v19700_v39  ;;  %v19841_v54 = vand.u32 4294901760, %v9493_v12 }
 0x7d5   :  { %9195 = vmatprep.subr.mxu0 %v24245_v61  ;;  %9362 = vmatmul.mubr.f32.vlgmr.msra.gmra.mxu1 %v24246_v25  ;;  %v19711_v1 = vand.u32 4294901760, %v9513_v22  ;;  %v19719_v46 = vsub.f32 %v9514_v14, %v19702_v29  ;;  %v9639_v44 = vand.u32 4294901760, %v9638_v40  ;;  %v9663_v61 = vand.u32 4294901760, %v9662_v11 }
 0x7d6   :  { %9199 = vmatpush1.msra.mxu0 %v24247_v9  ;;  %9256 = vmatprep.mubr.f32.mxu0 %v23244_v20  ;;  %v9632_v33 = vsub.f32 %v19700_v39, %v22947_v18  ;;  %v19819_v9 = vsub.f32 %v9501_v45, %v19798_v8  ;;  %v9486_v45 = vld [vmem:[%s22222_s3 + $0xe8] sm:$0xff] }
 0x7d7   :  { %9203 = vmatprep.subr.mxu0 %v24248_v7  ;;  %9853 = vmatprep.mubr.f32.mxu1 %v23244_v20  ;;  %v19729_v2 = vsub.f32 %v9513_v22, %v19711_v1  ;;  %v22943_v41 = vand.u32 4294901760, %v19719_v46  ;;  %v19821_v7 = vand.u32 4294901760, %v9497_v42 }
 0x7d8   :  { %9207 = vmatpush1.msra.mxu0 %v24249_v59  ;;  %v9633_v53 = vand.u32 4294901760, %v9632_v33  ;;  %v9490_v59 = vld [vmem:[%s22222_s3 + $0x108] sm:$0xff]  ;;  %v22932_v14 = vand.u32 4294901760, %v19819_v9 }
 0x7d9   :  { %9211 = vmatprep.subr.mxu0 %v24250_v4  ;;  %v22942_v26 = vand.u32 4294901760, %v19729_v2  ;;  %v9644_v6 = vsub.f32 %v19719_v46, %v22943_v41  ;;  %v9669_v4 = vand.u32 4294901760, %v9668_v3  ;;  %v19839_v22 = vsub.f32 %v9497_v42, %v19821_v7 }
 0x7da   :  { %9215 = vmatpush1.msra.mxu0 %v24251_v63  ;;  %9634 = vmatprep.subr.mxu1 %v9633_v53  ;;  %v22933_v63 = vand.u32 4294901760, %v19807_v50  ;;  %v19851_v49 = vand.u32 4294901760, %v9490_v59  ;;  %v9686_v40 = vsub.f32 %v19819_v9, %v22932_v14  ;;  %v19859_v53 = vsub.f32 %v9493_v12, %v19841_v54 }
 0x7db   :  { %9219 = vmatprep.subr.mxu0 %v24252_v16  ;;  %v9650_v19 = vsub.f32 %v19729_v2, %v22942_v26  ;;  %v9645_v36 = vand.u32 4294901760, %v9644_v6  ;;  %9640 = vmatpush1.msra.mxu1 %v9639_v44  ;;  %v19829_v16 = vsub.f32 %v9498_v37, %v19809_v30  ;;  %v22929_v34 = vand.u32 4294901760, %v19839_v22 }
 0x7dc   :  { %9223 = vmatpush1.msra.mxu0 %v24253_v51  ;;  %v19831_v51 = vand.u32 4294901760, %v9494_v24  ;;  %v9680_v52 = vsub.f32 %v19807_v50, %v22933_v63  ;;  %v19861_v6 = vand.u32 4294901760, %v9489_v62  ;;  %v9687_v42 = vand.u32 4294901760, %v9686_v40  ;;  %v9478_v40 = vld [vmem:[%s22222_s3 + $0xa8] sm:$0xff] }
 0x7dd   :  { %9258 = vmatmul.mubr.f32.vlgmr.msra.gmra.mxu0 %v24246_v25  ;;  %9522 = vmatprep.subr.mxu0 %v19689_v57  ;;  %v9651_v60 = vand.u32 4294901760, %v9650_v19  ;;  %v9674_v25 = vsub.f32 %v19779_v58, %v22935_v15  ;;  %v22930_v55 = vand.u32 4294901760, %v19829_v16  ;;  %v22926_v11 = vand.u32 4294901760, %v19859_v53 }
 0x7de   :  { %9617 = vmatprep.mubr.f32.mxu0 %v23244_v20  ;;  %9524 = vmatpush1.msra.mxu0 %v19694_v31  ;;  %v19849_v33 = vsub.f32 %v9494_v24, %v19831_v51  ;;  %v9681_v44 = vand.u32 4294901760, %v9680_v52  ;;  %v19883_v24 = vsub.f32 %v9489_v62, %v19861_v6  ;;  %v19902_v52 = vand.u32 4294901760, %v9485_v48 }
 0x7df   :  { %9526 = vmatprep.subr.mxu0 %v19702_v29  ;;  %9646 = vmatprep.subr.mxu1 %v9645_v36  ;;  %v9675_v56 = vand.u32 4294901760, %v9674_v25  ;;  %v9692_v19 = vsub.f32 %v19829_v16, %v22930_v55  ;;  %v19872_v36 = vsub.f32 %v9490_v59, %v19851_v49  ;;  %v19893_v25 = vand.u32 4294901760, %v9486_v45  ;;  %v9481_v59 = vld [vmem:[%s22222_s3 + $0xc0] sm:$0xff] }
 0x7e0   :  { %9528 = vmatpush1.msra.mxu0 %v19711_v1  ;;  %9652 = vmatpush1.msra.mxu1 %v9651_v60  ;;  %v22927_v37 = vand.u32 4294901760, %v19849_v33  ;;  %v9698_v60 = vsub.f32 %v19839_v22, %v22929_v34  ;;  %24257 = vst [vmem:[#allocation33_spill] sm:$0xff] %v19883_v24  ;;  %v9710_v62 = vsub.f32 %v19859_v53, %v22926_v11  ;;  %v9477_v11 = vld [vmem:[%s22222_s3 + $0xa0] sm:$0xff] }
 0x7e1   :  { %9530 = vmatprep.subr.mxu0 %v19721_v5  ;;  %9658 = vmatprep.subr.mxu1 %v9657_v32  ;;  %24256 = vst [vmem:[#allocation38_spill] sm:$0xff] %v19872_v36  ;;  %v9482_v32 = vld [vmem:[%s22222_s3 + $0xc8] sm:$0xff]  ;;  %v9693_v3 = vand.u32 4294901760, %v9692_v19 }
 0x7e2   :  { %9532 = vmatpush1.msra.mxu0 %v19731_v23  ;;  %9664 = vmatpush1.msra.mxu1 %v9663_v61  ;;  %v9704_v12 = vsub.f32 %v19849_v33, %v22927_v37  ;;  %v22928_v61 = vand.u32 4294901760, %v19872_v36  ;;  %v9711_v37 = vand.u32 4294901760, %v9710_v62  ;;  %v9474_v62 = vld [vmem:[%s22222_s3 + $0x88] sm:$0xff] }
 0x7e3   :  { %9534 = vmatprep.subr.mxu0 %v19744_v28  ;;  %9670 = vmatprep.subr.mxu1 %v9669_v4  ;;  %v9699_v4 = vand.u32 4294901760, %v9698_v60  ;;  %v19913_v60 = vand.u32 4294901760, %v9482_v32 }
 0x7e4   :  { %9536 = vmatpush1.msra.mxu0 %v19757_v47  ;;  %9676 = vmatpush1.msra.mxu1 %v9675_v56  ;;  %v22931_v56 = vand.u32 4294901760, %v19883_v24  ;;  %v9716_v19 = vsub.f32 %v19872_v36, %v22928_v61  ;;  %v19925_v61 = vand.u32 4294901760, %v9481_v59 }
 0x7e5   :  { %9538 = vmatprep.subr.mxu0 %v19789_v38  ;;  %9682 = vmatprep.subr.mxu1 %v9681_v44  ;;  %v9705_v44 = vand.u32 4294901760, %v9704_v12  ;;  %v19923_v12 = vsub.f32 %v9485_v48, %v19902_v52  ;;  %v19930_v55 = vsub.f32 %v9482_v32, %v19913_v60 }
 0x7e6   :  { %9540 = vmatpush1.msra.mxu0 %v19798_v8  ;;  %9688 = vmatpush1.msra.mxu1 %v9687_v42  ;;  %v19911_v42 = vsub.f32 %v9486_v45, %v19893_v25  ;;  %v9717_v45 = vand.u32 4294901760, %v9716_v19  ;;  %v19942_v19 = vand.u32 4294901760, %v9477_v11 }
 0x7e7   :  { %9542 = vmatprep.subr.mxu0 %v19809_v30  ;;  %9694 = vmatprep.subr.mxu1 %v9693_v3  ;;  %v9722_v3 = vsub.f32 %v19883_v24, %v22931_v56  ;;  %24259 = vst [vmem:[#allocation11_spill] sm:$0xff] %v19923_v12  ;;  %24260 = vst [vmem:[#allocation18_spill] sm:$0xff] %v19930_v55  ;;  %v22936_v56 = vand.u32 4294901760, %v19923_v12  ;;  %v22938_v14 = vand.u32 4294901760, %v19930_v55 }
 0x7e8   :  { %9544 = vmatpush1.msra.mxu0 %v19821_v7  ;;  %24258 = vst [vmem:[#allocation45_spill] sm:$0xff] %v19911_v42  ;;  %9700 = vmatpush1.msra.mxu1 %v9699_v4  ;;  %v22934_v34 = vand.u32 4294901760, %v19911_v42  ;;  %v19932_v4 = vand.u32 4294901760, %v9478_v40  ;;  %24262 = vst [vmem:[#allocation21_spill] sm:$0xff] %v19942_v19 }
 0x7e9   :  { %9546 = vmatprep.subr.mxu0 %v19831_v51  ;;  %9706 = vmatprep.subr.mxu1 %v9705_v44  ;;  %v9723_v48 = vand.u32 4294901760, %v9722_v3  ;;  %v19940_v44 = vsub.f32 %v9481_v59, %v19925_v61  ;;  %v19958_v3 = vsub.f32 %v9477_v11, %v19942_v19 }
 0x7ea   :  { %9548 = vmatpush1.msra.mxu0 %v19841_v54  ;;  %9712 = vmatpush1.msra.mxu1 %v9711_v37  ;;  %v9728_v32 = vsub.f32 %v19911_v42, %v22934_v34  ;;  %v19950_v63 = vsub.f32 %v9478_v40, %v19932_v4  ;;  %v9734_v37 = vsub.f32 %v19923_v12, %v22936_v56 }
 0x7eb   :  { %9550 = vmatprep.subr.mxu0 %v19851_v49  ;;  %24261 = vst [vmem:[#allocation13_spill] sm:$0xff] %v19940_v44  ;;  %9718 = vmatprep.subr.mxu1 %v9717_v45  ;;  %v22940_v59 = vand.u32 4294901760, %v19940_v44  ;;  %24264 = vst [vmem:[#allocation6_spill] sm:$0xff] %v19958_v3  ;;  %v19960_v45 = vand.u32 4294901760, %v9474_v62  ;;  %v9740_v40 = vsub.f32 %v19930_v55, %v22938_v14  ;;  %v22945_v10 = vand.u32 4294901760, %v19958_v3 }
 0x7ec   :  { %9552 = vmatpush1.msra.mxu0 %v19861_v6  ;;  %24263 = vst [vmem:[#allocation23_spill] sm:$0xff] %v19950_v63  ;;  %9724 = vmatpush1.msra.mxu1 %v9723_v48  ;;  %v9729_v34 = vand.u32 4294901760, %v9728_v32  ;;  %v9473_v48 = vld [vmem:[%s22222_s3 + $0x80] sm:$0xff]  ;;  %v9735_v15 = vand.u32 4294901760, %v9734_v37  ;;  %v22944_v11 = vand.u32 4294901760, %v19950_v63  ;;  %v9470_v32 = vld [vmem:[%s22222_s3 + $0x68] sm:$0xff] }
 0x7ed   :  { %9554 = vmatprep.subr.mxu0 %v19893_v25  ;;  %24265 = vst [vmem:[#allocation24_spill] sm:$0xff] %v19960_v45  ;;  %v9746_v56 = vsub.f32 %v19940_v44, %v22940_v59  ;;  %v9741_v14 = vand.u32 4294901760, %v9740_v40  ;;  %v19979_v35 = vsub.f32 %v9474_v62, %v19960_v45  ;;  %v9469_v37 = vld [vmem:[%s22222_s3 + $0x60] sm:$0xff]  ;;  %v9758_v26 = vsub.f32 %v19958_v3, %v22945_v10 }
 0x7ee   :  { %9556 = vmatpush1.msra.mxu0 %v19902_v52  ;;  %9730 = vmatprep.subr.mxu1 %v9729_v34  ;;  %v9752_v17 = vsub.f32 %v19950_v63, %v22944_v11  ;;  %v19990_v41 = vand.u32 4294901760, %v9473_v48  ;;  %v19993_v62 = vand.u32 4294901760, %v9470_v32  ;;  %v20004_v13 = vand.u32 4294901760, %v9469_v37  ;;  %v9461_v63 = vld [vmem:[%s22222_s3 + $0x20] sm:$0xff] }
 0x7ef   :  { %9558 = vmatprep.subr.mxu0 %v19913_v60  ;;  %24266 = vst [vmem:[#allocation41_spill] sm:$0xff] %v19979_v35  ;;  %9736 = vmatpush1.msra.mxu1 %v9735_v15  ;;  %v9747_v59 = vand.u32 4294901760, %v9746_v56  ;;  %v22952_v34 = vand.u32 4294901760, %v19979_v35  ;;  %v9466_v15 = vld [vmem:[%s22222_s3 + $0x48] sm:$0xff]  ;;  %v9465_v56 = vld [vmem:[%s22222_s3 + $0x40] sm:$0xff]  ;;  %v9759_v11 = vand.u32 4294901760, %v9758_v26 }
 0x7f0   :  { %9560 = vmatpush1.msra.mxu0 %v19925_v61  ;;  %24267 = vst [vmem:[#allocation30_spill] sm:$0xff] %v19990_v41  ;;  %9742 = vmatprep.subr.mxu1 %v9741_v14  ;;  %24268 = vst [vmem:[#allocation9_spill] sm:$0xff] %v19993_v62  ;;  %v9753_v40 = vand.u32 4294901760, %v9752_v17  ;;  %v20002_v10 = vsub.f32 %v9473_v48, %v19990_v41  ;;  %v9462_v14 = vld [vmem:[%s22222_s3 + $0x28] sm:$0xff]  ;;  %v20014_v3 = vsub.f32 %v9470_v32, %v19993_v62 }
 0x7f1   :  { %9562 = vmatprep.subr.mxu0 %v19932_v4  ;;  %9748 = vmatpush1.msra.mxu1 %v9747_v59  ;;  %24270 = vst [vmem:[#allocation37_spill] sm:$0xff] %v20004_v13  ;;  %v9764_v18 = vsub.f32 %v19979_v35, %v22952_v34  ;;  %v20019_v17 = vsub.f32 %v9469_v37, %v20004_v13  ;;  %v20021_v59 = vand.u32 4294901760, %v9466_v15  ;;  %v20023_v48 = vand.u32 4294901760, %v9465_v56  ;;  %v9458_v32 = vld [vmem:[%s22222_s3 + $0x8] sm:$0xff] }
 0x7f2   :  { %9564 = vmatpush1.msra.mxu0 %v19942_v19  ;;  %24269 = vst [vmem:[#allocation20_spill] sm:$0xff] %v20002_v10  ;;  %24271 = vst [vmem:[#allocation15_spill] sm:$0xff] %v20014_v3  ;;  %9754 = vmatprep.subr.mxu1 %v9753_v40  ;;  %v22963_v26 = vand.u32 4294901760, %v20002_v10  ;;  %v22964_v34 = vand.u32 4294901760, %v20014_v3  ;;  %v20033_v37 = vand.u32 4294901760, %v9462_v14 }
 0x7f3   :  { %9566 = vmatprep.subr.mxu0 %v19960_v45  ;;  %24272 = vst [vmem:[#allocation35_spill] sm:$0xff] %v20019_v17  ;;  %24273 = vst [vmem:[#allocation25_spill] sm:$0xff] %v20021_v59  ;;  %9760 = vmatpush1.msra.mxu1 %v9759_v11  ;;  %v9765_v40 = vand.u32 4294901760, %v9764_v18  ;;  %v22973_v44 = vand.u32 4294901760, %v20019_v17  ;;  %v20040_v55 = vsub.f32 %v9466_v15, %v20021_v59  ;;  %v9457_v15 = vld [vmem:[%s22222_s3] sm:$0xff] }
 0x7f4   :  { %9568 = vmatpush1.msra.mxu0 %v19990_v41  ;;  %24274 = vst [vmem:[#allocation43_spill] sm:$0xff] %v20023_v48  ;;  %24275 = vst [vmem:[#allocation31_spill] sm:$0xff] %v20033_v37  ;;  %v9770_v35 = vsub.f32 %v20002_v10, %v22963_v26  ;;  %v20043_v12 = vsub.f32 %v9465_v56, %v20023_v48  ;;  %v9776_v18 = vsub.f32 %v20014_v3, %v22964_v34 }
 0x7f5   :  { %9570 = vmatprep.subr.mxu0 %v19993_v62  ;;  %24276 = vst [vmem:[#allocation19_spill] sm:$0xff] %v20040_v55  ;;  %9766 = vmatprep.subr.mxu1 %v9765_v40  ;;  %v20050_v11 = vsub.f32 %v9462_v14, %v20033_v37  ;;  %v20054_v26 = vand.u32 4294901760, %v9458_v32  ;;  %v9782_v40 = vsub.f32 %v20019_v17, %v22973_v44  ;;  %v22976_v34 = vand.u32 4294901760, %v20040_v55 }
 0x7f6   :  { %9572 = vmatpush1.msra.mxu0 %v20004_v13  ;;  %24277 = vst [vmem:[#allocation36_spill] sm:$0xff] %v20043_v12  ;;  %v20052_v13 = vand.u32 4294901760, %v9461_v63  ;;  %v9771_v56 = vand.u32 4294901760, %v9770_v35  ;;  %v22979_v14 = vand.u32 4294901760, %v20043_v12  ;;  %v9777_v3 = vand.u32 4294901760, %v9776_v18 }
 0x7f7   :  { %9574 = vmatprep.subr.mxu0 %v20021_v59  ;;  %24278 = vst [vmem:[#allocation8_spill] sm:$0xff] %v20050_v11  ;;  %24280 = vst [vmem:[#allocation40_spill] sm:$0xff] %v20054_v26  ;;  %v22980_v10 = vand.u32 4294901760, %v20050_v11  ;;  %v20071_v62 = vsub.f32 %v9458_v32, %v20054_v26  ;;  %v9783_v35 = vand.u32 4294901760, %v9782_v40  ;;  %v9788_v44 = vsub.f32 %v20040_v55, %v22976_v34 }
 0x7f8   :  { %24279 = vst [vmem:[#allocation39_spill] sm:$0xff] %v20052_v13  ;;  %9576 = vmatpush1.msra.mxu0 %v20023_v48  ;;  %v20068_v59 = vsub.f32 %v9461_v63, %v20052_v13  ;;  %9772 = vmatpush1.msra.mxu1 %v9771_v56  ;;  %v9794_v18 = vsub.f32 %v20043_v12, %v22979_v14  ;;  %v20080_v17 = vand.u32 4294901760, %v9457_v15 }
 0x7f9   :  { %9578 = vmatprep.subr.mxu0 %v20033_v37  ;;  %24282 = vst [vmem:[#allocation22_spill] sm:$0xff] %v20071_v62  ;;  %9778 = vmatprep.subr.mxu1 %v9777_v3  ;;  %v9800_v63 = vsub.f32 %v20050_v11, %v22980_v10  ;;  %v22981_v56 = vand.u32 4294901760, %v20071_v62  ;;  %v9789_v40 = vand.u32 4294901760, %v9788_v44 }
 0x7fa   :  { %24281 = vst [vmem:[#allocation10_spill] sm:$0xff] %v20068_v59  ;;  %9580 = vmatpush1.msra.mxu0 %v20052_v13  ;;  %24283 = vst [vmem:[#allocation32_spill] sm:$0xff] %v20080_v17  ;;  %v22982_v32 = vand.u32 4294901760, %v20068_v59  ;;  %9784 = vmatpush1.msra.mxu1 %v9783_v35  ;;  %v9795_v34 = vand.u32 4294901760, %v9794_v18  ;;  %v20089_v55 = vsub.f32 %v9457_v15, %v20080_v17 }
 0x7fb   :  { %9582 = vmatprep.subr.mxu0 %v20054_v26  ;;  %v9801_v14 = vand.u32 4294901760, %v9800_v63  ;;  %v9812_v10 = vsub.f32 %v20071_v62, %v22981_v56  ;;  %9790 = vmatprep.subr.mxu1 %v9789_v40  ;;  %v7761_v56 = vpop.f32.mrf.mxu0 }
 0x7fc   :  { %24284 = vst [vmem:[#allocation16_spill] sm:$0xff] %v20089_v55  ;;  %9584 = vmatpush1.msra.mxu0 %v20080_v17  ;;  %v9806_v3 = vsub.f32 %v20068_v59, %v22982_v32  ;;  %v22990_v44 = vand.u32 4294901760, %v20089_v55  ;;  %9796 = vmatpush1.msra.mxu1 %v9795_v34 }
 0x7fd   :  { %9863 = vmatprep.subr.mxu0 %v19700_v39  ;;  %v9813_v15 = vand.u32 4294901760, %v9812_v10  ;;  %9802 = vmatprep.subr.mxu1 %v9801_v14  ;;  %v7763_v32 = vpop.f32.mrf.mxu0  ;;  %v7993_v39 = vpop.f32.mrf.mxu1 }
 0x7fe   :  { %v9807_v35 = vand.u32 4294901760, %v9806_v3  ;;  %v9818_v18 = vsub.f32 %v20089_v55, %v22990_v44  ;;  %v7994_v3 = vadd.f32 %v7993_v39, %v7761_v56  ;;  %v24285_v44 = vld [vmem:[#allocation26_spill] sm:$0xff]  ;;  %v7535_v39 = vld [vmem:[%s22220_s1] sm:$0xf] }
 0x7ff   :  { %v7995_v62 = vpop.f32.mrf.mxu1  ;;  %v7577_v13 = vrot.slane %v7535_v39, %v24285_v44 }
 0x800   :  { %9808 = vmatpush1.msra.mxu1 %v9807_v35  ;;  %v9819_v63 = vand.u32 4294901760, %v9818_v18  ;;  %v7996_v34 = vadd.f32 %v7995_v62, %v7763_v32  ;;  %v7538_v35 = vld [vmem:[%s22221_s2] sm:$0xf] }
 0x801   :  { %9814 = vmatprep.subr.mxu1 %v9813_v15  ;;  %v7552_v55 = vrot.slane %v7538_v35, %v24285_v44 }
 0x802   :  { %9820 = vmatpush1.msra.mxu1 %v9819_v63 }
 0x803   :  { %9999 = vmatprep.subr.mxu1 %v19689_v57  ;;  %v24286_v57 = vld [vmem:[#allocation27_spill] sm:$0xff] }
 0x804   :  { %v7548_v17 = vrot.slane %v7538_v35, %v24286_v57  ;;  %v7573_v37 = vrot.slane %v7535_v39, %v24286_v57 }
 0x80c   :  { %v8236_v10 = vpop.f32.mrf.mxu1 }
 0x80e   :  { %v8238_v18 = vpop.f32.mrf.mxu1 }
 0x815   :  { %v8130_v40 = vpop.f32.mrf.mxu0 }
 0x816   :  { %v8131_v15 = vadd.f32 %v8130_v40, %v7994_v3 }
 0x817   :  { %v8132_v59 = vpop.f32.mrf.mxu0 }
 0x818   :  { %v8133_v11 = vadd.f32 %v8132_v59, %v7996_v34  ;;  %v8237_v62 = vadd.f32 %v8236_v10, %v8131_v15  ;;  %v7542_v59 = vpop.permute.xlu1 %7541 }
 0x819   :  { %v7566_v34 = vmul.f32 %v7552_v55, %v7542_v59  ;;  %v7565_v40 = vmul.f32 %v7548_v17, %v7542_v59 }
 0x81a   :  { %v8239_v12 = vadd.f32 %v8238_v18, %v8133_v11 }
 0x81b   :  { %v7591_v18 = vadd.f32 %v7577_v13, %v7566_v34  ;;  %v7590_v42 = vadd.f32 %v7573_v37, %v7565_v40  ;;  %v24288_v13 = vld [vmem:[#allocation28_spill] sm:$0xff] }
 0x81c   :  { %v7560_v37 = vrot.slane %v7538_v35, %v24288_v13 }
 0x82e   :  { %v8508_v26 = vpop.f32.mrf.mxu1 }
 0x830   :  { %v8510_v3 = vpop.f32.mrf.mxu1 }
 0x83a   :  { %v8404_v14 = vpop.f32.mrf.mxu0 }
 0x83b   :  { %v8405_v56 = vadd.f32 %v8404_v14, %v8237_v62  ;;  %v24287_v62 = vld [vmem:[#allocation29_spill] sm:$0xff] }
 0x83c   :  { %v8406_v63 = vpop.f32.mrf.mxu0  ;;  %v7556_v57 = vrot.slane %v7538_v35, %v24287_v62 }
 0x83d   :  { %v8407_v32 = vadd.f32 %v8406_v63, %v8239_v12  ;;  %v8509_v11 = vadd.f32 %v8508_v26, %v8405_v56 }
 0x83e   :  { %v7567_v56 = vmul.f32 %v7556_v57, %v7542_v59 }
 0x83f   :  { %v8511_v48 = vadd.f32 %v8510_v3, %v8407_v32  ;;  %v9368_v24 = vadd.f32 %v8509_v11, %v7590_v42  ;;  %v7568_v3 = vmul.f32 %v7560_v37, %v7542_v59 }
 0x841   :  { %v9369_v41 = vadd.f32 %v8511_v48, %v7591_v18  ;;  %v13166_v36 = vmul.f32 -1.442695, %v9368_v24 }
 0x843   :  { %v13168_v45 = vmul.f32 -1.442695, %v9369_v41 }
 0x845   :  { %13261 = vpow2.f32 %v13168_v45 }
 0x846   :  { %13263 = vpow2.f32 %v13166_v36  ;;  %v7581_v36 = vrot.slane %v7535_v39, %v24287_v62  ;;  %v24320_v62 = vld [vmem:[#allocation36_spill] sm:$0xff] }
 0x850   :  { %v8848_v12 = vpop.f32.mrf.mxu1 }
 0x852   :  { %v8850_v14 = vpop.f32.mrf.mxu1  ;;  %v13262_v42 = vpop.eup %13261 }
 0x853   :  { %v13264_v24 = vpop.eup %13263  ;;  %v9388_v11 = vadd.f32 1.0, %v13262_v42  ;;  %v24289_v42 = vld [vmem:[#allocation5_spill] sm:$0xff] }
 0x855   :  { %13265 = vrcp.f32 %v9388_v11 }
 0x85a   :  { %v8616_v19 = vpop.f32.mrf.mxu0 }
 0x85b   :  { %v8849_v15 = vadd.f32 %v8848_v12, %v8616_v19  ;;  %v7585_v19 = vrot.slane %v7535_v39, %v24288_v13  ;;  %v24319_v13 = vld [vmem:[#allocation19_spill] sm:$0xff] }
 0x85c   :  { %v8618_v10 = vpop.f32.mrf.mxu0 }
 0x85d   :  { %v8851_v32 = vadd.f32 %v8850_v14, %v8618_v10  ;;  %v9375_v10 = vadd.f32 1.0, %v13264_v24  ;;  %v7592_v14 = vadd.f32 %v7581_v36, %v7567_v56  ;;  %v7593_v57 = vadd.f32 %v7585_v19, %v7568_v3 }
 0x85f   :  { %13267 = vrcp.f32 %v9375_v10  ;;  %v24296_v10 = vld [vmem:[#allocation38_spill] sm:$0xff] }
 0x862   :  { %v13266_v39 = vpop.eup %13265 }
 0x86c   :  { %v13268_v59 = vpop.eup %13267 }
 0x873   :  { %v9091_v17 = vpop.f32.mrf.mxu1 }
 0x875   :  { %v9093_v41 = vpop.f32.mrf.mxu1 }
 0x87c   :  { %v8985_v55 = vpop.f32.mrf.mxu0 }
 0x87d   :  { %v8986_v26 = vadd.f32 %v8985_v55, %v8849_v15 }
 0x87e   :  { %v8987_v63 = vpop.f32.mrf.mxu0 }
 0x87f   :  { %v8988_v48 = vadd.f32 %v8987_v63, %v8851_v32  ;;  %v9092_v45 = vadd.f32 %v9091_v17, %v8986_v26 }
 0x881   :  { %v9094_v12 = vadd.f32 %v9093_v41, %v8988_v48  ;;  %v9391_v48 = vmul.f32 %v13266_v39, %v24289_v42  ;;  %v24306_v39 = vld [vmem:[#allocation13_spill] sm:$0xff]  ;;  %v24309_v42 = vld [vmem:[#allocation31_spill] sm:$0xff] }
 0x895   :  { %v9363_v34 = vpop.f32.mrf.mxu1 }
 0x897   :  { %v9365_v63 = vpop.f32.mrf.mxu1 }
 0x89d   :  { %v9259_v40 = vpop.f32.mrf.mxu0 }
 0x89e   :  { %v9260_v18 = vadd.f32 %v9259_v40, %v9092_v45 }
 0x89f   :  { %v9261_v55 = vpop.f32.mrf.mxu0 }
 0x8a0   :  { %v9364_v35 = vadd.f32 %v9363_v34, %v9260_v18  ;;  %v9262_v15 = vadd.f32 %v9261_v55, %v9094_v12  ;;  %v24295_v12 = vld [vmem:[#allocation21_spill] sm:$0xff]  ;;  %v24297_v55 = vld [vmem:[#allocation24_spill] sm:$0xff] }
 0x8a2   :  { %v9370_v32 = vadd.f32 %v9364_v35, %v7592_v14  ;;  %v9366_v44 = vadd.f32 %v9365_v63, %v9262_v15  ;;  %v24298_v14 = vld [vmem:[#allocation33_spill] sm:$0xff]  ;;  %v24299_v35 = vld [vmem:[#allocation30_spill] sm:$0xff] }
 0x8a3   :  { %v24300_v15 = vld [vmem:[#allocation45_spill] sm:$0xff] }
 0x8a4   :  { %13269 = vtanh.f32 %v9370_v32  ;;  %v9371_v17 = vadd.f32 %v9366_v44, %v7593_v57  ;;  %v24301_v63 = vld [vmem:[#allocation9_spill] sm:$0xff]  ;;  %v24302_v32 = vld [vmem:[#allocation11_spill] sm:$0xff] }
 0x8a5   :  { %v24303_v57 = vld [vmem:[#allocation37_spill] sm:$0xff] }
 0x8a6   :  { %v13167_v26 = vmul.f32 -1.442695, %v9371_v17  ;;  %v24304_v17 = vld [vmem:[#allocation18_spill] sm:$0xff] }
 0x8a8   :  { %13271 = vpow2.f32 %v13167_v26  ;;  %v24305_v26 = vld [vmem:[#allocation25_spill] sm:$0xff] }
 0x8b1   :  { %v13270_v37 = vpop.eup %13269 }
 0x8b2   :  { %v9392_v41 = vmul.f32 %v13270_v37, %v13268_v59  ;;  %v24307_v59 = vld [vmem:[#allocation43_spill] sm:$0xff] }
 0x8b3   :  { %v24308_v37 = vld [vmem:[#allocation23_spill] sm:$0xff] }
 0x8b4   :  { %v20119_v24 = vadd.f32 %v9392_v41, %v9391_v48  ;;  %v24310_v48 = vld [vmem:[#allocation6_spill] sm:$0xff]  ;;  %v24311_v41 = vld [vmem:[#allocation39_spill] sm:$0xff] }
 0x8b5   :  { %v13272_v56 = vpop.eup %13271 }
 0x8b6   :  { %24290 = vst [vmem:[#allocation34_spill] sm:$0xff] %v20119_v24  ;;  %v9382_v36 = vadd.f32 1.0, %v13272_v56  ;;  %13273 = vtanh.f32 %v20119_v24  ;;  %v24312_v56 = vld [vmem:[#allocation41_spill] sm:$0xff]  ;;  %v24318_v24 = vld [vmem:[#allocation35_spill] sm:$0xff] }
 0x8b8   :  { %13275 = vrcp.f32 %v9382_v36  ;;  %v24313_v36 = vld [vmem:[#allocation40_spill] sm:$0xff] }
 0x8c3   :  { %v13274_v45 = vpop.eup %13273 }
 0x8c5   :  { %v13276_v34 = vpop.eup %13275 }
 0x8c6   :  { %v9395_v40 = vmul.f32 %v13276_v34, %v13274_v45  ;;  %v24314_v45 = vld [vmem:[#allocation20_spill] sm:$0xff] }
 0x8c7   :  { %v24315_v34 = vld [vmem:[#allocation32_spill] sm:$0xff] }
 0x8c8   :  { %13169 = vst [vmem:[%s22223_s4 + $0x28] sm:$0xff] %v9395_v40  ;;  %v20125_v44 = vand.u32 4294901760, %v9395_v40 }
 0x8ca   :  { %24291 = vst [vmem:[#allocation42_spill] sm:$0xff] %v20125_v44  ;;  %9855 = vmatmul.mubr.f32.vlgmr.msra.gmra.mxu1 %v20125_v44  ;;  %v20129_v19 = vsub.f32 %v9395_v40, %v20125_v44  ;;  %v24316_v40 = vld [vmem:[#allocation15_spill] sm:$0xff]  ;;  %v24322_v44 = vld [vmem:[#allocation10_spill] sm:$0xff] }
 0x8cb   :  { %10001 = vmatpush1.msra.mxu1 %v19694_v31  ;;  %10094 = vmatprep.mubr.f32.mxu1 %v23244_v20 }
 0x8cc   :  { %24292 = vst [vmem:[#allocation7_spill] sm:$0xff] %v20129_v19  ;;  %10003 = vmatprep.subr.mxu1 %v19702_v29  ;;  %v20135_v3 = vand.u32 4294901760, %v20129_v19 }
 0x8cd   :  { %10005 = vmatpush1.msra.mxu1 %v19711_v1 }
 0x8ce   :  { %24293 = vst [vmem:[#allocation12_spill] sm:$0xff] %v20135_v3  ;;  %10007 = vmatprep.subr.mxu1 %v19721_v5  ;;  %v9621_v11 = vsub.f32 %v20129_v19, %v20135_v3 }
 0x8cf   :  { %10009 = vmatpush1.msra.mxu1 %v19731_v23 }
 0x8d0   :  { %10011 = vmatprep.subr.mxu1 %v19744_v28  ;;  %v20143_v18 = vand.u32 4294901760, %v9621_v11  ;;  %v24317_v11 = vld [vmem:[#allocation14_spill] sm:$0xff] }
 0x8d1   :  { %10013 = vmatpush1.msra.mxu1 %v19757_v47 }
 0x8d2   :  { %24294 = vst [vmem:[#allocation44_spill] sm:$0xff] %v20143_v18  ;;  %10015 = vmatprep.subr.mxu1 %v19789_v38  ;;  %9623 = vmatmul.mubr.f32.vlgmr.msra.gmra.mxu0 %v20143_v18  ;;  %v24321_v18 = vld [vmem:[#allocation8_spill] sm:$0xff] }
 0x8d3   :  { %9866 = vmatpush1.msra.mxu0 %v19709_v21  ;;  %10017 = vmatpush1.msra.mxu1 %v19798_v8 }
 0x8d4   :  { %9869 = vmatprep.subr.mxu0 %v19719_v46  ;;  %10019 = vmatprep.subr.mxu1 %v19809_v30 }
 0x8d5   :  { %9872 = vmatpush1.msra.mxu0 %v19729_v2  ;;  %10021 = vmatpush1.msra.mxu1 %v19821_v7 }
 0x8d6   :  { %9875 = vmatprep.subr.mxu0 %v19742_v0  ;;  %10023 = vmatprep.subr.mxu1 %v19831_v51 }
 0x8d7   :  { %9878 = vmatpush1.msra.mxu0 %v19755_v43  ;;  %10025 = vmatpush1.msra.mxu1 %v19841_v54 }
 0x8d8   :  { %9881 = vmatprep.subr.mxu0 %v19768_v27  ;;  %10027 = vmatprep.subr.mxu1 %v19851_v49 }
 0x8d9   :  { %9884 = vmatpush1.msra.mxu0 %v19779_v58  ;;  %10029 = vmatpush1.msra.mxu1 %v19861_v6 }
 0x8da   :  { %9887 = vmatprep.subr.mxu0 %v19807_v50  ;;  %10031 = vmatprep.subr.mxu1 %v19893_v25 }
 0x8db   :  { %9890 = vmatpush1.msra.mxu0 %v19819_v9  ;;  %10033 = vmatpush1.msra.mxu1 %v19902_v52 }
 0x8dc   :  { %9893 = vmatprep.subr.mxu0 %v19829_v16  ;;  %10035 = vmatprep.subr.mxu1 %v19913_v60 }
 0x8dd   :  { %9896 = vmatpush1.msra.mxu0 %v19839_v22  ;;  %10037 = vmatpush1.msra.mxu1 %v19925_v61 }
 0x8de   :  { %9899 = vmatprep.subr.mxu0 %v19849_v33  ;;  %10039 = vmatprep.subr.mxu1 %v19932_v4 }
 0x8df   :  { %9902 = vmatpush1.msra.mxu0 %v19859_v53  ;;  %10041 = vmatpush1.msra.mxu1 %v24295_v12 }
 0x8e0   :  { %9905 = vmatprep.subr.mxu0 %v24296_v10  ;;  %10043 = vmatprep.subr.mxu1 %v24297_v55 }
 0x8e1   :  { %9908 = vmatpush1.msra.mxu0 %v24298_v14  ;;  %10045 = vmatpush1.msra.mxu1 %v24299_v35 }
 0x8e2   :  { %9911 = vmatprep.subr.mxu0 %v24300_v15  ;;  %10047 = vmatprep.subr.mxu1 %v24301_v63 }
 0x8e3   :  { %9914 = vmatpush1.msra.mxu0 %v24302_v32  ;;  %10049 = vmatpush1.msra.mxu1 %v24303_v57 }
 0x8e4   :  { %9917 = vmatprep.subr.mxu0 %v24304_v17  ;;  %10051 = vmatprep.subr.mxu1 %v24305_v26 }
 0x8e5   :  { %9920 = vmatpush1.msra.mxu0 %v24306_v39  ;;  %10053 = vmatpush1.msra.mxu1 %v24307_v59 }
 0x8e6   :  { %9923 = vmatprep.subr.mxu0 %v24308_v37  ;;  %10055 = vmatprep.subr.mxu1 %v24309_v42 }
 0x8e7   :  { %9926 = vmatpush1.msra.mxu0 %v24310_v48  ;;  %10057 = vmatpush1.msra.mxu1 %v24311_v41 }
 0x8e8   :  { %9929 = vmatprep.subr.mxu0 %v24312_v56  ;;  %10059 = vmatprep.subr.mxu1 %v24313_v36 }
 0x8e9   :  { %9932 = vmatpush1.msra.mxu0 %v24314_v45  ;;  %10061 = vmatpush1.msra.mxu1 %v24315_v34 }
 0x8ea   :  { %9935 = vmatprep.subr.mxu0 %v24316_v40  ;;  %10098 = vmatmul.mubr.f32.vlgmr.msra.gmra.mxu1 %v20135_v3 }
 0x8eb   :  { %10273 = vmatprep.subr.mxu1 %v24317_v11  ;;  %9938 = vmatpush1.msra.mxu0 %v24318_v24  ;;  %v24323_v11 = vld [vmem:[#allocation22_spill] sm:$0xff] }
 0x8ec   :  { %10275 = vmatpush1.msra.mxu1 %v19694_v31  ;;  %9941 = vmatprep.subr.mxu0 %v24319_v13  ;;  %v24324_v31 = vld [vmem:[#allocation16_spill] sm:$0xff] }
 0x8ed   :  { %10277 = vmatprep.subr.mxu1 %v19702_v29  ;;  %9944 = vmatpush1.msra.mxu0 %v24320_v62  ;;  %v9520_v29 = vld [vmem:[%s22222_s3 + $0x1f8] sm:$0xff] }
 0x8ee   :  { %10279 = vmatpush1.msra.mxu1 %v19711_v1  ;;  %9947 = vmatprep.subr.mxu0 %v24321_v18  ;;  %v24325_v1 = vld [vmem:[#allocation17_spill] sm:$0xff]  ;;  %v20227_v3 = vand.u32 4294901760, %v9520_v29 }
 0x8ef   :  { %10281 = vmatprep.subr.mxu1 %v19721_v5  ;;  %9950 = vmatpush1.msra.mxu0 %v24322_v44  ;;  %v24326_v5 = vand.u32 4294901760, %v24325_v1  ;;  %v9516_v1 = vld [vmem:[%s22222_s3 + $0x1d8] sm:$0xff] }
 0x8f0   :  { %10283 = vmatpush1.msra.mxu1 %v19731_v23  ;;  %9953 = vmatprep.subr.mxu0 %v24323_v11  ;;  %v24327_v23 = vand.u32 4294901760, %v19709_v21  ;;  %v24329_v21 = vand.u32 4294901760, %v19729_v2  ;;  %v24331_v2 = vand.u32 4294901760, %v19755_v43  ;;  %v9508_v43 = vld [vmem:[%s22222_s3 + $0x198] sm:$0xff] }
 0x8f1   :  { %10285 = vmatprep.subr.mxu1 %v19744_v28  ;;  %9956 = vmatpush1.msra.mxu0 %v24324_v31  ;;  %v9519_v28 = vld [vmem:[%s22222_s3 + $0x1f0] sm:$0xff] }
 0x8f2   :  { %9989 = vmatprep.mubr.f32.mxu0 %v23244_v20  ;;  %10287 = vmatpush1.msra.mxu1 %v19757_v47  ;;  %v24328_v47 = vand.u32 4294901760, %v19719_v46  ;;  %v24330_v46 = vand.u32 4294901760, %v19742_v0  ;;  %v24332_v0 = vand.u32 4294901760, %v19768_v27  ;;  %v9507_v27 = vld [vmem:[%s22222_s3 + $0x190] sm:$0xff] }
 0x8f3   :  { %9992 = vmatmul.mubr.f32.vlgmr.msra.gmra.mxu0 %v20129_v19  ;;  %10107 = vmatprep.subr.mxu0 %v24326_v5  ;;  %v9512_v5 = vld [vmem:[%s22222_s3 + $0x1b8] sm:$0xff] }
 0x8f4   :  { %10289 = vmatprep.subr.mxu1 %v19789_v38  ;;  %10111 = vmatpush1.msra.mxu0 %v24327_v23  ;;  %v9515_v38 = vld [vmem:[%s22222_s3 + $0x1d0] sm:$0xff]  ;;  %v20258_v23 = vsub.f32 %v9520_v29, %v20227_v3 }
 0x8f5   :  { %10291 = vmatpush1.msra.mxu1 %v19798_v8  ;;  %10115 = vmatprep.subr.mxu0 %v24328_v47  ;;  %v20241_v8 = vand.u32 4294901760, %v9519_v28  ;;  %v20260_v47 = vand.u32 4294901760, %v9515_v38 }
 0x8f6   :  { %10293 = vmatprep.subr.mxu1 %v19809_v30  ;;  %10119 = vmatpush1.msra.mxu0 %v24329_v21  ;;  %v20249_v30 = vand.u32 4294901760, %v9516_v1  ;;  %v20268_v21 = vand.u32 4294901760, %v9512_v5 }
 0x8f7   :  { %10295 = vmatpush1.msra.mxu1 %v19821_v7  ;;  %10123 = vmatprep.subr.mxu0 %v24330_v46  ;;  %v9511_v7 = vld [vmem:[%s22222_s3 + $0x1b0] sm:$0xff]  ;;  %v20277_v29 = vsub.f32 %v9519_v28, %v20241_v8  ;;  %v24338_v28 = vand.u32 4294901760, %v19829_v16 }
 0x8f8   :  { %10297 = vmatprep.subr.mxu1 %v19831_v51  ;;  %10127 = vmatpush1.msra.mxu0 %v24331_v2  ;;  %v24333_v51 = vand.u32 4294901760, %v19779_v58  ;;  %v20279_v46 = vand.u32 4294901760, %v9511_v7  ;;  %v9504_v58 = vld [vmem:[%s22222_s3 + $0x178] sm:$0xff]  ;;  %v20288_v2 = vsub.f32 %v9516_v1, %v20249_v30 }
 0x8f9   :  { %10299 = vmatpush1.msra.mxu1 %v19841_v54  ;;  %10131 = vmatprep.subr.mxu0 %v24332_v0  ;;  %v24334_v54 = vand.u32 4294901760, %v19807_v50  ;;  %24335 = vst [vmem:[#allocation5_spill] sm:$0xff] %v20277_v29  ;;  %v9503_v50 = vld [vmem:[%s22222_s3 + $0x170] sm:$0xff]  ;;  %v23027_v0 = vand.u32 4294901760, %v20258_v23  ;;  %v9500_v1 = vld [vmem:[%s22222_s3 + $0x158] sm:$0xff]  ;;  %v20313_v16 = vand.u32 4294901760, %v9504_v58 }
 0x8fa   :  { %10301 = vmatprep.subr.mxu1 %v19851_v49  ;;  %10135 = vmatpush1.msra.mxu0 %v24333_v51  ;;  %v24336_v49 = vand.u32 4294901760, %v19819_v9  ;;  %24337 = vst [vmem:[#allocation21_spill] sm:$0xff] %v20288_v2  ;;  %v20302_v9 = vand.u32 4294901760, %v9507_v27  ;;  %v24340_v51 = vand.u32 4294901760, %v19839_v22  ;;  %v20325_v22 = vand.u32 4294901760, %v9503_v50 }
 0x8fb   :  { %10303 = vmatpush1.msra.mxu1 %v19861_v6  ;;  %10139 = vmatprep.subr.mxu0 %v24334_v54  ;;  %v20290_v6 = vand.u32 4294901760, %v9508_v43  ;;  %v24342_v54 = vand.u32 4294901760, %v19849_v33 }
 0x8fc   :  { %10305 = vmatprep.subr.mxu1 %v19893_v25  ;;  %10143 = vmatpush1.msra.mxu0 %v24336_v49  ;;  %v20300_v25 = vsub.f32 %v9515_v38, %v20260_v47  ;;  %v9499_v38 = vld [vmem:[%s22222_s3 + $0x150] sm:$0xff]  ;;  %v23028_v49 = vand.u32 4294901760, %v20277_v29 }
 0x8fd   :  { %10307 = vmatpush1.msra.mxu1 %v19902_v52  ;;  %10147 = vmatprep.subr.mxu0 %v24338_v28  ;;  %v20311_v52 = vsub.f32 %v9512_v5, %v20268_v21  ;;  %v9496_v5 = vld [vmem:[%s22222_s3 + $0x138] sm:$0xff]  ;;  %v24344_v28 = vand.u32 4294901760, %v19859_v53  ;;  %v20335_v33 = vsub.f32 %v9508_v43, %v20290_v6  ;;  %v20348_v53 = vsub.f32 %v20258_v23, %v23027_v0 }
 0x8fe   :  { %24339 = vst [vmem:[#allocation38_spill] sm:$0xff] %v20300_v25  ;;  %10309 = vmatprep.subr.mxu1 %v19913_v60  ;;  %10151 = vmatpush1.msra.mxu0 %v24340_v51  ;;  %v20323_v60 = vsub.f32 %v9511_v7, %v20279_v46  ;;  %v20337_v51 = vand.u32 4294901760, %v9500_v1  ;;  %v9495_v7 = vld [vmem:[%s22222_s3 + $0x130] sm:$0xff]  ;;  %v20352_v43 = vsub.f32 %v9507_v27, %v20302_v9  ;;  %v20366_v0 = vand.u32 4294901760, %v9496_v5 }
 0x8ff   :  { %24341 = vst [vmem:[#allocation24_spill] sm:$0xff] %v20311_v52  ;;  %10311 = vmatpush1.msra.mxu1 %v19925_v61  ;;  %10155 = vmatprep.subr.mxu0 %v24342_v54  ;;  %24345 = vst [vmem:[#allocation30_spill] sm:$0xff] %v20335_v33  ;;  %v24346_v54 = vand.u32 4294901760, %v24296_v10  ;;  %v9492_v61 = vld [vmem:[%s22222_s3 + $0x118] sm:$0xff]  ;;  %v24350_v27 = vand.u32 4294901760, %v24300_v15  ;;  %v24353_v15 = vand.u32 4294901760, %v20288_v2 }
 0x900   :  { %24343 = vst [vmem:[#allocation33_spill] sm:$0xff] %v20323_v60  ;;  %10313 = vmatprep.subr.mxu1 %v19932_v4  ;;  %10159 = vmatpush1.msra.mxu0 %v24344_v28  ;;  %24347 = vst [vmem:[#allocation45_spill] sm:$0xff] %v20352_v43  ;;  %v20354_v28 = vand.u32 4294901760, %v9499_v38  ;;  %v20374_v4 = vsub.f32 %v20277_v29, %v23028_v49  ;;  %v24355_v10 = vand.u32 4294901760, %v24304_v17 }
 0x901   :  { %10315 = vmatpush1.msra.mxu1 %v24295_v12  ;;  %10163 = vmatprep.subr.mxu0 %v24346_v54  ;;  %v24348_v12 = vand.u32 4294901760, %v24298_v14  ;;  %v20364_v54 = vsub.f32 %v9504_v58, %v20313_v16  ;;  %v20378_v14 = vsub.f32 %v9503_v50, %v20325_v22  ;;  %v9491_v58 = vld [vmem:[%s22222_s3 + $0x110] sm:$0xff]  ;;  %v20395_v50 = vsub.f32 %v9500_v1, %v20337_v51 }
 0x902   :  { %10317 = vmatprep.subr.mxu1 %v24297_v55  ;;  %v20397_v55 = vand.u32 4294901760, %v9492_v61  ;;  %v20410_v49 = vsub.f32 %v9499_v38, %v20354_v28  ;;  %v24358_v1 = vand.u32 4294901760, %v24306_v39  ;;  %v9488_v38 = vld [vmem:[%s22222_s3 + $0xf8] sm:$0xff]  ;;  %v10494_v39 = vand.u32 4294901760, %v20374_v4  ;;  %10368 = vmatprep.mubr.f32.mxu1 %v23244_v20 }
 0x903   :  { %10167 = vmatpush1.msra.mxu0 %v24348_v12  ;;  %24349 = vst [vmem:[#allocation9_spill] sm:$0xff] %v20364_v54  ;;  %10319 = vmatpush1.msra.mxu1 %v24299_v35  ;;  %24351 = vst [vmem:[#allocation11_spill] sm:$0xff] %v20378_v14  ;;  %v20380_v12 = vand.u32 4294901760, %v9495_v7  ;;  %v24352_v35 = vand.u32 4294901760, %v24302_v32  ;;  %v24356_v32 = vand.u32 4294901760, %v20300_v25  ;;  %v24375_v19 = vand.u32 4294901760, %v20395_v50 }
 0x904   :  { %10171 = vmatprep.subr.mxu0 %v24350_v27  ;;  %10321 = vmatprep.subr.mxu1 %v24301_v63  ;;  %v20391_v27 = vsub.f32 %v20288_v2, %v24353_v15  ;;  %24354 = vst [vmem:[#allocation37_spill] sm:$0xff] %v20395_v50  ;;  %v10488_v63 = vand.u32 4294901760, %v20348_v53  ;;  %24357 = vst [vmem:[#allocation18_spill] sm:$0xff] %v20410_v49  ;;  %v24364_v15 = vand.u32 4294901760, %v24310_v48 }
 0x905   :  { %10175 = vmatpush1.msra.mxu0 %v24352_v35  ;;  %10323 = vmatpush1.msra.mxu1 %v24303_v57  ;;  %v20406_v35 = vsub.f32 %v20300_v25, %v24356_v32  ;;  %v24359_v57 = vand.u32 4294901760, %v20311_v52  ;;  %v20424_v32 = vand.u32 4294901760, %v9491_v58  ;;  %v20440_v53 = vsub.f32 %v9495_v7, %v20380_v12  ;;  %v9487_v7 = vld [vmem:[%s22222_s3 + $0xf0] sm:$0xff] }
 0x906   :  { %10179 = vmatprep.subr.mxu0 %v24355_v10  ;;  %10325 = vmatprep.subr.mxu1 %v24305_v26  ;;  %v20422_v10 = vsub.f32 %v9496_v5, %v20366_v0  ;;  %v24361_v26 = vand.u32 4294901760, %v24308_v37  ;;  %v24365_v37 = vand.u32 4294901760, %v20335_v33  ;;  %v9483_v5 = vld [vmem:[%s22222_s3 + $0xd0] sm:$0xff] }
 0x907   :  { %10183 = vmatpush1.msra.mxu0 %v24358_v1  ;;  %v20418_v17 = vsub.f32 %v20311_v52, %v24359_v57  ;;  %10327 = vmatpush1.msra.mxu1 %v24307_v59  ;;  %v24362_v1 = vand.u32 4294901760, %v20323_v60  ;;  %24363 = vst [vmem:[#allocation13_spill] sm:$0xff] %v20440_v53  ;;  %v10500_v59 = vand.u32 4294901760, %v20391_v27  ;;  %v10506_v48 = vand.u32 4294901760, %v20406_v35 }
 0x908   :  { %24360 = vst [vmem:[#allocation25_spill] sm:$0xff] %v20422_v10  ;;  %10187 = vmatprep.subr.mxu0 %v24361_v26  ;;  %10329 = vmatprep.subr.mxu1 %v24309_v42  ;;  %v20449_v4 = vsub.f32 %v20335_v33, %v24365_v37  ;;  %v24367_v42 = vand.u32 4294901760, %v24312_v56  ;;  %v24368_v27 = vand.u32 4294901760, %v20352_v43  ;;  %v9484_v26 = vld [vmem:[%s22222_s3 + $0xd8] sm:$0xff]  ;;  %v24370_v35 = vand.u32 4294901760, %v20364_v54 }
 0x909   :  { %v20436_v57 = vsub.f32 %v20323_v60, %v24362_v1  ;;  %10191 = vmatpush1.msra.mxu0 %v24364_v15  ;;  %v20453_v1 = vsub.f32 %v9492_v61, %v20397_v55  ;;  %10331 = vmatpush1.msra.mxu1 %v24311_v41  ;;  %v20468_v61 = vand.u32 4294901760, %v9488_v38  ;;  %v24369_v41 = vand.u32 4294901760, %v24314_v45 }
 0x90a   :  { %10195 = vmatprep.subr.mxu0 %v24367_v42  ;;  %v20465_v15 = vsub.f32 %v20352_v43, %v24368_v27  ;;  %10333 = vmatprep.subr.mxu1 %v24313_v36  ;;  %v10512_v56 = vand.u32 4294901760, %v20418_v17  ;;  %v20480_v42 = vsub.f32 %v20364_v54, %v24370_v35  ;;  %v20484_v37 = vsub.f32 %v9491_v58, %v20424_v32  ;;  %v9480_v58 = vld [vmem:[%s22222_s3 + $0xb8] sm:$0xff]  ;;  %v9479_v54 = vld [vmem:[%s22222_s3 + $0xb0] sm:$0xff] }
 0x90b   :  { %24366 = vst [vmem:[#allocation43_spill] sm:$0xff] %v20453_v1  ;;  %10199 = vmatpush1.msra.mxu0 %v24369_v41  ;;  %10335 = vmatpush1.msra.mxu1 %v24315_v34  ;;  %v10518_v36 = vand.u32 4294901760, %v20436_v57  ;;  %v24372_v45 = vand.u32 4294901760, %v20378_v14  ;;  %v20498_v35 = vand.u32 4294901760, %v9487_v7  ;;  %v24373_v27 = vand.u32 4294901760, %v24316_v40  ;;  %v24374_v34 = vld [vmem:[#allocation42_spill] sm:$0xff] }
 0x90c   :  { %24371 = vst [vmem:[#allocation23_spill] sm:$0xff] %v20484_v37  ;;  %10370 = vmatmul.mubr.f32.vlgmr.msra.gmra.mxu1 %v24374_v34  ;;  %v10524_v57 = vand.u32 4294901760, %v20449_v4  ;;  %10489 = vmatprep.subr.mxu1 %v10488_v63  ;;  %v24376_v40 = vand.u32 4294901760, %v24318_v24  ;;  %v24377_v4 = vand.u32 4294901760, %v20410_v49  ;;  %v20529_v41 = vand.u32 4294901760, %v9483_v5 }
 0x90d   :  { %v20495_v17 = vsub.f32 %v20378_v14, %v24372_v45  ;;  %10203 = vmatprep.subr.mxu0 %v24373_v27  ;;  %v20510_v45 = vsub.f32 %v20395_v50, %v24375_v19  ;;  %v20513_v14 = vand.u32 4294901760, %v9484_v26  ;;  %v10530_v27 = vand.u32 4294901760, %v20465_v15  ;;  %v9476_v50 = vld [vmem:[%s22222_s3 + $0x98] sm:$0xff]  ;;  %10495 = vmatpush1.msra.mxu1 %v10494_v39 }
 0x90e   :  { %10207 = vmatpush1.msra.mxu0 %v24376_v40  ;;  %v20524_v43 = vsub.f32 %v20410_v49, %v24377_v4  ;;  %v20527_v19 = vsub.f32 %v9488_v38, %v20468_v61  ;;  %v24379_v24 = vand.u32 4294901760, %v24319_v13  ;;  %v10536_v63 = vand.u32 4294901760, %v20480_v42  ;;  %v9475_v49 = vld [vmem:[%s22222_s3 + $0x90] sm:$0xff]  ;;  %10501 = vmatprep.subr.mxu1 %v10500_v59 }
 0x90f   :  { %v24380_v15 = vand.u32 4294901760, %v20422_v10  ;;  %v20543_v4 = vand.u32 4294901760, %v9480_v58  ;;  %v24382_v39 = vand.u32 4294901760, %v24320_v62  ;;  %v10542_v13 = vand.u32 4294901760, %v20495_v17  ;;  %10507 = vmatpush1.msra.mxu1 %v10506_v48  ;;  %10264 = vmatprep.mubr.f32.mxu0 %v23244_v20 }
 0x910   :  { %24378 = vst [vmem:[#allocation31_spill] sm:$0xff] %v20527_v19  ;;  %10211 = vmatprep.subr.mxu0 %v24379_v24  ;;  %v24383_v42 = vand.u32 4294901760, %v20440_v53  ;;  %v20559_v38 = vand.u32 4294901760, %v9479_v54  ;;  %v24385_v62 = vand.u32 4294901760, %v24321_v18  ;;  %v10548_v59 = vand.u32 4294901760, %v20510_v45  ;;  %10513 = vmatprep.subr.mxu1 %v10512_v56  ;;  %v9467_v45 = vld [vmem:[%s22222_s3 + $0x50] sm:$0xff] }
 0x911   :  { %v20540_v40 = vsub.f32 %v20422_v10, %v24380_v15  ;;  %24381 = vst [vmem:[#allocation6_spill] sm:$0xff] %v20543_v4  ;;  %10215 = vmatpush1.msra.mxu0 %v24382_v39  ;;  %v20557_v15 = vsub.f32 %v9487_v7, %v20498_v35  ;;  %v9472_v10 = vld [vmem:[%s22222_s3 + $0x78] sm:$0xff]  ;;  %v24386_v17 = vand.u32 4294901760, %v20453_v1  ;;  %v20573_v7 = vsub.f32 %v9484_v26, %v20513_v14 }
 0x912   :  { %v20554_v24 = vsub.f32 %v20440_v53, %v24383_v42  ;;  %10219 = vmatprep.subr.mxu0 %v24385_v62  ;;  %v20575_v42 = vand.u32 4294901760, %v9476_v50  ;;  %v9471_v53 = vld [vmem:[%s22222_s3 + $0x70] sm:$0xff]  ;;  %v24388_v18 = vand.u32 4294901760, %v24322_v44  ;;  %v10554_v48 = vand.u32 4294901760, %v20524_v43  ;;  %v9468_v26 = vld [vmem:[%s22222_s3 + $0x58] sm:$0xff]  ;;  %10519 = vmatpush1.msra.mxu1 %v10518_v36 }
 0x913   :  { %24384 = vst [vmem:[#allocation39_spill] sm:$0xff] %v20557_v15  ;;  %v20570_v39 = vsub.f32 %v20453_v1, %v24386_v17  ;;  %24387 = vst [vmem:[#allocation41_spill] sm:$0xff] %v20573_v7  ;;  %v20585_v62 = vsub.f32 %v9483_v5, %v20529_v41  ;;  %v20587_v17 = vand.u32 4294901760, %v9475_v49  ;;  %v24389_v1 = vand.u32 4294901760, %v24323_v11  ;;  %10525 = vmatprep.subr.mxu1 %v10524_v57 }
 0x914   :  { %10223 = vmatpush1.msra.mxu0 %v24388_v18  ;;  %v10560_v44 = vand.u32 4294901760, %v20540_v40  ;;  %v24390_v56 = vand.u32 4294901760, %v20484_v37  ;;  %v20601_v5 = vsub.f32 %v9480_v58, %v20543_v4  ;;  %v20603_v18 = vand.u32 4294901760, %v9472_v10  ;;  %v9464_v58 = vld [vmem:[%s22222_s3 + $0x38] sm:$0xff]  ;;  %10531 = vmatpush1.msra.mxu1 %v10530_v27 }
 0x915   :  { %10227 = vmatprep.subr.mxu0 %v24389_v1  ;;  %v24391_v11 = vand.u32 4294901760, %v24324_v31  ;;  %v10566_v1 = vand.u32 4294901760, %v20554_v24  ;;  %v20613_v40 = vsub.f32 %v9479_v54, %v20559_v38  ;;  %v10572_v57 = vand.u32 4294901760, %v20570_v39  ;;  %v9463_v54 = vld [vmem:[%s22222_s3 + $0x30] sm:$0xff]  ;;  %10537 = vmatprep.subr.mxu1 %v10536_v63 }
 0x916   :  { %v20598_v43 = vsub.f32 %v20484_v37, %v24390_v56  ;;  %v20615_v56 = vand.u32 4294901760, %v9471_v53  ;;  %v20624_v24 = vsub.f32 %v9476_v50, %v20575_v42  ;;  %v24392_v36 = vand.u32 4294901760, %v20527_v19  ;;  %v9460_v37 = vld [vmem:[%s22222_s3 + $0x18] sm:$0xff]  ;;  %10543 = vmatpush1.msra.mxu1 %v10542_v13  ;;  %10708 = vmatprep.mubr.f32.mxu1 %v23244_v20 }
 0x917   :  { %10231 = vmatpush1.msra.mxu0 %v24391_v11  ;;  %v20626_v11 = vand.u32 4294901760, %v9468_v26  ;;  %v20638_v31 = vsub.f32 %v9475_v49, %v20587_v17  ;;  %v20640_v50 = vand.u32 4294901760, %v9467_v45  ;;  %v20651_v39 = vand.u32 4294901760, %v9464_v58  ;;  %v9459_v49 = vld [vmem:[%s22222_s3 + $0x10] sm:$0xff]  ;;  %10549 = vmatprep.subr.mxu1 %v10548_v59 }
 0x918   :  { %10266 = vmatmul.mubr.f32.vlgmr.msra.gmra.mxu0 %v24374_v34  ;;  %10377 = vmatprep.subr.mxu0 %v20227_v3  ;;  %v10583_v27 = vsub.f32 %v20527_v19, %v24392_v36  ;;  %v10578_v33 = vand.u32 4294901760, %v20598_v43  ;;  %v20649_v36 = vsub.f32 %v9472_v10, %v20603_v18  ;;  %v24394_v63 = vand.u32 4294901760, %v20557_v15 }
 0x919   :  { %24393 = vst [vmem:[#allocation40_spill] sm:$0xff] %v20640_v50  ;;  %10379 = vmatpush1.msra.mxu0 %v20241_v8  ;;  %v20662_v60 = vsub.f32 %v9471_v53, %v20615_v56  ;;  %v20664_v10 = vand.u32 4294901760, %v9463_v54  ;;  %v24395_v52 = vand.u32 4294901760, %v20573_v7  ;;  %v20672_v2 = vsub.f32 %v9468_v26, %v20626_v11  ;;  %10555 = vmatpush1.msra.mxu1 %v10554_v48 }
 0x91a   :  { %10381 = vmatprep.subr.mxu0 %v20249_v30  ;;  %v10589_v19 = vsub.f32 %v20557_v15, %v24394_v63  ;;  %v20674_v63 = vand.u32 4294901760, %v9460_v37  ;;  %v24396_v53 = vand.u32 4294901760, %v20585_v62  ;;  %v20682_v15 = vsub.f32 %v9467_v45, %v20640_v50  ;;  %10561 = vmatprep.subr.mxu1 %v10560_v44 }
 0x91b   :  { %10383 = vmatpush1.msra.mxu0 %v20260_v47  ;;  %v10595_v13 = vsub.f32 %v20573_v7, %v24395_v52  ;;  %v20684_v52 = vand.u32 4294901760, %v9459_v49  ;;  %v10584_v26 = vand.u32 4294901760, %v10583_v27  ;;  %v24397_v25 = vand.u32 4294901760, %v20601_v5  ;;  %10567 = vmatpush1.msra.mxu1 %v10566_v1 }
 0x91c   :  { %10385 = vmatprep.subr.mxu0 %v20268_v21  ;;  %v10601_v59 = vsub.f32 %v20585_v62, %v24396_v53  ;;  %v20692_v29 = vsub.f32 %v9464_v58, %v20651_v39  ;;  %v10590_v45 = vand.u32 4294901760, %v10589_v19  ;;  %v24398_v53 = vand.u32 4294901760, %v20613_v40  ;;  %10573 = vmatprep.subr.mxu1 %v10572_v57 }
 0x91d   :  { %10387 = vmatpush1.msra.mxu0 %v20279_v46  ;;  %v10607_v48 = vsub.f32 %v20601_v5, %v24397_v25  ;;  %v20700_v27 = vsub.f32 %v9463_v54, %v20664_v10  ;;  %v10596_v25 = vand.u32 4294901760, %v10595_v13  ;;  %v24399_v58 = vand.u32 4294901760, %v20624_v24  ;;  %10579 = vmatpush1.msra.mxu1 %v10578_v33 }
 0x91e   :  { %10389 = vmatprep.subr.mxu0 %v20290_v6  ;;  %v10613_v44 = vsub.f32 %v20613_v40, %v24398_v53  ;;  %v20708_v19 = vsub.f32 %v9460_v37, %v20674_v63  ;;  %v10602_v53 = vand.u32 4294901760, %v10601_v59  ;;  %v24400_v54 = vand.u32 4294901760, %v20638_v31  ;;  %10585 = vmatprep.subr.mxu1 %v10584_v26 }
 0x91f   :  { %10391 = vmatpush1.msra.mxu0 %v20302_v9  ;;  %v10619_v1 = vsub.f32 %v20624_v24, %v24399_v58  ;;  %v20716_v13 = vsub.f32 %v9459_v49, %v20684_v52  ;;  %v10608_v58 = vand.u32 4294901760, %v10607_v48  ;;  %v24401_v37 = vand.u32 4294901760, %v20649_v36  ;;  %10591 = vmatpush1.msra.mxu1 %v10590_v45 }
 0x920   :  { %10393 = vmatprep.subr.mxu0 %v20313_v16  ;;  %v10625_v57 = vsub.f32 %v20638_v31, %v24400_v54  ;;  %v10614_v59 = vand.u32 4294901760, %v10613_v44  ;;  %v24402_v54 = vand.u32 4294901760, %v20662_v60  ;;  %10597 = vmatprep.subr.mxu1 %v10596_v25  ;;  %v24403_v48 = vand.u32 4294901760, %v20672_v2 }
 0x921   :  { %10395 = vmatpush1.msra.mxu0 %v20325_v22  ;;  %v10631_v33 = vsub.f32 %v20649_v36, %v24401_v37  ;;  %v10620_v26 = vand.u32 4294901760, %v10619_v1  ;;  %10603 = vmatpush1.msra.mxu1 %v10602_v53  ;;  %v24404_v44 = vand.u32 4294901760, %v20682_v15  ;;  %v23066_v49 = vand.u32 4294901760, %v20716_v13 }
 0x922   :  { %10397 = vmatprep.subr.mxu0 %v20337_v51  ;;  %v10637_v43 = vsub.f32 %v20662_v60, %v24402_v54  ;;  %v10643_v37 = vsub.f32 %v20672_v2, %v24403_v48  ;;  %v10626_v45 = vand.u32 4294901760, %v10625_v57  ;;  %10609 = vmatprep.subr.mxu1 %v10608_v58  ;;  %v24405_v1 = vand.u32 4294901760, %v20692_v29 }
 0x923   :  { %10399 = vmatpush1.msra.mxu0 %v20354_v28  ;;  %v10649_v54 = vsub.f32 %v20682_v15, %v24404_v44  ;;  %v10632_v25 = vand.u32 4294901760, %v10631_v33  ;;  %10615 = vmatpush1.msra.mxu1 %v10614_v59  ;;  %v24406_v57 = vand.u32 4294901760, %v20700_v27  ;;  %v24407_v58 = vand.u32 4294901760, %v20708_v19 }
 0x924   :  { %10401 = vmatprep.subr.mxu0 %v20366_v0  ;;  %v10655_v48 = vsub.f32 %v20692_v29, %v24405_v1  ;;  %v10638_v53 = vand.u32 4294901760, %v10637_v43  ;;  %10621 = vmatprep.subr.mxu1 %v10620_v26  ;;  %v10644_v44 = vand.u32 4294901760, %v10643_v37  ;;  %v10673_v43 = vsub.f32 %v20716_v13, %v23066_v49  ;;  %v24424_v49 = vld [vmem:[#allocation31_spill] sm:$0xff] }
 0x925   :  { %10403 = vmatpush1.msra.mxu0 %v20380_v12  ;;  %v10661_v7 = vsub.f32 %v20700_v27, %v24406_v57  ;;  %v10667_v33 = vsub.f32 %v20708_v19, %v24407_v58  ;;  %10627 = vmatpush1.msra.mxu1 %v10626_v45  ;;  %v10650_v1 = vand.u32 4294901760, %v10649_v54  ;;  %v24409_v54 = vld [vmem:[#allocation5_spill] sm:$0xff] }
 0x926   :  { %10405 = vmatprep.subr.mxu0 %v20397_v55  ;;  %10633 = vmatprep.subr.mxu1 %v10632_v25  ;;  %v10656_v59 = vand.u32 4294901760, %v10655_v48  ;;  %v10674_v45 = vand.u32 4294901760, %v10673_v43  ;;  %v24410_v25 = vld [vmem:[#allocation21_spill] sm:$0xff]  ;;  %v24411_v48 = vld [vmem:[#allocation38_spill] sm:$0xff] }
 0x927   :  { %10407 = vmatpush1.msra.mxu0 %v20424_v32  ;;  %10639 = vmatpush1.msra.mxu1 %v10638_v53  ;;  %v10662_v26 = vand.u32 4294901760, %v10661_v7  ;;  %v10668_v37 = vand.u32 4294901760, %v10667_v33  ;;  %v24408_v7 = vld [vmem:[#allocation44_spill] sm:$0xff]  ;;  %v24413_v57 = vld [vmem:[#allocation33_spill] sm:$0xff] }
 0x928   :  { %10409 = vmatprep.subr.mxu0 %v20468_v61  ;;  %10645 = vmatprep.subr.mxu1 %v10644_v44  ;;  %v24412_v53 = vld [vmem:[#allocation24_spill] sm:$0xff]  ;;  %v24414_v44 = vld [vmem:[#allocation30_spill] sm:$0xff]  ;;  %v24415_v58 = vld [vmem:[#allocation45_spill] sm:$0xff] }
 0x929   :  { %10411 = vmatpush1.msra.mxu0 %v20498_v35  ;;  %10651 = vmatpush1.msra.mxu1 %v10650_v1  ;;  %v24416_v33 = vld [vmem:[#allocation9_spill] sm:$0xff]  ;;  %v24417_v1 = vld [vmem:[#allocation11_spill] sm:$0xff] }
 0x92a   :  { %10413 = vmatprep.subr.mxu0 %v20513_v14  ;;  %10657 = vmatprep.subr.mxu1 %v10656_v59  ;;  %v24418_v43 = vld [vmem:[#allocation37_spill] sm:$0xff]  ;;  %v24419_v59 = vld [vmem:[#allocation18_spill] sm:$0xff] }
 0x92b   :  { %10415 = vmatpush1.msra.mxu0 %v20529_v41  ;;  %10663 = vmatpush1.msra.mxu1 %v10662_v26  ;;  %v24420_v26 = vld [vmem:[#allocation25_spill] sm:$0xff] }
 0x92c   :  { %10417 = vmatprep.subr.mxu0 %v20543_v4  ;;  %10669 = vmatprep.subr.mxu1 %v10668_v37  ;;  %v24421_v37 = vld [vmem:[#allocation13_spill] sm:$0xff] }
 0x92d   :  { %10419 = vmatpush1.msra.mxu0 %v20559_v38  ;;  %10675 = vmatpush1.msra.mxu1 %v10674_v45  ;;  %v24422_v45 = vld [vmem:[#allocation43_spill] sm:$0xff] }
 0x92e   :  { %10421 = vmatprep.subr.mxu0 %v20575_v42  ;;  %10710 = vmatmul.mubr.f32.vlgmr.msra.gmra.mxu1 %v24374_v34  ;;  %v24425_v34 = vld [vmem:[#allocation39_spill] sm:$0xff] }
 0x92f   :  { %10423 = vmatpush1.msra.mxu0 %v20587_v17  ;;  %10854 = vmatprep.subr.mxu1 %v20227_v3 }
 0x930   :  { %10425 = vmatprep.subr.mxu0 %v20603_v18  ;;  %10856 = vmatpush1.msra.mxu1 %v20241_v8 }
 0x931   :  { %10427 = vmatpush1.msra.mxu0 %v20615_v56  ;;  %10858 = vmatprep.subr.mxu1 %v20249_v30 }
 0x932   :  { %10429 = vmatprep.subr.mxu0 %v20626_v11  ;;  %10860 = vmatpush1.msra.mxu1 %v20260_v47 }
 0x933   :  { %10431 = vmatpush1.msra.mxu0 %v20640_v50  ;;  %10862 = vmatprep.subr.mxu1 %v20268_v21 }
 0x934   :  { %10433 = vmatprep.subr.mxu0 %v20651_v39  ;;  %10864 = vmatpush1.msra.mxu1 %v20279_v46 }
 0x935   :  { %10435 = vmatpush1.msra.mxu0 %v20664_v10  ;;  %10866 = vmatprep.subr.mxu1 %v20290_v6 }
 0x936   :  { %10437 = vmatprep.subr.mxu0 %v20674_v63  ;;  %10472 = vmatprep.mubr.f32.mxu0 %v23244_v20 }
 0x937   :  { %10439 = vmatpush1.msra.mxu0 %v20684_v52  ;;  %10868 = vmatpush1.msra.mxu1 %v20302_v9 }
 0x938   :  { %10478 = vmatmul.mubr.f32.vlgmr.msra.gmra.mxu0 %v24408_v7  ;;  %10718 = vmatprep.subr.mxu0 %v20258_v23  ;;  %v24423_v7 = vld [vmem:[#allocation23_spill] sm:$0xff] }
 0x939   :  { %10870 = vmatprep.subr.mxu1 %v20313_v16  ;;  %10721 = vmatpush1.msra.mxu0 %v24409_v54 }
 0x93a   :  { %10872 = vmatpush1.msra.mxu1 %v20325_v22  ;;  %10724 = vmatprep.subr.mxu0 %v24410_v25 }
 0x93b   :  { %10874 = vmatprep.subr.mxu1 %v20337_v51  ;;  %10727 = vmatpush1.msra.mxu0 %v24411_v48 }
 0x93c   :  { %10876 = vmatpush1.msra.mxu1 %v20354_v28  ;;  %10730 = vmatprep.subr.mxu0 %v24412_v53 }
 0x93d   :  { %10878 = vmatprep.subr.mxu1 %v20366_v0  ;;  %10733 = vmatpush1.msra.mxu0 %v24413_v57 }
 0x93e   :  { %10880 = vmatpush1.msra.mxu1 %v20380_v12  ;;  %10736 = vmatprep.subr.mxu0 %v24414_v44 }
 0x93f   :  { %10882 = vmatprep.subr.mxu1 %v20397_v55  ;;  %10739 = vmatpush1.msra.mxu0 %v24415_v58 }
 0x940   :  { %10884 = vmatpush1.msra.mxu1 %v20424_v32  ;;  %10742 = vmatprep.subr.mxu0 %v24416_v33 }
 0x941   :  { %10886 = vmatprep.subr.mxu1 %v20468_v61  ;;  %10745 = vmatpush1.msra.mxu0 %v24417_v1 }
 0x942   :  { %10888 = vmatpush1.msra.mxu1 %v20498_v35  ;;  %10748 = vmatprep.subr.mxu0 %v24418_v43 }
 0x943   :  { %10890 = vmatprep.subr.mxu1 %v20513_v14  ;;  %10751 = vmatpush1.msra.mxu0 %v24419_v59 }
 0x944   :  { %10892 = vmatpush1.msra.mxu1 %v20529_v41  ;;  %10754 = vmatprep.subr.mxu0 %v24420_v26 }
 0x945   :  { %10894 = vmatprep.subr.mxu1 %v20543_v4  ;;  %10757 = vmatpush1.msra.mxu0 %v24421_v37  ;;  %v24426_v4 = vld [vmem:[#allocation41_spill] sm:$0xff] }
 0x946   :  { %10896 = vmatpush1.msra.mxu1 %v20559_v38  ;;  %10760 = vmatprep.subr.mxu0 %v24422_v45 }
 0x947   :  { %10898 = vmatprep.subr.mxu1 %v20575_v42  ;;  %10763 = vmatpush1.msra.mxu0 %v24423_v7 }
 0x948   :  { %10900 = vmatpush1.msra.mxu1 %v20587_v17  ;;  %10766 = vmatprep.subr.mxu0 %v24424_v49 }
 0x949   :  { %10902 = vmatprep.subr.mxu1 %v20603_v18  ;;  %10769 = vmatpush1.msra.mxu0 %v24425_v34 }
 0x94a   :  { %10904 = vmatpush1.msra.mxu1 %v20615_v56  ;;  %10772 = vmatprep.subr.mxu0 %v24426_v4 }
 0x94b   :  { %10906 = vmatprep.subr.mxu1 %v20626_v11  ;;  %10775 = vmatpush1.msra.mxu0 %v20585_v62 }
 0x94c   :  { %10908 = vmatpush1.msra.mxu1 %v20640_v50  ;;  %10778 = vmatprep.subr.mxu0 %v20601_v5  ;;  %v24427_v50 = vld [vmem:[#allocation12_spill] sm:$0xff] }
 0x94d   :  { %10910 = vmatprep.subr.mxu1 %v20651_v39  ;;  %10781 = vmatpush1.msra.mxu0 %v20613_v40 }
 0x94e   :  { %10912 = vmatpush1.msra.mxu1 %v20664_v10  ;;  %10784 = vmatprep.subr.mxu0 %v20624_v24 }
 0x94f   :  { %10914 = vmatprep.subr.mxu1 %v20674_v63  ;;  %10787 = vmatpush1.msra.mxu0 %v20638_v31 }
 0x950   :  { %10916 = vmatpush1.msra.mxu1 %v20684_v52  ;;  %10949 = vmatprep.mubr.f32.mxu1 %v23244_v20 }
 0x951   :  { %10790 = vmatprep.subr.mxu0 %v20649_v36  ;;  %10953 = vmatmul.mubr.f32.vlgmr.msra.gmra.mxu1 %v24427_v50 }
 0x952   :  { %11128 = vmatprep.subr.mxu1 %v20227_v3  ;;  %10793 = vmatpush1.msra.mxu0 %v20662_v60  ;;  %v24428_v3 = vld [vmem:[#allocation7_spill] sm:$0xff] }
 0x953   :  { %11130 = vmatpush1.msra.mxu1 %v20241_v8  ;;  %10796 = vmatprep.subr.mxu0 %v20672_v2  ;;  %v24429_v8 = vand.u32 4294901760, %v20258_v23  ;;  %v24433_v23 = vand.u32 4294901760, %v24412_v53 }
 0x954   :  { %11132 = vmatprep.subr.mxu1 %v20249_v30  ;;  %10799 = vmatpush1.msra.mxu0 %v20682_v15  ;;  %v24430_v30 = vand.u32 4294901760, %v24409_v54 }
 0x955   :  { %11134 = vmatpush1.msra.mxu1 %v20260_v47  ;;  %10802 = vmatprep.subr.mxu0 %v20692_v29  ;;  %v24431_v47 = vand.u32 4294901760, %v24410_v25 }
 0x956   :  { %11136 = vmatprep.subr.mxu1 %v20268_v21  ;;  %10805 = vmatpush1.msra.mxu0 %v20700_v27  ;;  %v24432_v21 = vand.u32 4294901760, %v24411_v48  ;;  %v11372_v48 = vld [vmem:[%s22222_s3 + $0x1a0] sm:$0xff] }
 0x957   :  { %11138 = vmatpush1.msra.mxu1 %v20279_v46  ;;  %10808 = vmatprep.subr.mxu0 %v20708_v19  ;;  %v24434_v46 = vand.u32 4294901760, %v24413_v57 }
 0x958   :  { %11140 = vmatprep.subr.mxu1 %v20290_v6  ;;  %10811 = vmatpush1.msra.mxu0 %v20716_v13  ;;  %v24435_v6 = vand.u32 4294901760, %v24414_v44  ;;  %v20988_v44 = vand.u32 4294901760, %v11372_v48 }
 0x959   :  { %10844 = vmatprep.mubr.f32.mxu0 %v23244_v20  ;;  %11142 = vmatpush1.msra.mxu1 %v20302_v9  ;;  %v24436_v9 = vand.u32 4294901760, %v24415_v58  ;;  %v11369_v58 = vld [vmem:[%s22222_s3 + $0x188] sm:$0xff] }
 0x95a   :  { %10847 = vmatmul.mubr.f32.vlgmr.msra.gmra.mxu0 %v24428_v3  ;;  %10962 = vmatprep.subr.mxu0 %v24429_v8  ;;  %v11365_v8 = vld [vmem:[%s22222_s3 + $0x168] sm:$0xff] }
 0x95b   :  { %11144 = vmatprep.subr.mxu1 %v20313_v16  ;;  %10966 = vmatpush1.msra.mxu0 %v24430_v30  ;;  %v24437_v16 = vand.u32 4294901760, %v24416_v33 }
 0x95c   :  { %11146 = vmatpush1.msra.mxu1 %v20325_v22  ;;  %10970 = vmatprep.subr.mxu0 %v24431_v47  ;;  %v24439_v22 = vand.u32 4294901760, %v24418_v43 }
 0x95d   :  { %11148 = vmatprep.subr.mxu1 %v20337_v51  ;;  %10974 = vmatpush1.msra.mxu0 %v24432_v21  ;;  %v24440_v51 = vand.u32 4294901760, %v24419_v59  ;;  %v21001_v59 = vand.u32 4294901760, %v11369_v58 }
 0x95e   :  { %11150 = vmatpush1.msra.mxu1 %v20354_v28  ;;  %10978 = vmatprep.subr.mxu0 %v24433_v23  ;;  %v24441_v28 = vand.u32 4294901760, %v24420_v26  ;;  %v11368_v26 = vld [vmem:[%s22222_s3 + $0x180] sm:$0xff] }
 0x95f   :  { %11152 = vmatprep.subr.mxu1 %v20366_v0  ;;  %10982 = vmatpush1.msra.mxu0 %v24434_v46  ;;  %v24438_v0 = vand.u32 4294901760, %v24417_v1  ;;  %v21014_v3 = vand.u32 4294901760, %v11368_v26  ;;  %v21025_v23 = vsub.f32 %v11369_v58, %v21001_v59  ;;  %v11364_v46 = vld [vmem:[%s22222_s3 + $0x160] sm:$0xff] }
 0x960   :  { %11154 = vmatpush1.msra.mxu1 %v20380_v12  ;;  %10986 = vmatprep.subr.mxu0 %v24435_v6  ;;  %v24443_v12 = vand.u32 4294901760, %v24421_v37 }
 0x961   :  { %11156 = vmatprep.subr.mxu1 %v20397_v55  ;;  %10990 = vmatpush1.msra.mxu0 %v24436_v9  ;;  %v24442_v55 = vld [vmem:[#allocation6_spill] sm:$0xff] }
 0x962   :  { %11158 = vmatpush1.msra.mxu1 %v20424_v32  ;;  %10994 = vmatprep.subr.mxu0 %v24437_v16  ;;  %v24444_v32 = vand.u32 4294901760, %v24422_v45 }
 0x963   :  { %11160 = vmatprep.subr.mxu1 %v20468_v61  ;;  %10998 = vmatpush1.msra.mxu0 %v24438_v0  ;;  %v24446_v61 = vand.u32 4294901760, %v24424_v49  ;;  %v21036_v0 = vsub.f32 %v11368_v26, %v21014_v3 }
 0x964   :  { %11162 = vmatpush1.msra.mxu1 %v20498_v35  ;;  %11002 = vmatprep.subr.mxu0 %v24439_v22  ;;  %v24448_v35 = vand.u32 4294901760, %v24426_v4  ;;  %v24453_v4 = vand.u32 4294901760, %v20624_v24  ;;  %v24460_v24 = vand.u32 4294901760, %v20692_v29  ;;  %v11380_v29 = vld [vmem:[%s22222_s3 + $0x1e0] sm:$0xff]  ;;  %v11361_v22 = vld [vmem:[%s22222_s3 + $0x148] sm:$0xff] }
 0x965   :  { %11164 = vmatprep.subr.mxu1 %v20513_v14  ;;  %11006 = vmatpush1.msra.mxu0 %v24440_v51  ;;  %v24445_v14 = vand.u32 4294901760, %v24423_v7  ;;  %v20951_v50 = vand.u32 4294901760, %v11380_v29  ;;  %v21012_v7 = vsub.f32 %v11372_v48, %v20988_v44 }
 0x966   :  { %11166 = vmatpush1.msra.mxu1 %v20529_v41  ;;  %11010 = vmatprep.subr.mxu0 %v24441_v28  ;;  %v24447_v41 = vand.u32 4294901760, %v24425_v34  ;;  %v24452_v34 = vand.u32 4294901760, %v20613_v40  ;;  %v24457_v40 = vand.u32 4294901760, %v20662_v60  ;;  %v24463_v60 = vand.u32 4294901760, %v20716_v13  ;;  %v11373_v13 = vld [vmem:[%s22222_s3 + $0x1a8] sm:$0xff] }
 0x967   :  { %11168 = vmatprep.subr.mxu1 %v24442_v55  ;;  %11014 = vmatpush1.msra.mxu0 %v24443_v12  ;;  %v20978_v25 = vand.u32 4294901760, %v11373_v13  ;;  %v23083_v16 = vand.u32 4294901760, %v21012_v7  ;;  %v23081_v55 = vand.u32 4294901760, %v21025_v23  ;;  %v21046_v12 = vand.u32 4294901760, %v11365_v8 }
 0x968   :  { %11170 = vmatpush1.msra.mxu1 %v20559_v38  ;;  %11018 = vmatprep.subr.mxu0 %v24444_v32  ;;  %v24449_v38 = vand.u32 4294901760, %v20585_v62  ;;  %v24454_v62 = vand.u32 4294901760, %v20638_v31  ;;  %v24459_v31 = vand.u32 4294901760, %v20682_v15  ;;  %v11360_v32 = vld [vmem:[%s22222_s3 + $0x140] sm:$0xff] }
 0x969   :  { %11172 = vmatprep.subr.mxu1 %v20575_v42  ;;  %11022 = vmatpush1.msra.mxu0 %v24445_v14  ;;  %v24450_v42 = vld [vmem:[#allocation40_spill] sm:$0xff]  ;;  %v20999_v43 = vsub.f32 %v11373_v13, %v20978_v25 }
 0x96a   :  { %11174 = vmatpush1.msra.mxu1 %v20587_v17  ;;  %11026 = vmatprep.subr.mxu0 %v24446_v61  ;;  %v24451_v17 = vand.u32 4294901760, %v20601_v5  ;;  %v24455_v5 = vand.u32 4294901760, %v20649_v36  ;;  %v11377_v36 = vld [vmem:[%s22222_s3 + $0x1c8] sm:$0xff]  ;;  %v11525_v61 = vsub.f32 %v21012_v7, %v23083_v16 }
 0x96b   :  { %11176 = vmatprep.subr.mxu1 %v20603_v18  ;;  %11030 = vmatpush1.msra.mxu0 %v24447_v41  ;;  %v24456_v18 = vld [vmem:[#allocation42_spill] sm:$0xff]  ;;  %v23085_v21 = vand.u32 4294901760, %v20999_v43  ;;  %v23079_v41 = vand.u32 4294901760, %v21036_v0 }
 0x96c   :  { %11178 = vmatpush1.msra.mxu1 %v20615_v56  ;;  %11034 = vmatprep.subr.mxu0 %v24448_v35  ;;  %v24458_v56 = vand.u32 4294901760, %v20672_v2  ;;  %v11381_v2 = vld [vmem:[%s22222_s3 + $0x1e8] sm:$0xff]  ;;  %v21055_v35 = vand.u32 4294901760, %v11364_v46 }
 0x96d   :  { %11180 = vmatprep.subr.mxu1 %v20626_v11  ;;  %11038 = vmatpush1.msra.mxu0 %v24449_v38  ;;  %v24461_v11 = vand.u32 4294901760, %v20700_v27  ;;  %v20946_v15 = vand.u32 4294901760, %v11381_v2  ;;  %v20966_v27 = vsub.f32 %v11380_v29, %v20951_v50  ;;  %v11519_v28 = vsub.f32 %v20999_v43, %v23085_v21  ;;  %v11357_v38 = vld [vmem:[%s22222_s3 + $0x128] sm:$0xff] }
 0x96e   :  { %11182 = vmatpush1.msra.mxu1 %v24450_v42  ;;  %11042 = vmatprep.subr.mxu0 %v24451_v17  ;;  %v11531_v17 = vsub.f32 %v21025_v23, %v23081_v55 }
 0x96f   :  { %11184 = vmatprep.subr.mxu1 %v20651_v39  ;;  %11046 = vmatpush1.msra.mxu0 %v24452_v34  ;;  %v24462_v39 = vand.u32 4294901760, %v20708_v19  ;;  %24464 = vst [vmem:[#allocation20_spill] sm:$0xff] %v20946_v15  ;;  %v23090_v53 = vand.u32 4294901760, %v20966_v27  ;;  %v11520_v42 = vand.u32 4294901760, %v11519_v28  ;;  %v21064_v34 = vsub.f32 %v11365_v8, %v21046_v12  ;;  %v11348_v28 = vld [vmem:[%s22222_s3 + $0xe0] sm:$0xff] }
 0x970   :  { %11186 = vmatpush1.msra.mxu1 %v20664_v10  ;;  %11050 = vmatprep.subr.mxu0 %v24453_v4  ;;  %v20957_v10 = vsub.f32 %v11381_v2, %v20946_v15  ;;  %v21066_v4 = vand.u32 4294901760, %v11361_v22  ;;  %v11352_v2 = vld [vmem:[%s22222_s3 + $0x100] sm:$0xff] }
 0x971   :  { %11188 = vmatprep.subr.mxu1 %v20674_v63  ;;  %11054 = vmatpush1.msra.mxu0 %v24454_v62  ;;  %v20959_v63 = vand.u32 4294901760, %v11377_v36  ;;  %v11501_v37 = vsub.f32 %v20966_v27, %v23090_v53  ;;  %v11356_v62 = vld [vmem:[%s22222_s3 + $0x120] sm:$0xff] }
 0x972   :  { %11190 = vmatpush1.msra.mxu1 %v20684_v52  ;;  %11223 = vmatprep.mubr.f32.mxu1 %v23244_v20  ;;  %24465 = vst [vmem:[#allocation32_spill] sm:$0xff] %v20957_v10  ;;  %v11376_v52 = vld [vmem:[%s22222_s3 + $0x1c0] sm:$0xff]  ;;  %v23091_v49 = vand.u32 4294901760, %v20957_v10  ;;  %v21098_v13 = vand.u32 4294901760, %v11356_v62 }
 0x973   :  { %11058 = vmatprep.subr.mxu0 %v24455_v5  ;;  %11225 = vmatmul.mubr.f32.vlgmr.msra.gmra.mxu1 %v24456_v18  ;;  %v20968_v19 = vand.u32 4294901760, %v11376_v52  ;;  %v20976_v54 = vsub.f32 %v11377_v36, %v20959_v63  ;;  %v11502_v6 = vand.u32 4294901760, %v11501_v37  ;;  %v11526_v5 = vand.u32 4294901760, %v11525_v61 }
 0x974   :  { %11062 = vmatpush1.msra.mxu0 %v24457_v40  ;;  %11119 = vmatprep.mubr.f32.mxu0 %v23244_v20  ;;  %v11495_v33 = vsub.f32 %v20957_v10, %v23091_v49  ;;  %v21076_v40 = vsub.f32 %v11364_v46, %v21055_v35  ;;  %v11349_v46 = vld [vmem:[%s22222_s3 + $0xe8] sm:$0xff] }
 0x975   :  { %11066 = vmatprep.subr.mxu0 %v24458_v56  ;;  %11716 = vmatprep.mubr.f32.mxu1 %v23244_v20  ;;  %v20986_v57 = vsub.f32 %v11376_v52, %v20968_v19  ;;  %v23087_v1 = vand.u32 4294901760, %v20976_v54  ;;  %v21078_v56 = vand.u32 4294901760, %v11360_v32 }
 0x976   :  { %11070 = vmatpush1.msra.mxu0 %v24459_v31  ;;  %v11496_v30 = vand.u32 4294901760, %v11495_v33  ;;  %v11353_v31 = vld [vmem:[%s22222_s3 + $0x108] sm:$0xff]  ;;  %v23076_v36 = vand.u32 4294901760, %v21076_v40 }
 0x977   :  { %11074 = vmatprep.subr.mxu0 %v24460_v24  ;;  %v23086_v45 = vand.u32 4294901760, %v20986_v57  ;;  %v11507_v47 = vsub.f32 %v20976_v54, %v23087_v1  ;;  %v11532_v24 = vand.u32 4294901760, %v11531_v17  ;;  %v21096_v52 = vsub.f32 %v11360_v32, %v21078_v56 }
 0x978   :  { %11078 = vmatpush1.msra.mxu0 %v24461_v11  ;;  %11497 = vmatprep.subr.mxu1 %v11496_v30  ;;  %v23077_v11 = vand.u32 4294901760, %v21064_v34  ;;  %v21108_v26 = vand.u32 4294901760, %v11353_v31  ;;  %v11549_v37 = vsub.f32 %v21076_v40, %v23076_v36  ;;  %v21116_v30 = vsub.f32 %v11356_v62, %v21098_v13 }
 0x979   :  { %11082 = vmatprep.subr.mxu0 %v24462_v39  ;;  %v11513_v9 = vsub.f32 %v20986_v57, %v23086_v45  ;;  %v11508_v51 = vand.u32 4294901760, %v11507_v47  ;;  %11503 = vmatpush1.msra.mxu1 %v11502_v6  ;;  %v21086_v39 = vsub.f32 %v11361_v22, %v21066_v4  ;;  %v23073_v8 = vand.u32 4294901760, %v21096_v52 }
 0x97a   :  { %11086 = vmatpush1.msra.mxu0 %v24463_v60  ;;  %v21088_v60 = vand.u32 4294901760, %v11357_v38  ;;  %v11543_v48 = vsub.f32 %v21064_v34, %v23077_v11  ;;  %v21118_v47 = vand.u32 4294901760, %v11352_v2  ;;  %v11550_v32 = vand.u32 4294901760, %v11549_v37  ;;  %v11341_v37 = vld [vmem:[%s22222_s3 + $0xa8] sm:$0xff] }
 0x97b   :  { %11121 = vmatmul.mubr.f32.vlgmr.msra.gmra.mxu0 %v24456_v18  ;;  %11385 = vmatprep.subr.mxu0 %v20946_v15  ;;  %v11514_v14 = vand.u32 4294901760, %v11513_v9  ;;  %v11537_v18 = vsub.f32 %v21036_v0, %v23079_v41  ;;  %v23074_v58 = vand.u32 4294901760, %v21086_v39  ;;  %v23070_v61 = vand.u32 4294901760, %v21116_v30 }
 0x97c   :  { %11480 = vmatprep.mubr.f32.mxu0 %v23244_v20  ;;  %11387 = vmatpush1.msra.mxu0 %v20951_v50  ;;  %v21106_v33 = vsub.f32 %v11357_v38, %v21088_v60  ;;  %v11544_v6 = vand.u32 4294901760, %v11543_v48  ;;  %v21140_v38 = vsub.f32 %v11352_v2, %v21118_v47  ;;  %v21159_v48 = vand.u32 4294901760, %v11348_v28 }
 0x97d   :  { %11389 = vmatprep.subr.mxu0 %v20959_v63  ;;  %11509 = vmatprep.subr.mxu1 %v11508_v51  ;;  %v11538_v29 = vand.u32 4294901760, %v11537_v18  ;;  %v11555_v9 = vsub.f32 %v21086_v39, %v23074_v58  ;;  %v21129_v51 = vsub.f32 %v11353_v31, %v21108_v26  ;;  %v21150_v18 = vand.u32 4294901760, %v11349_v46  ;;  %v11344_v31 = vld [vmem:[%s22222_s3 + $0xc0] sm:$0xff] }
 0x97e   :  { %11391 = vmatpush1.msra.mxu0 %v20968_v19  ;;  %11515 = vmatpush1.msra.mxu1 %v11514_v14  ;;  %v23071_v22 = vand.u32 4294901760, %v21106_v33  ;;  %v11561_v14 = vsub.f32 %v21096_v52, %v23073_v8  ;;  %24467 = vst [vmem:[#allocation14_spill] sm:$0xff] %v21140_v38  ;;  %v11573_v2 = vsub.f32 %v21116_v30, %v23070_v61  ;;  %v11340_v61 = vld [vmem:[%s22222_s3 + $0xa0] sm:$0xff] }
 0x97f   :  { %11393 = vmatprep.subr.mxu0 %v20978_v25  ;;  %11521 = vmatprep.subr.mxu1 %v11520_v42  ;;  %24466 = vst [vmem:[#allocation15_spill] sm:$0xff] %v21129_v51  ;;  %v11345_v42 = vld [vmem:[%s22222_s3 + $0xc8] sm:$0xff]  ;;  %v11556_v17 = vand.u32 4294901760, %v11555_v9 }
 0x980   :  { %11395 = vmatpush1.msra.mxu0 %v20988_v44  ;;  %11527 = vmatpush1.msra.mxu1 %v11526_v5  ;;  %v11567_v62 = vsub.f32 %v21106_v33, %v23071_v22  ;;  %v23072_v5 = vand.u32 4294901760, %v21129_v51  ;;  %v11574_v22 = vand.u32 4294901760, %v11573_v2  ;;  %v11337_v2 = vld [vmem:[%s22222_s3 + $0x88] sm:$0xff] }
 0x981   :  { %11397 = vmatprep.subr.mxu0 %v21001_v59  ;;  %11533 = vmatprep.subr.mxu1 %v11532_v24  ;;  %v11562_v24 = vand.u32 4294901760, %v11561_v14  ;;  %v21170_v14 = vand.u32 4294901760, %v11345_v42 }
 0x982   :  { %11399 = vmatpush1.msra.mxu0 %v21014_v3  ;;  %11539 = vmatpush1.msra.mxu1 %v11538_v29  ;;  %v23075_v29 = vand.u32 4294901760, %v21140_v38  ;;  %v11579_v9 = vsub.f32 %v21129_v51, %v23072_v5  ;;  %v21182_v5 = vand.u32 4294901760, %v11344_v31 }
 0x983   :  { %11401 = vmatprep.subr.mxu0 %v21046_v12  ;;  %11545 = vmatprep.subr.mxu1 %v11544_v6  ;;  %v11568_v6 = vand.u32 4294901760, %v11567_v62  ;;  %v21180_v62 = vsub.f32 %v11348_v28, %v21159_v48  ;;  %v21187_v58 = vsub.f32 %v11345_v42, %v21170_v14 }
 0x984   :  { %11403 = vmatpush1.msra.mxu0 %v21055_v35  ;;  %11551 = vmatpush1.msra.mxu1 %v11550_v32  ;;  %v21168_v32 = vsub.f32 %v11349_v46, %v21150_v18  ;;  %v11580_v46 = vand.u32 4294901760, %v11579_v9  ;;  %v21199_v9 = vand.u32 4294901760, %v11340_v61 }
 0x985   :  { %11405 = vmatprep.subr.mxu0 %v21066_v4  ;;  %11557 = vmatprep.subr.mxu1 %v11556_v17  ;;  %v11585_v17 = vsub.f32 %v21140_v38, %v23075_v29  ;;  %24469 = vst [vmem:[#allocation19_spill] sm:$0xff] %v21180_v62  ;;  %24470 = vst [vmem:[#allocation36_spill] sm:$0xff] %v21187_v58  ;;  %v23080_v29 = vand.u32 4294901760, %v21180_v62  ;;  %v23082_v36 = vand.u32 4294901760, %v21187_v58 }
 0x986   :  { %11407 = vmatpush1.msra.mxu0 %v21078_v56  ;;  %24468 = vst [vmem:[#allocation35_spill] sm:$0xff] %v21168_v32  ;;  %11563 = vmatpush1.msra.mxu1 %v11562_v24  ;;  %v23078_v8 = vand.u32 4294901760, %v21168_v32  ;;  %v21189_v24 = vand.u32 4294901760, %v11341_v37  ;;  %24472 = vst [vmem:[#allocation10_spill] sm:$0xff] %v21199_v9 }
 0x987   :  { %11409 = vmatprep.subr.mxu0 %v21088_v60  ;;  %11569 = vmatprep.subr.mxu1 %v11568_v6  ;;  %v11586_v28 = vand.u32 4294901760, %v11585_v17  ;;  %v21197_v6 = vsub.f32 %v11344_v31, %v21182_v5  ;;  %v21215_v17 = vsub.f32 %v11340_v61, %v21199_v9 }
 0x988   :  { %11411 = vmatpush1.msra.mxu0 %v21098_v13  ;;  %11575 = vmatpush1.msra.mxu1 %v11574_v22  ;;  %v11591_v42 = vsub.f32 %v21168_v32, %v23078_v8  ;;  %v21207_v11 = vsub.f32 %v11341_v37, %v21189_v24  ;;  %v11597_v22 = vsub.f32 %v21180_v62, %v23080_v29 }
 0x989   :  { %11413 = vmatprep.subr.mxu0 %v21108_v26  ;;  %24471 = vst [vmem:[#allocation8_spill] sm:$0xff] %v21197_v6  ;;  %11581 = vmatprep.subr.mxu1 %v11580_v46  ;;  %v23084_v31 = vand.u32 4294901760, %v21197_v6  ;;  %24474 = vst [vmem:[#allocation16_spill] sm:$0xff] %v21215_v17  ;;  %v21217_v46 = vand.u32 4294901760, %v11337_v2  ;;  %v11603_v37 = vsub.f32 %v21187_v58, %v23082_v36  ;;  %v23089_v55 = vand.u32 4294901760, %v21215_v17 }
 0x98a   :  { %11415 = vmatpush1.msra.mxu0 %v21118_v47  ;;  %24473 = vst [vmem:[#allocation22_spill] sm:$0xff] %v21207_v11  ;;  %11587 = vmatpush1.msra.mxu1 %v11586_v28  ;;  %v11592_v8 = vand.u32 4294901760, %v11591_v42  ;;  %v11336_v28 = vld [vmem:[%s22222_s3 + $0x80] sm:$0xff]  ;;  %v11598_v41 = vand.u32 4294901760, %v11597_v22  ;;  %v23088_v61 = vand.u32 4294901760, %v21207_v11  ;;  %v11333_v42 = vld [vmem:[%s22222_s3 + $0x68] sm:$0xff] }
 0x98b   :  { %11417 = vmatprep.subr.mxu0 %v21150_v18  ;;  %24475 = vst [vmem:[#allocation17_spill] sm:$0xff] %v21217_v46  ;;  %v11609_v29 = vsub.f32 %v21197_v6, %v23084_v31  ;;  %v11604_v36 = vand.u32 4294901760, %v11603_v37  ;;  %v21236_v16 = vsub.f32 %v11337_v2, %v21217_v46  ;;  %v11332_v22 = vld [vmem:[%s22222_s3 + $0x60] sm:$0xff]  ;;  %v11621_v45 = vsub.f32 %v21215_v17, %v23089_v55 }
 0x98c   :  { %11419 = vmatpush1.msra.mxu0 %v21159_v48  ;;  %11593 = vmatprep.subr.mxu1 %v11592_v8  ;;  %v11615_v21 = vsub.f32 %v21207_v11, %v23088_v61  ;;  %v21247_v1 = vand.u32 4294901760, %v11336_v28  ;;  %v21250_v2 = vand.u32 4294901760, %v11333_v42  ;;  %v21261_v53 = vand.u32 4294901760, %v11332_v22  ;;  %v11324_v11 = vld [vmem:[%s22222_s3 + $0x20] sm:$0xff] }
 0x98d   :  { %11421 = vmatprep.subr.mxu0 %v21170_v14  ;;  %24476 = vst [vmem:[#allocation44_spill] sm:$0xff] %v21236_v16  ;;  %11599 = vmatpush1.msra.mxu1 %v11598_v41  ;;  %v11610_v31 = vand.u32 4294901760, %v11609_v29  ;;  %v23096_v8 = vand.u32 4294901760, %v21236_v16  ;;  %v11329_v41 = vld [vmem:[%s22222_s3 + $0x48] sm:$0xff]  ;;  %v11328_v29 = vld [vmem:[%s22222_s3 + $0x40] sm:$0xff]  ;;  %v11622_v61 = vand.u32 4294901760, %v11621_v45 }
 0x98e   :  { %11423 = vmatpush1.msra.mxu0 %v21182_v5  ;;  %24477 = vst [vmem:[#allocation5_spill] sm:$0xff] %v21247_v1  ;;  %11605 = vmatprep.subr.mxu1 %v11604_v36  ;;  %24478 = vst [vmem:[#allocation21_spill] sm:$0xff] %v21250_v2  ;;  %v11616_v37 = vand.u32 4294901760, %v11615_v21  ;;  %v21259_v55 = vsub.f32 %v11336_v28, %v21247_v1  ;;  %v11325_v36 = vld [vmem:[%s22222_s3 + $0x28] sm:$0xff]  ;;  %v21271_v17 = vsub.f32 %v11333_v42, %v21250_v2 }
 0x98f   :  { %11425 = vmatprep.subr.mxu0 %v21189_v24  ;;  %11611 = vmatpush1.msra.mxu1 %v11610_v31  ;;  %24480 = vst [vmem:[#allocation24_spill] sm:$0xff] %v21261_v53  ;;  %v11627_v49 = vsub.f32 %v21236_v16, %v23096_v8  ;;  %v21276_v21 = vsub.f32 %v11332_v22, %v21261_v53  ;;  %v21278_v31 = vand.u32 4294901760, %v11329_v41  ;;  %v21280_v28 = vand.u32 4294901760, %v11328_v29  ;;  %v11321_v42 = vld [vmem:[%s22222_s3 + $0x8] sm:$0xff] }
 0x990   :  { %11427 = vmatpush1.msra.mxu0 %v21199_v9  ;;  %24479 = vst [vmem:[#allocation38_spill] sm:$0xff] %v21259_v55  ;;  %24481 = vst [vmem:[#allocation33_spill] sm:$0xff] %v21271_v17  ;;  %11617 = vmatprep.subr.mxu1 %v11616_v37  ;;  %v23107_v45 = vand.u32 4294901760, %v21259_v55  ;;  %v23108_v8 = vand.u32 4294901760, %v21271_v17  ;;  %v21290_v22 = vand.u32 4294901760, %v11325_v36 }
 0x991   :  { %11429 = vmatprep.subr.mxu0 %v21217_v46  ;;  %24482 = vst [vmem:[#allocation30_spill] sm:$0xff] %v21276_v21  ;;  %24483 = vst [vmem:[#allocation45_spill] sm:$0xff] %v21278_v31  ;;  %11623 = vmatpush1.msra.mxu1 %v11622_v61  ;;  %v11628_v37 = vand.u32 4294901760, %v11627_v49  ;;  %v23117_v6 = vand.u32 4294901760, %v21276_v21  ;;  %v21297_v58 = vsub.f32 %v11329_v41, %v21278_v31  ;;  %v11320_v41 = vld [vmem:[%s22222_s3] sm:$0xff] }
 0x992   :  { %11431 = vmatpush1.msra.mxu0 %v21247_v1  ;;  %24484 = vst [vmem:[#allocation9_spill] sm:$0xff] %v21280_v28  ;;  %24485 = vst [vmem:[#allocation11_spill] sm:$0xff] %v21290_v22  ;;  %v11633_v16 = vsub.f32 %v21259_v55, %v23107_v45  ;;  %v21300_v62 = vsub.f32 %v11328_v29, %v21280_v28  ;;  %v11639_v49 = vsub.f32 %v21271_v17, %v23108_v8 }
 0x993   :  { %11433 = vmatprep.subr.mxu0 %v21250_v2  ;;  %24486 = vst [vmem:[#allocation37_spill] sm:$0xff] %v21297_v58  ;;  %11629 = vmatprep.subr.mxu1 %v11628_v37  ;;  %v21307_v61 = vsub.f32 %v11325_v36, %v21290_v22  ;;  %v21311_v45 = vand.u32 4294901760, %v11321_v42  ;;  %v11645_v37 = vsub.f32 %v21276_v21, %v23117_v6  ;;  %v23120_v8 = vand.u32 4294901760, %v21297_v58 }
 0x994   :  { %11435 = vmatpush1.msra.mxu0 %v21261_v53  ;;  %24487 = vst [vmem:[#allocation18_spill] sm:$0xff] %v21300_v62  ;;  %v21309_v53 = vand.u32 4294901760, %v11324_v11  ;;  %v11634_v29 = vand.u32 4294901760, %v11633_v16  ;;  %v23123_v36 = vand.u32 4294901760, %v21300_v62  ;;  %v11640_v17 = vand.u32 4294901760, %v11639_v49 }
 0x995   :  { %11437 = vmatprep.subr.mxu0 %v21278_v31  ;;  %24488 = vst [vmem:[#allocation25_spill] sm:$0xff] %v21307_v61  ;;  %24490 = vst [vmem:[#allocation43_spill] sm:$0xff] %v21311_v45  ;;  %v23124_v55 = vand.u32 4294901760, %v21307_v61  ;;  %v21328_v2 = vsub.f32 %v11321_v42, %v21311_v45  ;;  %v11646_v16 = vand.u32 4294901760, %v11645_v37  ;;  %v11651_v6 = vsub.f32 %v21297_v58, %v23120_v8 }
 0x996   :  { %24489 = vst [vmem:[#allocation13_spill] sm:$0xff] %v21309_v53  ;;  %11439 = vmatpush1.msra.mxu0 %v21280_v28  ;;  %v21325_v31 = vsub.f32 %v11324_v11, %v21309_v53  ;;  %11635 = vmatpush1.msra.mxu1 %v11634_v29  ;;  %v11657_v49 = vsub.f32 %v21300_v62, %v23123_v36  ;;  %v21337_v21 = vand.u32 4294901760, %v11320_v41 }
 0x997   :  { %11441 = vmatprep.subr.mxu0 %v21290_v22  ;;  %24492 = vst [vmem:[#allocation31_spill] sm:$0xff] %v21328_v2  ;;  %11641 = vmatprep.subr.mxu1 %v11640_v17  ;;  %v11663_v11 = vsub.f32 %v21307_v61, %v23124_v55  ;;  %v23125_v29 = vand.u32 4294901760, %v21328_v2  ;;  %v11652_v37 = vand.u32 4294901760, %v11651_v6 }
 0x998   :  { %24491 = vst [vmem:[#allocation23_spill] sm:$0xff] %v21325_v31  ;;  %11443 = vmatpush1.msra.mxu0 %v21309_v53  ;;  %24493 = vst [vmem:[#allocation39_spill] sm:$0xff] %v21337_v21  ;;  %v23126_v42 = vand.u32 4294901760, %v21325_v31  ;;  %11647 = vmatpush1.msra.mxu1 %v11646_v16  ;;  %v11658_v8 = vand.u32 4294901760, %v11657_v49  ;;  %v21346_v58 = vsub.f32 %v11320_v41, %v21337_v21 }
 0x999   :  { %11445 = vmatprep.subr.mxu0 %v21311_v45  ;;  %v11664_v36 = vand.u32 4294901760, %v11663_v11  ;;  %v11675_v55 = vsub.f32 %v21328_v2, %v23125_v29  ;;  %11653 = vmatprep.subr.mxu1 %v11652_v37  ;;  %v9624_v29 = vpop.f32.mrf.mxu0 }
 0x99a   :  { %24494 = vst [vmem:[#allocation41_spill] sm:$0xff] %v21346_v58  ;;  %11447 = vmatpush1.msra.mxu0 %v21337_v21  ;;  %v11669_v17 = vsub.f32 %v21325_v31, %v23126_v42  ;;  %v23134_v6 = vand.u32 4294901760, %v21346_v58  ;;  %11659 = vmatpush1.msra.mxu1 %v11658_v8  ;;  %v24496_v21 = vld [vmem:[#allocation27_spill] sm:$0xff] }
 0x99b   :  { %11726 = vmatprep.subr.mxu0 %v20957_v10  ;;  %v11676_v41 = vand.u32 4294901760, %v11675_v55  ;;  %11665 = vmatprep.subr.mxu1 %v11664_v36  ;;  %v9626_v42 = vpop.f32.mrf.mxu0  ;;  %v9856_v10 = vpop.f32.mrf.mxu1 }
 0x99c   :  { %v11670_v16 = vand.u32 4294901760, %v11669_v17  ;;  %v11681_v49 = vsub.f32 %v21346_v58, %v23134_v6  ;;  %v9857_v17 = vadd.f32 %v9856_v10, %v9624_v29  ;;  %v24495_v6 = vld [vmem:[#allocation26_spill] sm:$0xff]  ;;  %v9405_v10 = vpop.permute.xlu0 %9404 }
 0x99d   :  { %v9858_v2 = vpop.f32.mrf.mxu1 }
 0x99e   :  { %11671 = vmatpush1.msra.mxu1 %v11670_v16  ;;  %v11682_v11 = vand.u32 4294901760, %v11681_v49  ;;  %v9859_v8 = vadd.f32 %v9858_v2, %v9626_v42  ;;  %v9401_v16 = vld [vmem:[%s22221_s2] sm:$0xf] }
 0x99f   :  { %11677 = vmatprep.subr.mxu1 %v11676_v41  ;;  %v9415_v58 = vrot.slane %v9401_v16, %v24495_v6  ;;  %v9411_v2 = vrot.slane %v9401_v16, %v24496_v21 }
 0x9a0   :  { %11683 = vmatpush1.msra.mxu1 %v11682_v11 }
 0x9a1   :  { %11862 = vmatprep.subr.mxu1 %v20946_v15  ;;  %v9398_v15 = vld [vmem:[%s22220_s1] sm:$0xf]  ;;  %v9429_v53 = vmul.f32 %v9415_v58, %v9405_v10 }
 0x9a2   :  { %v9440_v45 = vrot.slane %v9398_v15, %v24495_v6 }
 0x9aa   :  { %v10099_v55 = vpop.f32.mrf.mxu1 }
 0x9ac   :  { %v10101_v49 = vpop.f32.mrf.mxu1 }
 0x9b3   :  { %v9993_v37 = vpop.f32.mrf.mxu0 }
 0x9b4   :  { %v9994_v41 = vadd.f32 %v9993_v37, %v9857_v17  ;;  %v9436_v37 = vrot.slane %v9398_v15, %v24496_v21  ;;  %v9428_v17 = vmul.f32 %v9411_v2, %v9405_v10  ;;  %v24497_v2 = vld [vmem:[#allocation29_spill] sm:$0xff] }
 0x9b5   :  { %v9995_v31 = vpop.f32.mrf.mxu0  ;;  %v9419_v21 = vrot.slane %v9401_v16, %v24497_v2 }
 0x9b6   :  { %v9996_v61 = vadd.f32 %v9995_v31, %v9859_v8  ;;  %v10100_v29 = vadd.f32 %v10099_v55, %v9994_v41  ;;  %v9453_v32 = vadd.f32 %v9436_v37, %v9428_v17 }
 0x9b8   :  { %v10102_v62 = vadd.f32 %v10101_v49, %v9996_v61  ;;  %v9454_v49 = vadd.f32 %v9440_v45, %v9429_v53  ;;  %v24498_v53 = vld [vmem:[#allocation28_spill] sm:$0xff] }
 0x9b9   :  { %v9423_v45 = vrot.slane %v9401_v16, %v24498_v53 }
 0x9bb   :  { %v9431_v17 = vmul.f32 %v9423_v45, %v9405_v10  ;;  %v24499_v45 = vld [vmem:[#allocation34_spill] sm:$0xff] }
 0x9cc   :  { %v10371_v42 = vpop.f32.mrf.mxu1 }
 0x9ce   :  { %v10373_v22 = vpop.f32.mrf.mxu1 }
 0x9d8   :  { %v10267_v36 = vpop.f32.mrf.mxu0 }
 0x9d9   :  { %v10268_v8 = vadd.f32 %v10267_v36, %v10100_v29 }
 0x9da   :  { %v10269_v11 = vpop.f32.mrf.mxu0 }
 0x9db   :  { %v10270_v31 = vadd.f32 %v10269_v11, %v10102_v62  ;;  %v10372_v61 = vadd.f32 %v10371_v42, %v10268_v8  ;;  %v9448_v8 = vrot.slane %v9398_v15, %v24498_v53  ;;  %v24530_v53 = vld [vmem:[#allocation18_spill] sm:$0xff] }
 0x9dd   :  { %v10374_v28 = vadd.f32 %v10373_v22, %v10270_v31  ;;  %v11231_v38 = vadd.f32 %v10372_v61, %v9453_v32 }
 0x9df   :  { %v11232_v1 = vadd.f32 %v10374_v28, %v9454_v49  ;;  %v13171_v51 = vmul.f32 -1.442695, %v11231_v38 }
 0x9e1   :  { %v13173_v46 = vmul.f32 -1.442695, %v11232_v1 }
 0x9e3   :  { %13277 = vpow2.f32 %v13173_v46  ;;  %v9444_v46 = vrot.slane %v9398_v15, %v24497_v2 }
 0x9e4   :  { %13279 = vpow2.f32 %v13171_v51  ;;  %v9430_v51 = vmul.f32 %v9419_v21, %v9405_v10 }
 0x9ee   :  { %v10711_v62 = vpop.f32.mrf.mxu1 }
 0x9f0   :  { %v10713_v41 = vpop.f32.mrf.mxu1  ;;  %v13278_v32 = vpop.eup %13277 }
 0x9f1   :  { %v13280_v38 = vpop.eup %13279  ;;  %v11251_v61 = vadd.f32 1.0, %v13278_v32 }
 0x9f3   :  { %13281 = vrcp.f32 %v11251_v61  ;;  %v24505_v61 = vld [vmem:[#allocation10_spill] sm:$0xff] }
 0x9f8   :  { %v10479_v9 = vpop.f32.mrf.mxu0 }
 0x9f9   :  { %v10712_v58 = vadd.f32 %v10711_v62, %v10479_v9 }
 0x9fa   :  { %v10481_v55 = vpop.f32.mrf.mxu0 }
 0x9fb   :  { %v10714_v22 = vadd.f32 %v10713_v41, %v10481_v55  ;;  %v11238_v55 = vadd.f32 1.0, %v13280_v38  ;;  %v9455_v41 = vadd.f32 %v9444_v46, %v9430_v51 }
 0x9fd   :  { %13283 = vrcp.f32 %v11238_v55  ;;  %v24508_v55 = vld [vmem:[#allocation14_spill] sm:$0xff] }
 0xa11   :  { %v10954_v11 = vpop.f32.mrf.mxu1 }
 0xa13   :  { %v10956_v1 = vpop.f32.mrf.mxu1 }
 0xa1a   :  { %v10848_v36 = vpop.f32.mrf.mxu0 }
 0xa1b   :  { %v10849_v42 = vadd.f32 %v10848_v36, %v10712_v58 }
 0xa1c   :  { %v10850_v29 = vpop.f32.mrf.mxu0 }
 0xa1d   :  { %v10851_v28 = vadd.f32 %v10850_v29, %v10714_v22  ;;  %v10955_v31 = vadd.f32 %v10954_v11, %v10849_v42  ;;  %v9456_v22 = vadd.f32 %v9448_v8, %v9431_v17  ;;  %v13282_v11 = vpop.eup %13281 }
 0xa1e   :  { %v13284_v10 = vpop.eup %13283 }
 0xa1f   :  { %v10957_v62 = vadd.f32 %v10956_v1, %v10851_v28  ;;  %v11254_v28 = vmul.f32 %v13282_v11, %v24499_v45  ;;  %v24517_v11 = vld [vmem:[#allocation9_spill] sm:$0xff]  ;;  %v24520_v45 = vld [vmem:[#allocation16_spill] sm:$0xff] }
 0xa33   :  { %v11226_v37 = vpop.f32.mrf.mxu1 }
 0xa35   :  { %v11228_v29 = vpop.f32.mrf.mxu1 }
 0xa3b   :  { %v11122_v9 = vpop.f32.mrf.mxu0 }
 0xa3c   :  { %v11123_v49 = vadd.f32 %v11122_v9, %v10955_v31 }
 0xa3d   :  { %v11124_v36 = vpop.f32.mrf.mxu0 }
 0xa3e   :  { %v11227_v16 = vadd.f32 %v11226_v37, %v11123_v49  ;;  %v11125_v58 = vadd.f32 %v11124_v36, %v10957_v62  ;;  %v24506_v49 = vld [vmem:[#allocation15_spill] sm:$0xff]  ;;  %v24507_v62 = vld [vmem:[#allocation17_spill] sm:$0xff] }
 0xa3f   :  { %v24509_v36 = vld [vmem:[#allocation5_spill] sm:$0xff] }
 0xa40   :  { %v11233_v6 = vadd.f32 %v11227_v16, %v9455_v41  ;;  %v11229_v2 = vadd.f32 %v11228_v29, %v11125_v58  ;;  %v24510_v41 = vld [vmem:[#allocation35_spill] sm:$0xff]  ;;  %v24511_v16 = vld [vmem:[#allocation21_spill] sm:$0xff]  ;;  %v24513_v29 = vld [vmem:[#allocation24_spill] sm:$0xff] }
 0xa41   :  { %v24512_v58 = vld [vmem:[#allocation19_spill] sm:$0xff] }
 0xa42   :  { %13285 = vtanh.f32 %v11233_v6  ;;  %v11234_v21 = vadd.f32 %v11229_v2, %v9456_v22  ;;  %v24514_v22 = vld [vmem:[#allocation36_spill] sm:$0xff] }
 0xa44   :  { %v13172_v15 = vmul.f32 -1.442695, %v11234_v21  ;;  %v24515_v21 = vld [vmem:[#allocation45_spill] sm:$0xff] }
 0xa46   :  { %13287 = vpow2.f32 %v13172_v15  ;;  %v24516_v15 = vld [vmem:[#allocation8_spill] sm:$0xff] }
 0xa4f   :  { %v13286_v42 = vpop.eup %13285 }
 0xa50   :  { %v11255_v32 = vmul.f32 %v13286_v42, %v13284_v10  ;;  %v24518_v10 = vld [vmem:[#allocation22_spill] sm:$0xff]  ;;  %v24519_v42 = vld [vmem:[#allocation11_spill] sm:$0xff] }
 0xa52   :  { %v21376_v1 = vadd.f32 %v11255_v32, %v11254_v28  ;;  %v24521_v28 = vld [vmem:[#allocation13_spill] sm:$0xff]  ;;  %v24522_v32 = vld [vmem:[#allocation44_spill] sm:$0xff] }
 0xa53   :  { %v13288_v38 = vpop.eup %13287 }
 0xa54   :  { %24500 = vst [vmem:[#allocation12_spill] sm:$0xff] %v21376_v1  ;;  %v11245_v46 = vadd.f32 1.0, %v13288_v38  ;;  %13289 = vtanh.f32 %v21376_v1  ;;  %v24523_v38 = vld [vmem:[#allocation43_spill] sm:$0xff]  ;;  %v24529_v1 = vld [vmem:[#allocation37_spill] sm:$0xff] }
 0xa56   :  { %13291 = vrcp.f32 %v11245_v46  ;;  %v24524_v46 = vld [vmem:[#allocation38_spill] sm:$0xff] }
 0xa61   :  { %v13290_v51 = vpop.eup %13289 }
 0xa63   :  { %v13292_v31 = vpop.eup %13291 }
 0xa64   :  { %v11258_v8 = vmul.f32 %v13292_v31, %v13290_v51  ;;  %v24525_v51 = vld [vmem:[#allocation39_spill] sm:$0xff]  ;;  %v24526_v31 = vld [vmem:[#allocation33_spill] sm:$0xff] }
 0xa66   :  { %13174 = vst [vmem:[%s22223_s4 + $0x30] sm:$0xff] %v11258_v8  ;;  %v21382_v6 = vand.u32 4294901760, %v11258_v8 }
 0xa68   :  { %24501 = vst [vmem:[#allocation7_spill] sm:$0xff] %v21382_v6  ;;  %11718 = vmatmul.mubr.f32.vlgmr.msra.gmra.mxu1 %v21382_v6  ;;  %v21386_v2 = vsub.f32 %v11258_v8, %v21382_v6  ;;  %v24527_v8 = vld [vmem:[#allocation20_spill] sm:$0xff]  ;;  %v24532_v6 = vld [vmem:[#allocation23_spill] sm:$0xff] }
 0xa69   :  { %11864 = vmatpush1.msra.mxu1 %v20951_v50  ;;  %11957 = vmatprep.mubr.f32.mxu1 %v23244_v20 }
 0xa6a   :  { %24502 = vst [vmem:[#allocation6_spill] sm:$0xff] %v21386_v2  ;;  %11866 = vmatprep.subr.mxu1 %v20959_v63  ;;  %v21392_v37 = vand.u32 4294901760, %v21386_v2 }
 0xa6b   :  { %11868 = vmatpush1.msra.mxu1 %v20968_v19 }
 0xa6c   :  { %24503 = vst [vmem:[#allocation40_spill] sm:$0xff] %v21392_v37  ;;  %11870 = vmatprep.subr.mxu1 %v20978_v25  ;;  %v11484_v9 = vsub.f32 %v21386_v2, %v21392_v37 }
 0xa6d   :  { %11872 = vmatpush1.msra.mxu1 %v20988_v44 }
 0xa6e   :  { %11874 = vmatprep.subr.mxu1 %v21001_v59  ;;  %v21400_v17 = vand.u32 4294901760, %v11484_v9  ;;  %v24528_v9 = vld [vmem:[#allocation30_spill] sm:$0xff] }
 0xa6f   :  { %11876 = vmatpush1.msra.mxu1 %v21014_v3 }
 0xa70   :  { %24504 = vst [vmem:[#allocation42_spill] sm:$0xff] %v21400_v17  ;;  %11878 = vmatprep.subr.mxu1 %v21046_v12  ;;  %11486 = vmatmul.mubr.f32.vlgmr.msra.gmra.mxu0 %v21400_v17  ;;  %v24531_v17 = vld [vmem:[#allocation25_spill] sm:$0xff] }
 0xa71   :  { %11729 = vmatpush1.msra.mxu0 %v20966_v27  ;;  %11880 = vmatpush1.msra.mxu1 %v21055_v35 }
 0xa72   :  { %11732 = vmatprep.subr.mxu0 %v20976_v54  ;;  %11882 = vmatprep.subr.mxu1 %v21066_v4 }
 0xa73   :  { %11735 = vmatpush1.msra.mxu0 %v20986_v57  ;;  %11884 = vmatpush1.msra.mxu1 %v21078_v56 }
 0xa74   :  { %11738 = vmatprep.subr.mxu0 %v20999_v43  ;;  %11886 = vmatprep.subr.mxu1 %v21088_v60 }
 0xa75   :  { %11741 = vmatpush1.msra.mxu0 %v21012_v7  ;;  %11888 = vmatpush1.msra.mxu1 %v21098_v13 }
 0xa76   :  { %11744 = vmatprep.subr.mxu0 %v21025_v23  ;;  %11890 = vmatprep.subr.mxu1 %v21108_v26 }
 0xa77   :  { %11747 = vmatpush1.msra.mxu0 %v21036_v0  ;;  %11892 = vmatpush1.msra.mxu1 %v21118_v47 }
 0xa78   :  { %11750 = vmatprep.subr.mxu0 %v21064_v34  ;;  %11894 = vmatprep.subr.mxu1 %v21150_v18 }
 0xa79   :  { %11753 = vmatpush1.msra.mxu0 %v21076_v40  ;;  %11896 = vmatpush1.msra.mxu1 %v21159_v48 }
 0xa7a   :  { %11756 = vmatprep.subr.mxu0 %v21086_v39  ;;  %11898 = vmatprep.subr.mxu1 %v21170_v14 }
 0xa7b   :  { %11759 = vmatpush1.msra.mxu0 %v21096_v52  ;;  %11900 = vmatpush1.msra.mxu1 %v21182_v5 }
 0xa7c   :  { %11762 = vmatprep.subr.mxu0 %v21106_v33  ;;  %11902 = vmatprep.subr.mxu1 %v21189_v24 }
 0xa7d   :  { %11765 = vmatpush1.msra.mxu0 %v21116_v30  ;;  %11904 = vmatpush1.msra.mxu1 %v24505_v61 }
 0xa7e   :  { %11768 = vmatprep.subr.mxu0 %v24506_v49  ;;  %11906 = vmatprep.subr.mxu1 %v24507_v62 }
 0xa7f   :  { %11771 = vmatpush1.msra.mxu0 %v24508_v55  ;;  %11908 = vmatpush1.msra.mxu1 %v24509_v36 }
 0xa80   :  { %11774 = vmatprep.subr.mxu0 %v24510_v41  ;;  %11910 = vmatprep.subr.mxu1 %v24511_v16 }
 0xa81   :  { %11777 = vmatpush1.msra.mxu0 %v24512_v58  ;;  %11912 = vmatpush1.msra.mxu1 %v24513_v29 }
 0xa82   :  { %11780 = vmatprep.subr.mxu0 %v24514_v22  ;;  %11914 = vmatprep.subr.mxu1 %v24515_v21 }
 0xa83   :  { %11783 = vmatpush1.msra.mxu0 %v24516_v15  ;;  %11916 = vmatpush1.msra.mxu1 %v24517_v11 }
 0xa84   :  { %11786 = vmatprep.subr.mxu0 %v24518_v10  ;;  %11918 = vmatprep.subr.mxu1 %v24519_v42 }
 0xa85   :  { %11789 = vmatpush1.msra.mxu0 %v24520_v45  ;;  %11920 = vmatpush1.msra.mxu1 %v24521_v28 }
 0xa86   :  { %11792 = vmatprep.subr.mxu0 %v24522_v32  ;;  %11922 = vmatprep.subr.mxu1 %v24523_v38 }
 0xa87   :  { %11795 = vmatpush1.msra.mxu0 %v24524_v46  ;;  %11924 = vmatpush1.msra.mxu1 %v24525_v51 }
 0xa88   :  { %11798 = vmatprep.subr.mxu0 %v24526_v31  ;;  %11961 = vmatmul.mubr.f32.vlgmr.msra.gmra.mxu1 %v21392_v37 }
 0xa89   :  { %12136 = vmatprep.subr.mxu1 %v24527_v8  ;;  %11801 = vmatpush1.msra.mxu0 %v24528_v9  ;;  %v24533_v8 = vld [vmem:[#allocation31_spill] sm:$0xff] }
 0xa8a   :  { %12138 = vmatpush1.msra.mxu1 %v20951_v50  ;;  %11804 = vmatprep.subr.mxu0 %v24529_v1  ;;  %v24534_v50 = vld [vmem:[#allocation41_spill] sm:$0xff] }
 0xa8b   :  { %12140 = vmatprep.subr.mxu1 %v20959_v63  ;;  %11807 = vmatpush1.msra.mxu0 %v24530_v53  ;;  %v11383_v63 = vld [vmem:[%s22222_s3 + $0x1f8] sm:$0xff] }
 0xa8c   :  { %12142 = vmatpush1.msra.mxu1 %v20968_v19  ;;  %11810 = vmatprep.subr.mxu0 %v24531_v17  ;;  %v24535_v19 = vld [vmem:[#allocation32_spill] sm:$0xff]  ;;  %v21484_v37 = vand.u32 4294901760, %v11383_v63 }
 0xa8d   :  { %12144 = vmatprep.subr.mxu1 %v20978_v25  ;;  %11813 = vmatpush1.msra.mxu0 %v24532_v6  ;;  %v24536_v25 = vand.u32 4294901760, %v24535_v19  ;;  %v11379_v19 = vld [vmem:[%s22222_s3 + $0x1d8] sm:$0xff] }
 0xa8e   :  { %12146 = vmatpush1.msra.mxu1 %v20988_v44  ;;  %11816 = vmatprep.subr.mxu0 %v24533_v8  ;;  %v24537_v44 = vand.u32 4294901760, %v20966_v27  ;;  %v24539_v27 = vand.u32 4294901760, %v20986_v57  ;;  %v24541_v57 = vand.u32 4294901760, %v21012_v7  ;;  %v11371_v7 = vld [vmem:[%s22222_s3 + $0x198] sm:$0xff] }
 0xa8f   :  { %12148 = vmatprep.subr.mxu1 %v21001_v59  ;;  %11819 = vmatpush1.msra.mxu0 %v24534_v50  ;;  %v11382_v59 = vld [vmem:[%s22222_s3 + $0x1f0] sm:$0xff] }
 0xa90   :  { %11852 = vmatprep.mubr.f32.mxu0 %v23244_v20  ;;  %12150 = vmatpush1.msra.mxu1 %v21014_v3  ;;  %v24538_v3 = vand.u32 4294901760, %v20976_v54  ;;  %v24540_v54 = vand.u32 4294901760, %v20999_v43  ;;  %v24542_v43 = vand.u32 4294901760, %v21025_v23  ;;  %v11370_v23 = vld [vmem:[%s22222_s3 + $0x190] sm:$0xff] }
 0xa91   :  { %11855 = vmatmul.mubr.f32.vlgmr.msra.gmra.mxu0 %v21386_v2  ;;  %11970 = vmatprep.subr.mxu0 %v24536_v25  ;;  %v11375_v25 = vld [vmem:[%s22222_s3 + $0x1b8] sm:$0xff] }
 0xa92   :  { %12152 = vmatprep.subr.mxu1 %v21046_v12  ;;  %11974 = vmatpush1.msra.mxu0 %v24537_v44  ;;  %v11378_v12 = vld [vmem:[%s22222_s3 + $0x1d0] sm:$0xff]  ;;  %v21515_v44 = vsub.f32 %v11383_v63, %v21484_v37 }
 0xa93   :  { %12154 = vmatpush1.msra.mxu1 %v21055_v35  ;;  %11978 = vmatprep.subr.mxu0 %v24538_v3  ;;  %v21498_v35 = vand.u32 4294901760, %v11382_v59  ;;  %v21517_v3 = vand.u32 4294901760, %v11378_v12 }
 0xa94   :  { %12156 = vmatprep.subr.mxu1 %v21066_v4  ;;  %11982 = vmatpush1.msra.mxu0 %v24539_v27  ;;  %v21506_v4 = vand.u32 4294901760, %v11379_v19  ;;  %v21525_v27 = vand.u32 4294901760, %v11375_v25 }
 0xa95   :  { %12158 = vmatpush1.msra.mxu1 %v21078_v56  ;;  %11986 = vmatprep.subr.mxu0 %v24540_v54  ;;  %v11374_v56 = vld [vmem:[%s22222_s3 + $0x1b0] sm:$0xff]  ;;  %v21534_v63 = vsub.f32 %v11382_v59, %v21498_v35  ;;  %v24548_v59 = vand.u32 4294901760, %v21086_v39 }
 0xa96   :  { %12160 = vmatprep.subr.mxu1 %v21088_v60  ;;  %11990 = vmatpush1.msra.mxu0 %v24541_v57  ;;  %v24543_v60 = vand.u32 4294901760, %v21036_v0  ;;  %v21536_v54 = vand.u32 4294901760, %v11374_v56  ;;  %v11367_v0 = vld [vmem:[%s22222_s3 + $0x178] sm:$0xff]  ;;  %v21545_v57 = vsub.f32 %v11379_v19, %v21506_v4 }
 0xa97   :  { %12162 = vmatpush1.msra.mxu1 %v21098_v13  ;;  %11994 = vmatprep.subr.mxu0 %v24542_v43  ;;  %v24544_v13 = vand.u32 4294901760, %v21064_v34  ;;  %24545 = vst [vmem:[#allocation34_spill] sm:$0xff] %v21534_v63  ;;  %v11366_v34 = vld [vmem:[%s22222_s3 + $0x170] sm:$0xff]  ;;  %v23171_v43 = vand.u32 4294901760, %v21515_v44  ;;  %v11363_v19 = vld [vmem:[%s22222_s3 + $0x158] sm:$0xff]  ;;  %v21570_v39 = vand.u32 4294901760, %v11367_v0 }
 0xa98   :  { %12164 = vmatprep.subr.mxu1 %v21108_v26  ;;  %11998 = vmatpush1.msra.mxu0 %v24543_v60  ;;  %v24546_v26 = vand.u32 4294901760, %v21076_v40  ;;  %24547 = vst [vmem:[#allocation10_spill] sm:$0xff] %v21545_v57  ;;  %v21559_v40 = vand.u32 4294901760, %v11370_v23  ;;  %v24550_v60 = vand.u32 4294901760, %v21096_v52  ;;  %v21582_v52 = vand.u32 4294901760, %v11366_v34 }
 0xa99   :  { %12166 = vmatpush1.msra.mxu1 %v21118_v47  ;;  %12002 = vmatprep.subr.mxu0 %v24544_v13  ;;  %v21547_v47 = vand.u32 4294901760, %v11371_v7  ;;  %v24552_v13 = vand.u32 4294901760, %v21106_v33 }
 0xa9a   :  { %12168 = vmatprep.subr.mxu1 %v21150_v18  ;;  %12006 = vmatpush1.msra.mxu0 %v24546_v26  ;;  %v21557_v18 = vsub.f32 %v11378_v12, %v21517_v3  ;;  %v11362_v12 = vld [vmem:[%s22222_s3 + $0x150] sm:$0xff]  ;;  %v23172_v26 = vand.u32 4294901760, %v21534_v63 }
 0xa9b   :  { %12170 = vmatpush1.msra.mxu1 %v21159_v48  ;;  %12010 = vmatprep.subr.mxu0 %v24548_v59  ;;  %v21568_v48 = vsub.f32 %v11375_v25, %v21525_v27  ;;  %v11359_v25 = vld [vmem:[%s22222_s3 + $0x138] sm:$0xff]  ;;  %v24554_v59 = vand.u32 4294901760, %v21116_v30  ;;  %v21592_v33 = vsub.f32 %v11371_v7, %v21547_v47  ;;  %v21605_v30 = vsub.f32 %v21515_v44, %v23171_v43 }
 0xa9c   :  { %24549 = vst [vmem:[#allocation15_spill] sm:$0xff] %v21557_v18  ;;  %12172 = vmatprep.subr.mxu1 %v21170_v14  ;;  %12014 = vmatpush1.msra.mxu0 %v24550_v60  ;;  %v21580_v14 = vsub.f32 %v11374_v56, %v21536_v54  ;;  %v21594_v60 = vand.u32 4294901760, %v11363_v19  ;;  %v11358_v56 = vld [vmem:[%s22222_s3 + $0x130] sm:$0xff]  ;;  %v21609_v7 = vsub.f32 %v11370_v23, %v21559_v40  ;;  %v21623_v43 = vand.u32 4294901760, %v11359_v25 }
 0xa9d   :  { %24551 = vst [vmem:[#allocation17_spill] sm:$0xff] %v21568_v48  ;;  %12174 = vmatpush1.msra.mxu1 %v21182_v5  ;;  %12018 = vmatprep.subr.mxu0 %v24552_v13  ;;  %24555 = vst [vmem:[#allocation5_spill] sm:$0xff] %v21592_v33  ;;  %v24556_v13 = vand.u32 4294901760, %v24506_v49  ;;  %v11355_v5 = vld [vmem:[%s22222_s3 + $0x118] sm:$0xff]  ;;  %v24560_v23 = vand.u32 4294901760, %v24510_v41  ;;  %v24563_v41 = vand.u32 4294901760, %v21545_v57 }
 0xa9e   :  { %24553 = vst [vmem:[#allocation14_spill] sm:$0xff] %v21580_v14  ;;  %12176 = vmatprep.subr.mxu1 %v21189_v24  ;;  %12022 = vmatpush1.msra.mxu0 %v24554_v59  ;;  %24557 = vst [vmem:[#allocation35_spill] sm:$0xff] %v21609_v7  ;;  %v21611_v59 = vand.u32 4294901760, %v11362_v12  ;;  %v21631_v24 = vsub.f32 %v21534_v63, %v23172_v26  ;;  %v24565_v49 = vand.u32 4294901760, %v24514_v22 }
 0xa9f   :  { %12178 = vmatpush1.msra.mxu1 %v24505_v61  ;;  %12026 = vmatprep.subr.mxu0 %v24556_v13  ;;  %v24558_v61 = vand.u32 4294901760, %v24508_v55  ;;  %v21621_v13 = vsub.f32 %v11367_v0, %v21570_v39  ;;  %v21635_v55 = vsub.f32 %v11366_v34, %v21582_v52  ;;  %v11354_v0 = vld [vmem:[%s22222_s3 + $0x110] sm:$0xff]  ;;  %v21652_v34 = vsub.f32 %v11363_v19, %v21594_v60 }
 0xaa0   :  { %12180 = vmatprep.subr.mxu1 %v24507_v62  ;;  %v21654_v62 = vand.u32 4294901760, %v11355_v5  ;;  %v21667_v26 = vsub.f32 %v11362_v12, %v21611_v59  ;;  %v24568_v19 = vand.u32 4294901760, %v24516_v15  ;;  %v11351_v12 = vld [vmem:[%s22222_s3 + $0xf8] sm:$0xff]  ;;  %v12357_v15 = vand.u32 4294901760, %v21631_v24  ;;  %12231 = vmatprep.mubr.f32.mxu1 %v23244_v20 }
 0xaa1   :  { %12030 = vmatpush1.msra.mxu0 %v24558_v61  ;;  %24559 = vst [vmem:[#allocation21_spill] sm:$0xff] %v21621_v13  ;;  %12182 = vmatpush1.msra.mxu1 %v24509_v36  ;;  %24561 = vst [vmem:[#allocation19_spill] sm:$0xff] %v21635_v55  ;;  %v21637_v61 = vand.u32 4294901760, %v11358_v56  ;;  %v24562_v36 = vand.u32 4294901760, %v24512_v58  ;;  %v24566_v58 = vand.u32 4294901760, %v21557_v18  ;;  %v24585_v2 = vand.u32 4294901760, %v21652_v34 }
 0xaa2   :  { %12034 = vmatprep.subr.mxu0 %v24560_v23  ;;  %12184 = vmatprep.subr.mxu1 %v24511_v16  ;;  %v21648_v23 = vsub.f32 %v21545_v57, %v24563_v41  ;;  %24564 = vst [vmem:[#allocation24_spill] sm:$0xff] %v21652_v34  ;;  %v12351_v16 = vand.u32 4294901760, %v21605_v30  ;;  %24567 = vst [vmem:[#allocation36_spill] sm:$0xff] %v21667_v26  ;;  %v24574_v41 = vand.u32 4294901760, %v24520_v45 }
 0xaa3   :  { %12038 = vmatpush1.msra.mxu0 %v24562_v36  ;;  %12186 = vmatpush1.msra.mxu1 %v24513_v29  ;;  %v21663_v36 = vsub.f32 %v21557_v18, %v24566_v58  ;;  %v24569_v29 = vand.u32 4294901760, %v21568_v48  ;;  %v21681_v58 = vand.u32 4294901760, %v11354_v0  ;;  %v21697_v30 = vsub.f32 %v11358_v56, %v21637_v61  ;;  %v11350_v56 = vld [vmem:[%s22222_s3 + $0xf0] sm:$0xff] }
 0xaa4   :  { %12042 = vmatprep.subr.mxu0 %v24565_v49  ;;  %12188 = vmatprep.subr.mxu1 %v24515_v21  ;;  %v21679_v49 = vsub.f32 %v11359_v25, %v21623_v43  ;;  %v24571_v21 = vand.u32 4294901760, %v24518_v10  ;;  %v24575_v10 = vand.u32 4294901760, %v21592_v33  ;;  %v11346_v25 = vld [vmem:[%s22222_s3 + $0xd0] sm:$0xff] }
 0xaa5   :  { %12046 = vmatpush1.msra.mxu0 %v24568_v19  ;;  %v21675_v22 = vsub.f32 %v21568_v48, %v24569_v29  ;;  %12190 = vmatpush1.msra.mxu1 %v24517_v11  ;;  %v24572_v19 = vand.u32 4294901760, %v21580_v14  ;;  %24573 = vst [vmem:[#allocation8_spill] sm:$0xff] %v21697_v30  ;;  %v12363_v11 = vand.u32 4294901760, %v21648_v23  ;;  %v12369_v45 = vand.u32 4294901760, %v21663_v36 }
 0xaa6   :  { %24570 = vst [vmem:[#allocation45_spill] sm:$0xff] %v21679_v49  ;;  %12050 = vmatprep.subr.mxu0 %v24571_v21  ;;  %12192 = vmatprep.subr.mxu1 %v24519_v42  ;;  %v21706_v24 = vsub.f32 %v21592_v33, %v24575_v10  ;;  %v24577_v42 = vand.u32 4294901760, %v24522_v32  ;;  %v24578_v23 = vand.u32 4294901760, %v21609_v7  ;;  %v11347_v21 = vld [vmem:[%s22222_s3 + $0xd8] sm:$0xff]  ;;  %v24580_v36 = vand.u32 4294901760, %v21621_v13 }
 0xaa7   :  { %v21693_v29 = vsub.f32 %v21580_v14, %v24572_v19  ;;  %12054 = vmatpush1.msra.mxu0 %v24574_v41  ;;  %v21710_v19 = vsub.f32 %v11355_v5, %v21654_v62  ;;  %12194 = vmatpush1.msra.mxu1 %v24521_v28  ;;  %v21725_v5 = vand.u32 4294901760, %v11351_v12  ;;  %v24579_v28 = vand.u32 4294901760, %v24524_v46 }
 0xaa8   :  { %12058 = vmatprep.subr.mxu0 %v24577_v42  ;;  %v21722_v41 = vsub.f32 %v21609_v7, %v24578_v23  ;;  %12196 = vmatprep.subr.mxu1 %v24523_v38  ;;  %v12375_v32 = vand.u32 4294901760, %v21675_v22  ;;  %v21737_v42 = vsub.f32 %v21621_v13, %v24580_v36  ;;  %v21741_v10 = vsub.f32 %v11354_v0, %v21681_v58  ;;  %v11343_v0 = vld [vmem:[%s22222_s3 + $0xb8] sm:$0xff]  ;;  %v11342_v13 = vld [vmem:[%s22222_s3 + $0xb0] sm:$0xff] }
 0xaa9   :  { %24576 = vst [vmem:[#allocation9_spill] sm:$0xff] %v21710_v19  ;;  %12062 = vmatpush1.msra.mxu0 %v24579_v28  ;;  %12198 = vmatpush1.msra.mxu1 %v24525_v51  ;;  %v12381_v38 = vand.u32 4294901760, %v21693_v29  ;;  %v24582_v46 = vand.u32 4294901760, %v21635_v55  ;;  %v21755_v36 = vand.u32 4294901760, %v11350_v56  ;;  %v24583_v23 = vand.u32 4294901760, %v24526_v31  ;;  %v24584_v51 = vld [vmem:[#allocation7_spill] sm:$0xff] }
 0xaaa   :  { %24581 = vst [vmem:[#allocation22_spill] sm:$0xff] %v21741_v10  ;;  %12233 = vmatmul.mubr.f32.vlgmr.msra.gmra.mxu1 %v24584_v51  ;;  %v12387_v29 = vand.u32 4294901760, %v21706_v24  ;;  %12352 = vmatprep.subr.mxu1 %v12351_v16  ;;  %v24586_v31 = vand.u32 4294901760, %v24528_v9  ;;  %v24587_v24 = vand.u32 4294901760, %v21667_v26  ;;  %v21786_v28 = vand.u32 4294901760, %v11346_v25 }
 0xaab   :  { %v21752_v22 = vsub.f32 %v21635_v55, %v24582_v46  ;;  %12066 = vmatprep.subr.mxu0 %v24583_v23  ;;  %v21767_v46 = vsub.f32 %v21652_v34, %v24585_v2  ;;  %v21770_v55 = vand.u32 4294901760, %v11347_v21  ;;  %v12393_v23 = vand.u32 4294901760, %v21722_v41  ;;  %v11339_v34 = vld [vmem:[%s22222_s3 + $0x98] sm:$0xff]  ;;  %12358 = vmatpush1.msra.mxu1 %v12357_v15 }
 0xaac   :  { %12070 = vmatpush1.msra.mxu0 %v24586_v31  ;;  %v21781_v7 = vsub.f32 %v21667_v26, %v24587_v24  ;;  %v21784_v2 = vsub.f32 %v11351_v12, %v21725_v5  ;;  %v24589_v9 = vand.u32 4294901760, %v24529_v1  ;;  %v12399_v16 = vand.u32 4294901760, %v21737_v42  ;;  %v11338_v26 = vld [vmem:[%s22222_s3 + $0x90] sm:$0xff]  ;;  %12364 = vmatprep.subr.mxu1 %v12363_v11 }
 0xaad   :  { %v24590_v41 = vand.u32 4294901760, %v21679_v49  ;;  %v21800_v24 = vand.u32 4294901760, %v11343_v0  ;;  %v24592_v15 = vand.u32 4294901760, %v24530_v53  ;;  %v12405_v1 = vand.u32 4294901760, %v21752_v22  ;;  %12370 = vmatpush1.msra.mxu1 %v12369_v45  ;;  %12127 = vmatprep.mubr.f32.mxu0 %v23244_v20 }
 0xaae   :  { %24588 = vst [vmem:[#allocation11_spill] sm:$0xff] %v21784_v2  ;;  %12074 = vmatprep.subr.mxu0 %v24589_v9  ;;  %v24593_v42 = vand.u32 4294901760, %v21697_v30  ;;  %v21816_v12 = vand.u32 4294901760, %v11342_v13  ;;  %v24595_v53 = vand.u32 4294901760, %v24531_v17  ;;  %v12411_v11 = vand.u32 4294901760, %v21767_v46  ;;  %12376 = vmatprep.subr.mxu1 %v12375_v32  ;;  %v11330_v46 = vld [vmem:[%s22222_s3 + $0x50] sm:$0xff] }
 0xaaf   :  { %v21797_v31 = vsub.f32 %v21679_v49, %v24590_v41  ;;  %24591 = vst [vmem:[#allocation16_spill] sm:$0xff] %v21800_v24  ;;  %12078 = vmatpush1.msra.mxu0 %v24592_v15  ;;  %v21814_v41 = vsub.f32 %v11350_v56, %v21755_v36  ;;  %v11335_v49 = vld [vmem:[%s22222_s3 + $0x78] sm:$0xff]  ;;  %v24596_v22 = vand.u32 4294901760, %v21710_v19  ;;  %v21830_v56 = vsub.f32 %v11347_v21, %v21770_v55 }
 0xab0   :  { %v21811_v9 = vsub.f32 %v21697_v30, %v24593_v42  ;;  %12082 = vmatprep.subr.mxu0 %v24595_v53  ;;  %v21832_v42 = vand.u32 4294901760, %v11339_v34  ;;  %v11334_v30 = vld [vmem:[%s22222_s3 + $0x70] sm:$0xff]  ;;  %v24598_v17 = vand.u32 4294901760, %v24532_v6  ;;  %v12417_v45 = vand.u32 4294901760, %v21781_v7  ;;  %v11331_v21 = vld [vmem:[%s22222_s3 + $0x58] sm:$0xff]  ;;  %12382 = vmatpush1.msra.mxu1 %v12381_v38 }
 0xab1   :  { %24594 = vst [vmem:[#allocation13_spill] sm:$0xff] %v21814_v41  ;;  %v21827_v15 = vsub.f32 %v21710_v19, %v24596_v22  ;;  %24597 = vst [vmem:[#allocation44_spill] sm:$0xff] %v21830_v56  ;;  %v21842_v53 = vsub.f32 %v11346_v25, %v21786_v28  ;;  %v21844_v22 = vand.u32 4294901760, %v11338_v26  ;;  %v24599_v19 = vand.u32 4294901760, %v24533_v8  ;;  %12388 = vmatprep.subr.mxu1 %v12387_v29 }
 0xab2   :  { %12086 = vmatpush1.msra.mxu0 %v24598_v17  ;;  %v12423_v6 = vand.u32 4294901760, %v21797_v31  ;;  %v24600_v32 = vand.u32 4294901760, %v21741_v10  ;;  %v21858_v25 = vsub.f32 %v11343_v0, %v21800_v24  ;;  %v21860_v17 = vand.u32 4294901760, %v11335_v49  ;;  %v11327_v0 = vld [vmem:[%s22222_s3 + $0x38] sm:$0xff]  ;;  %12394 = vmatpush1.msra.mxu1 %v12393_v23 }
 0xab3   :  { %12090 = vmatprep.subr.mxu0 %v24599_v19  ;;  %v24601_v8 = vand.u32 4294901760, %v24534_v50  ;;  %v12429_v19 = vand.u32 4294901760, %v21811_v9  ;;  %v21870_v31 = vsub.f32 %v11342_v13, %v21816_v12  ;;  %v12435_v29 = vand.u32 4294901760, %v21827_v15  ;;  %v11326_v13 = vld [vmem:[%s22222_s3 + $0x30] sm:$0xff]  ;;  %12400 = vmatprep.subr.mxu1 %v12399_v16 }
 0xab4   :  { %v21855_v7 = vsub.f32 %v21741_v10, %v24600_v32  ;;  %v21872_v32 = vand.u32 4294901760, %v11334_v30  ;;  %v21881_v9 = vsub.f32 %v11339_v34, %v21832_v42  ;;  %v24602_v38 = vand.u32 4294901760, %v21784_v2  ;;  %v11323_v10 = vld [vmem:[%s22222_s3 + $0x18] sm:$0xff]  ;;  %12406 = vmatpush1.msra.mxu1 %v12405_v1  ;;  %12571 = vmatprep.mubr.f32.mxu1 %v23244_v20 }
 0xab5   :  { %12094 = vmatpush1.msra.mxu0 %v24601_v8  ;;  %v21883_v8 = vand.u32 4294901760, %v11331_v21  ;;  %v21895_v50 = vsub.f32 %v11338_v26, %v21844_v22  ;;  %v21897_v34 = vand.u32 4294901760, %v11330_v46  ;;  %v21908_v15 = vand.u32 4294901760, %v11327_v0  ;;  %v11322_v26 = vld [vmem:[%s22222_s3 + $0x10] sm:$0xff]  ;;  %12412 = vmatprep.subr.mxu1 %v12411_v11 }
 0xab6   :  { %12129 = vmatmul.mubr.f32.vlgmr.msra.gmra.mxu0 %v24584_v51  ;;  %12240 = vmatprep.subr.mxu0 %v21484_v37  ;;  %v12446_v23 = vsub.f32 %v21784_v2, %v24602_v38  ;;  %v12441_v33 = vand.u32 4294901760, %v21855_v7  ;;  %v21906_v38 = vsub.f32 %v11335_v49, %v21860_v17  ;;  %v24604_v16 = vand.u32 4294901760, %v21814_v41 }
 0xab7   :  { %24603 = vst [vmem:[#allocation43_spill] sm:$0xff] %v21897_v34  ;;  %12242 = vmatpush1.msra.mxu0 %v21498_v35  ;;  %v21919_v14 = vsub.f32 %v11334_v30, %v21872_v32  ;;  %v21921_v49 = vand.u32 4294901760, %v11326_v13  ;;  %v24605_v48 = vand.u32 4294901760, %v21830_v56  ;;  %v21929_v57 = vsub.f32 %v11331_v21, %v21883_v8  ;;  %12418 = vmatpush1.msra.mxu1 %v12417_v45 }
 0xab8   :  { %12244 = vmatprep.subr.mxu0 %v21506_v4  ;;  %v12452_v2 = vsub.f32 %v21814_v41, %v24604_v16  ;;  %v21931_v16 = vand.u32 4294901760, %v11323_v10  ;;  %v24606_v30 = vand.u32 4294901760, %v21842_v53  ;;  %v21939_v41 = vsub.f32 %v11330_v46, %v21897_v34  ;;  %12424 = vmatprep.subr.mxu1 %v12423_v6 }
 0xab9   :  { %12246 = vmatpush1.msra.mxu0 %v21517_v3  ;;  %v12458_v1 = vsub.f32 %v21830_v56, %v24605_v48  ;;  %v21941_v48 = vand.u32 4294901760, %v11322_v26  ;;  %v12447_v21 = vand.u32 4294901760, %v12446_v23  ;;  %v24607_v18 = vand.u32 4294901760, %v21858_v25  ;;  %12430 = vmatpush1.msra.mxu1 %v12429_v19 }
 0xaba   :  { %12248 = vmatprep.subr.mxu0 %v21525_v27  ;;  %v12464_v11 = vsub.f32 %v21842_v53, %v24606_v30  ;;  %v21949_v63 = vsub.f32 %v11327_v0, %v21908_v15  ;;  %v12453_v46 = vand.u32 4294901760, %v12452_v2  ;;  %v24608_v30 = vand.u32 4294901760, %v21870_v31  ;;  %12436 = vmatprep.subr.mxu1 %v12435_v29 }
 0xabb   :  { %12250 = vmatpush1.msra.mxu0 %v21536_v54  ;;  %v12470_v45 = vsub.f32 %v21858_v25, %v24607_v18  ;;  %v21957_v23 = vsub.f32 %v11326_v13, %v21921_v49  ;;  %v12459_v18 = vand.u32 4294901760, %v12458_v1  ;;  %v24609_v0 = vand.u32 4294901760, %v21881_v9  ;;  %12442 = vmatpush1.msra.mxu1 %v12441_v33 }
 0xabc   :  { %12252 = vmatprep.subr.mxu0 %v21547_v47  ;;  %v12476_v6 = vsub.f32 %v21870_v31, %v24608_v30  ;;  %v21965_v2 = vsub.f32 %v11323_v10, %v21931_v16  ;;  %v12465_v30 = vand.u32 4294901760, %v12464_v11  ;;  %v24610_v13 = vand.u32 4294901760, %v21895_v50  ;;  %12448 = vmatprep.subr.mxu1 %v12447_v21 }
 0xabd   :  { %12254 = vmatpush1.msra.mxu0 %v21559_v40  ;;  %v12482_v19 = vsub.f32 %v21881_v9, %v24609_v0  ;;  %v21973_v1 = vsub.f32 %v11322_v26, %v21941_v48  ;;  %v12471_v0 = vand.u32 4294901760, %v12470_v45  ;;  %v24611_v10 = vand.u32 4294901760, %v21906_v38  ;;  %12454 = vmatpush1.msra.mxu1 %v12453_v46 }
 0xabe   :  { %12256 = vmatprep.subr.mxu0 %v21570_v39  ;;  %v12488_v29 = vsub.f32 %v21895_v50, %v24610_v13  ;;  %v12477_v11 = vand.u32 4294901760, %v12476_v6  ;;  %v24612_v13 = vand.u32 4294901760, %v21919_v14  ;;  %12460 = vmatprep.subr.mxu1 %v12459_v18  ;;  %v24613_v45 = vand.u32 4294901760, %v21929_v57 }
 0xabf   :  { %12258 = vmatpush1.msra.mxu0 %v21582_v52  ;;  %v12494_v33 = vsub.f32 %v21906_v38, %v24611_v10  ;;  %v12483_v21 = vand.u32 4294901760, %v12482_v19  ;;  %12466 = vmatpush1.msra.mxu1 %v12465_v30  ;;  %v24614_v6 = vand.u32 4294901760, %v21939_v41  ;;  %v23210_v26 = vand.u32 4294901760, %v21973_v1 }
 0xac0   :  { %12260 = vmatprep.subr.mxu0 %v21594_v60  ;;  %v12500_v7 = vsub.f32 %v21919_v14, %v24612_v13  ;;  %v12506_v10 = vsub.f32 %v21929_v57, %v24613_v45  ;;  %v12489_v46 = vand.u32 4294901760, %v12488_v29  ;;  %12472 = vmatprep.subr.mxu1 %v12471_v0  ;;  %v24615_v19 = vand.u32 4294901760, %v21949_v63 }
 0xac1   :  { %12262 = vmatpush1.msra.mxu0 %v21611_v59  ;;  %v12512_v13 = vsub.f32 %v21939_v41, %v24614_v6  ;;  %v12495_v18 = vand.u32 4294901760, %v12494_v33  ;;  %12478 = vmatpush1.msra.mxu1 %v12477_v11  ;;  %v24616_v29 = vand.u32 4294901760, %v21957_v23  ;;  %v24617_v0 = vand.u32 4294901760, %v21965_v2 }
 0xac2   :  { %12264 = vmatprep.subr.mxu0 %v21623_v43  ;;  %v12518_v45 = vsub.f32 %v21949_v63, %v24615_v19  ;;  %v12501_v30 = vand.u32 4294901760, %v12500_v7  ;;  %12484 = vmatprep.subr.mxu1 %v12483_v21  ;;  %v12507_v6 = vand.u32 4294901760, %v12506_v10  ;;  %v12536_v7 = vsub.f32 %v21973_v1, %v23210_v26  ;;  %v24634_v26 = vld [vmem:[#allocation11_spill] sm:$0xff] }
 0xac3   :  { %12266 = vmatpush1.msra.mxu0 %v21637_v61  ;;  %v12524_v56 = vsub.f32 %v21957_v23, %v24616_v29  ;;  %v12530_v33 = vsub.f32 %v21965_v2, %v24617_v0  ;;  %12490 = vmatpush1.msra.mxu1 %v12489_v46  ;;  %v12513_v19 = vand.u32 4294901760, %v12512_v13  ;;  %v24619_v13 = vld [vmem:[#allocation34_spill] sm:$0xff]  ;;  %v24625_v0 = vld [vmem:[#allocation35_spill] sm:$0xff] }
 0xac4   :  { %12268 = vmatprep.subr.mxu0 %v21654_v62  ;;  %12496 = vmatprep.subr.mxu1 %v12495_v18  ;;  %v12519_v11 = vand.u32 4294901760, %v12518_v45  ;;  %v12537_v46 = vand.u32 4294901760, %v12536_v7  ;;  %v24620_v18 = vld [vmem:[#allocation10_spill] sm:$0xff]  ;;  %v24621_v45 = vld [vmem:[#allocation15_spill] sm:$0xff]  ;;  %v24628_v7 = vld [vmem:[#allocation24_spill] sm:$0xff] }
 0xac5   :  { %12270 = vmatpush1.msra.mxu0 %v21681_v58  ;;  %12502 = vmatpush1.msra.mxu1 %v12501_v30  ;;  %v12525_v21 = vand.u32 4294901760, %v12524_v56  ;;  %v12531_v10 = vand.u32 4294901760, %v12530_v33  ;;  %v24618_v56 = vld [vmem:[#allocation42_spill] sm:$0xff]  ;;  %v24622_v30 = vld [vmem:[#allocation17_spill] sm:$0xff] }
 0xac6   :  { %12272 = vmatprep.subr.mxu0 %v21725_v5  ;;  %12508 = vmatprep.subr.mxu1 %v12507_v6  ;;  %v24623_v29 = vld [vmem:[#allocation14_spill] sm:$0xff]  ;;  %v24624_v6 = vld [vmem:[#allocation5_spill] sm:$0xff] }
 0xac7   :  { %12274 = vmatpush1.msra.mxu0 %v21755_v36  ;;  %12514 = vmatpush1.msra.mxu1 %v12513_v19  ;;  %v24626_v33 = vld [vmem:[#allocation21_spill] sm:$0xff]  ;;  %v24627_v19 = vld [vmem:[#allocation19_spill] sm:$0xff] }
 0xac8   :  { %12276 = vmatprep.subr.mxu0 %v21770_v55  ;;  %12520 = vmatprep.subr.mxu1 %v12519_v11  ;;  %v24629_v11 = vld [vmem:[#allocation36_spill] sm:$0xff] }
 0xac9   :  { %12278 = vmatpush1.msra.mxu0 %v21786_v28  ;;  %12526 = vmatpush1.msra.mxu1 %v12525_v21  ;;  %v24630_v21 = vld [vmem:[#allocation45_spill] sm:$0xff] }
 0xaca   :  { %12280 = vmatprep.subr.mxu0 %v21800_v24  ;;  %12532 = vmatprep.subr.mxu1 %v12531_v10  ;;  %v24631_v10 = vld [vmem:[#allocation8_spill] sm:$0xff] }
 0xacb   :  { %12282 = vmatpush1.msra.mxu0 %v21816_v12  ;;  %12538 = vmatpush1.msra.mxu1 %v12537_v46  ;;  %v24632_v46 = vld [vmem:[#allocation9_spill] sm:$0xff] }
 0xacc   :  { %12284 = vmatprep.subr.mxu0 %v21832_v42  ;;  %12573 = vmatmul.mubr.f32.vlgmr.msra.gmra.mxu1 %v24584_v51  ;;  %v24635_v51 = vld [vmem:[#allocation13_spill] sm:$0xff] }
 0xacd   :  { %12286 = vmatpush1.msra.mxu0 %v21844_v22  ;;  %12717 = vmatprep.subr.mxu1 %v21484_v37 }
 0xace   :  { %12288 = vmatprep.subr.mxu0 %v21860_v17  ;;  %12719 = vmatpush1.msra.mxu1 %v21498_v35 }
 0xacf   :  { %12290 = vmatpush1.msra.mxu0 %v21872_v32  ;;  %12721 = vmatprep.subr.mxu1 %v21506_v4 }
 0xad0   :  { %12292 = vmatprep.subr.mxu0 %v21883_v8  ;;  %12723 = vmatpush1.msra.mxu1 %v21517_v3 }
 0xad1   :  { %12294 = vmatpush1.msra.mxu0 %v21897_v34  ;;  %12725 = vmatprep.subr.mxu1 %v21525_v27 }
 0xad2   :  { %12296 = vmatprep.subr.mxu0 %v21908_v15  ;;  %12727 = vmatpush1.msra.mxu1 %v21536_v54 }
 0xad3   :  { %12298 = vmatpush1.msra.mxu0 %v21921_v49  ;;  %12729 = vmatprep.subr.mxu1 %v21547_v47 }
 0xad4   :  { %12300 = vmatprep.subr.mxu0 %v21931_v16  ;;  %12335 = vmatprep.mubr.f32.mxu0 %v23244_v20 }
 0xad5   :  { %12302 = vmatpush1.msra.mxu0 %v21941_v48  ;;  %12731 = vmatpush1.msra.mxu1 %v21559_v40 }
 0xad6   :  { %12341 = vmatmul.mubr.f32.vlgmr.msra.gmra.mxu0 %v24618_v56  ;;  %12581 = vmatprep.subr.mxu0 %v21515_v44  ;;  %v24633_v56 = vld [vmem:[#allocation22_spill] sm:$0xff] }
 0xad7   :  { %12733 = vmatprep.subr.mxu1 %v21570_v39  ;;  %12584 = vmatpush1.msra.mxu0 %v24619_v13 }
 0xad8   :  { %12735 = vmatpush1.msra.mxu1 %v21582_v52  ;;  %12587 = vmatprep.subr.mxu0 %v24620_v18 }
 0xad9   :  { %12737 = vmatprep.subr.mxu1 %v21594_v60  ;;  %12590 = vmatpush1.msra.mxu0 %v24621_v45 }
 0xada   :  { %12739 = vmatpush1.msra.mxu1 %v21611_v59  ;;  %12593 = vmatprep.subr.mxu0 %v24622_v30 }
 0xadb   :  { %12741 = vmatprep.subr.mxu1 %v21623_v43  ;;  %12596 = vmatpush1.msra.mxu0 %v24623_v29 }
 0xadc   :  { %12743 = vmatpush1.msra.mxu1 %v21637_v61  ;;  %12599 = vmatprep.subr.mxu0 %v24624_v6 }
 0xadd   :  { %12745 = vmatprep.subr.mxu1 %v21654_v62  ;;  %12602 = vmatpush1.msra.mxu0 %v24625_v0 }
 0xade   :  { %12747 = vmatpush1.msra.mxu1 %v21681_v58  ;;  %12605 = vmatprep.subr.mxu0 %v24626_v33 }
 0xadf   :  { %12749 = vmatprep.subr.mxu1 %v21725_v5  ;;  %12608 = vmatpush1.msra.mxu0 %v24627_v19 }
 0xae0   :  { %12751 = vmatpush1.msra.mxu1 %v21755_v36  ;;  %12611 = vmatprep.subr.mxu0 %v24628_v7 }
 0xae1   :  { %12753 = vmatprep.subr.mxu1 %v21770_v55  ;;  %12614 = vmatpush1.msra.mxu0 %v24629_v11 }
 0xae2   :  { %12755 = vmatpush1.msra.mxu1 %v21786_v28  ;;  %12617 = vmatprep.subr.mxu0 %v24630_v21 }
 0xae3   :  { %12757 = vmatprep.subr.mxu1 %v21800_v24  ;;  %12620 = vmatpush1.msra.mxu0 %v24631_v10  ;;  %v24636_v24 = vld [vmem:[#allocation44_spill] sm:$0xff] }
 0xae4   :  { %12759 = vmatpush1.msra.mxu1 %v21816_v12  ;;  %12623 = vmatprep.subr.mxu0 %v24632_v46 }
 0xae5   :  { %12761 = vmatprep.subr.mxu1 %v21832_v42  ;;  %12626 = vmatpush1.msra.mxu0 %v24633_v56 }
 0xae6   :  { %12763 = vmatpush1.msra.mxu1 %v21844_v22  ;;  %12629 = vmatprep.subr.mxu0 %v24634_v26 }
 0xae7   :  { %12765 = vmatprep.subr.mxu1 %v21860_v17  ;;  %12632 = vmatpush1.msra.mxu0 %v24635_v51 }
 0xae8   :  { %12767 = vmatpush1.msra.mxu1 %v21872_v32  ;;  %12635 = vmatprep.subr.mxu0 %v24636_v24 }
 0xae9   :  { %12769 = vmatprep.subr.mxu1 %v21883_v8  ;;  %12638 = vmatpush1.msra.mxu0 %v21842_v53 }
 0xaea   :  { %12771 = vmatpush1.msra.mxu1 %v21897_v34  ;;  %12641 = vmatprep.subr.mxu0 %v21858_v25  ;;  %v24637_v34 = vld [vmem:[#allocation40_spill] sm:$0xff] }
 0xaeb   :  { %12773 = vmatprep.subr.mxu1 %v21908_v15  ;;  %12644 = vmatpush1.msra.mxu0 %v21870_v31 }
 0xaec   :  { %12775 = vmatpush1.msra.mxu1 %v21921_v49  ;;  %12647 = vmatprep.subr.mxu0 %v21881_v9 }
 0xaed   :  { %12777 = vmatprep.subr.mxu1 %v21931_v16  ;;  %12650 = vmatpush1.msra.mxu0 %v21895_v50 }
 0xaee   :  { %12779 = vmatpush1.msra.mxu1 %v21941_v48  ;;  %12812 = vmatprep.mubr.f32.mxu1 %v23244_v20 }
 0xaef   :  { %12653 = vmatprep.subr.mxu0 %v21906_v38  ;;  %12816 = vmatmul.mubr.f32.vlgmr.msra.gmra.mxu1 %v24637_v34 }
 0xaf0   :  { %12991 = vmatprep.subr.mxu1 %v21484_v37  ;;  %12656 = vmatpush1.msra.mxu0 %v21919_v14  ;;  %v24638_v37 = vld [vmem:[#allocation6_spill] sm:$0xff] }
 0xaf1   :  { %12993 = vmatpush1.msra.mxu1 %v21498_v35  ;;  %12659 = vmatprep.subr.mxu0 %v21929_v57  ;;  %v24639_v35 = vand.u32 4294901760, %v21515_v44  ;;  %v24643_v44 = vand.u32 4294901760, %v24622_v30 }
 0xaf2   :  { %12995 = vmatprep.subr.mxu1 %v21506_v4  ;;  %12662 = vmatpush1.msra.mxu0 %v21939_v41  ;;  %v24640_v4 = vand.u32 4294901760, %v24619_v13 }
 0xaf3   :  { %12997 = vmatpush1.msra.mxu1 %v21517_v3  ;;  %12665 = vmatprep.subr.mxu0 %v21949_v63  ;;  %v24641_v3 = vand.u32 4294901760, %v24620_v18 }
 0xaf4   :  { %12999 = vmatprep.subr.mxu1 %v21525_v27  ;;  %12668 = vmatpush1.msra.mxu0 %v21957_v23  ;;  %v24642_v27 = vand.u32 4294901760, %v24621_v45  ;;  %v24674_v45 = vld [vmem:[#allocation26_spill] sm:$0xff] }
 0xaf5   :  { %13001 = vmatpush1.msra.mxu1 %v21536_v54  ;;  %12671 = vmatprep.subr.mxu0 %v21965_v2  ;;  %v24644_v54 = vand.u32 4294901760, %v24623_v29 }
 0xaf6   :  { %13003 = vmatprep.subr.mxu1 %v21547_v47  ;;  %12674 = vmatpush1.msra.mxu0 %v21973_v1  ;;  %v24645_v47 = vand.u32 4294901760, %v24624_v6  ;;  %v11261_v6 = vld [vmem:[%s22220_s1] sm:$0xf]  ;;  %s13333_s1 = smov [#allocation2]  }
 0xaf7   :  { %12707 = vmatprep.mubr.f32.mxu0 %v23244_v20  ;;  %13005 = vmatpush1.msra.mxu1 %v21559_v40  ;;  %v24646_v40 = vand.u32 4294901760, %v24625_v0  ;;  %v24675_v0 = vld [vmem:[#allocation27_spill] sm:$0xff] }
 0xaf8   :  { %12710 = vmatmul.mubr.f32.vlgmr.msra.gmra.mxu0 %v24638_v37  ;;  %12825 = vmatprep.subr.mxu0 %v24639_v35  ;;  %v11299_v37 = vrot.slane %v11261_v6, %v24675_v0 }
 0xaf9   :  { %13007 = vmatprep.subr.mxu1 %v21570_v39  ;;  %12829 = vmatpush1.msra.mxu0 %v24640_v4  ;;  %v24647_v39 = vand.u32 4294901760, %v24626_v33 }
 0xafa   :  { %13009 = vmatpush1.msra.mxu1 %v21582_v52  ;;  %12833 = vmatprep.subr.mxu0 %v24641_v3  ;;  %v24649_v52 = vand.u32 4294901760, %v24628_v7 }
 0xafb   :  { %13011 = vmatprep.subr.mxu1 %v21594_v60  ;;  %12837 = vmatpush1.msra.mxu0 %v24642_v27  ;;  %v24650_v60 = vand.u32 4294901760, %v24629_v11 }
 0xafc   :  { %13013 = vmatpush1.msra.mxu1 %v21611_v59  ;;  %12841 = vmatprep.subr.mxu0 %v24643_v44  ;;  %v24651_v59 = vand.u32 4294901760, %v24630_v21 }
 0xafd   :  { %13015 = vmatprep.subr.mxu1 %v21623_v43  ;;  %12845 = vmatpush1.msra.mxu0 %v24644_v54  ;;  %v24648_v43 = vand.u32 4294901760, %v24627_v19  ;;  %v11268_v19 = vpop.permute.xlu1 %11267 }
 0xafe   :  { %13017 = vmatpush1.msra.mxu1 %v21637_v61  ;;  %12849 = vmatprep.subr.mxu0 %v24645_v47  ;;  %v24653_v61 = vand.u32 4294901760, %v24631_v10 }
 0xaff   :  { %13019 = vmatprep.subr.mxu1 %v21654_v62  ;;  %12853 = vmatpush1.msra.mxu0 %v24646_v40  ;;  %v24652_v62 = vld [vmem:[#allocation16_spill] sm:$0xff] }
 0xb00   :  { %13021 = vmatpush1.msra.mxu1 %v21681_v58  ;;  %12857 = vmatprep.subr.mxu0 %v24647_v39  ;;  %v24654_v58 = vand.u32 4294901760, %v24632_v46  ;;  %v11303_v46 = vrot.slane %v11261_v6, %v24674_v45 }
 0xb01   :  { %13023 = vmatprep.subr.mxu1 %v21725_v5  ;;  %12861 = vmatpush1.msra.mxu0 %v24648_v43  ;;  %v24656_v5 = vand.u32 4294901760, %v24634_v26 }
 0xb02   :  { %13025 = vmatpush1.msra.mxu1 %v21755_v36  ;;  %12865 = vmatprep.subr.mxu0 %v24649_v52  ;;  %v24658_v36 = vand.u32 4294901760, %v24636_v24  ;;  %v24663_v24 = vand.u32 4294901760, %v21881_v9  ;;  %v24670_v9 = vand.u32 4294901760, %v21949_v63 }
 0xb03   :  { %13027 = vmatprep.subr.mxu1 %v21770_v55  ;;  %12869 = vmatpush1.msra.mxu0 %v24650_v60  ;;  %v24655_v55 = vand.u32 4294901760, %v24633_v56 }
 0xb04   :  { %13029 = vmatpush1.msra.mxu1 %v21786_v28  ;;  %12873 = vmatprep.subr.mxu0 %v24651_v59  ;;  %v24657_v28 = vand.u32 4294901760, %v24635_v51  ;;  %v24662_v51 = vand.u32 4294901760, %v21870_v31  ;;  %v24667_v31 = vand.u32 4294901760, %v21919_v14  ;;  %v24673_v14 = vand.u32 4294901760, %v21973_v1 }
 0xb05   :  { %13031 = vmatprep.subr.mxu1 %v24652_v62  ;;  %12877 = vmatpush1.msra.mxu0 %v24653_v61 }
 0xb06   :  { %13033 = vmatpush1.msra.mxu1 %v21816_v12  ;;  %12881 = vmatprep.subr.mxu0 %v24654_v58  ;;  %v24659_v12 = vand.u32 4294901760, %v21842_v53  ;;  %v24664_v53 = vand.u32 4294901760, %v21895_v50  ;;  %v24669_v50 = vand.u32 4294901760, %v21939_v41 }
 0xb07   :  { %13035 = vmatprep.subr.mxu1 %v21832_v42  ;;  %12885 = vmatpush1.msra.mxu0 %v24655_v55  ;;  %v24660_v42 = vld [vmem:[#allocation43_spill] sm:$0xff] }
 0xb08   :  { %13037 = vmatpush1.msra.mxu1 %v21844_v22  ;;  %12889 = vmatprep.subr.mxu0 %v24656_v5  ;;  %v24661_v22 = vand.u32 4294901760, %v21858_v25  ;;  %v24665_v25 = vand.u32 4294901760, %v21906_v38 }
 0xb09   :  { %13039 = vmatprep.subr.mxu1 %v21860_v17  ;;  %12893 = vmatpush1.msra.mxu0 %v24657_v28  ;;  %v24666_v17 = vld [vmem:[#allocation7_spill] sm:$0xff]  ;;  %v24676_v28 = vld [vmem:[#allocation29_spill] sm:$0xff] }
 0xb0a   :  { %13041 = vmatpush1.msra.mxu1 %v21872_v32  ;;  %12897 = vmatprep.subr.mxu0 %v24658_v36  ;;  %v24668_v32 = vand.u32 4294901760, %v21929_v57 }
 0xb0b   :  { %13043 = vmatprep.subr.mxu1 %v21883_v8  ;;  %12901 = vmatpush1.msra.mxu0 %v24659_v12  ;;  %v24671_v8 = vand.u32 4294901760, %v21957_v23 }
 0xb0c   :  { %13045 = vmatpush1.msra.mxu1 %v24660_v42  ;;  %12905 = vmatprep.subr.mxu0 %v24661_v22  ;;  %v24677_v22 = vld [vmem:[#allocation28_spill] sm:$0xff] }
 0xb0d   :  { %13047 = vmatprep.subr.mxu1 %v21908_v15  ;;  %12909 = vmatpush1.msra.mxu0 %v24662_v51  ;;  %v24672_v15 = vand.u32 4294901760, %v21965_v2  ;;  %v11264_v2 = vld [vmem:[%s22221_s2] sm:$0xf]  ;;  %s13133_s2 = sshll.u32 %s13333_s1, 4  ;;  %s13134_s2 = int_to_ptr.vmem [resolvable:$true] %s13133_s2 }
 0xb0e   :  { %13049 = vmatpush1.msra.mxu1 %v21921_v49  ;;  %12913 = vmatprep.subr.mxu0 %v24663_v24  ;;  %v11278_v30 = vrot.slane %v11264_v2, %v24674_v45  ;;  %v11274_v33 = vrot.slane %v11264_v2, %v24675_v0  ;;  %v11282_v36 = vrot.slane %v11264_v2, %v24676_v28  ;;  %s13309_s24 = scalar_lea.vmem %s13134_s2, 128  ;;  %p13314_p1 = scmp.lt.s32.totalorder %s13134_s2, %s13134_s2 }
 0xb0f   :  { %13051 = vmatprep.subr.mxu1 %v21931_v16  ;;  %12917 = vmatpush1.msra.mxu0 %v24664_v53  ;;  %v11286_v51 = vrot.slane %v11264_v2, %v24677_v22  ;;  %p13310_p0 = scmp.ne.s32.totalorder %s13134_s2, %s13309_s24  ;;  %p13315_p2 = scmp.lt.s32.totalorder %s13309_s24, %s13309_s24 }
 0xb10   :  { %13053 = vmatpush1.msra.mxu1 %v21941_v48  ;;  %13086 = vmatprep.mubr.f32.mxu1 %v23244_v20  ;;  %v11292_v56 = vmul.f32 %v11278_v30, %v11268_v19  ;;  %v11291_v35 = vmul.f32 %v11274_v33, %v11268_v19 }
 0xb11   :  { %12921 = vmatprep.subr.mxu0 %v24665_v25  ;;  %13088 = vmatmul.mubr.f32.vlgmr.msra.gmra.mxu1 %v24666_v17  ;;  %p13316_p3 = por %p13315_p2, %p13314_p1 }
 0xb12   :  { %12925 = vmatpush1.msra.mxu0 %v24667_v31  ;;  %12982 = vmatprep.mubr.f32.mxu0 %v23244_v20  ;;  %v11317_v44 = vadd.f32 %v11303_v46, %v11292_v56  ;;  %v11316_v54 = vadd.f32 %v11299_v37, %v11291_v35  ;;  %v11307_v31 = vrot.slane %v11261_v6, %v24676_v28 }
 0xb13   :  { %12929 = vmatprep.subr.mxu0 %v24668_v32  ;;  %v11293_v32 = vmul.f32 %v11282_v36, %v11268_v19  ;;  %p13317_p4 = pnand %p13316_p3, %p13310_p0 }
 0xb14   :  { %12933 = vmatpush1.msra.mxu0 %v24669_v50 }
 0xb15   :  { %12937 = vmatprep.subr.mxu0 %v24670_v9  ;;  %v11311_v9 = vrot.slane %v11261_v6, %v24677_v22 }
 0xb16   :  { %12941 = vmatpush1.msra.mxu0 %v24671_v8 }
 0xb17   :  { %12945 = vmatprep.subr.mxu0 %v24672_v15 }
 0xb18   :  { %12949 = vmatpush1.msra.mxu0 %v24673_v14  ;;  %v11294_v14 = vmul.f32 %v11286_v51, %v11268_v19 }
 0xb19   :  { %12984 = vmatmul.mubr.f32.vlgmr.msra.gmra.mxu0 %v24666_v17 }
 0xb28   :  { %v11719_v34 = vpop.f32.mrf.mxu1 }
 0xb2a   :  { %v11721_v41 = vpop.f32.mrf.mxu1 }
 0xb30   :  { %v11487_v20 = vpop.f32.mrf.mxu0 }
 0xb31   :  { %v11720_v63 = vadd.f32 %v11719_v34, %v11487_v20 }
 0xb32   :  { %v11489_v57 = vpop.f32.mrf.mxu0 }
 0xb33   :  { %v11722_v16 = vadd.f32 %v11721_v41, %v11489_v57 }
 0xb48   :  { %v11962_v48 = vpop.f32.mrf.mxu1 }
 0xb4a   :  { %v11964_v1 = vpop.f32.mrf.mxu1 }
 0xb51   :  { %v11856_v38 = vpop.f32.mrf.mxu0 }
 0xb52   :  { %v11857_v13 = vadd.f32 %v11856_v38, %v11720_v63 }
 0xb53   :  { %v11858_v49 = vpop.f32.mrf.mxu0 }
 0xb54   :  { %v11859_v23 = vadd.f32 %v11858_v49, %v11722_v16  ;;  %v11963_v11 = vadd.f32 %v11962_v48, %v11857_v13  ;;  %v11318_v49 = vadd.f32 %v11307_v31, %v11293_v32 }
 0xb56   :  { %v11965_v29 = vadd.f32 %v11964_v1, %v11859_v23 }
 0xb6a   :  { %v12234_v7 = vpop.f32.mrf.mxu1 }
 0xb6c   :  { %v12236_v4 = vpop.f32.mrf.mxu1 }
 0xb76   :  { %v12130_v26 = vpop.f32.mrf.mxu0 }
 0xb77   :  { %v12131_v10 = vadd.f32 %v12130_v26, %v11963_v11  ;;  %v11319_v26 = vadd.f32 %v11311_v9, %v11294_v14 }
 0xb78   :  { %v12132_v18 = vpop.f32.mrf.mxu0 }
 0xb79   :  { %v12133_v21 = vadd.f32 %v12132_v18, %v11965_v29  ;;  %v12235_v27 = vadd.f32 %v12234_v7, %v12131_v10  ;;  %v24678_v29 = vld [vmem:[#allocation12_spill] sm:$0xff] }
 0xb7b   :  { %v12237_v3 = vadd.f32 %v12236_v4, %v12133_v21  ;;  %v13094_v40 = vadd.f32 %v12235_v27, %v11316_v54 }
 0xb7d   :  { %v13095_v47 = vadd.f32 %v12237_v3, %v11317_v44  ;;  %v13176_v43 = vmul.f32 -1.442695, %v13094_v40 }
 0xb7f   :  { %v13178_v39 = vmul.f32 -1.442695, %v13095_v47 }
 0xb81   :  { %13293 = vpow2.f32 %v13178_v39 }
 0xb82   :  { %13295 = vpow2.f32 %v13176_v43 }
 0xb8c   :  { %v12574_v60 = vpop.f32.mrf.mxu1 }
 0xb8e   :  { %v12576_v61 = vpop.f32.mrf.mxu1  ;;  %v13294_v53 = vpop.eup %13293 }
 0xb8f   :  { %v13296_v17 = vpop.eup %13295  ;;  %v13114_v20 = vadd.f32 1.0, %v13294_v53 }
 0xb90   :  { %v13101_v38 = vadd.f32 1.0, %v13296_v17 }
 0xb91   :  { %13297 = vrcp.f32 %v13114_v20 }
 0xb92   :  { %13299 = vrcp.f32 %v13101_v38 }
 0xb96   :  { %v12342_v52 = vpop.f32.mrf.mxu0 }
 0xb97   :  { %v12575_v58 = vadd.f32 %v12574_v60, %v12342_v52 }
 0xb98   :  { %v12344_v59 = vpop.f32.mrf.mxu0 }
 0xb99   :  { %v12577_v12 = vadd.f32 %v12576_v61, %v12344_v59 }
 0xb9e   :  { %v13298_v18 = vpop.eup %13297 }
 0xb9f   :  { %v13300_v45 = vpop.eup %13299  ;;  %v13117_v6 = vmul.f32 %v13298_v18, %v24678_v29 }
 0xbaf   :  { %v12817_v55 = vpop.f32.mrf.mxu1 }
 0xbb1   :  { %v12819_v25 = vpop.f32.mrf.mxu1 }
 0xbb8   :  { %v12711_v62 = vpop.f32.mrf.mxu0 }
 0xbb9   :  { %v12712_v42 = vadd.f32 %v12711_v62, %v12575_v58 }
 0xbba   :  { %v12713_v5 = vpop.f32.mrf.mxu0 }
 0xbbb   :  { %v12714_v24 = vadd.f32 %v12713_v5, %v12577_v12  ;;  %v12818_v50 = vadd.f32 %v12817_v55, %v12712_v42 }
 0xbbd   :  { %v12820_v34 = vadd.f32 %v12819_v25, %v12714_v24 }
 0xbd1   :  { %v13089_v8 = vpop.f32.mrf.mxu1 }
 0xbd3   :  { %v13091_v48 = vpop.f32.mrf.mxu1 }
 0xbd9   :  { %v12985_v15 = vpop.f32.mrf.mxu0 }
 0xbda   :  { %v12986_v57 = vadd.f32 %v12985_v15, %v12818_v50 }
 0xbdb   :  { %v12987_v41 = vpop.f32.mrf.mxu0 }
 0xbdc   :  { %v13090_v16 = vadd.f32 %v13089_v8, %v12986_v57  ;;  %v12988_v63 = vadd.f32 %v12987_v41, %v12820_v34 }
 0xbde   :  { %v13096_v23 = vadd.f32 %v13090_v16, %v11318_v49  ;;  %v13092_v2 = vadd.f32 %v13091_v48, %v12988_v63 }
 0xbe0   :  { %13301 = vtanh.f32 %v13096_v23  ;;  %v13097_v13 = vadd.f32 %v13092_v2, %v11319_v26 }
 0xbe2   :  { %v13177_v1 = vmul.f32 -1.442695, %v13097_v13 }
 0xbe4   :  { %13303 = vpow2.f32 %v13177_v1 }
 0xbed   :  { %v13302_v30 = vpop.eup %13301 }
 0xbee   :  { %v13118_v0 = vmul.f32 %v13302_v30, %v13300_v45 }
 0xbf0   :  { %v13119_v33 = vadd.f32 %v13118_v0, %v13117_v6 }
 0xbf1   :  { %v13304_v19 = vpop.eup %13303 }
 0xbf2   :  { %v13108_v7 = vadd.f32 1.0, %v13304_v19  ;;  %13124 = vst [vmem:[#allocation2] sm:$0xff] %v13119_v33  ;;  %13305 = vtanh.f32 %v13119_v33 }
 0xbf3   :  { %13320 = shalt.err (!%p13317_p4)
}
 0xbf4   :  { %13136 = dma.vmem_to_hbm [thread:$0]  %s13134_s2, 128, %s22224_s5, [#allocation3]   ;;  %13307 = vrcp.f32 %v13108_v7 }
 0xbff   :  { %v13306_v11 = vpop.eup %13305 }
 0xc01   :  { %v13308_v21 = vpop.eup %13307 }
 0xc02   :  { %v13121_v10 = vmul.f32 %v13308_v21, %v13306_v11 }
 0xc04   :  { %13179 = vst [vmem:[%s22223_s4 + $0x38] sm:$0xff] %v13121_v10 }
 0xc05   :  { %13329 = dma.done.wait [#allocation3], 128  }
 0xc06   :  { %13330 = vsyncadd [#allocation3], 4294967168 }
 0xc07   :  { %13142 = vsyncpa [#allocation3], 1 }

</bundles_post_ra>
